<compile_context>
chip_gen: v7x
topology: tpu7x:2x2x1
jax: 0.10.0
libtpu: 0.0.40
codegen_flags: <defaults>
</compile_context>

<pallas_src>
import functools

import jax
import jax.numpy as jnp
from jax.experimental import pallas as pl
from jax.experimental.pallas import tpu as pltpu


# ---------------------------------------------------------------------------
# Synthetic lane-friendly 4-bit packing helpers.
# ---------------------------------------------------------------------------
def pack_block_size(out_features: int) -> int:
    """Packed-column block width of the synthetic layout (128 when possible)."""
    n_pack = out_features // 8
    pb = 128
    while pb > 1 and n_pack % pb != 0:
        pb //= 2
    return pb


def pack_q4(vals, out_features: int):
    """Pack int4 values (rows, out_features) -> int32 (rows, out_features//8)."""
    pb = pack_block_size(out_features)
    rows = vals.shape[0]
    n_pack = out_features // 8
    v = vals.reshape(rows, out_features // (8 * pb), 8, pb).astype(jnp.int32)
    packed = jnp.zeros((rows, out_features // (8 * pb), pb), jnp.int32)
    for s in range(8):
        packed = packed | (v[:, :, s, :] << (4 * s))
    return packed.reshape(rows, n_pack)


def _unpack_q4(packed, pack_block):
    """(..., W) packed int32 -> (..., 8*W) int32 nibbles in natural column order."""
    width = packed.shape[-1]
    chunks = []
    for b0 in range(0, width, pack_block):
        blk = packed[..., b0:b0 + pack_block]
        for s in range(8):
            # Arithmetic shift + mask is correct for the top nibble too.
            chunks.append((blk >> (4 * s)) & 0xF)
    return jnp.concatenate(chunks, axis=-1)


# ---------------------------------------------------------------------------
# Kernel.
# ---------------------------------------------------------------------------
def _q4_matmul_kernel(x_ref, qw_ref, qz_ref, sc_ref, *rest,
                      group_size, n_grp, pack_block, has_bias, folded):
    if has_bias:
        b_ref, o_ref, acc_ref = rest
    else:
        b_ref = None
        o_ref, acc_ref = rest

    k = pl.program_id(2)

    @pl.when(k == 0)
    def _init():
        acc_ref[...] = jnp.zeros_like(acc_ref)

    if folded:
        # Decode path (small M): fold zero-point & scale out of the (tk, tn)
        # dequant:  acc += sum_g [(x_g @ q_g) * s_g - rowsum(x_g) * (z_g * s_g)]
        # Per-group ref slices keep intermediates bounded at (gs, tn).
        acc = acc_ref[...]
        for g in range(n_grp):
            lo = g * group_size
            x_g = x_ref[:, lo:lo + group_size]                    # (tm, gs) bf16
            q_g = _unpack_q4(qw_ref[lo:lo + group_size, :], pack_block)
            q_g = q_g.astype(jnp.float32).astype(jnp.bfloat16)    # (gs, tn) bf16
            pg = jnp.dot(x_g, q_g, preferred_element_type=jnp.float32)
            s_g = sc_ref[g].astype(jnp.float32)                   # (1, tn)
            z_g = _unpack_q4(qz_ref[g], pack_block).astype(jnp.float32)
            xs_g = jnp.sum(x_g.astype(jnp.float32), axis=1, keepdims=True)
            acc = acc + pg * s_g - xs_g * (z_g * s_g)
        acc_ref[...] = acc
    else:
        # Prefill path: dequantize per group (bounded temps), assemble the
        # bf16 (tk, tn) tile, one deep-K dot for best MXU utilization.
        w_parts = []
        for g in range(n_grp):
            lo = g * group_size
            s_g = sc_ref[g].astype(jnp.float32)                   # (1, tn)
            z_g = _unpack_q4(qz_ref[g], pack_block).astype(jnp.float32)
            q_g = _unpack_q4(qw_ref[lo:lo + group_size, :], pack_block)
            w_g = (q_g.astype(jnp.float32) - z_g) * s_g
            w_parts.append(w_g.astype(jnp.bfloat16))
        w = jnp.concatenate(w_parts, axis=0)                      # (tk, tn) bf16
        acc_ref[...] += jnp.dot(x_ref[...], w, preferred_element_type=jnp.float32)

    @pl.when(k == pl.num_programs(2) - 1)
    def _finalize():
        res = acc_ref[...]
        if has_bias:
            res = res + b_ref[...]
        o_ref[...] = res.astype(o_ref.dtype)


# ---------------------------------------------------------------------------
# Wrapper.
# ---------------------------------------------------------------------------
def _round_up(a, b):
    return (a + b - 1) // b * b


def _choose_m_tile(m, cap=512):
    """Smallest multiple-of-8 tile that covers m with ceil(m/cap) tiles."""
    n_tiles = -(-m // cap)
    return _round_up(-(-m // n_tiles), 8)


def _choose_k_tile(in_features, group_size, target):
    if in_features <= target:
        return in_features
    t = (target // group_size) * group_size
    while t >= group_size:
        if in_features % t == 0 and t % 128 == 0:
            return t
        t -= group_size
    return in_features


def _choose_n_tile(out_features, pack_block, target):
    unit = 8 * pack_block
    if out_features <= target:
        return out_features
    t = (target // unit) * unit
    while t >= unit:
        if out_features % t == 0:
            return t
        t -= unit
    return out_features


def wq_linear_exllama_forward(x, qweight, qzeros, scales, bias, group_size):
    """Forward pass of WQLinear_Exllama: out = x @ dequant(qweight) + bias."""
    in_features, n_pack = qweight.shape
    out_features = scales.shape[1]
    if group_size == -1:
        group_size = in_features
    n_groups = in_features // group_size
    pack_block = pack_block_size(out_features)
    has_bias = bias is not None

    orig_dtype = x.dtype
    out_shape = x.shape[:-1] + (out_features,)

    # torch casts x to fp16 and runs an fp16 GEMM; here the MXU gets bf16
    # inputs and a f32 accumulator.
    x2 = x.reshape(-1, in_features).astype(jnp.bfloat16)
    M = x2.shape[0]

    folded = M <= 16   # decode-sized batch: use zero-point folding

    # ---- Tile selection (bounded VMEM, lane-dense N tiles). ----
    tm = _choose_m_tile(M, cap=512)
    m_pad = _round_up(M, tm)
    if m_pad != M:
        x2 = jnp.pad(x2, ((0, m_pad - M), (0, 0)))
    # Decode is unpack/HBM bound -> larger tiles to amortize per-step overhead.
    tk = _choose_k_tile(in_features, group_size, target=1024 if folded else 512)
    tn = _choose_n_tile(out_features, pack_block, target=2048 if folded else 1024)
    tp = tn // 8
    n_grp = tk // group_size
    grid = (m_pad // tm, out_features // tn, in_features // tk)

    # Per-(k, j) BlockSpecs for scales / zeros; the singleton middle dim keeps
    # the group axis out of the (8, 128) minor-dims block constraint.
    scales_b = scales.astype(jnp.bfloat16).reshape(n_groups, 1, out_features)
    qzeros_b = qzeros.reshape(n_groups, 1, n_pack)

    kernel = functools.partial(
        _q4_matmul_kernel,
        group_size=group_size, n_grp=n_grp, pack_block=pack_block,
        has_bias=has_bias, folded=folded)

    in_specs = [
        pl.BlockSpec((tm, tk), lambda i, j, k: (i, k)),               # x
        pl.BlockSpec((tk, tp), lambda i, j, k: (k, j)),               # qweight
        pl.BlockSpec((n_grp, 1, tp), lambda i, j, k: (k, 0, j)),      # qzeros
        pl.BlockSpec((n_grp, 1, tn), lambda i, j, k: (k, 0, j)),      # scales
    ]
    args = [x2, qweight, qzeros_b, scales_b]
    if has_bias:
        in_specs.append(pl.BlockSpec((1, tn), lambda i, j, k: (0, j)))  # bias
        args.append(bias.astype(jnp.float32).reshape(1, out_features))

    # Rough VMEM budget for the chosen tiles (double-buffered ins/outs, acc,
    # assembled bf16 tile, per-group dequant temps), clamped to a limit safe
    # on v5e/v6e/v7x.
    group_rows = min(group_size, tk)
    est = (2 * 2 * tm * tk            # x (double-buffered bf16)
           + 2 * 4 * tk * tp          # qweight
           + 2 * 4 * n_grp * tp       # qzeros
           + 2 * 2 * n_grp * tn       # scales
           + 2 * 2 * tm * tn          # out (bf16)
           + 4 * tm * tn              # f32 accumulator scratch
           + (2 * 4 * tn if has_bias else 0)
           + 2 * tk * tn              # assembled bf16 weight tile (prefill)
           + 12 * group_rows * tn     # per-group dequant temps
           + 4 * tm * tn)             # live f32 acc value
    vmem_limit = int(min(48 << 20, max(16 << 20, 2 * est)))

    out = pl.pallas_call(
        kernel,
        out_shape=jax.ShapeDtypeStruct((m_pad, out_features), jnp.bfloat16),
        grid_spec=pltpu.PrefetchScalarGridSpec(
            num_scalar_prefetch=0,
            grid=grid,
            in_specs=in_specs,
            out_specs=pl.BlockSpec((tm, tn), lambda i, j, k: (i, j)),
            scratch_shapes=[pltpu.VMEM((tm, tn), jnp.float32)],
        ),
        compiler_params=pltpu.CompilerParams(
            dimension_semantics=("parallel", "parallel", "arbitrary"),
            vmem_limit_bytes=vmem_limit),
    )(*args)

    out = out[:M].astype(jnp.float16)
    if orig_dtype != jnp.float16:
        out = out.astype(orig_dtype)
    return out.reshape(out_shape)


# ---------------------------------------------------------------------------
# Self-test.
# ---------------------------------------------------------------------------
if __name__ == "__main__":
    def reference(x, w_q4, z_q4, scales, bias, group_size):
        in_features, out_features = w_q4.shape
        g_idx = jnp.arange(in_features) // group_size
        w = (w_q4.astype(jnp.float32) - z_q4[g_idx].astype(jnp.float32)) \
            * scales[g_idx].astype(jnp.float32)
        out = x.reshape(-1, in_features).astype(jnp.float32) @ w
        if bias is not None:
            out = out + bias.astype(jnp.float32)
        return out.astype(jnp.float16).reshape(x.shape[:-1] + (out_features,))

    def run_case(key, batch, seq, in_features, out_features, group_size, use_bias):
        n_groups = in_features // group_size
        k1, k2, k3, k4, k5 = jax.random.split(key, 5)
        w_q4 = jax.random.randint(k1, (in_features, out_features), 0, 16, dtype=jnp.int32)
        z_q4 = jax.random.randint(k2, (n_groups, out_features), 0, 16, dtype=jnp.int32)
        scales = (jax.random.uniform(k3, (n_groups, out_features), jnp.float32,
                                     0.5, 1.5) * 0.01).astype(jnp.float16)
        bias = (jax.random.normal(k4, (out_features,), jnp.float32).astype(jnp.float16)
                if use_bias else None)
        x = jax.random.normal(k5, (batch, seq, in_features),
                              jnp.float32).astype(jnp.float16)

        qweight = pack_q4(w_q4, out_features)   # (in_features, out_features // 8)
        qzeros = pack_q4(z_q4, out_features)    # (n_groups,    out_features // 8)

        out = wq_linear_exllama_forward(x, qweight, qzeros, scales, bias, group_size)
        out = jax.block_until_ready(out)
        ref = reference(x, w_q4, z_q4, scales, bias, group_size)

        assert out.shape == (batch, seq, out_features)
        assert out.dtype == jnp.float16
        assert jnp.allclose(out.astype(jnp.float32), ref.astype(jnp.float32),
                            atol=5e-2, rtol=5e-2), "mismatch vs reference"

    key = jax.random.PRNGKey(0)
    k_a, k_b = jax.random.split(key)

    # Decode-sized M (zero-point-folding path), bias present, K accumulation
    # over two 1024-deep tiles (8 groups each), full-width N tile.
    run_case(k_a, batch=2, seq=8, in_features=2048, out_features=512,
             group_size=128, use_bias=True)

    # Prefill-sized M (direct dequant path), no bias, lane-width (128) pack
    # blocks, tiled N (two 1024-wide tiles), M padded 100 -> 104.
    run_case(k_b, batch=1, seq=100, in_features=512, out_features=2048,
             group_size=64, use_bias=False)

    print("KERNEL_OK")
</pallas_src>

<mosaic_0001>
module attributes {stable_mosaic.version = 11 : i64} {
  func.func @_q4_matmul_kernel(%arg0: i32, %arg1: i32, %arg2: i32, %arg3: memref<16x1024xbf16, #tpu.memory_space<vmem>>, %arg4: memref<1024x64xi32, #tpu.memory_space<vmem>>, %arg5: memref<8x1x64xi32, #tpu.memory_space<vmem>>, %arg6: memref<8x1x512xbf16, #tpu.memory_space<vmem>>, %arg7: memref<1x512xf32, #tpu.memory_space<vmem>>, %arg8: memref<16x512xbf16, #tpu.memory_space<vmem>>, %arg9: memref<16x512xf32, #tpu.memory_space<vmem>>) attributes {dimension_semantics = [#tpu.dimension_semantics<parallel>, #tpu.dimension_semantics<parallel>, #tpu.dimension_semantics<arbitrary>], iteration_bounds = array<i64: 1, 1, 2>, scalar_prefetch = 0 : i64, scratch_operands = 1 : i64, tpu.core_type = #tpu.core_type<tc>, window_params = [{transform_indices = @transform_0, window_bounds = array<i64: 16, 1024>}, {transform_indices = @transform_1, window_bounds = array<i64: 1024, 64>}, {transform_indices = @transform_2, window_bounds = array<i64: 8, 1, 64>}, {transform_indices = @transform_3, window_bounds = array<i64: 8, 1, 512>}, {transform_indices = @transform_4, window_bounds = array<i64: 1, 512>}, {transform_indices = @transform_5, window_bounds = array<i64: 16, 512>}]} {
    %c0_i32 = arith.constant 0 : i32
    %0 = arith.cmpi eq, %arg2, %c0_i32 : i32
    %1 = arith.extui %0 : i1 to i32
    %c0_i32_0 = arith.constant 0 : i32
    %2 = arith.cmpi ne, %1, %c0_i32_0 : i32
    scf.if %2 {
      %cst_334 = arith.constant 0.000000e+00 : f32
      %712 = vector.broadcast %cst_334 : f32 to vector<16x512xf32>
      %c0_335 = arith.constant 0 : index
      %c0_336 = arith.constant 0 : index
      %713 = vector.load %arg9[%c0_335, %c0_336] : memref<16x512xf32, #tpu.memory_space<vmem>>, vector<16x512xf32>
      tpu.vector_store %arg9[%c0_335, %c0_336], %712 {strides = array<i32>} : memref<16x512xf32, #tpu.memory_space<vmem>>, vector<16x512xf32>,
    } else {
    }
    %c0 = arith.constant 0 : index
    %c0_1 = arith.constant 0 : index
    %3 = vector.load %arg9[%c0, %c0_1] : memref<16x512xf32, #tpu.memory_space<vmem>>, vector<16x512xf32>
    %c0_2 = arith.constant 0 : index
    %c0_3 = arith.constant 0 : index
    %4 = vector.load %arg3[%c0_2, %c0_3] : memref<16x1024xbf16, #tpu.memory_space<vmem>>, vector<16x128xbf16>
    %c0_4 = arith.constant 0 : index
    %c0_5 = arith.constant 0 : index
    %5 = vector.load %arg4[%c0_4, %c0_5] : memref<1024x64xi32, #tpu.memory_space<vmem>>, vector<128x64xi32>
    %c0_i32_6 = arith.constant 0 : i32
    %6 = vector.broadcast %c0_i32_6 : i32 to vector<128x64xi32>
    %7 = arith.shrsi %5, %6 : vector<128x64xi32>
    %c15_i32 = arith.constant 15 : i32
    %8 = vector.broadcast %c15_i32 : i32 to vector<128x64xi32>
    %9 = arith.andi %7, %8 : vector<128x64xi32>
    %c4_i32 = arith.constant 4 : i32
    %10 = vector.broadcast %c4_i32 : i32 to vector<128x64xi32>
    %11 = arith.shrsi %5, %10 : vector<128x64xi32>
    %c15_i32_7 = arith.constant 15 : i32
    %12 = vector.broadcast %c15_i32_7 : i32 to vector<128x64xi32>
    %13 = arith.andi %11, %12 : vector<128x64xi32>
    %c8_i32 = arith.constant 8 : i32
    %14 = vector.broadcast %c8_i32 : i32 to vector<128x64xi32>
    %15 = arith.shrsi %5, %14 : vector<128x64xi32>
    %c15_i32_8 = arith.constant 15 : i32
    %16 = vector.broadcast %c15_i32_8 : i32 to vector<128x64xi32>
    %17 = arith.andi %15, %16 : vector<128x64xi32>
    %c12_i32 = arith.constant 12 : i32
    %18 = vector.broadcast %c12_i32 : i32 to vector<128x64xi32>
    %19 = arith.shrsi %5, %18 : vector<128x64xi32>
    %c15_i32_9 = arith.constant 15 : i32
    %20 = vector.broadcast %c15_i32_9 : i32 to vector<128x64xi32>
    %21 = arith.andi %19, %20 : vector<128x64xi32>
    %c16_i32 = arith.constant 16 : i32
    %22 = vector.broadcast %c16_i32 : i32 to vector<128x64xi32>
    %23 = arith.shrsi %5, %22 : vector<128x64xi32>
    %c15_i32_10 = arith.constant 15 : i32
    %24 = vector.broadcast %c15_i32_10 : i32 to vector<128x64xi32>
    %25 = arith.andi %23, %24 : vector<128x64xi32>
    %c20_i32 = arith.constant 20 : i32
    %26 = vector.broadcast %c20_i32 : i32 to vector<128x64xi32>
    %27 = arith.shrsi %5, %26 : vector<128x64xi32>
    %c15_i32_11 = arith.constant 15 : i32
    %28 = vector.broadcast %c15_i32_11 : i32 to vector<128x64xi32>
    %29 = arith.andi %27, %28 : vector<128x64xi32>
    %c24_i32 = arith.constant 24 : i32
    %30 = vector.broadcast %c24_i32 : i32 to vector<128x64xi32>
    %31 = arith.shrsi %5, %30 : vector<128x64xi32>
    %c15_i32_12 = arith.constant 15 : i32
    %32 = vector.broadcast %c15_i32_12 : i32 to vector<128x64xi32>
    %33 = arith.andi %31, %32 : vector<128x64xi32>
    %c28_i32 = arith.constant 28 : i32
    %34 = vector.broadcast %c28_i32 : i32 to vector<128x64xi32>
    %35 = arith.shrsi %5, %34 : vector<128x64xi32>
    %c15_i32_13 = arith.constant 15 : i32
    %36 = vector.broadcast %c15_i32_13 : i32 to vector<128x64xi32>
    %37 = arith.andi %35, %36 : vector<128x64xi32>
    %38 = tpu.concatenate %9, %13, %17, %21, %25, %29, %33, %37 in 1 : vector<128x64xi32>, vector<128x64xi32>, vector<128x64xi32>, vector<128x64xi32>, vector<128x64xi32>, vector<128x64xi32>, vector<128x64xi32>, vector<128x64xi32> -> vector<128x512xi32>
    %39 = arith.sitofp %38 : vector<128x512xi32> to vector<128x512xf32>
    %40 = arith.truncf %39 : vector<128x512xf32> to vector<128x512xbf16>
    %cst = arith.constant dense<0.000000e+00> : vector<16x512xf32>
    %41 = tpu.matmul %4, %40, %cst {dimension_numbers = #tpu.dot_dimension_numbers<[1], [0], [0], [1], [0, 0, 1, 1], [], []>} : vector<16x128xbf16>, vector<128x512xbf16>, vector<16x512xf32> -> vector<16x512xf32>
    %c0_14 = arith.constant 0 : index
    %c0_15 = arith.constant 0 : index
    %c0_16 = arith.constant 0 : index
    %42 = vector.load %arg6[%c0_14, %c0_15, %c0_16] : memref<8x1x512xbf16, #tpu.memory_space<vmem>>, vector<1x1x512xbf16>
    %43 = vector.shape_cast %42 : vector<1x1x512xbf16> to vector<1x512xbf16>
    %44 = arith.extf %43 : vector<1x512xbf16> to vector<1x512xf32>
    %c0_17 = arith.constant 0 : index
    %c0_18 = arith.constant 0 : index
    %c0_19 = arith.constant 0 : index
    %45 = vector.load %arg5[%c0_17, %c0_18, %c0_19] : memref<8x1x64xi32, #tpu.memory_space<vmem>>, vector<1x1x64xi32>
    %46 = vector.shape_cast %45 : vector<1x1x64xi32> to vector<1x64xi32>
    %c0_i32_20 = arith.constant 0 : i32
    %47 = vector.broadcast %c0_i32_20 : i32 to vector<1x64xi32>
    %48 = arith.shrsi %46, %47 : vector<1x64xi32>
    %c15_i32_21 = arith.constant 15 : i32
    %49 = vector.broadcast %c15_i32_21 : i32 to vector<1x64xi32>
    %50 = arith.andi %48, %49 : vector<1x64xi32>
    %c4_i32_22 = arith.constant 4 : i32
    %51 = vector.broadcast %c4_i32_22 : i32 to vector<1x64xi32>
    %52 = arith.shrsi %46, %51 : vector<1x64xi32>
    %c15_i32_23 = arith.constant 15 : i32
    %53 = vector.broadcast %c15_i32_23 : i32 to vector<1x64xi32>
    %54 = arith.andi %52, %53 : vector<1x64xi32>
    %c8_i32_24 = arith.constant 8 : i32
    %55 = vector.broadcast %c8_i32_24 : i32 to vector<1x64xi32>
    %56 = arith.shrsi %46, %55 : vector<1x64xi32>
    %c15_i32_25 = arith.constant 15 : i32
    %57 = vector.broadcast %c15_i32_25 : i32 to vector<1x64xi32>
    %58 = arith.andi %56, %57 : vector<1x64xi32>
    %c12_i32_26 = arith.constant 12 : i32
    %59 = vector.broadcast %c12_i32_26 : i32 to vector<1x64xi32>
    %60 = arith.shrsi %46, %59 : vector<1x64xi32>
    %c15_i32_27 = arith.constant 15 : i32
    %61 = vector.broadcast %c15_i32_27 : i32 to vector<1x64xi32>
    %62 = arith.andi %60, %61 : vector<1x64xi32>
    %c16_i32_28 = arith.constant 16 : i32
    %63 = vector.broadcast %c16_i32_28 : i32 to vector<1x64xi32>
    %64 = arith.shrsi %46, %63 : vector<1x64xi32>
    %c15_i32_29 = arith.constant 15 : i32
    %65 = vector.broadcast %c15_i32_29 : i32 to vector<1x64xi32>
    %66 = arith.andi %64, %65 : vector<1x64xi32>
    %c20_i32_30 = arith.constant 20 : i32
    %67 = vector.broadcast %c20_i32_30 : i32 to vector<1x64xi32>
    %68 = arith.shrsi %46, %67 : vector<1x64xi32>
    %c15_i32_31 = arith.constant 15 : i32
    %69 = vector.broadcast %c15_i32_31 : i32 to vector<1x64xi32>
    %70 = arith.andi %68, %69 : vector<1x64xi32>
    %c24_i32_32 = arith.constant 24 : i32
    %71 = vector.broadcast %c24_i32_32 : i32 to vector<1x64xi32>
    %72 = arith.shrsi %46, %71 : vector<1x64xi32>
    %c15_i32_33 = arith.constant 15 : i32
    %73 = vector.broadcast %c15_i32_33 : i32 to vector<1x64xi32>
    %74 = arith.andi %72, %73 : vector<1x64xi32>
    %c28_i32_34 = arith.constant 28 : i32
    %75 = vector.broadcast %c28_i32_34 : i32 to vector<1x64xi32>
    %76 = arith.shrsi %46, %75 : vector<1x64xi32>
    %c15_i32_35 = arith.constant 15 : i32
    %77 = vector.broadcast %c15_i32_35 : i32 to vector<1x64xi32>
    %78 = arith.andi %76, %77 : vector<1x64xi32>
    %79 = tpu.concatenate %50, %54, %58, %62, %66, %70, %74, %78 in 1 : vector<1x64xi32>, vector<1x64xi32>, vector<1x64xi32>, vector<1x64xi32>, vector<1x64xi32>, vector<1x64xi32>, vector<1x64xi32>, vector<1x64xi32> -> vector<1x512xi32>
    %80 = arith.sitofp %79 : vector<1x512xi32> to vector<1x512xf32>
    %81 = arith.extf %4 : vector<16x128xbf16> to vector<16x128xf32>
    %cst_36 = arith.constant dense<0.000000e+00> : vector<16xf32>
    %82 = vector.multi_reduction <add>, %81, %cst_36 [1] : vector<16x128xf32> to vector<16xf32>
    %83 = vector.shape_cast %82 : vector<16xf32> to vector<16x1xf32>
    %84 = vector.broadcast %44 : vector<1x512xf32> to vector<16x512xf32>
    %85 = arith.mulf %41, %84 : vector<16x512xf32>
    %86 = arith.addf %3, %85 : vector<16x512xf32>
    %87 = arith.mulf %80, %44 : vector<1x512xf32>
    %88 = vector.broadcast %83 : vector<16x1xf32> to vector<16x512xf32>
    %89 = vector.broadcast %87 : vector<1x512xf32> to vector<16x512xf32>
    %90 = arith.mulf %88, %89 : vector<16x512xf32>
    %91 = arith.subf %86, %90 : vector<16x512xf32>
    %c0_37 = arith.constant 0 : index
    %c128 = arith.constant 128 : index
    %92 = vector.load %arg3[%c0_37, %c128] : memref<16x1024xbf16, #tpu.memory_space<vmem>>, vector<16x128xbf16>
    %c128_38 = arith.constant 128 : index
    %c0_39 = arith.constant 0 : index
    %93 = vector.load %arg4[%c128_38, %c0_39] : memref<1024x64xi32, #tpu.memory_space<vmem>>, vector<128x64xi32>
    %c0_i32_40 = arith.constant 0 : i32
    %94 = vector.broadcast %c0_i32_40 : i32 to vector<128x64xi32>
    %95 = arith.shrsi %93, %94 : vector<128x64xi32>
    %c15_i32_41 = arith.constant 15 : i32
    %96 = vector.broadcast %c15_i32_41 : i32 to vector<128x64xi32>
    %97 = arith.andi %95, %96 : vector<128x64xi32>
    %c4_i32_42 = arith.constant 4 : i32
    %98 = vector.broadcast %c4_i32_42 : i32 to vector<128x64xi32>
    %99 = arith.shrsi %93, %98 : vector<128x64xi32>
    %c15_i32_43 = arith.constant 15 : i32
    %100 = vector.broadcast %c15_i32_43 : i32 to vector<128x64xi32>
    %101 = arith.andi %99, %100 : vector<128x64xi32>
    %c8_i32_44 = arith.constant 8 : i32
    %102 = vector.broadcast %c8_i32_44 : i32 to vector<128x64xi32>
    %103 = arith.shrsi %93, %102 : vector<128x64xi32>
    %c15_i32_45 = arith.constant 15 : i32
    %104 = vector.broadcast %c15_i32_45 : i32 to vector<128x64xi32>
    %105 = arith.andi %103, %104 : vector<128x64xi32>
    %c12_i32_46 = arith.constant 12 : i32
    %106 = vector.broadcast %c12_i32_46 : i32 to vector<128x64xi32>
    %107 = arith.shrsi %93, %106 : vector<128x64xi32>
    %c15_i32_47 = arith.constant 15 : i32
    %108 = vector.broadcast %c15_i32_47 : i32 to vector<128x64xi32>
    %109 = arith.andi %107, %108 : vector<128x64xi32>
    %c16_i32_48 = arith.constant 16 : i32
    %110 = vector.broadcast %c16_i32_48 : i32 to vector<128x64xi32>
    %111 = arith.shrsi %93, %110 : vector<128x64xi32>
    %c15_i32_49 = arith.constant 15 : i32
    %112 = vector.broadcast %c15_i32_49 : i32 to vector<128x64xi32>
    %113 = arith.andi %111, %112 : vector<128x64xi32>
    %c20_i32_50 = arith.constant 20 : i32
    %114 = vector.broadcast %c20_i32_50 : i32 to vector<128x64xi32>
    %115 = arith.shrsi %93, %114 : vector<128x64xi32>
    %c15_i32_51 = arith.constant 15 : i32
    %116 = vector.broadcast %c15_i32_51 : i32 to vector<128x64xi32>
    %117 = arith.andi %115, %116 : vector<128x64xi32>
    %c24_i32_52 = arith.constant 24 : i32
    %118 = vector.broadcast %c24_i32_52 : i32 to vector<128x64xi32>
    %119 = arith.shrsi %93, %118 : vector<128x64xi32>
    %c15_i32_53 = arith.constant 15 : i32
    %120 = vector.broadcast %c15_i32_53 : i32 to vector<128x64xi32>
    %121 = arith.andi %119, %120 : vector<128x64xi32>
    %c28_i32_54 = arith.constant 28 : i32
    %122 = vector.broadcast %c28_i32_54 : i32 to vector<128x64xi32>
    %123 = arith.shrsi %93, %122 : vector<128x64xi32>
    %c15_i32_55 = arith.constant 15 : i32
    %124 = vector.broadcast %c15_i32_55 : i32 to vector<128x64xi32>
    %125 = arith.andi %123, %124 : vector<128x64xi32>
    %126 = tpu.concatenate %97, %101, %105, %109, %113, %117, %121, %125 in 1 : vector<128x64xi32>, vector<128x64xi32>, vector<128x64xi32>, vector<128x64xi32>, vector<128x64xi32>, vector<128x64xi32>, vector<128x64xi32>, vector<128x64xi32> -> vector<128x512xi32>
    %127 = arith.sitofp %126 : vector<128x512xi32> to vector<128x512xf32>
    %128 = arith.truncf %127 : vector<128x512xf32> to vector<128x512xbf16>
    %cst_56 = arith.constant dense<0.000000e+00> : vector<16x512xf32>
    %129 = tpu.matmul %92, %128, %cst_56 {dimension_numbers = #tpu.dot_dimension_numbers<[1], [0], [0], [1], [0, 0, 1, 1], [], []>} : vector<16x128xbf16>, vector<128x512xbf16>, vector<16x512xf32> -> vector<16x512xf32>
    %c1 = arith.constant 1 : index
    %c0_57 = arith.constant 0 : index
    %c0_58 = arith.constant 0 : index
    %130 = vector.load %arg6[%c1, %c0_57, %c0_58] : memref<8x1x512xbf16, #tpu.memory_space<vmem>>, vector<1x1x512xbf16>
    %131 = vector.shape_cast %130 : vector<1x1x512xbf16> to vector<1x512xbf16>
    %132 = arith.extf %131 : vector<1x512xbf16> to vector<1x512xf32>
    %c1_59 = arith.constant 1 : index
    %c0_60 = arith.constant 0 : index
    %c0_61 = arith.constant 0 : index
    %133 = vector.load %arg5[%c1_59, %c0_60, %c0_61] : memref<8x1x64xi32, #tpu.memory_space<vmem>>, vector<1x1x64xi32>
    %134 = vector.shape_cast %133 : vector<1x1x64xi32> to vector<1x64xi32>
    %c0_i32_62 = arith.constant 0 : i32
    %135 = vector.broadcast %c0_i32_62 : i32 to vector<1x64xi32>
    %136 = arith.shrsi %134, %135 : vector<1x64xi32>
    %c15_i32_63 = arith.constant 15 : i32
    %137 = vector.broadcast %c15_i32_63 : i32 to vector<1x64xi32>
    %138 = arith.andi %136, %137 : vector<1x64xi32>
    %c4_i32_64 = arith.constant 4 : i32
    %139 = vector.broadcast %c4_i32_64 : i32 to vector<1x64xi32>
    %140 = arith.shrsi %134, %139 : vector<1x64xi32>
    %c15_i32_65 = arith.constant 15 : i32
    %141 = vector.broadcast %c15_i32_65 : i32 to vector<1x64xi32>
    %142 = arith.andi %140, %141 : vector<1x64xi32>
    %c8_i32_66 = arith.constant 8 : i32
    %143 = vector.broadcast %c8_i32_66 : i32 to vector<1x64xi32>
    %144 = arith.shrsi %134, %143 : vector<1x64xi32>
    %c15_i32_67 = arith.constant 15 : i32
    %145 = vector.broadcast %c15_i32_67 : i32 to vector<1x64xi32>
    %146 = arith.andi %144, %145 : vector<1x64xi32>
    %c12_i32_68 = arith.constant 12 : i32
    %147 = vector.broadcast %c12_i32_68 : i32 to vector<1x64xi32>
    %148 = arith.shrsi %134, %147 : vector<1x64xi32>
    %c15_i32_69 = arith.constant 15 : i32
    %149 = vector.broadcast %c15_i32_69 : i32 to vector<1x64xi32>
    %150 = arith.andi %148, %149 : vector<1x64xi32>
    %c16_i32_70 = arith.constant 16 : i32
    %151 = vector.broadcast %c16_i32_70 : i32 to vector<1x64xi32>
    %152 = arith.shrsi %134, %151 : vector<1x64xi32>
    %c15_i32_71 = arith.constant 15 : i32
    %153 = vector.broadcast %c15_i32_71 : i32 to vector<1x64xi32>
    %154 = arith.andi %152, %153 : vector<1x64xi32>
    %c20_i32_72 = arith.constant 20 : i32
    %155 = vector.broadcast %c20_i32_72 : i32 to vector<1x64xi32>
    %156 = arith.shrsi %134, %155 : vector<1x64xi32>
    %c15_i32_73 = arith.constant 15 : i32
    %157 = vector.broadcast %c15_i32_73 : i32 to vector<1x64xi32>
    %158 = arith.andi %156, %157 : vector<1x64xi32>
    %c24_i32_74 = arith.constant 24 : i32
    %159 = vector.broadcast %c24_i32_74 : i32 to vector<1x64xi32>
    %160 = arith.shrsi %134, %159 : vector<1x64xi32>
    %c15_i32_75 = arith.constant 15 : i32
    %161 = vector.broadcast %c15_i32_75 : i32 to vector<1x64xi32>
    %162 = arith.andi %160, %161 : vector<1x64xi32>
    %c28_i32_76 = arith.constant 28 : i32
    %163 = vector.broadcast %c28_i32_76 : i32 to vector<1x64xi32>
    %164 = arith.shrsi %134, %163 : vector<1x64xi32>
    %c15_i32_77 = arith.constant 15 : i32
    %165 = vector.broadcast %c15_i32_77 : i32 to vector<1x64xi32>
    %166 = arith.andi %164, %165 : vector<1x64xi32>
    %167 = tpu.concatenate %138, %142, %146, %150, %154, %158, %162, %166 in 1 : vector<1x64xi32>, vector<1x64xi32>, vector<1x64xi32>, vector<1x64xi32>, vector<1x64xi32>, vector<1x64xi32>, vector<1x64xi32>, vector<1x64xi32> -> vector<1x512xi32>
    %168 = arith.sitofp %167 : vector<1x512xi32> to vector<1x512xf32>
    %169 = arith.extf %92 : vector<16x128xbf16> to vector<16x128xf32>
    %cst_78 = arith.constant dense<0.000000e+00> : vector<16xf32>
    %170 = vector.multi_reduction <add>, %169, %cst_78 [1] : vector<16x128xf32> to vector<16xf32>
    %171 = vector.shape_cast %170 : vector<16xf32> to vector<16x1xf32>
    %172 = vector.broadcast %132 : vector<1x512xf32> to vector<16x512xf32>
    %173 = arith.mulf %129, %172 : vector<16x512xf32>
    %174 = arith.addf %91, %173 : vector<16x512xf32>
    %175 = arith.mulf %168, %132 : vector<1x512xf32>
    %176 = vector.broadcast %171 : vector<16x1xf32> to vector<16x512xf32>
    %177 = vector.broadcast %175 : vector<1x512xf32> to vector<16x512xf32>
    %178 = arith.mulf %176, %177 : vector<16x512xf32>
    %179 = arith.subf %174, %178 : vector<16x512xf32>
    %c0_79 = arith.constant 0 : index
    %c256 = arith.constant 256 : index
    %180 = vector.load %arg3[%c0_79, %c256] : memref<16x1024xbf16, #tpu.memory_space<vmem>>, vector<16x128xbf16>
    %c256_80 = arith.constant 256 : index
    %c0_81 = arith.constant 0 : index
    %181 = vector.load %arg4[%c256_80, %c0_81] : memref<1024x64xi32, #tpu.memory_space<vmem>>, vector<128x64xi32>
    %c0_i32_82 = arith.constant 0 : i32
    %182 = vector.broadcast %c0_i32_82 : i32 to vector<128x64xi32>
    %183 = arith.shrsi %181, %182 : vector<128x64xi32>
    %c15_i32_83 = arith.constant 15 : i32
    %184 = vector.broadcast %c15_i32_83 : i32 to vector<128x64xi32>
    %185 = arith.andi %183, %184 : vector<128x64xi32>
    %c4_i32_84 = arith.constant 4 : i32
    %186 = vector.broadcast %c4_i32_84 : i32 to vector<128x64xi32>
    %187 = arith.shrsi %181, %186 : vector<128x64xi32>
    %c15_i32_85 = arith.constant 15 : i32
    %188 = vector.broadcast %c15_i32_85 : i32 to vector<128x64xi32>
    %189 = arith.andi %187, %188 : vector<128x64xi32>
    %c8_i32_86 = arith.constant 8 : i32
    %190 = vector.broadcast %c8_i32_86 : i32 to vector<128x64xi32>
    %191 = arith.shrsi %181, %190 : vector<128x64xi32>
    %c15_i32_87 = arith.constant 15 : i32
    %192 = vector.broadcast %c15_i32_87 : i32 to vector<128x64xi32>
    %193 = arith.andi %191, %192 : vector<128x64xi32>
    %c12_i32_88 = arith.constant 12 : i32
    %194 = vector.broadcast %c12_i32_88 : i32 to vector<128x64xi32>
    %195 = arith.shrsi %181, %194 : vector<128x64xi32>
    %c15_i32_89 = arith.constant 15 : i32
    %196 = vector.broadcast %c15_i32_89 : i32 to vector<128x64xi32>
    %197 = arith.andi %195, %196 : vector<128x64xi32>
    %c16_i32_90 = arith.constant 16 : i32
    %198 = vector.broadcast %c16_i32_90 : i32 to vector<128x64xi32>
    %199 = arith.shrsi %181, %198 : vector<128x64xi32>
    %c15_i32_91 = arith.constant 15 : i32
    %200 = vector.broadcast %c15_i32_91 : i32 to vector<128x64xi32>
    %201 = arith.andi %199, %200 : vector<128x64xi32>
    %c20_i32_92 = arith.constant 20 : i32
    %202 = vector.broadcast %c20_i32_92 : i32 to vector<128x64xi32>
    %203 = arith.shrsi %181, %202 : vector<128x64xi32>
    %c15_i32_93 = arith.constant 15 : i32
    %204 = vector.broadcast %c15_i32_93 : i32 to vector<128x64xi32>
    %205 = arith.andi %203, %204 : vector<128x64xi32>
    %c24_i32_94 = arith.constant 24 : i32
    %206 = vector.broadcast %c24_i32_94 : i32 to vector<128x64xi32>
    %207 = arith.shrsi %181, %206 : vector<128x64xi32>
    %c15_i32_95 = arith.constant 15 : i32
    %208 = vector.broadcast %c15_i32_95 : i32 to vector<128x64xi32>
    %209 = arith.andi %207, %208 : vector<128x64xi32>
    %c28_i32_96 = arith.constant 28 : i32
    %210 = vector.broadcast %c28_i32_96 : i32 to vector<128x64xi32>
    %211 = arith.shrsi %181, %210 : vector<128x64xi32>
    %c15_i32_97 = arith.constant 15 : i32
    %212 = vector.broadcast %c15_i32_97 : i32 to vector<128x64xi32>
    %213 = arith.andi %211, %212 : vector<128x64xi32>
    %214 = tpu.concatenate %185, %189, %193, %197, %201, %205, %209, %213 in 1 : vector<128x64xi32>, vector<128x64xi32>, vector<128x64xi32>, vector<128x64xi32>, vector<128x64xi32>, vector<128x64xi32>, vector<128x64xi32>, vector<128x64xi32> -> vector<128x512xi32>
    %215 = arith.sitofp %214 : vector<128x512xi32> to vector<128x512xf32>
    %216 = arith.truncf %215 : vector<128x512xf32> to vector<128x512xbf16>
    %cst_98 = arith.constant dense<0.000000e+00> : vector<16x512xf32>
    %217 = tpu.matmul %180, %216, %cst_98 {dimension_numbers = #tpu.dot_dimension_numbers<[1], [0], [0], [1], [0, 0, 1, 1], [], []>} : vector<16x128xbf16>, vector<128x512xbf16>, vector<16x512xf32> -> vector<16x512xf32>
    %c2 = arith.constant 2 : index
    %c0_99 = arith.constant 0 : index
    %c0_100 = arith.constant 0 : index
    %218 = vector.load %arg6[%c2, %c0_99, %c0_100] : memref<8x1x512xbf16, #tpu.memory_space<vmem>>, vector<1x1x512xbf16>
    %219 = vector.shape_cast %218 : vector<1x1x512xbf16> to vector<1x512xbf16>
    %220 = arith.extf %219 : vector<1x512xbf16> to vector<1x512xf32>
    %c2_101 = arith.constant 2 : index
    %c0_102 = arith.constant 0 : index
    %c0_103 = arith.constant 0 : index
    %221 = vector.load %arg5[%c2_101, %c0_102, %c0_103] : memref<8x1x64xi32, #tpu.memory_space<vmem>>, vector<1x1x64xi32>
    %222 = vector.shape_cast %221 : vector<1x1x64xi32> to vector<1x64xi32>
    %c0_i32_104 = arith.constant 0 : i32
    %223 = vector.broadcast %c0_i32_104 : i32 to vector<1x64xi32>
    %224 = arith.shrsi %222, %223 : vector<1x64xi32>
    %c15_i32_105 = arith.constant 15 : i32
    %225 = vector.broadcast %c15_i32_105 : i32 to vector<1x64xi32>
    %226 = arith.andi %224, %225 : vector<1x64xi32>
    %c4_i32_106 = arith.constant 4 : i32
    %227 = vector.broadcast %c4_i32_106 : i32 to vector<1x64xi32>
    %228 = arith.shrsi %222, %227 : vector<1x64xi32>
    %c15_i32_107 = arith.constant 15 : i32
    %229 = vector.broadcast %c15_i32_107 : i32 to vector<1x64xi32>
    %230 = arith.andi %228, %229 : vector<1x64xi32>
    %c8_i32_108 = arith.constant 8 : i32
    %231 = vector.broadcast %c8_i32_108 : i32 to vector<1x64xi32>
    %232 = arith.shrsi %222, %231 : vector<1x64xi32>
    %c15_i32_109 = arith.constant 15 : i32
    %233 = vector.broadcast %c15_i32_109 : i32 to vector<1x64xi32>
    %234 = arith.andi %232, %233 : vector<1x64xi32>
    %c12_i32_110 = arith.constant 12 : i32
    %235 = vector.broadcast %c12_i32_110 : i32 to vector<1x64xi32>
    %236 = arith.shrsi %222, %235 : vector<1x64xi32>
    %c15_i32_111 = arith.constant 15 : i32
    %237 = vector.broadcast %c15_i32_111 : i32 to vector<1x64xi32>
    %238 = arith.andi %236, %237 : vector<1x64xi32>
    %c16_i32_112 = arith.constant 16 : i32
    %239 = vector.broadcast %c16_i32_112 : i32 to vector<1x64xi32>
    %240 = arith.shrsi %222, %239 : vector<1x64xi32>
    %c15_i32_113 = arith.constant 15 : i32
    %241 = vector.broadcast %c15_i32_113 : i32 to vector<1x64xi32>
    %242 = arith.andi %240, %241 : vector<1x64xi32>
    %c20_i32_114 = arith.constant 20 : i32
    %243 = vector.broadcast %c20_i32_114 : i32 to vector<1x64xi32>
    %244 = arith.shrsi %222, %243 : vector<1x64xi32>
    %c15_i32_115 = arith.constant 15 : i32
    %245 = vector.broadcast %c15_i32_115 : i32 to vector<1x64xi32>
    %246 = arith.andi %244, %245 : vector<1x64xi32>
    %c24_i32_116 = arith.constant 24 : i32
    %247 = vector.broadcast %c24_i32_116 : i32 to vector<1x64xi32>
    %248 = arith.shrsi %222, %247 : vector<1x64xi32>
    %c15_i32_117 = arith.constant 15 : i32
    %249 = vector.broadcast %c15_i32_117 : i32 to vector<1x64xi32>
    %250 = arith.andi %248, %249 : vector<1x64xi32>
    %c28_i32_118 = arith.constant 28 : i32
    %251 = vector.broadcast %c28_i32_118 : i32 to vector<1x64xi32>
    %252 = arith.shrsi %222, %251 : vector<1x64xi32>
    %c15_i32_119 = arith.constant 15 : i32
    %253 = vector.broadcast %c15_i32_119 : i32 to vector<1x64xi32>
    %254 = arith.andi %252, %253 : vector<1x64xi32>
    %255 = tpu.concatenate %226, %230, %234, %238, %242, %246, %250, %254 in 1 : vector<1x64xi32>, vector<1x64xi32>, vector<1x64xi32>, vector<1x64xi32>, vector<1x64xi32>, vector<1x64xi32>, vector<1x64xi32>, vector<1x64xi32> -> vector<1x512xi32>
    %256 = arith.sitofp %255 : vector<1x512xi32> to vector<1x512xf32>
    %257 = arith.extf %180 : vector<16x128xbf16> to vector<16x128xf32>
    %cst_120 = arith.constant dense<0.000000e+00> : vector<16xf32>
    %258 = vector.multi_reduction <add>, %257, %cst_120 [1] : vector<16x128xf32> to vector<16xf32>
    %259 = vector.shape_cast %258 : vector<16xf32> to vector<16x1xf32>
    %260 = vector.broadcast %220 : vector<1x512xf32> to vector<16x512xf32>
    %261 = arith.mulf %217, %260 : vector<16x512xf32>
    %262 = arith.addf %179, %261 : vector<16x512xf32>
    %263 = arith.mulf %256, %220 : vector<1x512xf32>
    %264 = vector.broadcast %259 : vector<16x1xf32> to vector<16x512xf32>
    %265 = vector.broadcast %263 : vector<1x512xf32> to vector<16x512xf32>
    %266 = arith.mulf %264, %265 : vector<16x512xf32>
    %267 = arith.subf %262, %266 : vector<16x512xf32>
    %c0_121 = arith.constant 0 : index
    %c384 = arith.constant 384 : index
    %268 = vector.load %arg3[%c0_121, %c384] : memref<16x1024xbf16, #tpu.memory_space<vmem>>, vector<16x128xbf16>
    %c384_122 = arith.constant 384 : index
    %c0_123 = arith.constant 0 : index
    %269 = vector.load %arg4[%c384_122, %c0_123] : memref<1024x64xi32, #tpu.memory_space<vmem>>, vector<128x64xi32>
    %c0_i32_124 = arith.constant 0 : i32
    %270 = vector.broadcast %c0_i32_124 : i32 to vector<128x64xi32>
    %271 = arith.shrsi %269, %270 : vector<128x64xi32>
    %c15_i32_125 = arith.constant 15 : i32
    %272 = vector.broadcast %c15_i32_125 : i32 to vector<128x64xi32>
    %273 = arith.andi %271, %272 : vector<128x64xi32>
    %c4_i32_126 = arith.constant 4 : i32
    %274 = vector.broadcast %c4_i32_126 : i32 to vector<128x64xi32>
    %275 = arith.shrsi %269, %274 : vector<128x64xi32>
    %c15_i32_127 = arith.constant 15 : i32
    %276 = vector.broadcast %c15_i32_127 : i32 to vector<128x64xi32>
    %277 = arith.andi %275, %276 : vector<128x64xi32>
    %c8_i32_128 = arith.constant 8 : i32
    %278 = vector.broadcast %c8_i32_128 : i32 to vector<128x64xi32>
    %279 = arith.shrsi %269, %278 : vector<128x64xi32>
    %c15_i32_129 = arith.constant 15 : i32
    %280 = vector.broadcast %c15_i32_129 : i32 to vector<128x64xi32>
    %281 = arith.andi %279, %280 : vector<128x64xi32>
    %c12_i32_130 = arith.constant 12 : i32
    %282 = vector.broadcast %c12_i32_130 : i32 to vector<128x64xi32>
    %283 = arith.shrsi %269, %282 : vector<128x64xi32>
    %c15_i32_131 = arith.constant 15 : i32
    %284 = vector.broadcast %c15_i32_131 : i32 to vector<128x64xi32>
    %285 = arith.andi %283, %284 : vector<128x64xi32>
    %c16_i32_132 = arith.constant 16 : i32
    %286 = vector.broadcast %c16_i32_132 : i32 to vector<128x64xi32>
    %287 = arith.shrsi %269, %286 : vector<128x64xi32>
    %c15_i32_133 = arith.constant 15 : i32
    %288 = vector.broadcast %c15_i32_133 : i32 to vector<128x64xi32>
    %289 = arith.andi %287, %288 : vector<128x64xi32>
    %c20_i32_134 = arith.constant 20 : i32
    %290 = vector.broadcast %c20_i32_134 : i32 to vector<128x64xi32>
    %291 = arith.shrsi %269, %290 : vector<128x64xi32>
    %c15_i32_135 = arith.constant 15 : i32
    %292 = vector.broadcast %c15_i32_135 : i32 to vector<128x64xi32>
    %293 = arith.andi %291, %292 : vector<128x64xi32>
    %c24_i32_136 = arith.constant 24 : i32
    %294 = vector.broadcast %c24_i32_136 : i32 to vector<128x64xi32>
    %295 = arith.shrsi %269, %294 : vector<128x64xi32>
    %c15_i32_137 = arith.constant 15 : i32
    %296 = vector.broadcast %c15_i32_137 : i32 to vector<128x64xi32>
    %297 = arith.andi %295, %296 : vector<128x64xi32>
    %c28_i32_138 = arith.constant 28 : i32
    %298 = vector.broadcast %c28_i32_138 : i32 to vector<128x64xi32>
    %299 = arith.shrsi %269, %298 : vector<128x64xi32>
    %c15_i32_139 = arith.constant 15 : i32
    %300 = vector.broadcast %c15_i32_139 : i32 to vector<128x64xi32>
    %301 = arith.andi %299, %300 : vector<128x64xi32>
    %302 = tpu.concatenate %273, %277, %281, %285, %289, %293, %297, %301 in 1 : vector<128x64xi32>, vector<128x64xi32>, vector<128x64xi32>, vector<128x64xi32>, vector<128x64xi32>, vector<128x64xi32>, vector<128x64xi32>, vector<128x64xi32> -> vector<128x512xi32>
    %303 = arith.sitofp %302 : vector<128x512xi32> to vector<128x512xf32>
    %304 = arith.truncf %303 : vector<128x512xf32> to vector<128x512xbf16>
    %cst_140 = arith.constant dense<0.000000e+00> : vector<16x512xf32>
    %305 = tpu.matmul %268, %304, %cst_140 {dimension_numbers = #tpu.dot_dimension_numbers<[1], [0], [0], [1], [0, 0, 1, 1], [], []>} : vector<16x128xbf16>, vector<128x512xbf16>, vector<16x512xf32> -> vector<16x512xf32>
    %c3 = arith.constant 3 : index
    %c0_141 = arith.constant 0 : index
    %c0_142 = arith.constant 0 : index
    %306 = vector.load %arg6[%c3, %c0_141, %c0_142] : memref<8x1x512xbf16, #tpu.memory_space<vmem>>, vector<1x1x512xbf16>
    %307 = vector.shape_cast %306 : vector<1x1x512xbf16> to vector<1x512xbf16>
    %308 = arith.extf %307 : vector<1x512xbf16> to vector<1x512xf32>
    %c3_143 = arith.constant 3 : index
    %c0_144 = arith.constant 0 : index
    %c0_145 = arith.constant 0 : index
    %309 = vector.load %arg5[%c3_143, %c0_144, %c0_145] : memref<8x1x64xi32, #tpu.memory_space<vmem>>, vector<1x1x64xi32>
    %310 = vector.shape_cast %309 : vector<1x1x64xi32> to vector<1x64xi32>
    %c0_i32_146 = arith.constant 0 : i32
    %311 = vector.broadcast %c0_i32_146 : i32 to vector<1x64xi32>
    %312 = arith.shrsi %310, %311 : vector<1x64xi32>
    %c15_i32_147 = arith.constant 15 : i32
    %313 = vector.broadcast %c15_i32_147 : i32 to vector<1x64xi32>
    %314 = arith.andi %312, %313 : vector<1x64xi32>
    %c4_i32_148 = arith.constant 4 : i32
    %315 = vector.broadcast %c4_i32_148 : i32 to vector<1x64xi32>
    %316 = arith.shrsi %310, %315 : vector<1x64xi32>
    %c15_i32_149 = arith.constant 15 : i32
    %317 = vector.broadcast %c15_i32_149 : i32 to vector<1x64xi32>
    %318 = arith.andi %316, %317 : vector<1x64xi32>
    %c8_i32_150 = arith.constant 8 : i32
    %319 = vector.broadcast %c8_i32_150 : i32 to vector<1x64xi32>
    %320 = arith.shrsi %310, %319 : vector<1x64xi32>
    %c15_i32_151 = arith.constant 15 : i32
    %321 = vector.broadcast %c15_i32_151 : i32 to vector<1x64xi32>
    %322 = arith.andi %320, %321 : vector<1x64xi32>
    %c12_i32_152 = arith.constant 12 : i32
    %323 = vector.broadcast %c12_i32_152 : i32 to vector<1x64xi32>
    %324 = arith.shrsi %310, %323 : vector<1x64xi32>
    %c15_i32_153 = arith.constant 15 : i32
    %325 = vector.broadcast %c15_i32_153 : i32 to vector<1x64xi32>
    %326 = arith.andi %324, %325 : vector<1x64xi32>
    %c16_i32_154 = arith.constant 16 : i32
    %327 = vector.broadcast %c16_i32_154 : i32 to vector<1x64xi32>
    %328 = arith.shrsi %310, %327 : vector<1x64xi32>
    %c15_i32_155 = arith.constant 15 : i32
    %329 = vector.broadcast %c15_i32_155 : i32 to vector<1x64xi32>
    %330 = arith.andi %328, %329 : vector<1x64xi32>
    %c20_i32_156 = arith.constant 20 : i32
    %331 = vector.broadcast %c20_i32_156 : i32 to vector<1x64xi32>
    %332 = arith.shrsi %310, %331 : vector<1x64xi32>
    %c15_i32_157 = arith.constant 15 : i32
    %333 = vector.broadcast %c15_i32_157 : i32 to vector<1x64xi32>
    %334 = arith.andi %332, %333 : vector<1x64xi32>
    %c24_i32_158 = arith.constant 24 : i32
    %335 = vector.broadcast %c24_i32_158 : i32 to vector<1x64xi32>
    %336 = arith.shrsi %310, %335 : vector<1x64xi32>
    %c15_i32_159 = arith.constant 15 : i32
    %337 = vector.broadcast %c15_i32_159 : i32 to vector<1x64xi32>
    %338 = arith.andi %336, %337 : vector<1x64xi32>
    %c28_i32_160 = arith.constant 28 : i32
    %339 = vector.broadcast %c28_i32_160 : i32 to vector<1x64xi32>
    %340 = arith.shrsi %310, %339 : vector<1x64xi32>
    %c15_i32_161 = arith.constant 15 : i32
    %341 = vector.broadcast %c15_i32_161 : i32 to vector<1x64xi32>
    %342 = arith.andi %340, %341 : vector<1x64xi32>
    %343 = tpu.concatenate %314, %318, %322, %326, %330, %334, %338, %342 in 1 : vector<1x64xi32>, vector<1x64xi32>, vector<1x64xi32>, vector<1x64xi32>, vector<1x64xi32>, vector<1x64xi32>, vector<1x64xi32>, vector<1x64xi32> -> vector<1x512xi32>
    %344 = arith.sitofp %343 : vector<1x512xi32> to vector<1x512xf32>
    %345 = arith.extf %268 : vector<16x128xbf16> to vector<16x128xf32>
    %cst_162 = arith.constant dense<0.000000e+00> : vector<16xf32>
    %346 = vector.multi_reduction <add>, %345, %cst_162 [1] : vector<16x128xf32> to vector<16xf32>
    %347 = vector.shape_cast %346 : vector<16xf32> to vector<16x1xf32>
    %348 = vector.broadcast %308 : vector<1x512xf32> to vector<16x512xf32>
    %349 = arith.mulf %305, %348 : vector<16x512xf32>
    %350 = arith.addf %267, %349 : vector<16x512xf32>
    %351 = arith.mulf %344, %308 : vector<1x512xf32>
    %352 = vector.broadcast %347 : vector<16x1xf32> to vector<16x512xf32>
    %353 = vector.broadcast %351 : vector<1x512xf32> to vector<16x512xf32>
    %354 = arith.mulf %352, %353 : vector<16x512xf32>
    %355 = arith.subf %350, %354 : vector<16x512xf32>
    %c0_163 = arith.constant 0 : index
    %c512 = arith.constant 512 : index
    %356 = vector.load %arg3[%c0_163, %c512] : memref<16x1024xbf16, #tpu.memory_space<vmem>>, vector<16x128xbf16>
    %c512_164 = arith.constant 512 : index
    %c0_165 = arith.constant 0 : index
    %357 = vector.load %arg4[%c512_164, %c0_165] : memref<1024x64xi32, #tpu.memory_space<vmem>>, vector<128x64xi32>
    %c0_i32_166 = arith.constant 0 : i32
    %358 = vector.broadcast %c0_i32_166 : i32 to vector<128x64xi32>
    %359 = arith.shrsi %357, %358 : vector<128x64xi32>
    %c15_i32_167 = arith.constant 15 : i32
    %360 = vector.broadcast %c15_i32_167 : i32 to vector<128x64xi32>
    %361 = arith.andi %359, %360 : vector<128x64xi32>
    %c4_i32_168 = arith.constant 4 : i32
    %362 = vector.broadcast %c4_i32_168 : i32 to vector<128x64xi32>
    %363 = arith.shrsi %357, %362 : vector<128x64xi32>
    %c15_i32_169 = arith.constant 15 : i32
    %364 = vector.broadcast %c15_i32_169 : i32 to vector<128x64xi32>
    %365 = arith.andi %363, %364 : vector<128x64xi32>
    %c8_i32_170 = arith.constant 8 : i32
    %366 = vector.broadcast %c8_i32_170 : i32 to vector<128x64xi32>
    %367 = arith.shrsi %357, %366 : vector<128x64xi32>
    %c15_i32_171 = arith.constant 15 : i32
    %368 = vector.broadcast %c15_i32_171 : i32 to vector<128x64xi32>
    %369 = arith.andi %367, %368 : vector<128x64xi32>
    %c12_i32_172 = arith.constant 12 : i32
    %370 = vector.broadcast %c12_i32_172 : i32 to vector<128x64xi32>
    %371 = arith.shrsi %357, %370 : vector<128x64xi32>
    %c15_i32_173 = arith.constant 15 : i32
    %372 = vector.broadcast %c15_i32_173 : i32 to vector<128x64xi32>
    %373 = arith.andi %371, %372 : vector<128x64xi32>
    %c16_i32_174 = arith.constant 16 : i32
    %374 = vector.broadcast %c16_i32_174 : i32 to vector<128x64xi32>
    %375 = arith.shrsi %357, %374 : vector<128x64xi32>
    %c15_i32_175 = arith.constant 15 : i32
    %376 = vector.broadcast %c15_i32_175 : i32 to vector<128x64xi32>
    %377 = arith.andi %375, %376 : vector<128x64xi32>
    %c20_i32_176 = arith.constant 20 : i32
    %378 = vector.broadcast %c20_i32_176 : i32 to vector<128x64xi32>
    %379 = arith.shrsi %357, %378 : vector<128x64xi32>
    %c15_i32_177 = arith.constant 15 : i32
    %380 = vector.broadcast %c15_i32_177 : i32 to vector<128x64xi32>
    %381 = arith.andi %379, %380 : vector<128x64xi32>
    %c24_i32_178 = arith.constant 24 : i32
    %382 = vector.broadcast %c24_i32_178 : i32 to vector<128x64xi32>
    %383 = arith.shrsi %357, %382 : vector<128x64xi32>
    %c15_i32_179 = arith.constant 15 : i32
    %384 = vector.broadcast %c15_i32_179 : i32 to vector<128x64xi32>
    %385 = arith.andi %383, %384 : vector<128x64xi32>
    %c28_i32_180 = arith.constant 28 : i32
    %386 = vector.broadcast %c28_i32_180 : i32 to vector<128x64xi32>
    %387 = arith.shrsi %357, %386 : vector<128x64xi32>
    %c15_i32_181 = arith.constant 15 : i32
    %388 = vector.broadcast %c15_i32_181 : i32 to vector<128x64xi32>
    %389 = arith.andi %387, %388 : vector<128x64xi32>
    %390 = tpu.concatenate %361, %365, %369, %373, %377, %381, %385, %389 in 1 : vector<128x64xi32>, vector<128x64xi32>, vector<128x64xi32>, vector<128x64xi32>, vector<128x64xi32>, vector<128x64xi32>, vector<128x64xi32>, vector<128x64xi32> -> vector<128x512xi32>
    %391 = arith.sitofp %390 : vector<128x512xi32> to vector<128x512xf32>
    %392 = arith.truncf %391 : vector<128x512xf32> to vector<128x512xbf16>
    %cst_182 = arith.constant dense<0.000000e+00> : vector<16x512xf32>
    %393 = tpu.matmul %356, %392, %cst_182 {dimension_numbers = #tpu.dot_dimension_numbers<[1], [0], [0], [1], [0, 0, 1, 1], [], []>} : vector<16x128xbf16>, vector<128x512xbf16>, vector<16x512xf32> -> vector<16x512xf32>
    %c4 = arith.constant 4 : index
    %c0_183 = arith.constant 0 : index
    %c0_184 = arith.constant 0 : index
    %394 = vector.load %arg6[%c4, %c0_183, %c0_184] : memref<8x1x512xbf16, #tpu.memory_space<vmem>>, vector<1x1x512xbf16>
    %395 = vector.shape_cast %394 : vector<1x1x512xbf16> to vector<1x512xbf16>
    %396 = arith.extf %395 : vector<1x512xbf16> to vector<1x512xf32>
    %c4_185 = arith.constant 4 : index
    %c0_186 = arith.constant 0 : index
    %c0_187 = arith.constant 0 : index
    %397 = vector.load %arg5[%c4_185, %c0_186, %c0_187] : memref<8x1x64xi32, #tpu.memory_space<vmem>>, vector<1x1x64xi32>
    %398 = vector.shape_cast %397 : vector<1x1x64xi32> to vector<1x64xi32>
    %c0_i32_188 = arith.constant 0 : i32
    %399 = vector.broadcast %c0_i32_188 : i32 to vector<1x64xi32>
    %400 = arith.shrsi %398, %399 : vector<1x64xi32>
    %c15_i32_189 = arith.constant 15 : i32
    %401 = vector.broadcast %c15_i32_189 : i32 to vector<1x64xi32>
    %402 = arith.andi %400, %401 : vector<1x64xi32>
    %c4_i32_190 = arith.constant 4 : i32
    %403 = vector.broadcast %c4_i32_190 : i32 to vector<1x64xi32>
    %404 = arith.shrsi %398, %403 : vector<1x64xi32>
    %c15_i32_191 = arith.constant 15 : i32
    %405 = vector.broadcast %c15_i32_191 : i32 to vector<1x64xi32>
    %406 = arith.andi %404, %405 : vector<1x64xi32>
    %c8_i32_192 = arith.constant 8 : i32
    %407 = vector.broadcast %c8_i32_192 : i32 to vector<1x64xi32>
    %408 = arith.shrsi %398, %407 : vector<1x64xi32>
    %c15_i32_193 = arith.constant 15 : i32
    %409 = vector.broadcast %c15_i32_193 : i32 to vector<1x64xi32>
    %410 = arith.andi %408, %409 : vector<1x64xi32>
    %c12_i32_194 = arith.constant 12 : i32
    %411 = vector.broadcast %c12_i32_194 : i32 to vector<1x64xi32>
    %412 = arith.shrsi %398, %411 : vector<1x64xi32>
    %c15_i32_195 = arith.constant 15 : i32
    %413 = vector.broadcast %c15_i32_195 : i32 to vector<1x64xi32>
    %414 = arith.andi %412, %413 : vector<1x64xi32>
    %c16_i32_196 = arith.constant 16 : i32
    %415 = vector.broadcast %c16_i32_196 : i32 to vector<1x64xi32>
    %416 = arith.shrsi %398, %415 : vector<1x64xi32>
    %c15_i32_197 = arith.constant 15 : i32
    %417 = vector.broadcast %c15_i32_197 : i32 to vector<1x64xi32>
    %418 = arith.andi %416, %417 : vector<1x64xi32>
    %c20_i32_198 = arith.constant 20 : i32
    %419 = vector.broadcast %c20_i32_198 : i32 to vector<1x64xi32>
    %420 = arith.shrsi %398, %419 : vector<1x64xi32>
    %c15_i32_199 = arith.constant 15 : i32
    %421 = vector.broadcast %c15_i32_199 : i32 to vector<1x64xi32>
    %422 = arith.andi %420, %421 : vector<1x64xi32>
    %c24_i32_200 = arith.constant 24 : i32
    %423 = vector.broadcast %c24_i32_200 : i32 to vector<1x64xi32>
    %424 = arith.shrsi %398, %423 : vector<1x64xi32>
    %c15_i32_201 = arith.constant 15 : i32
    %425 = vector.broadcast %c15_i32_201 : i32 to vector<1x64xi32>
    %426 = arith.andi %424, %425 : vector<1x64xi32>
    %c28_i32_202 = arith.constant 28 : i32
    %427 = vector.broadcast %c28_i32_202 : i32 to vector<1x64xi32>
    %428 = arith.shrsi %398, %427 : vector<1x64xi32>
    %c15_i32_203 = arith.constant 15 : i32
    %429 = vector.broadcast %c15_i32_203 : i32 to vector<1x64xi32>
    %430 = arith.andi %428, %429 : vector<1x64xi32>
    %431 = tpu.concatenate %402, %406, %410, %414, %418, %422, %426, %430 in 1 : vector<1x64xi32>, vector<1x64xi32>, vector<1x64xi32>, vector<1x64xi32>, vector<1x64xi32>, vector<1x64xi32>, vector<1x64xi32>, vector<1x64xi32> -> vector<1x512xi32>
    %432 = arith.sitofp %431 : vector<1x512xi32> to vector<1x512xf32>
    %433 = arith.extf %356 : vector<16x128xbf16> to vector<16x128xf32>
    %cst_204 = arith.constant dense<0.000000e+00> : vector<16xf32>
    %434 = vector.multi_reduction <add>, %433, %cst_204 [1] : vector<16x128xf32> to vector<16xf32>
    %435 = vector.shape_cast %434 : vector<16xf32> to vector<16x1xf32>
    %436 = vector.broadcast %396 : vector<1x512xf32> to vector<16x512xf32>
    %437 = arith.mulf %393, %436 : vector<16x512xf32>
    %438 = arith.addf %355, %437 : vector<16x512xf32>
    %439 = arith.mulf %432, %396 : vector<1x512xf32>
    %440 = vector.broadcast %435 : vector<16x1xf32> to vector<16x512xf32>
    %441 = vector.broadcast %439 : vector<1x512xf32> to vector<16x512xf32>
    %442 = arith.mulf %440, %441 : vector<16x512xf32>
    %443 = arith.subf %438, %442 : vector<16x512xf32>
    %c0_205 = arith.constant 0 : index
    %c640 = arith.constant 640 : index
    %444 = vector.load %arg3[%c0_205, %c640] : memref<16x1024xbf16, #tpu.memory_space<vmem>>, vector<16x128xbf16>
    %c640_206 = arith.constant 640 : index
    %c0_207 = arith.constant 0 : index
    %445 = vector.load %arg4[%c640_206, %c0_207] : memref<1024x64xi32, #tpu.memory_space<vmem>>, vector<128x64xi32>
    %c0_i32_208 = arith.constant 0 : i32
    %446 = vector.broadcast %c0_i32_208 : i32 to vector<128x64xi32>
    %447 = arith.shrsi %445, %446 : vector<128x64xi32>
    %c15_i32_209 = arith.constant 15 : i32
    %448 = vector.broadcast %c15_i32_209 : i32 to vector<128x64xi32>
    %449 = arith.andi %447, %448 : vector<128x64xi32>
    %c4_i32_210 = arith.constant 4 : i32
    %450 = vector.broadcast %c4_i32_210 : i32 to vector<128x64xi32>
    %451 = arith.shrsi %445, %450 : vector<128x64xi32>
    %c15_i32_211 = arith.constant 15 : i32
    %452 = vector.broadcast %c15_i32_211 : i32 to vector<128x64xi32>
    %453 = arith.andi %451, %452 : vector<128x64xi32>
    %c8_i32_212 = arith.constant 8 : i32
    %454 = vector.broadcast %c8_i32_212 : i32 to vector<128x64xi32>
    %455 = arith.shrsi %445, %454 : vector<128x64xi32>
    %c15_i32_213 = arith.constant 15 : i32
    %456 = vector.broadcast %c15_i32_213 : i32 to vector<128x64xi32>
    %457 = arith.andi %455, %456 : vector<128x64xi32>
    %c12_i32_214 = arith.constant 12 : i32
    %458 = vector.broadcast %c12_i32_214 : i32 to vector<128x64xi32>
    %459 = arith.shrsi %445, %458 : vector<128x64xi32>
    %c15_i32_215 = arith.constant 15 : i32
    %460 = vector.broadcast %c15_i32_215 : i32 to vector<128x64xi32>
    %461 = arith.andi %459, %460 : vector<128x64xi32>
    %c16_i32_216 = arith.constant 16 : i32
    %462 = vector.broadcast %c16_i32_216 : i32 to vector<128x64xi32>
    %463 = arith.shrsi %445, %462 : vector<128x64xi32>
    %c15_i32_217 = arith.constant 15 : i32
    %464 = vector.broadcast %c15_i32_217 : i32 to vector<128x64xi32>
    %465 = arith.andi %463, %464 : vector<128x64xi32>
    %c20_i32_218 = arith.constant 20 : i32
    %466 = vector.broadcast %c20_i32_218 : i32 to vector<128x64xi32>
    %467 = arith.shrsi %445, %466 : vector<128x64xi32>
    %c15_i32_219 = arith.constant 15 : i32
    %468 = vector.broadcast %c15_i32_219 : i32 to vector<128x64xi32>
    %469 = arith.andi %467, %468 : vector<128x64xi32>
    %c24_i32_220 = arith.constant 24 : i32
    %470 = vector.broadcast %c24_i32_220 : i32 to vector<128x64xi32>
    %471 = arith.shrsi %445, %470 : vector<128x64xi32>
    %c15_i32_221 = arith.constant 15 : i32
    %472 = vector.broadcast %c15_i32_221 : i32 to vector<128x64xi32>
    %473 = arith.andi %471, %472 : vector<128x64xi32>
    %c28_i32_222 = arith.constant 28 : i32
    %474 = vector.broadcast %c28_i32_222 : i32 to vector<128x64xi32>
    %475 = arith.shrsi %445, %474 : vector<128x64xi32>
    %c15_i32_223 = arith.constant 15 : i32
    %476 = vector.broadcast %c15_i32_223 : i32 to vector<128x64xi32>
    %477 = arith.andi %475, %476 : vector<128x64xi32>
    %478 = tpu.concatenate %449, %453, %457, %461, %465, %469, %473, %477 in 1 : vector<128x64xi32>, vector<128x64xi32>, vector<128x64xi32>, vector<128x64xi32>, vector<128x64xi32>, vector<128x64xi32>, vector<128x64xi32>, vector<128x64xi32> -> vector<128x512xi32>
    %479 = arith.sitofp %478 : vector<128x512xi32> to vector<128x512xf32>
    %480 = arith.truncf %479 : vector<128x512xf32> to vector<128x512xbf16>
    %cst_224 = arith.constant dense<0.000000e+00> : vector<16x512xf32>
    %481 = tpu.matmul %444, %480, %cst_224 {dimension_numbers = #tpu.dot_dimension_numbers<[1], [0], [0], [1], [0, 0, 1, 1], [], []>} : vector<16x128xbf16>, vector<128x512xbf16>, vector<16x512xf32> -> vector<16x512xf32>
    %c5 = arith.constant 5 : index
    %c0_225 = arith.constant 0 : index
    %c0_226 = arith.constant 0 : index
    %482 = vector.load %arg6[%c5, %c0_225, %c0_226] : memref<8x1x512xbf16, #tpu.memory_space<vmem>>, vector<1x1x512xbf16>
    %483 = vector.shape_cast %482 : vector<1x1x512xbf16> to vector<1x512xbf16>
    %484 = arith.extf %483 : vector<1x512xbf16> to vector<1x512xf32>
    %c5_227 = arith.constant 5 : index
    %c0_228 = arith.constant 0 : index
    %c0_229 = arith.constant 0 : index
    %485 = vector.load %arg5[%c5_227, %c0_228, %c0_229] : memref<8x1x64xi32, #tpu.memory_space<vmem>>, vector<1x1x64xi32>
    %486 = vector.shape_cast %485 : vector<1x1x64xi32> to vector<1x64xi32>
    %c0_i32_230 = arith.constant 0 : i32
    %487 = vector.broadcast %c0_i32_230 : i32 to vector<1x64xi32>
    %488 = arith.shrsi %486, %487 : vector<1x64xi32>
    %c15_i32_231 = arith.constant 15 : i32
    %489 = vector.broadcast %c15_i32_231 : i32 to vector<1x64xi32>
    %490 = arith.andi %488, %489 : vector<1x64xi32>
    %c4_i32_232 = arith.constant 4 : i32
    %491 = vector.broadcast %c4_i32_232 : i32 to vector<1x64xi32>
    %492 = arith.shrsi %486, %491 : vector<1x64xi32>
    %c15_i32_233 = arith.constant 15 : i32
    %493 = vector.broadcast %c15_i32_233 : i32 to vector<1x64xi32>
    %494 = arith.andi %492, %493 : vector<1x64xi32>
    %c8_i32_234 = arith.constant 8 : i32
    %495 = vector.broadcast %c8_i32_234 : i32 to vector<1x64xi32>
    %496 = arith.shrsi %486, %495 : vector<1x64xi32>
    %c15_i32_235 = arith.constant 15 : i32
    %497 = vector.broadcast %c15_i32_235 : i32 to vector<1x64xi32>
    %498 = arith.andi %496, %497 : vector<1x64xi32>
    %c12_i32_236 = arith.constant 12 : i32
    %499 = vector.broadcast %c12_i32_236 : i32 to vector<1x64xi32>
    %500 = arith.shrsi %486, %499 : vector<1x64xi32>
    %c15_i32_237 = arith.constant 15 : i32
    %501 = vector.broadcast %c15_i32_237 : i32 to vector<1x64xi32>
    %502 = arith.andi %500, %501 : vector<1x64xi32>
    %c16_i32_238 = arith.constant 16 : i32
    %503 = vector.broadcast %c16_i32_238 : i32 to vector<1x64xi32>
    %504 = arith.shrsi %486, %503 : vector<1x64xi32>
    %c15_i32_239 = arith.constant 15 : i32
    %505 = vector.broadcast %c15_i32_239 : i32 to vector<1x64xi32>
    %506 = arith.andi %504, %505 : vector<1x64xi32>
    %c20_i32_240 = arith.constant 20 : i32
    %507 = vector.broadcast %c20_i32_240 : i32 to vector<1x64xi32>
    %508 = arith.shrsi %486, %507 : vector<1x64xi32>
    %c15_i32_241 = arith.constant 15 : i32
    %509 = vector.broadcast %c15_i32_241 : i32 to vector<1x64xi32>
    %510 = arith.andi %508, %509 : vector<1x64xi32>
    %c24_i32_242 = arith.constant 24 : i32
    %511 = vector.broadcast %c24_i32_242 : i32 to vector<1x64xi32>
    %512 = arith.shrsi %486, %511 : vector<1x64xi32>
    %c15_i32_243 = arith.constant 15 : i32
    %513 = vector.broadcast %c15_i32_243 : i32 to vector<1x64xi32>
    %514 = arith.andi %512, %513 : vector<1x64xi32>
    %c28_i32_244 = arith.constant 28 : i32
    %515 = vector.broadcast %c28_i32_244 : i32 to vector<1x64xi32>
    %516 = arith.shrsi %486, %515 : vector<1x64xi32>
    %c15_i32_245 = arith.constant 15 : i32
    %517 = vector.broadcast %c15_i32_245 : i32 to vector<1x64xi32>
    %518 = arith.andi %516, %517 : vector<1x64xi32>
    %519 = tpu.concatenate %490, %494, %498, %502, %506, %510, %514, %518 in 1 : vector<1x64xi32>, vector<1x64xi32>, vector<1x64xi32>, vector<1x64xi32>, vector<1x64xi32>, vector<1x64xi32>, vector<1x64xi32>, vector<1x64xi32> -> vector<1x512xi32>
    %520 = arith.sitofp %519 : vector<1x512xi32> to vector<1x512xf32>
    %521 = arith.extf %444 : vector<16x128xbf16> to vector<16x128xf32>
    %cst_246 = arith.constant dense<0.000000e+00> : vector<16xf32>
    %522 = vector.multi_reduction <add>, %521, %cst_246 [1] : vector<16x128xf32> to vector<16xf32>
    %523 = vector.shape_cast %522 : vector<16xf32> to vector<16x1xf32>
    %524 = vector.broadcast %484 : vector<1x512xf32> to vector<16x512xf32>
    %525 = arith.mulf %481, %524 : vector<16x512xf32>
    %526 = arith.addf %443, %525 : vector<16x512xf32>
    %527 = arith.mulf %520, %484 : vector<1x512xf32>
    %528 = vector.broadcast %523 : vector<16x1xf32> to vector<16x512xf32>
    %529 = vector.broadcast %527 : vector<1x512xf32> to vector<16x512xf32>
    %530 = arith.mulf %528, %529 : vector<16x512xf32>
    %531 = arith.subf %526, %530 : vector<16x512xf32>
    %c0_247 = arith.constant 0 : index
    %c768 = arith.constant 768 : index
    %532 = vector.load %arg3[%c0_247, %c768] : memref<16x1024xbf16, #tpu.memory_space<vmem>>, vector<16x128xbf16>
    %c768_248 = arith.constant 768 : index
    %c0_249 = arith.constant 0 : index
    %533 = vector.load %arg4[%c768_248, %c0_249] : memref<1024x64xi32, #tpu.memory_space<vmem>>, vector<128x64xi32>
    %c0_i32_250 = arith.constant 0 : i32
    %534 = vector.broadcast %c0_i32_250 : i32 to vector<128x64xi32>
    %535 = arith.shrsi %533, %534 : vector<128x64xi32>
    %c15_i32_251 = arith.constant 15 : i32
    %536 = vector.broadcast %c15_i32_251 : i32 to vector<128x64xi32>
    %537 = arith.andi %535, %536 : vector<128x64xi32>
    %c4_i32_252 = arith.constant 4 : i32
    %538 = vector.broadcast %c4_i32_252 : i32 to vector<128x64xi32>
    %539 = arith.shrsi %533, %538 : vector<128x64xi32>
    %c15_i32_253 = arith.constant 15 : i32
    %540 = vector.broadcast %c15_i32_253 : i32 to vector<128x64xi32>
    %541 = arith.andi %539, %540 : vector<128x64xi32>
    %c8_i32_254 = arith.constant 8 : i32
    %542 = vector.broadcast %c8_i32_254 : i32 to vector<128x64xi32>
    %543 = arith.shrsi %533, %542 : vector<128x64xi32>
    %c15_i32_255 = arith.constant 15 : i32
    %544 = vector.broadcast %c15_i32_255 : i32 to vector<128x64xi32>
    %545 = arith.andi %543, %544 : vector<128x64xi32>
    %c12_i32_256 = arith.constant 12 : i32
    %546 = vector.broadcast %c12_i32_256 : i32 to vector<128x64xi32>
    %547 = arith.shrsi %533, %546 : vector<128x64xi32>
    %c15_i32_257 = arith.constant 15 : i32
    %548 = vector.broadcast %c15_i32_257 : i32 to vector<128x64xi32>
    %549 = arith.andi %547, %548 : vector<128x64xi32>
    %c16_i32_258 = arith.constant 16 : i32
    %550 = vector.broadcast %c16_i32_258 : i32 to vector<128x64xi32>
    %551 = arith.shrsi %533, %550 : vector<128x64xi32>
    %c15_i32_259 = arith.constant 15 : i32
    %552 = vector.broadcast %c15_i32_259 : i32 to vector<128x64xi32>
    %553 = arith.andi %551, %552 : vector<128x64xi32>
    %c20_i32_260 = arith.constant 20 : i32
    %554 = vector.broadcast %c20_i32_260 : i32 to vector<128x64xi32>
    %555 = arith.shrsi %533, %554 : vector<128x64xi32>
    %c15_i32_261 = arith.constant 15 : i32
    %556 = vector.broadcast %c15_i32_261 : i32 to vector<128x64xi32>
    %557 = arith.andi %555, %556 : vector<128x64xi32>
    %c24_i32_262 = arith.constant 24 : i32
    %558 = vector.broadcast %c24_i32_262 : i32 to vector<128x64xi32>
    %559 = arith.shrsi %533, %558 : vector<128x64xi32>
    %c15_i32_263 = arith.constant 15 : i32
    %560 = vector.broadcast %c15_i32_263 : i32 to vector<128x64xi32>
    %561 = arith.andi %559, %560 : vector<128x64xi32>
    %c28_i32_264 = arith.constant 28 : i32
    %562 = vector.broadcast %c28_i32_264 : i32 to vector<128x64xi32>
    %563 = arith.shrsi %533, %562 : vector<128x64xi32>
    %c15_i32_265 = arith.constant 15 : i32
    %564 = vector.broadcast %c15_i32_265 : i32 to vector<128x64xi32>
    %565 = arith.andi %563, %564 : vector<128x64xi32>
    %566 = tpu.concatenate %537, %541, %545, %549, %553, %557, %561, %565 in 1 : vector<128x64xi32>, vector<128x64xi32>, vector<128x64xi32>, vector<128x64xi32>, vector<128x64xi32>, vector<128x64xi32>, vector<128x64xi32>, vector<128x64xi32> -> vector<128x512xi32>
    %567 = arith.sitofp %566 : vector<128x512xi32> to vector<128x512xf32>
    %568 = arith.truncf %567 : vector<128x512xf32> to vector<128x512xbf16>
    %cst_266 = arith.constant dense<0.000000e+00> : vector<16x512xf32>
    %569 = tpu.matmul %532, %568, %cst_266 {dimension_numbers = #tpu.dot_dimension_numbers<[1], [0], [0], [1], [0, 0, 1, 1], [], []>} : vector<16x128xbf16>, vector<128x512xbf16>, vector<16x512xf32> -> vector<16x512xf32>
    %c6 = arith.constant 6 : index
    %c0_267 = arith.constant 0 : index
    %c0_268 = arith.constant 0 : index
    %570 = vector.load %arg6[%c6, %c0_267, %c0_268] : memref<8x1x512xbf16, #tpu.memory_space<vmem>>, vector<1x1x512xbf16>
    %571 = vector.shape_cast %570 : vector<1x1x512xbf16> to vector<1x512xbf16>
    %572 = arith.extf %571 : vector<1x512xbf16> to vector<1x512xf32>
    %c6_269 = arith.constant 6 : index
    %c0_270 = arith.constant 0 : index
    %c0_271 = arith.constant 0 : index
    %573 = vector.load %arg5[%c6_269, %c0_270, %c0_271] : memref<8x1x64xi32, #tpu.memory_space<vmem>>, vector<1x1x64xi32>
    %574 = vector.shape_cast %573 : vector<1x1x64xi32> to vector<1x64xi32>
    %c0_i32_272 = arith.constant 0 : i32
    %575 = vector.broadcast %c0_i32_272 : i32 to vector<1x64xi32>
    %576 = arith.shrsi %574, %575 : vector<1x64xi32>
    %c15_i32_273 = arith.constant 15 : i32
    %577 = vector.broadcast %c15_i32_273 : i32 to vector<1x64xi32>
    %578 = arith.andi %576, %577 : vector<1x64xi32>
    %c4_i32_274 = arith.constant 4 : i32
    %579 = vector.broadcast %c4_i32_274 : i32 to vector<1x64xi32>
    %580 = arith.shrsi %574, %579 : vector<1x64xi32>
    %c15_i32_275 = arith.constant 15 : i32
    %581 = vector.broadcast %c15_i32_275 : i32 to vector<1x64xi32>
    %582 = arith.andi %580, %581 : vector<1x64xi32>
    %c8_i32_276 = arith.constant 8 : i32
    %583 = vector.broadcast %c8_i32_276 : i32 to vector<1x64xi32>
    %584 = arith.shrsi %574, %583 : vector<1x64xi32>
    %c15_i32_277 = arith.constant 15 : i32
    %585 = vector.broadcast %c15_i32_277 : i32 to vector<1x64xi32>
    %586 = arith.andi %584, %585 : vector<1x64xi32>
    %c12_i32_278 = arith.constant 12 : i32
    %587 = vector.broadcast %c12_i32_278 : i32 to vector<1x64xi32>
    %588 = arith.shrsi %574, %587 : vector<1x64xi32>
    %c15_i32_279 = arith.constant 15 : i32
    %589 = vector.broadcast %c15_i32_279 : i32 to vector<1x64xi32>
    %590 = arith.andi %588, %589 : vector<1x64xi32>
    %c16_i32_280 = arith.constant 16 : i32
    %591 = vector.broadcast %c16_i32_280 : i32 to vector<1x64xi32>
    %592 = arith.shrsi %574, %591 : vector<1x64xi32>
    %c15_i32_281 = arith.constant 15 : i32
    %593 = vector.broadcast %c15_i32_281 : i32 to vector<1x64xi32>
    %594 = arith.andi %592, %593 : vector<1x64xi32>
    %c20_i32_282 = arith.constant 20 : i32
    %595 = vector.broadcast %c20_i32_282 : i32 to vector<1x64xi32>
    %596 = arith.shrsi %574, %595 : vector<1x64xi32>
    %c15_i32_283 = arith.constant 15 : i32
    %597 = vector.broadcast %c15_i32_283 : i32 to vector<1x64xi32>
    %598 = arith.andi %596, %597 : vector<1x64xi32>
    %c24_i32_284 = arith.constant 24 : i32
    %599 = vector.broadcast %c24_i32_284 : i32 to vector<1x64xi32>
    %600 = arith.shrsi %574, %599 : vector<1x64xi32>
    %c15_i32_285 = arith.constant 15 : i32
    %601 = vector.broadcast %c15_i32_285 : i32 to vector<1x64xi32>
    %602 = arith.andi %600, %601 : vector<1x64xi32>
    %c28_i32_286 = arith.constant 28 : i32
    %603 = vector.broadcast %c28_i32_286 : i32 to vector<1x64xi32>
    %604 = arith.shrsi %574, %603 : vector<1x64xi32>
    %c15_i32_287 = arith.constant 15 : i32
    %605 = vector.broadcast %c15_i32_287 : i32 to vector<1x64xi32>
    %606 = arith.andi %604, %605 : vector<1x64xi32>
    %607 = tpu.concatenate %578, %582, %586, %590, %594, %598, %602, %606 in 1 : vector<1x64xi32>, vector<1x64xi32>, vector<1x64xi32>, vector<1x64xi32>, vector<1x64xi32>, vector<1x64xi32>, vector<1x64xi32>, vector<1x64xi32> -> vector<1x512xi32>
    %608 = arith.sitofp %607 : vector<1x512xi32> to vector<1x512xf32>
    %609 = arith.extf %532 : vector<16x128xbf16> to vector<16x128xf32>
    %cst_288 = arith.constant dense<0.000000e+00> : vector<16xf32>
    %610 = vector.multi_reduction <add>, %609, %cst_288 [1] : vector<16x128xf32> to vector<16xf32>
    %611 = vector.shape_cast %610 : vector<16xf32> to vector<16x1xf32>
    %612 = vector.broadcast %572 : vector<1x512xf32> to vector<16x512xf32>
    %613 = arith.mulf %569, %612 : vector<16x512xf32>
    %614 = arith.addf %531, %613 : vector<16x512xf32>
    %615 = arith.mulf %608, %572 : vector<1x512xf32>
    %616 = vector.broadcast %611 : vector<16x1xf32> to vector<16x512xf32>
    %617 = vector.broadcast %615 : vector<1x512xf32> to vector<16x512xf32>
    %618 = arith.mulf %616, %617 : vector<16x512xf32>
    %619 = arith.subf %614, %618 : vector<16x512xf32>
    %c0_289 = arith.constant 0 : index
    %c896 = arith.constant 896 : index
    %620 = vector.load %arg3[%c0_289, %c896] : memref<16x1024xbf16, #tpu.memory_space<vmem>>, vector<16x128xbf16>
    %c896_290 = arith.constant 896 : index
    %c0_291 = arith.constant 0 : index
    %621 = vector.load %arg4[%c896_290, %c0_291] : memref<1024x64xi32, #tpu.memory_space<vmem>>, vector<128x64xi32>
    %c0_i32_292 = arith.constant 0 : i32
    %622 = vector.broadcast %c0_i32_292 : i32 to vector<128x64xi32>
    %623 = arith.shrsi %621, %622 : vector<128x64xi32>
    %c15_i32_293 = arith.constant 15 : i32
    %624 = vector.broadcast %c15_i32_293 : i32 to vector<128x64xi32>
    %625 = arith.andi %623, %624 : vector<128x64xi32>
    %c4_i32_294 = arith.constant 4 : i32
    %626 = vector.broadcast %c4_i32_294 : i32 to vector<128x64xi32>
    %627 = arith.shrsi %621, %626 : vector<128x64xi32>
    %c15_i32_295 = arith.constant 15 : i32
    %628 = vector.broadcast %c15_i32_295 : i32 to vector<128x64xi32>
    %629 = arith.andi %627, %628 : vector<128x64xi32>
    %c8_i32_296 = arith.constant 8 : i32
    %630 = vector.broadcast %c8_i32_296 : i32 to vector<128x64xi32>
    %631 = arith.shrsi %621, %630 : vector<128x64xi32>
    %c15_i32_297 = arith.constant 15 : i32
    %632 = vector.broadcast %c15_i32_297 : i32 to vector<128x64xi32>
    %633 = arith.andi %631, %632 : vector<128x64xi32>
    %c12_i32_298 = arith.constant 12 : i32
    %634 = vector.broadcast %c12_i32_298 : i32 to vector<128x64xi32>
    %635 = arith.shrsi %621, %634 : vector<128x64xi32>
    %c15_i32_299 = arith.constant 15 : i32
    %636 = vector.broadcast %c15_i32_299 : i32 to vector<128x64xi32>
    %637 = arith.andi %635, %636 : vector<128x64xi32>
    %c16_i32_300 = arith.constant 16 : i32
    %638 = vector.broadcast %c16_i32_300 : i32 to vector<128x64xi32>
    %639 = arith.shrsi %621, %638 : vector<128x64xi32>
    %c15_i32_301 = arith.constant 15 : i32
    %640 = vector.broadcast %c15_i32_301 : i32 to vector<128x64xi32>
    %641 = arith.andi %639, %640 : vector<128x64xi32>
    %c20_i32_302 = arith.constant 20 : i32
    %642 = vector.broadcast %c20_i32_302 : i32 to vector<128x64xi32>
    %643 = arith.shrsi %621, %642 : vector<128x64xi32>
    %c15_i32_303 = arith.constant 15 : i32
    %644 = vector.broadcast %c15_i32_303 : i32 to vector<128x64xi32>
    %645 = arith.andi %643, %644 : vector<128x64xi32>
    %c24_i32_304 = arith.constant 24 : i32
    %646 = vector.broadcast %c24_i32_304 : i32 to vector<128x64xi32>
    %647 = arith.shrsi %621, %646 : vector<128x64xi32>
    %c15_i32_305 = arith.constant 15 : i32
    %648 = vector.broadcast %c15_i32_305 : i32 to vector<128x64xi32>
    %649 = arith.andi %647, %648 : vector<128x64xi32>
    %c28_i32_306 = arith.constant 28 : i32
    %650 = vector.broadcast %c28_i32_306 : i32 to vector<128x64xi32>
    %651 = arith.shrsi %621, %650 : vector<128x64xi32>
    %c15_i32_307 = arith.constant 15 : i32
    %652 = vector.broadcast %c15_i32_307 : i32 to vector<128x64xi32>
    %653 = arith.andi %651, %652 : vector<128x64xi32>
    %654 = tpu.concatenate %625, %629, %633, %637, %641, %645, %649, %653 in 1 : vector<128x64xi32>, vector<128x64xi32>, vector<128x64xi32>, vector<128x64xi32>, vector<128x64xi32>, vector<128x64xi32>, vector<128x64xi32>, vector<128x64xi32> -> vector<128x512xi32>
    %655 = arith.sitofp %654 : vector<128x512xi32> to vector<128x512xf32>
    %656 = arith.truncf %655 : vector<128x512xf32> to vector<128x512xbf16>
    %cst_308 = arith.constant dense<0.000000e+00> : vector<16x512xf32>
    %657 = tpu.matmul %620, %656, %cst_308 {dimension_numbers = #tpu.dot_dimension_numbers<[1], [0], [0], [1], [0, 0, 1, 1], [], []>} : vector<16x128xbf16>, vector<128x512xbf16>, vector<16x512xf32> -> vector<16x512xf32>
    %c7 = arith.constant 7 : index
    %c0_309 = arith.constant 0 : index
    %c0_310 = arith.constant 0 : index
    %658 = vector.load %arg6[%c7, %c0_309, %c0_310] : memref<8x1x512xbf16, #tpu.memory_space<vmem>>, vector<1x1x512xbf16>
    %659 = vector.shape_cast %658 : vector<1x1x512xbf16> to vector<1x512xbf16>
    %660 = arith.extf %659 : vector<1x512xbf16> to vector<1x512xf32>
    %c7_311 = arith.constant 7 : index
    %c0_312 = arith.constant 0 : index
    %c0_313 = arith.constant 0 : index
    %661 = vector.load %arg5[%c7_311, %c0_312, %c0_313] : memref<8x1x64xi32, #tpu.memory_space<vmem>>, vector<1x1x64xi32>
    %662 = vector.shape_cast %661 : vector<1x1x64xi32> to vector<1x64xi32>
    %c0_i32_314 = arith.constant 0 : i32
    %663 = vector.broadcast %c0_i32_314 : i32 to vector<1x64xi32>
    %664 = arith.shrsi %662, %663 : vector<1x64xi32>
    %c15_i32_315 = arith.constant 15 : i32
    %665 = vector.broadcast %c15_i32_315 : i32 to vector<1x64xi32>
    %666 = arith.andi %664, %665 : vector<1x64xi32>
    %c4_i32_316 = arith.constant 4 : i32
    %667 = vector.broadcast %c4_i32_316 : i32 to vector<1x64xi32>
    %668 = arith.shrsi %662, %667 : vector<1x64xi32>
    %c15_i32_317 = arith.constant 15 : i32
    %669 = vector.broadcast %c15_i32_317 : i32 to vector<1x64xi32>
    %670 = arith.andi %668, %669 : vector<1x64xi32>
    %c8_i32_318 = arith.constant 8 : i32
    %671 = vector.broadcast %c8_i32_318 : i32 to vector<1x64xi32>
    %672 = arith.shrsi %662, %671 : vector<1x64xi32>
    %c15_i32_319 = arith.constant 15 : i32
    %673 = vector.broadcast %c15_i32_319 : i32 to vector<1x64xi32>
    %674 = arith.andi %672, %673 : vector<1x64xi32>
    %c12_i32_320 = arith.constant 12 : i32
    %675 = vector.broadcast %c12_i32_320 : i32 to vector<1x64xi32>
    %676 = arith.shrsi %662, %675 : vector<1x64xi32>
    %c15_i32_321 = arith.constant 15 : i32
    %677 = vector.broadcast %c15_i32_321 : i32 to vector<1x64xi32>
    %678 = arith.andi %676, %677 : vector<1x64xi32>
    %c16_i32_322 = arith.constant 16 : i32
    %679 = vector.broadcast %c16_i32_322 : i32 to vector<1x64xi32>
    %680 = arith.shrsi %662, %679 : vector<1x64xi32>
    %c15_i32_323 = arith.constant 15 : i32
    %681 = vector.broadcast %c15_i32_323 : i32 to vector<1x64xi32>
    %682 = arith.andi %680, %681 : vector<1x64xi32>
    %c20_i32_324 = arith.constant 20 : i32
    %683 = vector.broadcast %c20_i32_324 : i32 to vector<1x64xi32>
    %684 = arith.shrsi %662, %683 : vector<1x64xi32>
    %c15_i32_325 = arith.constant 15 : i32
    %685 = vector.broadcast %c15_i32_325 : i32 to vector<1x64xi32>
    %686 = arith.andi %684, %685 : vector<1x64xi32>
    %c24_i32_326 = arith.constant 24 : i32
    %687 = vector.broadcast %c24_i32_326 : i32 to vector<1x64xi32>
    %688 = arith.shrsi %662, %687 : vector<1x64xi32>
    %c15_i32_327 = arith.constant 15 : i32
    %689 = vector.broadcast %c15_i32_327 : i32 to vector<1x64xi32>
    %690 = arith.andi %688, %689 : vector<1x64xi32>
    %c28_i32_328 = arith.constant 28 : i32
    %691 = vector.broadcast %c28_i32_328 : i32 to vector<1x64xi32>
    %692 = arith.shrsi %662, %691 : vector<1x64xi32>
    %c15_i32_329 = arith.constant 15 : i32
    %693 = vector.broadcast %c15_i32_329 : i32 to vector<1x64xi32>
    %694 = arith.andi %692, %693 : vector<1x64xi32>
    %695 = tpu.concatenate %666, %670, %674, %678, %682, %686, %690, %694 in 1 : vector<1x64xi32>, vector<1x64xi32>, vector<1x64xi32>, vector<1x64xi32>, vector<1x64xi32>, vector<1x64xi32>, vector<1x64xi32>, vector<1x64xi32> -> vector<1x512xi32>
    %696 = arith.sitofp %695 : vector<1x512xi32> to vector<1x512xf32>
    %697 = arith.extf %620 : vector<16x128xbf16> to vector<16x128xf32>
    %cst_330 = arith.constant dense<0.000000e+00> : vector<16xf32>
    %698 = vector.multi_reduction <add>, %697, %cst_330 [1] : vector<16x128xf32> to vector<16xf32>
    %699 = vector.shape_cast %698 : vector<16xf32> to vector<16x1xf32>
    %700 = vector.broadcast %660 : vector<1x512xf32> to vector<16x512xf32>
    %701 = arith.mulf %657, %700 : vector<16x512xf32>
    %702 = arith.addf %619, %701 : vector<16x512xf32>
    %703 = arith.mulf %696, %660 : vector<1x512xf32>
    %704 = vector.broadcast %699 : vector<16x1xf32> to vector<16x512xf32>
    %705 = vector.broadcast %703 : vector<1x512xf32> to vector<16x512xf32>
    %706 = arith.mulf %704, %705 : vector<16x512xf32>
    %707 = arith.subf %702, %706 : vector<16x512xf32>
    %c0_331 = arith.constant 0 : index
    %c0_332 = arith.constant 0 : index
    %708 = vector.load %arg9[%c0_331, %c0_332] : memref<16x512xf32, #tpu.memory_space<vmem>>, vector<16x512xf32>
    tpu.vector_store %arg9[%c0_331, %c0_332], %707 {strides = array<i32>} : memref<16x512xf32, #tpu.memory_space<vmem>>, vector<16x512xf32>,
    %c1_i32 = arith.constant 1 : i32
    %709 = arith.cmpi eq, %arg2, %c1_i32 : i32
    %710 = arith.extui %709 : i1 to i32
    %c0_i32_333 = arith.constant 0 : i32
    %711 = arith.cmpi ne, %710, %c0_i32_333 : i32
    scf.if %711 {
      %c0_334 = arith.constant 0 : index
      %c0_335 = arith.constant 0 : index
      %712 = vector.load %arg9[%c0_334, %c0_335] : memref<16x512xf32, #tpu.memory_space<vmem>>, vector<16x512xf32>
      %c0_336 = arith.constant 0 : index
      %c0_337 = arith.constant 0 : index
      %713 = vector.load %arg7[%c0_336, %c0_337] : memref<1x512xf32, #tpu.memory_space<vmem>>, vector<1x512xf32>
      %714 = vector.broadcast %713 : vector<1x512xf32> to vector<16x512xf32>
      %715 = arith.addf %712, %714 : vector<16x512xf32>
      %716 = arith.truncf %715 : vector<16x512xf32> to vector<16x512xbf16>
      %c0_338 = arith.constant 0 : index
      %c0_339 = arith.constant 0 : index
      %717 = vector.load %arg8[%c0_338, %c0_339] : memref<16x512xbf16, #tpu.memory_space<vmem>>, vector<16x512xbf16>
      tpu.vector_store %arg8[%c0_338, %c0_339], %716 {strides = array<i32>} : memref<16x512xbf16, #tpu.memory_space<vmem>>, vector<16x512xbf16>,
    } else {
    }
    return
  }
  func.func @transform_0(%arg0: i32, %arg1: i32, %arg2: i32) -> (i32, i32) {
    %c0_i32 = arith.constant 0 : i32
    return %arg0, %arg2 : i32, i32
  }
  func.func @transform_1(%arg0: i32, %arg1: i32, %arg2: i32) -> (i32, i32) {
    %c0_i32 = arith.constant 0 : i32
    return %arg2, %arg1 : i32, i32
  }
  func.func @transform_2(%arg0: i32, %arg1: i32, %arg2: i32) -> (i32, i32, i32) {
    %c0_i32 = arith.constant 0 : i32
    %c0_i32_0 = arith.constant 0 : i32
    return %arg2, %c0_i32, %arg1 : i32, i32, i32
  }
  func.func @transform_3(%arg0: i32, %arg1: i32, %arg2: i32) -> (i32, i32, i32) {
    %c0_i32 = arith.constant 0 : i32
    %c0_i32_0 = arith.constant 0 : i32
    return %arg2, %c0_i32, %arg1 : i32, i32, i32
  }
  func.func @transform_4(%arg0: i32, %arg1: i32, %arg2: i32) -> (i32, i32) {
    %c0_i32 = arith.constant 0 : i32
    %c0_i32_0 = arith.constant 0 : i32
    return %c0_i32, %arg1 : i32, i32
  }
  func.func @transform_5(%arg0: i32, %arg1: i32, %arg2: i32) -> (i32, i32) {
    %c0_i32 = arith.constant 0 : i32
    return %arg0, %arg1 : i32, i32
  }
}

</mosaic_0001>

<bundles_post_ra>
// kernel: tpu_custom_call.1
= control target key start
LH: loop header
LB: loop body
LE: loop exit
PB: predicated region body
PF: predicated region fallthrough
CT: control target
= control target key end

     0   :  { %10 = vsyncpa [#allocation5], 0  ;;  %s7390_s18 = smov 0   ;;  %s7392_s19 = smov 0   ;;  %s12228_s0 = inlined_call_operand.vmem [shape: bf16[16,2048], index: 0, kind: input, shape index: {}]   ;;  %s12229_s1 = inlined_call_operand.vmem [shape: s32[2048,64], index: 1, kind: input, shape index: {}]   ;;  %s12230_s2 = inlined_call_operand.vmem [shape: s32[16,1,64], index: 2, kind: input, shape index: {}]   ;;  %s12231_s3 = inlined_call_operand.vmem [shape: bf16[16,1,512], index: 3, kind: input, shape index: {}]   ;;  %s12232_s4 = inlined_call_operand.vmem [shape: f32[1,512], index: 4, kind: input, shape index: {}]   ;;  %s12233_s5 = inlined_call_operand.hbm [shape: bf16[16,512], index: 5, kind: output, shape index: {}]  }
   0x1   :  { %s7394_s20 = smov 0   ;;  %s7396_s21 = smov 0  }
   0x2   :  { %s7398_s22 = smov 0  }
   0x3 LB: > { %s6912_s23 = sadd.s32 4294967295, %s7352_s22   ;;  %s28_s24 = sadd.s32 1, %s7348_s21  ;;  %s7352_s22 = sphi %s7398_s22, %s16_s22   ;;  %s7348_s21 = sphi %s7396_s21, %s13010_s21   ;;  %s7344_s20 = sphi %s7394_s20, %s13009_s20   ;;  %s7340_s19 = sphi %s7392_s19, %s13008_s19   ;;  %s7336_s18 = sphi %s7390_s18, %s13007_s18  }
   0x4   : > { %p29_p0 = scmp.ge.s32.totalorder %s28_s24, 2  ;;  %p51_p1 = scmp.ne.s32.totalorder %s7340_s19, %s7336_s18 }
   0x5   : > { %p52_p2 = scmp.eq.s32.totalorder %s7352_s22, 0  ;;  %s44_s26 = sadd.s32 1, %s7340_s19 }
   0x6   : > { %s13012_s24 = smov (%p29_p0, %s28_s24), 0  ;;  %p6915_p5 = scmp.ge.s32.totalorder %s7352_s22, 2 }
   0x7   : > { %p53_p3 = por %p52_p2, %p51_p1  ;;  %s40_s25 = ssub.s32 %s7348_s21, %s13012_s24 }
   0x8   : > { %p42_p4 = scmp.eq.s32.totalorder %s40_s25, 0  ;;  %223 = sbr.rel (%p6915_p5) target bundleno = 23 (0x17), region = 20 }
   0xa   : > { %s7426_s27 = scalar_select %p42_p4, %s7340_s19, %s44_s26  }
   0xf   : > { %226 = sbr.rel (!%p53_p3) target bundleno = 23 (0x17), region = 24  ;;  %s228_s28 = sand.u32 (%p53_p3), 1, %s7340_s19  }
  0x10   : > { %s7094_s29 = sshll.u32 (%p53_p3), %s7348_s21, 5  ;;  %s6916_s30 = sshll.u32 (%p53_p3), %s228_s28, 6 }
  0x11   : > { %s236_s8 = scalar_lea.vmem (%p53_p3), %s12228_s0, %s7094_s29  ;;  %s230_s9 = scalar_lea.vmem (%p53_p3), [#allocation3], %s6916_s30 }
  0x12   : > { %v249_v0 = vld [vmem:[%s236_s8] sm:$0xff] (%p53_p3)  ;;  %v251_v1 = vld [vmem:[%s236_s8 + $0x8] sm:$0xff] (%p53_p3)  ;;  %v253_v2 = vld [vmem:[%s236_s8 + $0x10] sm:$0xff] (%p53_p3) }
  0x13   : > { %250 = vst [vmem:[%s230_s9] sm:$0xff] (%p53_p3), %v249_v0  ;;  %252 = vst [vmem:[%s230_s9 + $0x8] sm:$0xff] (%p53_p3), %v251_v1  ;;  %v255_v3 = vld [vmem:[%s236_s8 + $0x18] sm:$0xff] (%p53_p3)  ;;  %v257_v4 = vld [vmem:[%s236_s8 + $0x40] sm:$0xff] (%p53_p3) }
  0x14   : > { %254 = vst [vmem:[%s230_s9 + $0x10] sm:$0xff] (%p53_p3), %v253_v2  ;;  %v259_v5 = vld [vmem:[%s236_s8 + $0x48] sm:$0xff] (%p53_p3)  ;;  %256 = vst [vmem:[%s230_s9 + $0x18] sm:$0xff] (%p53_p3), %v255_v3  ;;  %v261_v6 = vld [vmem:[%s236_s8 + $0x50] sm:$0xff] (%p53_p3) }
  0x15   : > { %258 = vst [vmem:[%s230_s9 + $0x20] sm:$0xff] (%p53_p3), %v257_v4  ;;  %260 = vst [vmem:[%s230_s9 + $0x28] sm:$0xff] (%p53_p3), %v259_v5  ;;  %v263_v7 = vld [vmem:[%s236_s8 + $0x58] sm:$0xff] (%p53_p3) }
  0x16   : > { %262 = vst [vmem:[%s230_s9 + $0x30] sm:$0xff] %v261_v6  ;;  %264 = vst [vmem:[%s230_s9 + $0x38] sm:$0xff] %v263_v7 }
  0x17 PF: > { %p6919_p6 = scmp.ge.s32.totalorder %s7352_s22, 1  ;;  %p306_p7 = scmp.lt.s32.totalorder %s7352_s22, 3 }
  0x19   : > { %p307_p8 = pnand %p6919_p6, %p306_p7 }
  0x1b   : > { %310 = sbr.rel (%p307_p8) target bundleno = 1759 (0x6df), region = 59 }
  0x22   : > { %s313_s10 = sand.u32 1, %s7336_s18   ;;  %s6921_s11 = sshll.u32 %s7344_s20, 7 }
  0x23   : > { %s6920_s12 = sshll.u32 %s313_s10, 6  ;;  %p366_p9 = scmp.lt.s32.totalorder %s6921_s11, 255 }
  0x24   : > { %s6923_s13 = sshll.u32 %s7344_s20, 3  ;;  %s7454_s7 = scalar_lea.vmem [#allocation3], %s6920_s12 }
  0x25   : > { %s13014_s11 = smov (!%p366_p9, %s6921_s11), 255  ;;  %p375_p10 = scmp.lt.s32.totalorder %s6923_s13, 15 }
  0x26   : > { %s6922_s14 = sshll.u32 %s13014_s11, 3  ;;  %p6926_p11 = scmp.ne.s32.totalorder %s7344_s20, 0 }
  0x27   : > { %s7442_s17 = scalar_lea.vmem %s12229_s1, %s6922_s14  ;;  %s13016_s13 = smov (!%p375_p10, %s6923_s13), 15  ;;  %v7354_v8 = vmov (!%p6926_p11), 0.0  }
  0x28   : > { %s7447_s28 = scalar_lea.vmem %s12230_s2, %s13016_s13  ;;  %s6925_s29 = sshll.u32 %s13016_s13, 2  ;;  %405 = vst [vmem:[#allocation2] sm:$0xff] (!%p6926_p11), %v7354_v8  ;;  %406 = vst [vmem:[#allocation2 + $0x8] sm:$0xff] (!%p6926_p11), %v7354_v8 }
  0x29   : > { %s7452_s6 = scalar_lea.vmem %s12231_s3, %s6925_s29  ;;  %404 = sbr.rel (%p6926_p11) target bundleno = 48 (0x30), region = 67  ;;  %407 = vst [vmem:[#allocation2 + $0x10] sm:$0xff] (!%p6926_p11), %v7354_v8  ;;  %408 = vst [vmem:[#allocation2 + $0x18] sm:$0xff] (!%p6926_p11), %v7354_v8 }
  0x2a   : > { %409 = vst [vmem:[#allocation2 + $0x20] sm:$0xff] (!%p6926_p11), %v7354_v8  ;;  %410 = vst [vmem:[#allocation2 + $0x28] sm:$0xff] (!%p6926_p11), %v7354_v8 }
  0x2b   : > { %411 = vst [vmem:[#allocation2 + $0x30] sm:$0xff] (!%p6926_p11), %v7354_v8  ;;  %412 = vst [vmem:[#allocation2 + $0x38] sm:$0xff] (!%p6926_p11), %v7354_v8 }
  0x30 PF: > { %v7458_v9 = vld [vmem:[%s7442_s17 + $0x10] sm:$0xff]  ;;  %v7461_v10 = vld [vmem:[%s7442_s17] sm:$0xff]  ;;  %v7464_v11 = vld [vmem:[%s7442_s17 + $0x18] sm:$0xff]  ;;  %s7355_s8 = smov 64   ;;  %vm807_vm0 = vcmask 523264   ;;  %p7085_p12 = scmp.ne.s32.totalorder %s7344_s20, 1 }
  0x31   : > { %v457_v12 = vshra.s32 %v7458_v9, 4  ;;  %v455_v13 = vshra.s32 %v7461_v10, 4  ;;  %v458_v14 = vshra.s32 %v7464_v11, 4  ;;  %v7470_v15 = vld [vmem:[%s7442_s17 + $0x8] sm:$0xff]  ;;  %v7477_v18 = vld [vmem:[%s7442_s17 + $0x20] sm:$0xff]  ;;  %v7484_v25 = vld [vmem:[%s7442_s17 + $0x38] sm:$0xff] }
  0x32   : > { %v456_v16 = vshra.s32 %v7470_v15, 4  ;;  %v7474_v17 = vld [vmem:[%s7442_s17 + $0x28] sm:$0xff]  ;;  %v459_v24 = vshra.s32 %v7477_v18, 4  ;;  %v7487_v26 = vld [vmem:[%s7442_s17 + $0x30] sm:$0xff]  ;;  %v462_v29 = vshra.s32 %v7484_v25, 4  ;;  %v7497_v32 = vld [vmem:[%s7442_s17 + $0x40] sm:$0xff] }
  0x33   : > { %v473_v19 = vand.u32 15, %v457_v12  ;;  %v471_v20 = vand.u32 15, %v455_v13  ;;  %v474_v21 = vand.u32 15, %v458_v14  ;;  %v460_v23 = vshra.s32 %v7474_v17, 4  ;;  %v7494_v31 = vld [vmem:[%s7442_s17 + $0x48] sm:$0xff]  ;;  %v7504_v37 = vld [vmem:[%s7442_s17 + $0x58] sm:$0xff] }
  0x34   : > { %v472_v22 = vand.u32 15, %v456_v16  ;;  %v475_v28 = vand.u32 15, %v459_v24  ;;  %v461_v30 = vshra.s32 %v7487_v26, 4  ;;  %v478_v33 = vand.u32 15, %v462_v29  ;;  %v7507_v38 = vld [vmem:[%s7442_s17 + $0x50] sm:$0xff]  ;;  %v7514_v43 = vld [vmem:[%s7442_s17 + $0x68] sm:$0xff] }
  0x35   : > { %683 = vrot.lane.b32.xlu1 %v473_v19, %s7355_s8  ;;  %679 = vrot.lane.b32.xlu0 %v471_v20, %s7355_s8  ;;  %v476_v27 = vand.u32 15, %v460_v23  ;;  %v464_v35 = vshra.s32 %v7494_v31, 4  ;;  %v463_v36 = vshra.s32 %v7497_v32, 4  ;;  %v466_v41 = vshra.s32 %v7504_v37, 4  ;;  %v7517_v44 = vld [vmem:[%s7442_s17 + $0x60] sm:$0xff]  ;;  %v7524_v49 = vld [vmem:[%s7442_s17 + $0x78] sm:$0xff] }
  0x36   : > { %v477_v34 = vand.u32 15, %v461_v30  ;;  %v465_v42 = vshra.s32 %v7507_v38, 4  ;;  %v468_v47 = vshra.s32 %v7514_v43, 4  ;;  %v467_v48 = vshra.s32 %v7517_v44, 4  ;;  %v7527_v50 = vld [vmem:[%s7442_s17 + $0x70] sm:$0xff] }
  0x37   : > { %v480_v39 = vand.u32 15, %v464_v35  ;;  %v479_v40 = vand.u32 15, %v463_v36  ;;  %v482_v45 = vand.u32 15, %v466_v41  ;;  %12448 = vst [vmem:[#allocation7_spill] sm:$0xff] %v7527_v50  ;;  %v470_v53 = vshra.s32 %v7524_v49, 4 }
  0x38   : > { %v481_v46 = vand.u32 15, %v465_v42  ;;  %v484_v51 = vand.u32 15, %v468_v47  ;;  %v483_v52 = vand.u32 15, %v467_v48  ;;  %v469_v54 = vshra.s32 %v7527_v50, 4 }
  0x39   : > { %685 = vrot.lane.b32.xlu1 %v474_v21, %s7355_s8  ;;  %681 = vrot.lane.b32.xlu0 %v472_v22, %s7355_s8  ;;  %v486_v55 = vand.u32 15, %v470_v53  ;;  %v520_v57 = vshra.s32 %v7470_v15, 12  ;;  %v519_v58 = vshra.s32 %v7461_v10, 12  ;;  %v522_v61 = vshra.s32 %v7464_v11, 12 }
  0x3a   : > { %v485_v56 = vand.u32 15, %v469_v54  ;;  %v521_v62 = vshra.s32 %v7458_v9, 12  ;;  %v524_v1 = vshra.s32 %v7474_v17, 12  ;;  %v523_v2 = vshra.s32 %v7477_v18, 12 }
  0x3b   : > { %v536_v59 = vand.u32 15, %v520_v57  ;;  %v535_v60 = vand.u32 15, %v519_v58  ;;  %v538_v63 = vand.u32 15, %v522_v61  ;;  %v526_v5 = vshra.s32 %v7484_v25, 12 }
  0x3c   : > { %v537_v0 = vand.u32 15, %v521_v62  ;;  %v540_v3 = vand.u32 15, %v524_v1  ;;  %v539_v4 = vand.u32 15, %v523_v2  ;;  %v525_v6 = vshra.s32 %v7487_v26, 12 }
  0x3d   : > { %689 = vrot.lane.b32.xlu1 %v476_v27, %s7355_s8  ;;  %687 = vrot.lane.b32.xlu0 %v475_v28, %s7355_s8  ;;  %v542_v7 = vand.u32 15, %v526_v5  ;;  %v528_v12 = vshra.s32 %v7494_v31, 12  ;;  %v527_v13 = vshra.s32 %v7497_v32, 12  ;;  %v530_v19 = vshra.s32 %v7504_v37, 12 }
  0x3e   : > { %v541_v8 = vand.u32 15, %v525_v6  ;;  %v529_v20 = vshra.s32 %v7507_v38, 12  ;;  %v532_v23 = vshra.s32 %v7514_v43, 12  ;;  %v531_v24 = vshra.s32 %v7517_v44, 12 }
  0x3f   : > { %v544_v14 = vand.u32 15, %v528_v12  ;;  %v543_v16 = vand.u32 15, %v527_v13  ;;  %v546_v21 = vand.u32 15, %v530_v19  ;;  %v534_v29 = vshra.s32 %v7524_v49, 12 }
  0x40   : > { %v545_v22 = vand.u32 15, %v529_v20  ;;  %v548_v27 = vand.u32 15, %v532_v23  ;;  %v547_v28 = vand.u32 15, %v531_v24  ;;  %v533_v30 = vshra.s32 %v7527_v50, 12 }
  0x41   : > { %693 = vrot.lane.b32.xlu1 %v478_v33, %s7355_s8  ;;  %691 = vrot.lane.b32.xlu0 %v477_v34, %s7355_s8  ;;  %v12234_v33 = vmov 0   ;;  %v550_v34 = vand.u32 15, %v534_v29  ;;  %v584_v36 = vshra.s32 %v7470_v15, 20  ;;  %v586_v42 = vshra.s32 %v7464_v11, 20 }
  0x42   : > { %1006 = vmatprep.mubr.bf16.mxu0 %v12234_v33  ;;  %1049 = vmatprep.mubr.bf16.mxu1 %v12234_v33  ;;  %v549_v35 = vand.u32 15, %v533_v30  ;;  %v588_v48 = vshra.s32 %v7474_v17, 20  ;;  %v590_v54 = vshra.s32 %v7484_v25, 20  ;;  %v592_v58 = vshra.s32 %v7494_v31, 20 }
  0x43   : > { %v594_v62 = vshra.s32 %v7504_v37, 20  ;;  %v596_v2 = vshra.s32 %v7514_v43, 20  ;;  %v598_v6 = vshra.s32 %v7524_v49, 20  ;;  %v6928_v13 = vshrl.u32 %v7470_v15, 28 }
  0x44   : > { %v6929_v19 = vshrl.u32 %v7458_v9, 28  ;;  %v6932_v20 = vshrl.u32 %v7474_v17, 28  ;;  %v6933_v23 = vshrl.u32 %v7487_v26, 28  ;;  %v6936_v24 = vshrl.u32 %v7494_v31, 28 }
  0x45   : > { %697 = vrot.lane.b32.xlu1 %v480_v39, %s7355_s8  ;;  %695 = vrot.lane.b32.xlu0 %v479_v40, %s7355_s8  ;;  %v583_v39 = vshra.s32 %v7461_v10, 20  ;;  %v600_v40 = vand.u32 15, %v584_v36  ;;  %v6937_v29 = vshrl.u32 %v7507_v38, 28  ;;  %v1078_v30 = vlaneseq }
  0x47   : > { %v599_v41 = vand.u32 15, %v583_v39  ;;  %v6940_v39 = vshrl.u32 %v7514_v43, 28 }
  0x49   : > { %701 = vrot.lane.b32.xlu1 %v482_v45, %s7355_s8  ;;  %699 = vrot.lane.b32.xlu0 %v481_v46, %s7355_s8  ;;  %v585_v45 = vshra.s32 %v7458_v9, 20  ;;  %v602_v46 = vand.u32 15, %v586_v42  ;;  %v7632_v42 = vshrl.u32 %v1078_v30, 7  ;;  %v444_v30 = vand.u32 15, %v7474_v17 }
  0x4b   : > { %v601_v47 = vand.u32 15, %v585_v45  ;;  %12449 = vst [vmem:[#allocation8_spill] sm:$0xff] %v7632_v42 }
  0x4d   : > { %705 = vrot.lane.b32.xlu1 %v484_v51, %s7355_s8  ;;  %703 = vrot.lane.b32.xlu0 %v483_v52, %s7355_s8  ;;  %v587_v51 = vshra.s32 %v7477_v18, 20  ;;  %v604_v52 = vand.u32 15, %v588_v48  ;;  %v6942_v48 = vshrl.u32 %v7524_v49, 28 }
  0x4f   : > { %v603_v53 = vand.u32 15, %v587_v51  ;;  %v6941_v51 = vshrl.u32 %v7527_v50, 28 }
  0x51   : > { %709 = vrot.lane.b32.xlu1 %v486_v55, %s7355_s8  ;;  %707 = vrot.lane.b32.xlu0 %v485_v56, %s7355_s8  ;;  %v589_v55 = vshra.s32 %v7487_v26, 20  ;;  %v606_v56 = vand.u32 15, %v590_v54 }
  0x53   : > { %v605_v57 = vand.u32 15, %v589_v55 }
  0x55   : > { %713 = vrot.lane.b32.xlu1 %v536_v59, %s7355_s8  ;;  %711 = vrot.lane.b32.xlu0 %v535_v60, %s7355_s8  ;;  %v591_v59 = vshra.s32 %v7497_v32, 20  ;;  %v608_v60 = vand.u32 15, %v592_v58 }
  0x57   : > { %v607_v61 = vand.u32 15, %v591_v59 }
  0x59   : > { %717 = vrot.lane.b32.xlu1 %v538_v63, %s7355_s8  ;;  %715 = vrot.lane.b32.xlu0 %v537_v0, %s7355_s8  ;;  %v593_v63 = vshra.s32 %v7507_v38, 20  ;;  %v610_v0 = vand.u32 15, %v594_v62 }
  0x5b   : > { %v609_v1 = vand.u32 15, %v593_v63 }
  0x5d   : > { %721 = vrot.lane.b32.xlu1 %v540_v3, %s7355_s8  ;;  %719 = vrot.lane.b32.xlu0 %v539_v4, %s7355_s8  ;;  %v595_v3 = vshra.s32 %v7517_v44, 20  ;;  %v612_v4 = vand.u32 15, %v596_v2 }
  0x5f   : > { %v611_v5 = vand.u32 15, %v595_v3 }
  0x61   : > { %725 = vrot.lane.b32.xlu1 %v542_v7, %s7355_s8  ;;  %723 = vrot.lane.b32.xlu0 %v541_v8, %s7355_s8  ;;  %v597_v7 = vshra.s32 %v7527_v50, 20  ;;  %v614_v8 = vand.u32 15, %v598_v6 }
  0x63   : > { %v613_v12 = vand.u32 15, %v597_v7 }
  0x65   : > { %729 = vrot.lane.b32.xlu1 %v544_v14, %s7355_s8  ;;  %727 = vrot.lane.b32.xlu0 %v543_v16, %s7355_s8  ;;  %v6927_v14 = vshrl.u32 %v7461_v10, 28  ;;  %v6930_v16 = vshrl.u32 %v7464_v11, 28 }
  0x69   : > { %733 = vrot.lane.b32.xlu1 %v546_v21, %s7355_s8  ;;  %731 = vrot.lane.b32.xlu0 %v545_v22, %s7355_s8  ;;  %v6931_v21 = vshrl.u32 %v7477_v18, 28  ;;  %v6934_v22 = vshrl.u32 %v7484_v25, 28 }
  0x6d   : > { %737 = vrot.lane.b32.xlu1 %v548_v27, %s7355_s8  ;;  %735 = vrot.lane.b32.xlu0 %v547_v28, %s7355_s8  ;;  %v6935_v27 = vshrl.u32 %v7497_v32, 28  ;;  %v6938_v28 = vshrl.u32 %v7504_v37, 28 }
  0x71   : > { %741 = vrot.lane.b32.xlu1 %v550_v34, %s7355_s8  ;;  %739 = vrot.lane.b32.xlu0 %v549_v35, %s7355_s8  ;;  %v1062_v34 = vld [vmem:[%s7447_s28] sm:$0x1] }
  0x72   : > { %v1064_v45 = vshra.s32 %v1062_v34, 4  ;;  %v1072_v55 = vshra.s32 %v1062_v34, 20 }
  0x74   : > { %v1065_v54 = vand.u32 15, %v1064_v45 }
  0x75   : > { %745 = vrot.lane.b32.xlu1 %v600_v40, %s7355_s8  ;;  %743 = vrot.lane.b32.xlu0 %v599_v41, %s7355_s8  ;;  %v6939_v40 = vshrl.u32 %v7517_v44, 28  ;;  %v1068_v41 = vshra.s32 %v1062_v34, 12 }
  0x79   : > { %749 = vrot.lane.b32.xlu1 %v602_v46, %s7355_s8  ;;  %747 = vrot.lane.b32.xlu0 %v601_v47, %s7355_s8 }
  0x7d   : > { %753 = vrot.lane.b32.xlu1 %v604_v52, %s7355_s8  ;;  %751 = vrot.lane.b32.xlu0 %v603_v53, %s7355_s8  ;;  %v1069_v52 = vand.u32 15, %v1068_v41  ;;  %v7639_v53 = vsub.s32 0, %v7632_v42  ;;  %v492_v41 = vshra.s32 %v7474_v17, 8 }
  0x7f   : > { %12450 = vst [vmem:[#allocation9_spill] sm:$0xff] %v7639_v53  ;;  %v1087_v58 = vrot.slane %v1069_v52, %v7639_v53  ;;  %v1081_v59 = vrot.slane %v1065_v54, %v7639_v53 }
  0x81   : > { %757 = vrot.lane.b32.xlu1 %v606_v56, %s7355_s8  ;;  %755 = vrot.lane.b32.xlu0 %v605_v57, %s7355_s8 }
  0x85   : > { %761 = vrot.lane.b32.xlu1 %v608_v60, %s7355_s8  ;;  %759 = vrot.lane.b32.xlu0 %v607_v61, %s7355_s8  ;;  %v6944_v60 = vshrl.u32 %v1062_v34, 28  ;;  %v1073_v61 = vand.u32 15, %v1072_v55  ;;  %v443_v34 = vand.u32 15, %v7477_v18 }
  0x89   : > { %765 = vrot.lane.b32.xlu1 %v610_v0, %s7355_s8  ;;  %763 = vrot.lane.b32.xlu0 %v609_v1, %s7355_s8  ;;  %v1099_v0 = vrot.slane %v6944_v60, %v7639_v53  ;;  %v1093_v1 = vrot.slane %v1073_v61, %v7639_v53  ;;  %v448_v60 = vand.u32 15, %v7494_v31  ;;  %v447_v61 = vand.u32 15, %v7497_v32 }
  0x8d   : > { %769 = vrot.lane.b32.xlu1 %v612_v4, %s7355_s8  ;;  %767 = vrot.lane.b32.xlu0 %v611_v5, %s7355_s8 }
  0x91   : > { %773 = vrot.lane.b32.xlu1 %v614_v8, %s7355_s8  ;;  %771 = vrot.lane.b32.xlu0 %v613_v12, %s7355_s8  ;;  %v439_v8 = vand.u32 15, %v7461_v10  ;;  %v440_v12 = vand.u32 15, %v7470_v15 }
  0x95   : > { %777 = vrot.lane.b32.xlu1 %v6928_v13, %s7355_s8  ;;  %775 = vrot.lane.b32.xlu0 %v6927_v14, %s7355_s8  ;;  %v488_v13 = vshra.s32 %v7470_v15, 8  ;;  %v487_v14 = vshra.s32 %v7461_v10, 8 }
  0x99   : > { %781 = vrot.lane.b32.xlu1 %v6930_v16, %s7355_s8  ;;  %779 = vrot.lane.b32.xlu0 %v6929_v19, %s7355_s8  ;;  %v442_v16 = vand.u32 15, %v7464_v11 }
  0x9d   : > { %785 = vrot.lane.b32.xlu1 %v6932_v20, %s7355_s8  ;;  %783 = vrot.lane.b32.xlu0 %v6931_v21, %s7355_s8  ;;  %v490_v21 = vshra.s32 %v7464_v11, 8 }
  0x9f   : > { %v506_v52 = vand.u32 15, %v490_v21 }
  0xa1   : > { %789 = vrot.lane.b32.xlu1 %v6934_v22, %s7355_s8  ;;  %787 = vrot.lane.b32.xlu0 %v6933_v23, %s7355_s8  ;;  %v489_v22 = vshra.s32 %v7458_v9, 8 }
  0xa5   : > { %793 = vrot.lane.b32.xlu1 %v6936_v24, %s7355_s8  ;;  %791 = vrot.lane.b32.xlu0 %v6935_v27, %s7355_s8  ;;  %v504_v27 = vand.u32 15, %v488_v13  ;;  %v494_v13 = vshra.s32 %v7484_v25, 8 }
  0xa7   : > { %v7626_v35 = vpop.permute.xlu1 %683  ;;  %v680_v36 = vpop.permute.xlu0 %679 }
  0xa8   : > { %v808_v23 = vsel %vm807_vm0, %v439_v8, %v680_v36 }
  0xa9   : > { %797 = vrot.lane.b32.xlu1 %v6938_v28, %s7355_s8  ;;  %795 = vrot.lane.b32.xlu0 %v6937_v29, %s7355_s8  ;;  %v503_v28 = vand.u32 15, %v487_v14  ;;  %v441_v29 = vand.u32 15, %v7458_v9  ;;  %v872_v45 = vcvt.s32.f32 %v808_v23  ;;  %v493_v14 = vshra.s32 %v7487_v26, 8 }
  0xab   : > { %v686_v46 = vpop.permute.xlu1 %685  ;;  %v682_v47 = vpop.permute.xlu0 %681  ;;  %v810_v8 = vsel %vm807_vm0, %v441_v29, %v7626_v35 }
  0xac   : > { %v809_v24 = vsel %vm807_vm0, %v440_v12, %v682_v47  ;;  %v491_v47 = vshra.s32 %v7477_v18, 8  ;;  %v811_v54 = vsel %vm807_vm0, %v442_v16, %v686_v46  ;;  %v508_v12 = vand.u32 15, %v492_v41 }
  0xad   : > { %801 = vrot.lane.b32.xlu1 %v6940_v39, %s7355_s8  ;;  %799 = vrot.lane.b32.xlu0 %v6939_v40, %s7355_s8  ;;  %v446_v39 = vand.u32 15, %v7484_v25  ;;  %v445_v40 = vand.u32 15, %v7487_v26  ;;  %v884_v46 = vcvt.s32.f32 %v811_v54  ;;  %v880_v41 = vcvt.s32.f32 %v810_v8 }
  0xaf   : > { %v7641_v56 = vpop.permute.xlu1 %689  ;;  %v7643_v57 = vpop.permute.xlu0 %687 }
  0xb1   : > { %805 = vrot.lane.b32.xlu1 %v6942_v48, %s7355_s8  ;;  %803 = vrot.lane.b32.xlu0 %v6941_v51, %s7355_s8  ;;  %v876_v48 = vcvt.s32.f32 %v809_v24 }
  0xb3   : > { %v7649_v62 = vpop.permute.xlu1 %693  ;;  %v7651_v63 = vpop.permute.xlu0 %691  ;;  %v936_v24 = vpack.c.bf16 %v876_v48, %v872_v45  ;;  %v510_v45 = vand.u32 15, %v494_v13  ;;  %v509_v48 = vand.u32 15, %v493_v14  ;;  %v449_v14 = vand.u32 15, %v7507_v38 }
  0xb5   : > { %1088 = vrot.lane.b32.xlu1 %v1087_v58, %s7355_s8  ;;  %1082 = vrot.lane.b32.xlu0 %v1081_v59, %s7355_s8  ;;  %v505_v59 = vand.u32 15, %v489_v22  ;;  %v507_v22 = vand.u32 15, %v491_v47  ;;  %v496_v47 = vshra.s32 %v7494_v31, 8 }
  0xb7   : > { %v7657_v2 = vpop.permute.xlu1 %697  ;;  %v7659_v3 = vpop.permute.xlu0 %695 }
  0xb9   : > { %1100 = vrot.lane.b32.xlu1 %v1099_v0, %s7355_s8  ;;  %1094 = vrot.lane.b32.xlu0 %v1093_v1, %s7355_s8 }
  0xbb   : > { %v7663_v4 = vpop.permute.xlu1 %701  ;;  %v7665_v5 = vpop.permute.xlu0 %699 }
  0xbf   : > { %v7667_v6 = vpop.permute.xlu1 %705  ;;  %v7669_v7 = vpop.permute.xlu0 %703 }
  0xc3   : > { %v7676_v19 = vpop.permute.xlu1 %709  ;;  %v7678_v20 = vpop.permute.xlu0 %707 }
  0xc7   : > { %v714_v51 = vpop.permute.xlu1 %713  ;;  %v712_v36 = vpop.permute.xlu0 %711 }
  0xc8   : > { %v825_v55 = vsel %vm807_vm0, %v504_v27, %v714_v51  ;;  %v824_v58 = vsel %vm807_vm0, %v503_v28, %v712_v36  ;;  %v813_v27 = vsel %vm807_vm0, %v444_v30, %v7641_v56  ;;  %v812_v28 = vsel %vm807_vm0, %v443_v34, %v7643_v57  ;;  %v7710_v30 = vld [vmem:[%s7454_s7] sm:$0xf] }
  0xc9   : > { %v873_v0 = vcvt.s32.f32 %v824_v58  ;;  %v877_v1 = vcvt.s32.f32 %v825_v55  ;;  %v450_v51 = vand.u32 15, %v7504_v37  ;;  %v495_v56 = vshra.s32 %v7497_v32, 8 }
  0xca   : > { %v892_v57 = vcvt.s32.f32 %v813_v27  ;;  %v888_v34 = vcvt.s32.f32 %v812_v28  ;;  %v498_v27 = vshra.s32 %v7504_v37, 8 }
  0xcb   : > { %v718_v16 = vpop.permute.xlu1 %717  ;;  %v716_v21 = vpop.permute.xlu0 %715  ;;  %v937_v23 = vpack.c.bf16 %v877_v1, %v873_v0  ;;  %v815_v0 = vsel %vm807_vm0, %v446_v39, %v7649_v62  ;;  %v814_v1 = vsel %vm807_vm0, %v445_v40, %v7651_v63  ;;  %v497_v62 = vshra.s32 %v7507_v38, 8 }
  0xcc   : > { %v827_v35 = vsel %vm807_vm0, %v506_v52, %v718_v16  ;;  %v826_v29 = vsel %vm807_vm0, %v505_v59, %v716_v21  ;;  %v940_v59 = vpack.c.bf16 %v884_v46, %v880_v41  ;;  %v511_v46 = vand.u32 15, %v495_v56 }
  0xcd   : > { %v885_v36 = vcvt.s32.f32 %v827_v35  ;;  %v881_v54 = vcvt.s32.f32 %v826_v29  ;;  %974 = vmatprep.subr.bf16.mxu0 %v937_v23  ;;  %v1110_v23 = vunpack.c.l.bf16 %v7710_v30  ;;  %v900_v39 = vcvt.s32.f32 %v815_v0 }
  0xce   : > { %975 = vmatpush1.bf16.msra.mxu0 %v936_v24  ;;  %v512_v24 = vand.u32 15, %v496_v47  ;;  %v896_v63 = vcvt.s32.f32 %v814_v1  ;;  %v944_v28 = vpack.c.bf16 %v892_v57, %v888_v34  ;;  %v817_v35 = vsel %vm807_vm0, %v448_v60, %v7657_v2  ;;  %v7731_v34 = vld [vmem:[%s7454_s7 + $0x20] sm:$0xf] }
  0xcf   : > { %v722_v52 = vpop.permute.xlu1 %721  ;;  %v720_v55 = vpop.permute.xlu0 %719  ;;  %v941_v58 = vpack.c.bf16 %v885_v36, %v881_v54  ;;  %v816_v29 = vsel %vm807_vm0, %v447_v61, %v7659_v3  ;;  %v452_v54 = vand.u32 15, %v7514_v43  ;;  %v451_v47 = vand.u32 15, %v7517_v44 }
  0xd0   : > { %v829_v8 = vsel %vm807_vm0, %v508_v12, %v722_v52  ;;  %v828_v13 = vsel %vm807_vm0, %v507_v22, %v720_v55  ;;  %v514_v55 = vand.u32 15, %v498_v27  ;;  %v513_v57 = vand.u32 15, %v497_v62 }
  0xd1   : > { %v893_v16 = vcvt.s32.f32 %v829_v8  ;;  %v889_v21 = vcvt.s32.f32 %v828_v13  ;;  %976 = vmatprep.subr.bf16.mxu0 %v941_v58  ;;  %v500_v2 = vshra.s32 %v7514_v43, 8  ;;  %v499_v3 = vshra.s32 %v7517_v44, 8 }
  0xd2   : > { %977 = vmatpush1.bf16.msra.mxu0 %v940_v59  ;;  %v908_v60 = vcvt.s32.f32 %v817_v35  ;;  %v904_v61 = vcvt.s32.f32 %v816_v29  ;;  %v948_v59 = vpack.c.bf16 %v900_v39, %v896_v63  ;;  %v819_v0 = vsel %vm807_vm0, %v450_v51, %v7663_v4 }
  0xd3   : > { %v726_v40 = vpop.permute.xlu1 %725  ;;  %v724_v12 = vpop.permute.xlu0 %723  ;;  %v945_v22 = vpack.c.bf16 %v893_v16, %v889_v21  ;;  %v818_v1 = vsel %vm807_vm0, %v449_v14, %v7665_v5  ;;  %v1111_v27 = vunpack.c.l.bf16 %v7731_v34  ;;  %v516_v62 = vand.u32 15, %v500_v2 }
  0xd4   : > { %v831_v41 = vsel %vm807_vm0, %v510_v45, %v726_v40  ;;  %v830_v36 = vsel %vm807_vm0, %v509_v48, %v724_v12  ;;  %v515_v40 = vand.u32 15, %v499_v3  ;;  %v502_v39 = vshra.s32 %v7524_v49, 8 }
  0xd5   : > { %v901_v56 = vcvt.s32.f32 %v831_v41  ;;  %v897_v52 = vcvt.s32.f32 %v830_v36  ;;  %978 = vmatprep.subr.bf16.mxu0 %v945_v22  ;;  %v501_v4 = vshra.s32 %v7527_v50, 8  ;;  %v916_v51 = vcvt.s32.f32 %v819_v0 }
  0xd6   : > { %979 = vmatpush1.bf16.msra.mxu0 %v944_v28  ;;  %v912_v63 = vcvt.s32.f32 %v818_v1  ;;  %v952_v12 = vpack.c.bf16 %v908_v60, %v904_v61  ;;  %v454_v35 = vand.u32 15, %v7524_v49  ;;  %v453_v29 = vand.u32 15, %v7527_v50 }
  0xd7   : > { %v730_v45 = vpop.permute.xlu1 %729  ;;  %v728_v48 = vpop.permute.xlu0 %727  ;;  %v949_v58 = vpack.c.bf16 %v901_v56, %v897_v52  ;;  %v517_v3 = vand.u32 15, %v501_v4 }
  0xd8   : > { %v833_v8 = vsel %vm807_vm0, %v512_v24, %v730_v45  ;;  %v832_v13 = vsel %vm807_vm0, %v511_v46, %v728_v48  ;;  %1112 = vadd.xlane.f32.xlu0 %v1110_v23  ;;  %v821_v23 = vsel %vm807_vm0, %v452_v54, %v7667_v6  ;;  %v820_v46 = vsel %vm807_vm0, %v451_v47, %v7669_v7 }
  0xd9   : > { %v909_v16 = vcvt.s32.f32 %v833_v8  ;;  %v905_v21 = vcvt.s32.f32 %v832_v13  ;;  %980 = vmatprep.subr.bf16.mxu0 %v949_v58  ;;  %v924_v56 = vcvt.s32.f32 %v821_v23  ;;  %v920_v52 = vcvt.s32.f32 %v820_v46  ;;  %v7759_v8 = vld [vmem:[%s7442_s17 + $0x88] sm:$0xff]  ;;  %v7762_v13 = vld [vmem:[%s7442_s17 + $0x80] sm:$0xff] }
  0xda   : > { %981 = vmatpush1.bf16.msra.mxu0 %v948_v59  ;;  %v518_v7 = vand.u32 15, %v502_v39  ;;  %v823_v60 = vsel %vm807_vm0, %v454_v35, %v7676_v19  ;;  %v822_v61 = vsel %vm807_vm0, %v453_v29, %v7678_v20  ;;  %12451 = vst [vmem:[#allocation10_spill] sm:$0xff] %v7759_v8  ;;  %12452 = vst [vmem:[#allocation11_spill] sm:$0xff] %v7762_v13  ;;  %v1239_v39 = vshra.s32 %v7762_v13, 4 }
  0xdb   : > { %v734_v5 = vpop.permute.xlu1 %733  ;;  %v732_v14 = vpop.permute.xlu0 %731  ;;  %v953_v24 = vpack.c.bf16 %v909_v16, %v905_v21  ;;  %v960_v1 = vpack.c.bf16 %v924_v56, %v920_v52  ;;  %v932_v16 = vcvt.s32.f32 %v823_v60  ;;  %v928_v21 = vcvt.s32.f32 %v822_v61 }
  0xdc   : > { %v835_v22 = vsel %vm807_vm0, %v514_v55, %v734_v5  ;;  %v834_v28 = vsel %vm807_vm0, %v513_v57, %v732_v14  ;;  %v956_v57 = vpack.c.bf16 %v916_v51, %v912_v63  ;;  %v7773_v5 = vld [vmem:[%s7442_s17 + $0x98] sm:$0xff]  ;;  %v7776_v14 = vld [vmem:[%s7442_s17 + $0x90] sm:$0xff]  ;;  %v1255_v46 = vand.u32 15, %v1239_v39 }
  0xdd   : > { %v917_v41 = vcvt.s32.f32 %v835_v22  ;;  %v913_v36 = vcvt.s32.f32 %v834_v28  ;;  %982 = vmatprep.subr.bf16.mxu0 %v953_v24  ;;  %1114 = vadd.xlane.f32.xlu1 %v1111_v27  ;;  %12453 = vst [vmem:[#allocation12_spill] sm:$0xff] %v7773_v5  ;;  %12454 = vst [vmem:[#allocation13_spill] sm:$0xff] %v7776_v14  ;;  %v964_v24 = vpack.c.bf16 %v932_v16, %v928_v21  ;;  %v1242_v22 = vshra.s32 %v7773_v5, 4 }
  0xde   : > { %983 = vmatpush1.bf16.msra.mxu0 %v952_v12  ;;  %v7780_v12 = vcombine.low %v7710_v30, %v7731_v34  ;;  %v1241_v28 = vshra.s32 %v7776_v14, 4  ;;  %v552_v60 = vshra.s32 %v7470_v15, 16  ;;  %v551_v61 = vshra.s32 %v7461_v10, 16 }
  0xdf   : > { %v738_v2 = vpop.permute.xlu1 %737  ;;  %v736_v6 = vpop.permute.xlu0 %735  ;;  %v957_v54 = vpack.c.bf16 %v917_v41, %v913_v36  ;;  %v7789_v41 = vld [vmem:[%s7442_s17 + $0xa8] sm:$0xff]  ;;  %v7792_v36 = vld [vmem:[%s7442_s17 + $0xa0] sm:$0xff]  ;;  %v1258_v30 = vand.u32 15, %v1242_v22  ;;  %v558_v22 = vshra.s32 %v7484_v25, 16 }
  0xe0   : > { %v837_v47 = vsel %vm807_vm0, %v516_v62, %v738_v2  ;;  %v836_v55 = vsel %vm807_vm0, %v515_v40, %v736_v6  ;;  %v1240_v40 = vshra.s32 %v7759_v8, 4  ;;  %12455 = vst [vmem:[#allocation14_spill] sm:$0xff] %v7780_v12  ;;  %v1257_v34 = vand.u32 15, %v1241_v28 }
  0xe1   : > { %v925_v45 = vcvt.s32.f32 %v837_v47  ;;  %v921_v48 = vcvt.s32.f32 %v836_v55  ;;  %984 = vmatprep.subr.bf16.mxu0 %v957_v54  ;;  %v1244_v56 = vshra.s32 %v7789_v41, 4  ;;  %v1243_v52 = vshra.s32 %v7792_v36, 4  ;;  %v7804_v54 = vld [vmem:[%s7442_s17 + $0xb8] sm:$0xff] }
  0xe2   : > { %985 = vmatpush1.bf16.msra.mxu0 %v956_v57  ;;  %v1256_v23 = vand.u32 15, %v1240_v40  ;;  %v1246_v57 = vshra.s32 %v7804_v54, 4  ;;  %v557_v28 = vshra.s32 %v7487_v26, 16 }
  0xe3   : > { %v742_v58 = vpop.permute.xlu1 %741  ;;  %v740_v59 = vpop.permute.xlu0 %739  ;;  %v961_v0 = vpack.c.bf16 %v925_v45, %v921_v48  ;;  %v1260_v47 = vand.u32 15, %v1244_v56  ;;  %v1259_v55 = vand.u32 15, %v1243_v52  ;;  %v562_v56 = vshra.s32 %v7504_v37, 16 }
  0xe4   : > { %v839_v19 = vsel %vm807_vm0, %v518_v7, %v742_v58  ;;  %v838_v20 = vsel %vm807_vm0, %v517_v3, %v740_v59  ;;  %v7807_v7 = vld [vmem:[%s7442_s17 + $0xb0] sm:$0xff]  ;;  %v7821_v58 = vld [vmem:[%s7442_s17 + $0xc8] sm:$0xff]  ;;  %v7824_v59 = vld [vmem:[%s7442_s17 + $0xc0] sm:$0xff]  ;;  %v561_v52 = vshra.s32 %v7507_v38, 16  ;;  %v7880_v42 = vand.u32 15, %v557_v28 }
  0xe5   : > { %v933_v27 = vcvt.s32.f32 %v839_v19  ;;  %v929_v62 = vcvt.s32.f32 %v838_v20  ;;  %986 = vmatprep.subr.bf16.mxu0 %v961_v0  ;;  %v1245_v3 = vshra.s32 %v7807_v7, 4  ;;  %v1262_v0 = vand.u32 15, %v1246_v57 }
  0xe6   : > { %987 = vmatpush1.bf16.msra.mxu0 %v960_v1  ;;  %v1248_v16 = vshra.s32 %v7821_v58, 4  ;;  %v1247_v21 = vshra.s32 %v7824_v59, 4  ;;  %v7830_v19 = vand.u32 15, %v552_v60  ;;  %v7832_v20 = vand.u32 15, %v551_v61  ;;  %v7859_v60 = vld [vmem:[%s7442_s17 + $0xe8] sm:$0xff] }
  0xe7   : > { %v7768_v4 = vpop.permute.xlu1 %745  ;;  %v7770_v51 = vpop.permute.xlu0 %743  ;;  %v965_v63 = vpack.c.bf16 %v933_v27, %v929_v62  ;;  %v1261_v1 = vand.u32 15, %v1245_v3  ;;  %v554_v27 = vshra.s32 %v7464_v11, 16  ;;  %v553_v62 = vshra.s32 %v7458_v9, 16  ;;  %12457 = vst [vmem:[#allocation16_spill] sm:$0xff] %v7859_v60 }
  0xe8   : > { %v1252_v53 = vshra.s32 %v7859_v60, 4  ;;  %v616_v60 = vshra.s32 %v7470_v15, 24  ;;  %v1303_v15 = vshra.s32 %v7762_v13, 12 }
  0xe9   : > { %988 = vmatprep.subr.bf16.mxu0 %v965_v63  ;;  %v7841_v63 = vld [vmem:[%s7442_s17 + $0xd8] sm:$0xff]  ;;  %v7866_v37 = vand.u32 15, %v553_v62 }
  0xea   : > { %989 = vmatpush1.bf16.msra.mxu0 %v964_v24  ;;  %v7844_v24 = vld [vmem:[%s7442_s17 + $0xd0] sm:$0xff]  ;;  %v1250_v57 = vshra.s32 %v7841_v63, 4 }
  0xeb   : > { %v7784_v35 = vpop.permute.xlu1 %749  ;;  %v7786_v29 = vpop.permute.xlu0 %747  ;;  %12456 = vst [vmem:[#allocation15_spill] sm:$0xff] %v7844_v24  ;;  %v1249_v3 = vshra.s32 %v7844_v24, 4  ;;  %v7889_v24 = vld [vmem:[%s7442_s17 + $0xf8] sm:$0xff] }
  0xec   : > { %12459 = vst [vmem:[#allocation18_spill] sm:$0xff] %v7889_v24 }
  0xed   : > { %1007 = vmatmul.mubr.bf16.vlgmr.msra.gmra.mrb[0].mxu0 %v7780_v12 }
  0xee   : > { %1465 = vrot.lane.b32.xlu1 %v1256_v23, %s7355_s8  ;;  %1463 = vrot.lane.b32.xlu0 %v1255_v46, %s7355_s8  ;;  %v556_v23 = vshra.s32 %v7474_v17, 16  ;;  %v555_v46 = vshra.s32 %v7477_v18, 16 }
  0xef   : > { %v7799_v2 = vpop.permute.xlu1 %753  ;;  %v7801_v6 = vpop.permute.xlu0 %751  ;;  %1789 = vmatprep.mubr.bf16.mxu0 %v12234_v33  ;;  %v7878_v33 = vand.u32 15, %v558_v22  ;;  %v1265_v22 = vand.u32 15, %v1249_v3  ;;  %v1268_v3 = vand.u32 15, %v1252_v53 }
  0xf2   : > { %1469 = vrot.lane.b32.xlu1 %v1258_v30, %s7355_s8  ;;  %1467 = vrot.lane.b32.xlu0 %v1257_v34, %s7355_s8  ;;  %v560_v30 = vshra.s32 %v7494_v31, 16  ;;  %v559_v34 = vshra.s32 %v7497_v32, 16  ;;  %v7862_v31 = vld [vmem:[%s7442_s17 + $0xe0] sm:$0xff]  ;;  %v7864_v32 = vand.u32 15, %v554_v27 }
  0xf3   : > { %v7816_v45 = vpop.permute.xlu1 %757  ;;  %v7818_v48 = vpop.permute.xlu0 %755  ;;  %12458 = vst [vmem:[#allocation17_spill] sm:$0xff] %v7862_v31  ;;  %v1251_v12 = vshra.s32 %v7862_v31, 4 }
  0xf4   : > { %v7882_v27 = vand.u32 15, %v560_v30  ;;  %v7884_v62 = vand.u32 15, %v559_v34 }
  0xf6   : > { %1473 = vrot.lane.b32.xlu1 %v1260_v47, %s7355_s8  ;;  %1471 = vrot.lane.b32.xlu0 %v1259_v55, %s7355_s8  ;;  %v1264_v47 = vand.u32 15, %v1248_v16  ;;  %v1263_v55 = vand.u32 15, %v1247_v21  ;;  %v7874_v16 = vand.u32 15, %v556_v23  ;;  %v7876_v21 = vand.u32 15, %v555_v46 }
  0xf7   : > { %v7836_v40 = vpop.permute.xlu1 %761  ;;  %v7838_v39 = vpop.permute.xlu0 %759  ;;  %v7896_v23 = vand.u32 15, %v561_v52  ;;  %v1266_v46 = vand.u32 15, %v1250_v57  ;;  %v619_v52 = vshra.s32 %v7477_v18, 24 }
  0xfa   : > { %1477 = vrot.lane.b32.xlu1 %v1262_v0, %s7355_s8  ;;  %1475 = vrot.lane.b32.xlu0 %v1261_v1, %s7355_s8  ;;  %v564_v0 = vshra.s32 %v7514_v43, 16  ;;  %v563_v1 = vshra.s32 %v7517_v44, 16  ;;  %v7892_v43 = vld [vmem:[%s7442_s17 + $0xf0] sm:$0xff]  ;;  %v7894_v44 = vand.u32 15, %v562_v56  ;;  %v615_v56 = vshra.s32 %v7461_v10, 24 }
  0xfb   : > { %v7868_v38 = vpop.permute.xlu1 %765  ;;  %v7870_v61 = vpop.permute.xlu0 %763  ;;  %12460 = vst [vmem:[#allocation19_spill] sm:$0xff] %v7892_v43  ;;  %v1253_v57 = vshra.s32 %v7892_v43, 4  ;;  %v1304_v10 = vshra.s32 %v7759_v8, 12 }
  0xfc   : > { %v7900_v28 = vand.u32 15, %v564_v0  ;;  %v7904_v34 = vand.u32 15, %v563_v1  ;;  %v1267_v0 = vand.u32 15, %v1251_v12  ;;  %v617_v1 = vshra.s32 %v7458_v9, 24 }
  0xfd   : > { %v632_v12 = vand.u32 15, %v616_v60  ;;  %v1306_v9 = vshra.s32 %v7773_v5, 12  ;;  %v1269_v18 = vand.u32 15, %v1253_v57  ;;  %v621_v60 = vshra.s32 %v7487_v26, 24 }
  0xfe   : > { %1481 = vrot.lane.b32.xlu1 %v1264_v47, %s7355_s8  ;;  %1479 = vrot.lane.b32.xlu0 %v1263_v55, %s7355_s8  ;;  %12461 = vst [vmem:[#allocation20_spill] sm:$0xff] %v7900_v28  ;;  %v1254_v55 = vshra.s32 %v7889_v24, 4  ;;  %v618_v28 = vshra.s32 %v7464_v11, 24  ;;  %v620_v47 = vshra.s32 %v7474_v17, 24  ;;  %v631_v11 = vand.u32 15, %v615_v56 }
  0xff   : > { %v7902_v30 = vpop.permute.xlu1 %769  ;;  %v7906_v31 = vpop.permute.xlu0 %767  ;;  %v840_v17 = vsel %vm807_vm0, %v7832_v20, %v7770_v51  ;;  %v633_v43 = vand.u32 15, %v617_v1  ;;  %v1320_v56 = vand.u32 15, %v1304_v10  ;;  %v1322_v20 = vand.u32 15, %v1306_v9  ;;  %v7151_v1 = vld [vmem:[%s7442_s17 + $0x48] sm:$0xff] }
 0x100   : > { %v1270_v13 = vand.u32 15, %v1254_v55  ;;  %v634_v8 = vand.u32 15, %v618_v28  ;;  %v636_v5 = vand.u32 15, %v620_v47  ;;  %v842_v26 = vsel %vm807_vm0, %v7866_v37, %v7786_v29  ;;  %v7152_v37 = vld [vmem:[%s7442_s17 + $0x40] sm:$0xff] }
 0x101   : > { %v624_v29 = vshra.s32 %v7151_v1, 24 }
 0x102   : > { %1485 = vrot.lane.b32.xlu1 %v1266_v46, %s7355_s8  ;;  %1483 = vrot.lane.b32.xlu0 %v1265_v22, %s7355_s8  ;;  %v1305_v46 = vshra.s32 %v7776_v14, 12  ;;  %v841_v22 = vsel %vm807_vm0, %v7830_v19, %v7768_v4  ;;  %v1319_v14 = vand.u32 15, %v1303_v15  ;;  %v635_v4 = vand.u32 15, %v619_v52 }
 0x103   : > { %v7922_v24 = vpop.permute.xlu1 %773  ;;  %v7924_v53 = vpop.permute.xlu0 %771  ;;  %v878_v19 = vcvt.s32.f32 %v841_v22  ;;  %v882_v15 = vcvt.s32.f32 %v842_v26 }
 0x104   : > { %12462 = vst [vmem:[#allocation21_spill] sm:$0xff] %v7922_v24  ;;  %12463 = vst [vmem:[#allocation22_spill] sm:$0xff] %v7924_v53  ;;  %v622_v53 = vshra.s32 %v7484_v25, 24  ;;  %v874_v24 = vcvt.s32.f32 %v840_v17  ;;  %v7938_v28 = vand.u32 15, %v1305_v46  ;;  %v843_v25 = vsel %vm807_vm0, %v7864_v32, %v7784_v35 }
 0x105   : > { %v1308_v35 = vshra.s32 %v7789_v41, 12  ;;  %v1307_v32 = vshra.s32 %v7792_v36, 12  ;;  %v886_v10 = vcvt.s32.f32 %v843_v25  ;;  %v844_v46 = vsel %vm807_vm0, %v7876_v21, %v7801_v6 }
 0x106   : > { %1489 = vrot.lane.b32.xlu1 %v1268_v3, %s7355_s8  ;;  %1487 = vrot.lane.b32.xlu0 %v1267_v0, %s7355_s8  ;;  %v7948_v3 = vand.u32 15, %v622_v53  ;;  %v7950_v0 = vand.u32 15, %v621_v60  ;;  %v938_v9 = vpack.c.bf16 %v878_v19, %v874_v24  ;;  %v1309_v25 = vshra.s32 %v7807_v7, 12 }
 0x107   : > { %v778_v50 = vpop.permute.xlu1 %777  ;;  %v776_v51 = vpop.permute.xlu0 %775  ;;  %v1324_v24 = vand.u32 15, %v1308_v35  ;;  %v890_v6 = vcvt.s32.f32 %v844_v46  ;;  %v7155_v46 = vld [vmem:[%s7442_s17 + $0x68] sm:$0xff] }
 0x108   : > { %v857_v47 = vsel %vm807_vm0, %v632_v12, %v778_v50  ;;  %v856_v52 = vsel %vm807_vm0, %v631_v11, %v776_v51  ;;  %v623_v50 = vshra.s32 %v7152_v37, 24  ;;  %v1310_v51 = vshra.s32 %v7804_v54, 12 }
 0x109   : > { %v875_v55 = vcvt.s32.f32 %v856_v52  ;;  %v879_v57 = vcvt.s32.f32 %v857_v47  ;;  %v942_v47 = vpack.c.bf16 %v886_v10, %v882_v15  ;;  %v847_v52 = vsel %vm807_vm0, %v7878_v33, %v7816_v45 }
 0x10a   : > { %1493 = vrot.lane.b32.xlu1 %v1270_v13, %s7355_s8  ;;  %1491 = vrot.lane.b32.xlu0 %v1269_v18, %s7355_s8  ;;  %v845_v13 = vsel %vm807_vm0, %v7874_v16, %v7799_v2  ;;  %v1323_v2 = vand.u32 15, %v1307_v32  ;;  %v640_v16 = vand.u32 15, %v624_v29  ;;  %v639_v19 = vand.u32 15, %v623_v50  ;;  %v7153_v29 = vld [vmem:[%s7442_s17 + $0x58] sm:$0xff]  ;;  %v7154_v50 = vld [vmem:[%s7442_s17 + $0x50] sm:$0xff] }
 0x10b   : > { %v782_v12 = vpop.permute.xlu1 %781  ;;  %v780_v11 = vpop.permute.xlu0 %779  ;;  %v939_v53 = vpack.c.bf16 %v879_v57, %v875_v55  ;;  %v894_v26 = vcvt.s32.f32 %v845_v13  ;;  %v1326_v32 = vand.u32 15, %v1310_v51  ;;  %v1325_v1 = vand.u32 15, %v1309_v25 }
 0x10c   : > { %v859_v22 = vsel %vm807_vm0, %v634_v8, %v782_v12  ;;  %v858_v17 = vsel %vm807_vm0, %v633_v43, %v780_v11  ;;  %v626_v37 = vshra.s32 %v7153_v29, 24  ;;  %v625_v33 = vshra.s32 %v7154_v50, 24  ;;  %v12465_v50 = vld [vmem:[#allocation20_spill] sm:$0xff] }
 0x10d   : > { %v887_v18 = vcvt.s32.f32 %v859_v22  ;;  %v883_v60 = vcvt.s32.f32 %v858_v17  ;;  %1017 = vmatprep.subr.bf16.mxu1 %v939_v53  ;;  %v1312_v45 = vshra.s32 %v7821_v58, 12  ;;  %v946_v12 = vpack.c.bf16 %v894_v26, %v890_v6  ;;  %v7156_v17 = vld [vmem:[%s7442_s17 + $0x60] sm:$0xff] }
 0x10e   : > { %1018 = vmatpush1.bf16.msra.mxu1 %v938_v9  ;;  %1497 = vrot.lane.b32.xlu1 %v1320_v56, %s7355_s8  ;;  %v846_v56 = vsel %vm807_vm0, %v7880_v42, %v7818_v48  ;;  %v1311_v42 = vshra.s32 %v7824_v59, 12  ;;  %v848_v11 = vsel %vm807_vm0, %v7884_v62, %v7838_v39  ;;  %v628_v22 = vshra.s32 %v7155_v46, 24  ;;  %v12470_v46 = vld [vmem:[#allocation17_spill] sm:$0xff] }
 0x10f   : > { %1495 = vrot.lane.b32.xlu0 %v1319_v14, %s7355_s8  ;;  %v786_v8 = vpop.permute.xlu1 %785  ;;  %v784_v21 = vpop.permute.xlu0 %783  ;;  %v943_v43 = vpack.c.bf16 %v887_v18, %v883_v60  ;;  %v898_v48 = vcvt.s32.f32 %v846_v56  ;;  %v627_v18 = vshra.s32 %v7156_v17, 24  ;;  %v1328_v60 = vand.u32 15, %v1312_v45 }
 0x110   : > { %v861_v55 = vsel %vm807_vm0, %v636_v5, %v786_v8  ;;  %v860_v57 = vsel %vm807_vm0, %v635_v4, %v784_v21  ;;  %v902_v5 = vcvt.s32.f32 %v847_v52  ;;  %v1327_v39 = vand.u32 15, %v1311_v42 }
 0x111   : > { %v895_v35 = vcvt.s32.f32 %v861_v55  ;;  %v891_v14 = vcvt.s32.f32 %v860_v57  ;;  %1019 = vmatprep.subr.bf16.mxu1 %v943_v43  ;;  %v906_v51 = vcvt.s32.f32 %v848_v11  ;;  %v851_v6 = vsel %vm807_vm0, %v7894_v44, %v7868_v38  ;;  %v12464_v55 = vld [vmem:[#allocation15_spill] sm:$0xff]  ;;  %v7157_v44 = vld [vmem:[%s7442_s17 + $0x78] sm:$0xff] }
 0x112   : > { %1020 = vmatpush1.bf16.msra.mxu1 %v942_v47  ;;  %1501 = vrot.lane.b32.xlu1 %v1322_v20, %s7355_s8  ;;  %v849_v20 = vsel %vm807_vm0, %v7882_v27, %v7836_v40  ;;  %v642_v40 = vand.u32 15, %v626_v37  ;;  %v641_v27 = vand.u32 15, %v625_v33  ;;  %v950_v26 = vpack.c.bf16 %v902_v5, %v898_v48 }
 0x113   : > { %1499 = vrot.lane.b32.xlu0 %v7938_v28, %s7355_s8  ;;  %v790_v4 = vpop.permute.xlu1 %789  ;;  %v788_v10 = vpop.permute.xlu0 %787  ;;  %v947_v15 = vpack.c.bf16 %v895_v35, %v891_v14  ;;  %v910_v62 = vcvt.s32.f32 %v849_v20  ;;  %v644_v47 = vand.u32 15, %v628_v22  ;;  %v643_v52 = vand.u32 15, %v627_v18  ;;  %v7158_v35 = vld [vmem:[%s7442_s17 + $0x70] sm:$0xff] }
 0x114   : > { %v863_v53 = vsel %vm807_vm0, %v7948_v3, %v790_v4  ;;  %v862_v9 = vsel %vm807_vm0, %v7950_v0, %v788_v10  ;;  %v1314_v56 = vshra.s32 %v7841_v63, 12  ;;  %v1313_v38 = vshra.s32 %v12464_v55, 12 }
 0x115   : > { %v903_v13 = vcvt.s32.f32 %v863_v53  ;;  %v899_v28 = vcvt.s32.f32 %v862_v9  ;;  %1021 = vmatprep.subr.bf16.mxu1 %v947_v15  ;;  %v630_v57 = vshra.s32 %v7157_v44, 24  ;;  %v954_v37 = vpack.c.bf16 %v910_v62, %v906_v51  ;;  %v12472_v51 = vld [vmem:[#allocation22_spill] sm:$0xff] }
 0x116   : > { %1022 = vmatpush1.bf16.msra.mxu1 %v946_v12  ;;  %1505 = vrot.lane.b32.xlu1 %v1324_v24, %s7355_s8  ;;  %v850_v24 = vsel %vm807_vm0, %v7896_v23, %v7870_v61  ;;  %v629_v61 = vshra.s32 %v7158_v35, 24  ;;  %v918_v23 = vcvt.s32.f32 %v851_v6  ;;  %v852_v33 = vsel %vm807_vm0, %v7904_v34, %v7906_v31  ;;  %v12469_v31 = vld [vmem:[#allocation16_spill] sm:$0xff] }
 0x117   : > { %1503 = vrot.lane.b32.xlu0 %v1323_v2, %s7355_s8  ;;  %v794_v3 = vpop.permute.xlu1 %793  ;;  %v792_v0 = vpop.permute.xlu0 %791  ;;  %v951_v25 = vpack.c.bf16 %v903_v13, %v899_v28  ;;  %v12466_v5 = vshra.s32 %v7524_v49, 16  ;;  %v1329_v20 = vand.u32 15, %v1313_v38  ;;  %v646_v11 = vand.u32 15, %v630_v57 }
 0x118   : > { %v865_v8 = vsel %vm807_vm0, %v640_v16, %v794_v3  ;;  %v864_v21 = vsel %vm807_vm0, %v639_v19, %v792_v0  ;;  %v914_v16 = vcvt.s32.f32 %v850_v24  ;;  %v1316_v34 = vshra.s32 %v12469_v31, 12 }
 0x119   : > { %v911_v43 = vcvt.s32.f32 %v865_v8  ;;  %v907_v2 = vcvt.s32.f32 %v864_v21  ;;  %1023 = vmatprep.subr.bf16.mxu1 %v951_v25  ;;  %v582_v48 = vand.u32 15, %v12466_v5  ;;  %v922_v9 = vcvt.s32.f32 %v852_v33 }
 0x11a   : > { %1024 = vmatpush1.bf16.msra.mxu1 %v950_v26  ;;  %1509 = vrot.lane.b32.xlu1 %v1326_v32, %s7355_s8  ;;  %v853_v32 = vsel %vm807_vm0, %v12465_v50, %v7902_v30  ;;  %v1330_v30 = vand.u32 15, %v1314_v56  ;;  %v1315_v22 = vshra.s32 %v12470_v46, 12  ;;  %v12473_v26 = vld [vmem:[#allocation18_spill] sm:$0xff] }
 0x11b   : > { %1507 = vrot.lane.b32.xlu0 %v1325_v1, %s7355_s8  ;;  %v798_v19 = vpop.permute.xlu1 %797  ;;  %v796_v14 = vpop.permute.xlu0 %795  ;;  %v955_v29 = vpack.c.bf16 %v911_v43, %v907_v2  ;;  %v12467_v1 = vld [vmem:[#allocation7_spill] sm:$0xff]  ;;  %v926_v53 = vcvt.s32.f32 %v853_v32  ;;  %v1318_v6 = vshra.s32 %v12473_v26, 12 }
 0x11c   : > { %v867_v45 = vsel %vm807_vm0, %v642_v40, %v798_v19  ;;  %v866_v42 = vsel %vm807_vm0, %v641_v27, %v796_v14  ;;  %v12468_v4 = vshra.s32 %v12467_v1, 16  ;;  %v958_v40 = vpack.c.bf16 %v918_v23, %v914_v16  ;;  %v12475_v16 = vld [vmem:[#allocation10_spill] sm:$0xff] }
 0x11d   : > { %v919_v15 = vcvt.s32.f32 %v867_v45  ;;  %v915_v12 = vcvt.s32.f32 %v866_v42  ;;  %1025 = vmatprep.subr.bf16.mxu1 %v955_v29  ;;  %v645_v27 = vand.u32 15, %v629_v61  ;;  %v962_v43 = vpack.c.bf16 %v926_v53, %v922_v9  ;;  %v12477_v45 = vld [vmem:[#allocation12_spill] sm:$0xff] }
 0x11e   : > { %v581_v10 = vand.u32 15, %v12468_v4  ;;  %1026 = vmatpush1.bf16.msra.mxu1 %v954_v37  ;;  %1513 = vrot.lane.b32.xlu1 %v1328_v60, %s7355_s8  ;;  %v12471_v60 = vld [vmem:[#allocation21_spill] sm:$0xff]  ;;  %v1331_v2 = vand.u32 15, %v1315_v22  ;;  %v1334_v23 = vand.u32 15, %v1318_v6  ;;  %v1368_v19 = vshra.s32 %v12475_v16, 20  ;;  %v12476_v37 = vld [vmem:[#allocation11_spill] sm:$0xff] }
 0x11f   : > { %1511 = vrot.lane.b32.xlu0 %v1327_v39, %s7355_s8  ;;  %v802_v49 = vpop.permute.xlu1 %801  ;;  %v800_v13 = vpop.permute.xlu0 %799  ;;  %v959_v28 = vpack.c.bf16 %v919_v15, %v915_v12  ;;  %v855_v62 = vsel %vm807_vm0, %v582_v48, %v12471_v60  ;;  %v1332_v39 = vand.u32 15, %v1316_v34  ;;  %v1367_v50 = vshra.s32 %v12476_v37, 20  ;;  %v12478_v48 = vld [vmem:[#allocation13_spill] sm:$0xff]  ;;  %v12479_v4 = vld [vmem:[#allocation14_spill] sm:$0xff] }
 0x120   : > { %v869_v17 = vsel %vm807_vm0, %v644_v47, %v802_v49  ;;  %v868_v18 = vsel %vm807_vm0, %v643_v52, %v800_v13  ;;  %v854_v3 = vsel %vm807_vm0, %v581_v10, %v12472_v51  ;;  %v12474_v47 = vld [vmem:[#allocation19_spill] sm:$0xff]  ;;  %v934_v56 = vcvt.s32.f32 %v855_v62 }
 0x121   : > { %v927_v0 = vcvt.s32.f32 %v869_v17  ;;  %v923_v25 = vcvt.s32.f32 %v868_v18  ;;  %1027 = vmatprep.subr.bf16.mxu1 %v959_v28  ;;  %v1317_v52 = vshra.s32 %v12474_v47, 12  ;;  %v930_v38 = vcvt.s32.f32 %v854_v3 }
 0x122   : > { %1028 = vmatpush1.bf16.msra.mxu1 %v958_v40  ;;  %1517 = vrot.lane.b32.xlu1 %v1330_v30, %s7355_s8  ;;  %v1384_v33 = vand.u32 15, %v1368_v19  ;;  %v1370_v42 = vshra.s32 %v12477_v45, 20  ;;  %v1383_v5 = vand.u32 15, %v1367_v50  ;;  %v1369_v1 = vshra.s32 %v12478_v48, 20 }
 0x123   : > { %1515 = vrot.lane.b32.xlu0 %v1329_v20, %s7355_s8  ;;  %v806_v24 = vpop.permute.xlu1 %805  ;;  %v804_v8 = vpop.permute.xlu0 %803  ;;  %v963_v21 = vpack.c.bf16 %v927_v0, %v923_v25  ;;  %v1333_v29 = vand.u32 15, %v1317_v52  ;;  %v966_v32 = vpack.c.bf16 %v934_v56, %v930_v38  ;;  %v1372_v15 = vshra.s32 %v7789_v41, 20 }
 0x124   : > { %v871_v44 = vsel %vm807_vm0, %v646_v11, %v806_v24  ;;  %v870_v57 = vsel %vm807_vm0, %v645_v27, %v804_v8  ;;  %v1386_v10 = vand.u32 15, %v1370_v42  ;;  %v12480_v12 = vmov 0  }
 0x125   : > { %v935_v35 = vcvt.s32.f32 %v871_v44  ;;  %v931_v61 = vcvt.s32.f32 %v870_v57  ;;  %1029 = vmatprep.subr.bf16.mxu1 %v963_v21  ;;  %v1385_v30 = vand.u32 15, %v1369_v1  ;;  %v1371_v20 = vshra.s32 %v7792_v36, 20 }
 0x126   : > { %1030 = vmatpush1.bf16.msra.mxu1 %v962_v43  ;;  %1521 = vrot.lane.b32.xlu1 %v1332_v39, %s7355_s8  ;;  %v1388_v11 = vand.u32 15, %v1372_v15  ;;  %v1374_v34 = vshra.s32 %v7804_v54, 20  ;;  %v1373_v9 = vshra.s32 %v7807_v7, 20  ;;  %v1376_v13 = vshra.s32 %v7821_v58, 20 }
 0x127   : > { %1519 = vrot.lane.b32.xlu0 %v1331_v2, %s7355_s8  ;;  %v967_v14 = vpack.c.bf16 %v935_v35, %v931_v61  ;;  %v1387_v53 = vand.u32 15, %v1371_v20  ;;  %v1375_v22 = vshra.s32 %v7824_v59, 20  ;;  %v1378_v18 = vshra.s32 %v7841_v63, 20  ;;  %v8095_v61 = vpop.permute.xlu0 %1082  ;;  %v8104_v50 = vpop.permute.xlu1 %1088 }
 0x128   : > { %v1390_v49 = vand.u32 15, %v1374_v34  ;;  %v1389_v28 = vand.u32 15, %v1373_v9  ;;  %v1392_v17 = vand.u32 15, %v1376_v13  ;;  %v1377_v27 = vshra.s32 %v12464_v55, 20  ;;  %12481 = vst [vmem:[#allocation15_spill] sm:$0xff] %v8095_v61  ;;  %12482 = vst [vmem:[#allocation20_spill] sm:$0xff] %v8104_v50 }
 0x129   : > { %1031 = vmatprep.subr.bf16.mxu1 %v967_v14  ;;  %v1391_v40 = vand.u32 15, %v1375_v22  ;;  %v1394_v60 = vand.u32 15, %v1378_v18  ;;  %v1380_v62 = vshra.s32 %v12469_v31, 20  ;;  %v1379_v3 = vshra.s32 %v12470_v46, 20 }
 0x12a   : > { %1032 = vmatpush1.bf16.msra.mxu1 %v966_v32  ;;  %1525 = vrot.lane.b32.xlu1 %v1334_v23, %s7355_s8  ;;  %v1393_v51 = vand.u32 15, %v1377_v27  ;;  %v1382_v25 = vshra.s32 %v12473_v26, 20  ;;  %v1381_v6 = vshra.s32 %v12474_v47, 20  ;;  %v6946_v21 = vshrl.u32 %v12475_v16, 28 }
 0x12b   : > { %1523 = vrot.lane.b32.xlu0 %v1333_v29, %s7355_s8  ;;  %v1396_v0 = vand.u32 15, %v1380_v62  ;;  %v1395_v39 = vand.u32 15, %v1379_v3  ;;  %v6945_v43 = vshrl.u32 %v12476_v37, 28  ;;  %v6948_v2 = vshrl.u32 %v12477_v45, 28  ;;  %v6963_v29 = vld [vmem:[%s7447_s28 + $0x1] sm:$0x1]  ;;  %v8106_v32 = vpop.permute.xlu0 %1094 }
 0x12c   : > { %v1398_v24 = vand.u32 15, %v1382_v25  ;;  %v1397_v8 = vand.u32 15, %v1381_v6  ;;  %v6947_v52 = vshrl.u32 %v12478_v48, 28  ;;  %v6950_v56 = vshrl.u32 %v7789_v41, 28  ;;  %12483 = vst [vmem:[#allocation7_spill] sm:$0xff] %v8106_v32 }
 0x12d   : > { %1050 = vmatmul.mubr.bf16.vlgmr.msra.gmra.mrb[0].mxu1 %v12479_v4  ;;  %v6949_v38 = vshrl.u32 %v7792_v36, 28  ;;  %v6952_v44 = vshrl.u32 %v7804_v54, 28  ;;  %v6951_v57 = vshrl.u32 %v7807_v7, 28  ;;  %v6954_v35 = vshrl.u32 %v7821_v58, 28 }
 0x12e   : > { %1529 = vrot.lane.b32.xlu1 %v1384_v33, %s7355_s8  ;;  %1832 = vmatprep.mubr.bf16.mxu1 %v12480_v12  ;;  %v6953_v23 = vshrl.u32 %v7824_v59, 28  ;;  %v6956_v19 = vshrl.u32 %v7841_v63, 28  ;;  %v6955_v14 = vshrl.u32 %v12464_v55, 28  ;;  %v6958_v33 = vshrl.u32 %v12469_v31, 28 }
 0x12f   : > { %1527 = vrot.lane.b32.xlu0 %v1383_v5, %s7355_s8  ;;  %v1853_v42 = vshra.s32 %v6963_v29, 12  ;;  %v6957_v5 = vshrl.u32 %v12470_v46, 28  ;;  %v1849_v1 = vshra.s32 %v6963_v29, 4  ;;  %v6960_v15 = vshrl.u32 %v12473_v26, 28 }
 0x130   : > { %v6959_v20 = vshrl.u32 %v12474_v47, 28  ;;  %v1857_v34 = vshra.s32 %v6963_v29, 20 }
 0x132   : > { %1533 = vrot.lane.b32.xlu1 %v1386_v10, %s7355_s8  ;;  %v8114_v10 = vpop.permute.xlu1 %1100 }
 0x133   : > { %1531 = vrot.lane.b32.xlu0 %v1385_v30, %s7355_s8  ;;  %12485 = vst [vmem:[#allocation17_spill] sm:$0xff] %v8114_v10  ;;  %v1854_v30 = vand.u32 15, %v1853_v42  ;;  %v1229_v42 = vand.u32 15, %v7807_v7 }
 0x136   : > { %1537 = vrot.lane.b32.xlu1 %v1388_v11, %s7355_s8  ;;  %v1850_v11 = vand.u32 15, %v1849_v1  ;;  %v8168_v1 = vld [vmem:[%s7454_s7 + $0x4] sm:$0xf] }
 0x137   : > { %1535 = vrot.lane.b32.xlu0 %v1387_v53, %s7355_s8 }
 0x13a   : > { %1541 = vrot.lane.b32.xlu1 %v1390_v49, %s7355_s8  ;;  %v12487_v49 = vld [vmem:[#allocation9_spill] sm:$0xff] }
 0x13b   : > { %1539 = vrot.lane.b32.xlu0 %v1389_v28, %s7355_s8  ;;  %v1872_v13 = vrot.slane %v1854_v30, %v12487_v49  ;;  %v6964_v28 = vshrl.u32 %v6963_v29, 28  ;;  %v1866_v22 = vrot.slane %v1850_v11, %v12487_v49  ;;  %v1228_v30 = vand.u32 15, %v7789_v41 }
 0x13d   : > { %v1884_v27 = vrot.slane %v6964_v28, %v12487_v49  ;;  %v1275_v28 = vshra.s32 %v7792_v36, 8 }
 0x13e   : > { %1545 = vrot.lane.b32.xlu1 %v1392_v17, %s7355_s8  ;;  %v1858_v17 = vand.u32 15, %v1857_v34 }
 0x13f   : > { %1543 = vrot.lane.b32.xlu0 %v1391_v40, %s7355_s8 }
 0x142   : > { %1549 = vrot.lane.b32.xlu1 %v1394_v60, %s7355_s8  ;;  %v1878_v60 = vrot.slane %v1858_v17, %v12487_v49 }
 0x143   : > { %1547 = vrot.lane.b32.xlu0 %v1393_v51, %s7355_s8 }
 0x146   : > { %1553 = vrot.lane.b32.xlu1 %v1396_v0, %s7355_s8 }
 0x147   : > { %1551 = vrot.lane.b32.xlu0 %v1395_v39, %s7355_s8 }
 0x14a   : > { %1557 = vrot.lane.b32.xlu1 %v1398_v24, %s7355_s8 }
 0x14b   : > { %1555 = vrot.lane.b32.xlu0 %v1397_v8, %s7355_s8 }
 0x14e   : > { %1561 = vrot.lane.b32.xlu1 %v6946_v21, %s7355_s8 }
 0x14f   : > { %1559 = vrot.lane.b32.xlu0 %v6945_v43, %s7355_s8 }
 0x152   : > { %1565 = vrot.lane.b32.xlu1 %v6948_v2, %s7355_s8  ;;  %v1271_v2 = vshra.s32 %v12476_v37, 8 }
 0x153   : > { %1563 = vrot.lane.b32.xlu0 %v6947_v52, %s7355_s8 }
 0x156   : > { %1569 = vrot.lane.b32.xlu1 %v6950_v56, %s7355_s8  ;;  %v1272_v56 = vshra.s32 %v12475_v16, 8 }
 0x157   : > { %1567 = vrot.lane.b32.xlu0 %v6949_v38, %s7355_s8  ;;  %v1224_v38 = vand.u32 15, %v12475_v16  ;;  %v1274_v16 = vshra.s32 %v12477_v45, 8 }
 0x15a   : > { %1573 = vrot.lane.b32.xlu1 %v6952_v44, %s7355_s8  ;;  %v1287_v44 = vand.u32 15, %v1271_v2 }
 0x15b   : > { %1571 = vrot.lane.b32.xlu0 %v6951_v57, %s7355_s8 }
 0x15e   : > { %1577 = vrot.lane.b32.xlu1 %v6954_v35, %s7355_s8  ;;  %v1273_v35 = vshra.s32 %v12478_v48, 8 }
 0x15f   : > { %1575 = vrot.lane.b32.xlu0 %v6953_v23, %s7355_s8  ;;  %v1223_v23 = vand.u32 15, %v12476_v37 }
 0x160   : > { %v1289_v34 = vand.u32 15, %v1273_v35 }
 0x162   : > { %1581 = vrot.lane.b32.xlu1 %v6956_v19, %s7355_s8  ;;  %v1225_v19 = vand.u32 15, %v12478_v48  ;;  %v1230_v48 = vand.u32 15, %v7804_v54 }
 0x163   : > { %1579 = vrot.lane.b32.xlu0 %v6955_v14, %s7355_s8  ;;  %v1227_v14 = vand.u32 15, %v7792_v36 }
 0x165   : > { %v8112_v4 = vpop.xlane.xlu0 %1112 }
 0x166   : > { %12484 = vst [vmem:[#allocation16_spill] sm:$0xff] %v8112_v4  ;;  %1585 = vrot.lane.b32.xlu1 %v6958_v33, %s7355_s8  ;;  %v1226_v33 = vand.u32 15, %v12477_v45  ;;  %v1232_v45 = vand.u32 15, %v7821_v58 }
 0x167   : > { %1583 = vrot.lane.b32.xlu0 %v6957_v5, %s7355_s8  ;;  %v1288_v5 = vand.u32 15, %v1272_v56  ;;  %v1290_v56 = vand.u32 15, %v1274_v16 }
 0x169   : > { %v1464_v53 = vpop.permute.xlu0 %1463 }
 0x16a   : > { %1589 = vrot.lane.b32.xlu1 %v6960_v15, %s7355_s8  ;;  %v8121_v9 = vpop.xlane.xlu1 %1114 }
 0x16b   : > { %12486 = vst [vmem:[#allocation21_spill] sm:$0xff] %v8121_v9  ;;  %1587 = vrot.lane.b32.xlu0 %v6959_v20, %s7355_s8  ;;  %v1291_v20 = vand.u32 15, %v1275_v28  ;;  %v8422_v9 = vld [vmem:[%s7442_s17 + $0xc8] sm:$0xff] }
 0x16c   : > { %v1344_v4 = vshra.s32 %v8422_v9, 16 }
 0x16d   : > { %v8126_v18 = vpop.permute.xlu0 %1467 }
 0x16e   : > { %1873 = vrot.lane.b32.xlu1 %v1872_v13, %s7355_s8  ;;  %v1466_v40 = vpop.permute.xlu1 %1465 }
 0x16f   : > { %1867 = vrot.lane.b32.xlu0 %v1866_v22, %s7355_s8  ;;  %v1592_v15 = vsel %vm807_vm0, %v1224_v38, %v1466_v40  ;;  %v1591_v22 = vsel %vm807_vm0, %v1223_v23, %v1464_v53  ;;  %v8184_v38 = vld [vmem:[%s7454_s7 + $0x24] sm:$0xf] }
 0x170   : > { %v1655_v23 = vcvt.s32.f32 %v1591_v22 }
 0x171   : > { %v8132_v62 = vpop.permute.xlu0 %1471 }
 0x172   : > { %1885 = vrot.lane.b32.xlu1 %v1884_v27, %s7355_s8  ;;  %v1470_v51 = vpop.permute.xlu1 %1469  ;;  %v1895_v27 = vunpack.c.l.bf16 %v8168_v1 }
 0x173   : > { %1879 = vrot.lane.b32.xlu0 %v1878_v60, %s7355_s8  ;;  %v1659_v60 = vcvt.s32.f32 %v1592_v15  ;;  %v1277_v15 = vshra.s32 %v7807_v7, 8 }
 0x175   : > { %v8136_v3 = vpop.permute.xlu0 %1475 }
 0x176   : > { %v8138_v0 = vpop.permute.xlu1 %1473 }
 0x179   : > { %v8140_v25 = vpop.permute.xlu0 %1479 }
 0x17a   : > { %v8142_v39 = vpop.permute.xlu1 %1477 }
 0x17d   : > { %v8144_v6 = vpop.permute.xlu0 %1483 }
 0x17e   : > { %v8146_v24 = vpop.permute.xlu1 %1481 }
 0x17f   : > { %v1600_v7 = vsel %vm807_vm0, %v1232_v45, %v8146_v24 }
 0x181   : > { %v8148_v8 = vpop.permute.xlu0 %1487 }
 0x182   : > { %v8150_v21 = vpop.permute.xlu1 %1485 }
 0x185   : > { %v8152_v43 = vpop.permute.xlu0 %1491 }
 0x186   : > { %v8155_v52 = vpop.permute.xlu1 %1489 }
 0x189   : > { %v1496_v57 = vpop.permute.xlu0 %1495 }
 0x18a   : > { %v8163_v29 = vpop.permute.xlu1 %1493  ;;  %v1607_v11 = vsel %vm807_vm0, %v1287_v44, %v1496_v57  ;;  %v1276_v44 = vshra.s32 %v7789_v41, 8  ;;  %v1594_v57 = vsel %vm807_vm0, %v1226_v33, %v1470_v51  ;;  %v1896_v41 = vunpack.c.l.bf16 %v8184_v38 }
 0x18b   : > { %v1656_v53 = vcvt.s32.f32 %v1607_v11  ;;  %v1278_v51 = vshra.s32 %v7804_v54, 8  ;;  %v1719_v33 = vpack.c.bf16 %v1659_v60, %v1655_v23  ;;  %v1667_v11 = vcvt.s32.f32 %v1594_v57 }
 0x18c   : > { %v1279_v54 = vshra.s32 %v7824_v59, 8  ;;  %v1595_v60 = vsel %vm807_vm0, %v1227_v14, %v8132_v62  ;;  %v1281_v62 = vshra.s32 %v12464_v55, 8 }
 0x18d   : > { %v1500_v13 = vpop.permute.xlu0 %1499  ;;  %v1671_v14 = vcvt.s32.f32 %v1595_v60  ;;  %v1284_v60 = vshra.s32 %v12469_v31, 8 }
 0x18e   : > { %v1498_v40 = vpop.permute.xlu1 %1497  ;;  %v1609_v17 = vsel %vm807_vm0, %v1289_v34, %v1500_v13  ;;  %v1596_v34 = vsel %vm807_vm0, %v1228_v30, %v8138_v0  ;;  %v1237_v13 = vand.u32 15, %v12474_v47 }
 0x18f   : > { %v1608_v2 = vsel %vm807_vm0, %v1288_v5, %v1498_v40  ;;  %v1593_v5 = vsel %vm807_vm0, %v1225_v19, %v8126_v18  ;;  %v1664_v28 = vcvt.s32.f32 %v1609_v17  ;;  %v1675_v57 = vcvt.s32.f32 %v1596_v34 }
 0x190   : > { %v1660_v35 = vcvt.s32.f32 %v1608_v2  ;;  %v1292_v2 = vand.u32 15, %v1276_v44  ;;  %v1663_v18 = vcvt.s32.f32 %v1593_v5  ;;  %v1294_v44 = vand.u32 15, %v1278_v51 }
 0x191   : > { %v1504_v37 = vpop.permute.xlu0 %1503 }
 0x192   : > { %1897 = vadd.xlane.f32.xlu0 %v1895_v27  ;;  %v1502_v16 = vpop.permute.xlu1 %1501  ;;  %v1720_v40 = vpack.c.bf16 %v1660_v35, %v1656_v53  ;;  %v1611_v19 = vsel %vm807_vm0, %v1291_v20, %v1504_v37  ;;  %v1293_v27 = vand.u32 15, %v1277_v15  ;;  %v1723_v17 = vpack.c.bf16 %v1667_v11, %v1663_v18 }
 0x193   : > { %v1610_v22 = vsel %vm807_vm0, %v1290_v56, %v1502_v16  ;;  %v1236_v56 = vand.u32 15, %v12469_v31  ;;  %v1280_v37 = vshra.s32 %v7821_v58, 8  ;;  %v1598_v20 = vsel %vm807_vm0, %v1230_v48, %v8142_v39 }
 0x194   : > { %v1668_v36 = vcvt.s32.f32 %v1610_v22  ;;  %1757 = vmatprep.subr.bf16.mxu0 %v1720_v40  ;;  %v1672_v23 = vcvt.s32.f32 %v1611_v19  ;;  %v1283_v40 = vshra.s32 %v12470_v46, 8  ;;  %v1238_v39 = vand.u32 15, %v12473_v26 }
 0x195   : > { %v1508_v53 = vpop.permute.xlu0 %1507  ;;  %1758 = vmatpush1.bf16.msra.mxu0 %v1719_v33  ;;  %v1282_v33 = vshra.s32 %v7841_v63, 8  ;;  %v1727_v11 = vpack.c.bf16 %v1675_v57, %v1671_v14  ;;  %v1683_v22 = vcvt.s32.f32 %v1598_v20  ;;  %v1296_v34 = vand.u32 15, %v1280_v37 }
 0x196   : > { %1899 = vadd.xlane.f32.xlu1 %v1896_v41  ;;  %v1506_v0 = vpop.permute.xlu1 %1505  ;;  %v1724_v30 = vpack.c.bf16 %v1668_v36, %v1664_v28  ;;  %v1613_v5 = vsel %vm807_vm0, %v1293_v27, %v1508_v53  ;;  %v1295_v36 = vand.u32 15, %v1279_v54  ;;  %v1597_v41 = vsel %vm807_vm0, %v1229_v42, %v8136_v3  ;;  %v8219_v28 = vld [vmem:[%s7442_s17 + $0x108] sm:$0xff] }
 0x197   : > { %v1612_v35 = vsel %vm807_vm0, %v1292_v2, %v1506_v0  ;;  %12488 = vst [vmem:[#allocation22_spill] sm:$0xff] %v8219_v28  ;;  %v1680_v3 = vcvt.s32.f32 %v1613_v5  ;;  %v1297_v18 = vand.u32 15, %v1281_v62  ;;  %v1679_v19 = vcvt.s32.f32 %v1597_v41  ;;  %v8228_v0 = vld [vmem:[%s7442_s17 + $0x100] sm:$0xff]  ;;  %v8246_v5 = vld [vmem:[%s7442_s17 + $0x110] sm:$0xff] }
 0x198   : > { %v1676_v15 = vcvt.s32.f32 %v1612_v35  ;;  %1759 = vmatprep.subr.bf16.mxu0 %v1724_v30  ;;  %v1299_v54 = vand.u32 15, %v1283_v40  ;;  %12489 = vst [vmem:[#allocation18_spill] sm:$0xff] %v8228_v0  ;;  %v12490_v58 = vand.u32 15, %v7824_v59  ;;  %v1691_v35 = vcvt.s32.f32 %v1600_v7  ;;  %12493 = vst [vmem:[#allocation10_spill] sm:$0xff] %v8246_v5 }
 0x199   : > { %v1512_v16 = vpop.permute.xlu0 %1511  ;;  %1760 = vmatpush1.bf16.msra.mxu0 %v1723_v17  ;;  %v2025_v17 = vshra.s32 %v8219_v28, 4  ;;  %v1731_v57 = vpack.c.bf16 %v1683_v22, %v1679_v19  ;;  %v1285_v20 = vshra.s32 %v12474_v47, 8  ;;  %v2024_v14 = vshra.s32 %v8228_v0, 4 }
 0x19a   : > { %v1510_v48 = vpop.permute.xlu1 %1509  ;;  %v1728_v51 = vpack.c.bf16 %v1676_v15, %v1672_v23  ;;  %v1615_v27 = vsel %vm807_vm0, %v1295_v36, %v1512_v16  ;;  %v1599_v24 = vsel %vm807_vm0, %v12490_v58, %v8140_v25  ;;  %v8238_v23 = vld [vmem:[%s7442_s17 + $0x118] sm:$0xff]  ;;  %v12492_v15 = vand.u32 15, %v7841_v63 }
 0x19b   : > { %v1614_v2 = vsel %vm807_vm0, %v1294_v44, %v1510_v48  ;;  %v1298_v44 = vand.u32 15, %v1282_v33  ;;  %12491 = vst [vmem:[#allocation19_spill] sm:$0xff] %v8238_v23  ;;  %v1688_v62 = vcvt.s32.f32 %v1615_v27  ;;  %v1687_v36 = vcvt.s32.f32 %v1599_v24 }
 0x19c   : > { %v1684_v42 = vcvt.s32.f32 %v1614_v2  ;;  %1761 = vmatprep.subr.bf16.mxu0 %v1728_v51  ;;  %v1602_v59 = vsel %vm807_vm0, %v12492_v15, %v8150_v21  ;;  %v1300_v41 = vand.u32 15, %v1284_v60  ;;  %v1286_v48 = vshra.s32 %v12473_v26, 8 }
 0x19d   : > { %v1516_v53 = vpop.permute.xlu0 %1515  ;;  %1762 = vmatpush1.bf16.msra.mxu0 %v1727_v11  ;;  %v12494_v63 = vand.u32 15, %v12464_v55  ;;  %v2041_v11 = vand.u32 15, %v2025_v17  ;;  %v2027_v22 = vshra.s32 %v8238_v23, 4  ;;  %v1735_v2 = vpack.c.bf16 %v1691_v35, %v1687_v36  ;;  %v8288_v36 = vld [vmem:[%s7442_s17 + $0x130] sm:$0xff] }
 0x19e   : > { %v1514_v45 = vpop.permute.xlu1 %1513  ;;  %v1732_v30 = vpack.c.bf16 %v1684_v42, %v1680_v3  ;;  %v1617_v16 = vsel %vm807_vm0, %v1297_v18, %v1516_v53  ;;  %v2026_v3 = vshra.s32 %v8246_v5, 4  ;;  %v8258_v42 = vld [vmem:[%s7442_s17 + $0x128] sm:$0xff]  ;;  %v1604_v55 = vsel %vm807_vm0, %v1236_v56, %v8155_v52  ;;  %12499 = vst [vmem:[#allocation14_spill] sm:$0xff] %v8288_v36 }
 0x19f   : > { %v1616_v37 = vsel %vm807_vm0, %v1296_v34, %v1514_v45  ;;  %v1601_v21 = vsel %vm807_vm0, %v12494_v63, %v8144_v6  ;;  %v1699_v34 = vcvt.s32.f32 %v1602_v59  ;;  %12495 = vst [vmem:[#allocation11_spill] sm:$0xff] %v8258_v42  ;;  %v1696_v6 = vcvt.s32.f32 %v1617_v16  ;;  %v8266_v45 = vld [vmem:[%s7442_s17 + $0x120] sm:$0xff]  ;;  %v8282_v59 = vld [vmem:[%s7442_s17 + $0x138] sm:$0xff] }
 0x1a0   : > { %v1692_v25 = vcvt.s32.f32 %v1616_v37  ;;  %1763 = vmatprep.subr.bf16.mxu0 %v1732_v30  ;;  %v2040_v19 = vand.u32 15, %v2024_v14  ;;  %v1695_v27 = vcvt.s32.f32 %v1601_v21  ;;  %v1301_v60 = vand.u32 15, %v1285_v20  ;;  %12496 = vst [vmem:[#allocation12_spill] sm:$0xff] %v8266_v45  ;;  %12498 = vst [vmem:[#allocation13_spill] sm:$0xff] %v8282_v59 }
 0x1a1   : > { %v1520_v40 = vpop.permute.xlu0 %1519  ;;  %1764 = vmatpush1.bf16.msra.mxu0 %v1731_v57  ;;  %v1302_v24 = vand.u32 15, %v1286_v48  ;;  %v12497_v30 = vand.u32 15, %v12470_v46  ;;  %v2029_v17 = vshra.s32 %v8258_v42, 4  ;;  %v2042_v37 = vand.u32 15, %v2026_v3 }
 0x1a2   : > { %v1518_v51 = vpop.permute.xlu1 %1517  ;;  %v1736_v33 = vpack.c.bf16 %v1692_v25, %v1688_v62  ;;  %v1619_v53 = vsel %vm807_vm0, %v1299_v54, %v1520_v40  ;;  %v1739_v57 = vpack.c.bf16 %v1699_v34, %v1695_v27  ;;  %v1707_v54 = vcvt.s32.f32 %v1604_v55  ;;  %v8318_v27 = vld [vmem:[%s7442_s17 + $0x158] sm:$0xff] }
 0x1a3   : > { %v1618_v7 = vsel %vm807_vm0, %v1298_v44, %v1518_v51  ;;  %v1603_v31 = vsel %vm807_vm0, %v12497_v30, %v8148_v8  ;;  %v2043_v44 = vand.u32 15, %v2027_v22  ;;  %v1606_v46 = vsel %vm807_vm0, %v1238_v39, %v8163_v29  ;;  %v8305_v22 = vld [vmem:[%s7442_s17 + $0x140] sm:$0xff] }
 0x1a4   : > { %v1700_v18 = vcvt.s32.f32 %v1618_v7  ;;  %1765 = vmatprep.subr.bf16.mxu0 %v1736_v33  ;;  %v1704_v8 = vcvt.s32.f32 %v1619_v53  ;;  %v2028_v15 = vshra.s32 %v8266_v45, 4  ;;  %v1703_v62 = vcvt.s32.f32 %v1603_v31  ;;  %12501 = vst [vmem:[#allocation24_spill] sm:$0xff] %v8305_v22  ;;  %v8333_v31 = vld [vmem:[%s7442_s17 + $0x168] sm:$0xff] }
 0x1a5   : > { %v1524_v58 = vpop.permute.xlu0 %1523  ;;  %1766 = vmatpush1.bf16.msra.mxu0 %v1735_v2  ;;  %v1605_v26 = vsel %vm807_vm0, %v1237_v13, %v8152_v43  ;;  %v2045_v16 = vand.u32 15, %v2029_v17  ;;  %v2031_v63 = vshra.s32 %v8282_v59, 4  ;;  %v2030_v43 = vshra.s32 %v8288_v36, 4  ;;  %v8300_v13 = vld [vmem:[%s7442_s17 + $0x148] sm:$0xff] }
 0x1a6   : > { %v1522_v52 = vpop.permute.xlu1 %1521  ;;  %v1740_v56 = vpack.c.bf16 %v1700_v18, %v1696_v6  ;;  %v1621_v25 = vsel %vm807_vm0, %v1301_v60, %v1524_v58  ;;  %v1743_v40 = vpack.c.bf16 %v1707_v54, %v1703_v62  ;;  %v2044_v47 = vand.u32 15, %v2028_v15  ;;  %12500 = vst [vmem:[#allocation23_spill] sm:$0xff] %v8300_v13  ;;  %v8323_v60 = vld [vmem:[%s7442_s17 + $0x150] sm:$0xff] }
 0x1a7   : > { %v1620_v35 = vsel %vm807_vm0, %v1300_v41, %v1522_v52  ;;  %2250 = vrot.lane.b32.xlu1 %v2041_v11, %s7355_s8  ;;  %v1715_v41 = vcvt.s32.f32 %v1606_v46  ;;  %v1712_v21 = vcvt.s32.f32 %v1621_v25  ;;  %v1711_v33 = vcvt.s32.f32 %v1605_v26  ;;  %v8360_v62 = vld [vmem:[%s7442_s17 + $0x90] sm:$0xff] }
 0x1a8   : > { %v1708_v20 = vcvt.s32.f32 %v1620_v35  ;;  %2248 = vrot.lane.b32.xlu0 %v2040_v19, %s7355_s8  ;;  %1767 = vmatprep.subr.bf16.mxu0 %v1740_v56  ;;  %v2047_v3 = vand.u32 15, %v2031_v63  ;;  %v2033_v55 = vshra.s32 %v8300_v13, 4  ;;  %v8313_v6 = vcombine.low %v8168_v1, %v8184_v38  ;;  %v8338_v56 = vld [vmem:[%s7442_s17 + $0x160] sm:$0xff] }
 0x1a9   : > { %v8285_v14 = vpop.permute.xlu0 %1527  ;;  %1768 = vmatpush1.bf16.msra.mxu0 %v1739_v57  ;;  %v1747_v7 = vpack.c.bf16 %v1715_v41, %v1711_v33  ;;  %v2046_v18 = vand.u32 15, %v2030_v43  ;;  %v2032_v19 = vshra.s32 %v8305_v22, 4  ;;  %v2035_v38 = vshra.s32 %v8318_v27, 4  ;;  %v8370_v41 = vld [vmem:[%s7442_s17 + $0x88] sm:$0xff]  ;;  %v8374_v63 = vld [vmem:[%s7442_s17 + $0xa0] sm:$0xff] }
 0x1aa   : > { %v1526_v29 = vpop.permute.xlu1 %1525  ;;  %v1744_v39 = vpack.c.bf16 %v1708_v20, %v1704_v8  ;;  %12502 = vst [vmem:[#allocation25_spill] sm:$0xff] %v8313_v6  ;;  %v2049_v1 = vand.u32 15, %v2033_v55  ;;  %v2034_v30 = vshra.s32 %v8323_v60, 4  ;;  %v2037_v57 = vshra.s32 %v8333_v31, 4  ;;  %v8353_v8 = vld [vmem:[%s7442_s17 + $0x170] sm:$0xff]  ;;  %v8356_v20 = vld [vmem:[%s7442_s17 + $0x80] sm:$0xff] }
 0x1ab   : > { %v1622_v48 = vsel %vm807_vm0, %v1302_v24, %v1526_v29  ;;  %2254 = vrot.lane.b32.xlu1 %v2043_v44, %s7355_s8  ;;  %v2048_v24 = vand.u32 15, %v2032_v19  ;;  %v2051_v17 = vand.u32 15, %v2035_v38  ;;  %v2036_v35 = vshra.s32 %v8338_v56, 4 }
 0x1ac   : > { %v1716_v51 = vcvt.s32.f32 %v1622_v48  ;;  %2252 = vrot.lane.b32.xlu0 %v2042_v37, %s7355_s8  ;;  %1769 = vmatprep.subr.bf16.mxu0 %v1744_v39  ;;  %v2050_v54 = vand.u32 15, %v2034_v30  ;;  %v8348_v37 = vld [vmem:[%s7442_s17 + $0x178] sm:$0xff]  ;;  %v1335_v15 = vshra.s32 %v8356_v20, 16  ;;  %v1337_v25 = vshra.s32 %v8360_v62, 16 }
 0x1ad   : > { %v8302_v11 = vpop.permute.xlu0 %1531  ;;  %1770 = vmatpush1.bf16.msra.mxu0 %v1743_v40  ;;  %v2053_v29 = vand.u32 15, %v2037_v57  ;;  %v2039_v39 = vshra.s32 %v8348_v37, 4  ;;  %v2038_v40 = vshra.s32 %v8353_v8, 4  ;;  %v1336_v48 = vshra.s32 %v8370_v41, 16 }
 0x1ae   : > { %v8307_v2 = vpop.permute.xlu1 %1529  ;;  %v1748_v34 = vpack.c.bf16 %v1716_v51, %v1712_v21  ;;  %v1339_v21 = vshra.s32 %v8374_v63, 16  ;;  %v8378_v51 = vld [vmem:[%s7442_s17 + $0x98] sm:$0xff]  ;;  %v8383_v33 = vand.u32 15, %v1335_v15  ;;  %v2089_v30 = vshra.s32 %v8219_v28, 12 }
 0x1af   : > { %2258 = vrot.lane.b32.xlu1 %v2045_v16, %s7355_s8  ;;  %v2052_v16 = vand.u32 15, %v2036_v35 }
 0x1b0   : > { %2256 = vrot.lane.b32.xlu0 %v2044_v47, %s7355_s8  ;;  %1771 = vmatprep.subr.bf16.mxu0 %v1748_v34  ;;  %v1338_v47 = vshra.s32 %v8378_v51, 16  ;;  %v8385_v34 = vand.u32 15, %v1337_v25  ;;  %v2054_v25 = vand.u32 15, %v2038_v40  ;;  %v8417_v10 = vand.u32 15, %v1339_v21  ;;  %v8432_v40 = vld [vmem:[%s7442_s17 + $0xe0] sm:$0xff] }
 0x1b1   : > { %v8320_v53 = vpop.permute.xlu0 %1535  ;;  %1772 = vmatpush1.bf16.msra.mxu0 %v1747_v7  ;;  %v8388_v7 = vld [vmem:[%s7442_s17 + $0xb0] sm:$0xff] }
 0x1b2   : > { %v8325_v58 = vpop.permute.xlu1 %1533  ;;  %v8419_v32 = vand.u32 15, %v1338_v47 }
 0x1b3   : > { %2262 = vrot.lane.b32.xlu1 %v2047_v3, %s7355_s8  ;;  %v1341_v3 = vshra.s32 %v8388_v7, 16 }
 0x1b4   : > { %2260 = vrot.lane.b32.xlu0 %v2046_v18, %s7355_s8  ;;  %1790 = vmatmul.mubr.bf16.vlgmr.msra.gmra.mrb[4].mxu0 %v8313_v6  ;;  %v8394_v18 = vld [vmem:[%s7442_s17 + $0xa8] sm:$0xff] }
 0x1b5   : > { %v8335_v52 = vpop.permute.xlu0 %1539  ;;  %2574 = vmatprep.mubr.bf16.mxu0 %v12480_v12  ;;  %v1340_v19 = vshra.s32 %v8394_v18, 16  ;;  %v8444_v12 = vld [vmem:[%s7442_s17 + $0xf0] sm:$0xff] }
 0x1b6   : > { %v8341_v44 = vpop.permute.xlu1 %1537  ;;  %12509 = vst [vmem:[#allocation32_spill] sm:$0xff] %v8444_v12  ;;  %v1349_v6 = vshra.s32 %v8444_v12, 16  ;;  %v8461_v12 = vand.u32 15, %v1344_v4 }
 0x1b7   : > { %2266 = vrot.lane.b32.xlu1 %v2049_v1, %s7355_s8  ;;  %v8398_v1 = vld [vmem:[%s7442_s17 + $0xc0] sm:$0xff] }
 0x1b8   : > { %2264 = vrot.lane.b32.xlu0 %v2048_v24, %s7355_s8  ;;  %v1343_v38 = vshra.s32 %v8398_v1, 16  ;;  %v2055_v24 = vand.u32 15, %v2039_v39  ;;  %v8415_v39 = vand.u32 15, %v1336_v48  ;;  %v8436_v48 = vld [vmem:[%s7442_s17 + $0xd8] sm:$0xff] }
 0x1b9   : > { %v8350_v46 = vpop.permute.xlu0 %1543  ;;  %v1346_v21 = vshra.s32 %v8436_v48, 16 }
 0x1ba   : > { %v8363_v26 = vpop.permute.xlu1 %1541 }
 0x1bb   : > { %2270 = vrot.lane.b32.xlu1 %v2051_v17, %s7355_s8  ;;  %v8404_v17 = vld [vmem:[%s7442_s17 + $0xb8] sm:$0xff] }
 0x1bc   : > { %2268 = vrot.lane.b32.xlu0 %v2050_v54, %s7355_s8  ;;  %v1342_v57 = vshra.s32 %v8404_v17, 16  ;;  %v8408_v54 = vld [vmem:[%s7442_s17 + $0xd0] sm:$0xff] }
 0x1bd   : > { %v8381_v43 = vpop.permute.xlu0 %1547  ;;  %v1345_v35 = vshra.s32 %v8408_v54, 16 }
 0x1be   : > { %12503 = vst [vmem:[#allocation26_spill] sm:$0xff] %v8381_v43  ;;  %v8391_v55 = vpop.permute.xlu1 %1545  ;;  %v2105_v43 = vand.u32 15, %v2089_v30  ;;  %v1399_v30 = vshra.s32 %v8356_v20, 24  ;;  %v2093_v20 = vshra.s32 %v8258_v42, 12 }
 0x1bf   : > { %2274 = vrot.lane.b32.xlu1 %v2053_v29, %s7355_s8  ;;  %v2088_v29 = vshra.s32 %v8228_v0, 12  ;;  %v2091_v0 = vshra.s32 %v8238_v23, 12  ;;  %v1400_v23 = vshra.s32 %v8370_v41, 24  ;;  %v2094_v41 = vshra.s32 %v8288_v36, 12 }
 0x1c0   : > { %2272 = vrot.lane.b32.xlu0 %v2052_v16, %s7355_s8  ;;  %v8412_v15 = vpop.f32.mrb[0].mxu0  ;;  %v8429_v16 = vand.u32 15, %v1341_v3  ;;  %v8449_v3 = vand.u32 15, %v1343_v38 }
 0x1c1   : > { %12504 = vst [vmem:[#allocation27_spill] sm:$0xff] %v8412_v15  ;;  %v8425_v61 = vpop.permute.xlu0 %1551  ;;  %v8427_v50 = vpop.f32.mrb[1].mxu0  ;;  %v1347_v15 = vshra.s32 %v8432_v40, 16  ;;  %v2104_v28 = vand.u32 15, %v2088_v29  ;;  %v8478_v29 = vand.u32 15, %v1349_v6  ;;  %v1402_v6 = vshra.s32 %v8378_v51, 24 }
 0x1c2   : > { %12505 = vst [vmem:[#allocation28_spill] sm:$0xff] %v8425_v61  ;;  %12506 = vst [vmem:[#allocation29_spill] sm:$0xff] %v8427_v50  ;;  %v8439_v47 = vpop.permute.xlu1 %1549  ;;  %v8441_v49 = vpop.f32.mrb[2].mxu0  ;;  %v8447_v50 = vand.u32 15, %v1340_v19  ;;  %v2090_v19 = vshra.s32 %v8246_v5, 12  ;;  %v2107_v5 = vand.u32 15, %v2091_v0 }
 0x1c3   : > { %12507 = vst [vmem:[#allocation30_spill] sm:$0xff] %v8439_v47  ;;  %12508 = vst [vmem:[#allocation31_spill] sm:$0xff] %v8441_v49  ;;  %2278 = vrot.lane.b32.xlu1 %v2055_v24, %s7355_s8  ;;  %v8452_v61 = vpop.f32.mrb[3].mxu0  ;;  %v8455_v47 = vand.u32 15, %v1342_v57  ;;  %v8457_v49 = vand.u32 15, %v1345_v35  ;;  %v8474_v35 = vand.u32 15, %v1347_v15 }
 0x1c4   : > { %12510 = vst [vmem:[#allocation33_spill] sm:$0xff] %v8449_v3  ;;  %12511 = vst [vmem:[#allocation34_spill] sm:$0xff] %v8452_v61  ;;  %2276 = vrot.lane.b32.xlu0 %v2054_v25, %s7355_s8  ;;  %v8466_v3 = vld [vmem:[%s7442_s17 + $0xe8] sm:$0xff]  ;;  %v8471_v61 = vld [vmem:[%s7442_s17 + $0xf8] sm:$0xff]  ;;  %v8476_v25 = vand.u32 15, %v1346_v21  ;;  %v2106_v15 = vand.u32 15, %v2090_v19 }
 0x1c5   : > { %12512 = vst [vmem:[#allocation35_spill] sm:$0xff] %v8457_v49  ;;  %v8463_v38 = vpop.permute.xlu0 %1555  ;;  %v1348_v24 = vshra.s32 %v8466_v3, 16  ;;  %v1350_v57 = vshra.s32 %v8471_v61, 16  ;;  %12514 = vst [vmem:[#allocation37_spill] sm:$0xff] %v8474_v35  ;;  %v2092_v49 = vshra.s32 %v8266_v45, 12  ;;  %v1403_v21 = vshra.s32 %v8374_v63, 24 }
 0x1c6   : > { %12513 = vst [vmem:[#allocation36_spill] sm:$0xff] %v8463_v38  ;;  %12515 = vst [vmem:[#allocation38_spill] sm:$0xff] %v8478_v29  ;;  %v8480_v4 = vpop.permute.xlu1 %1553  ;;  %v1401_v38 = vshra.s32 %v8360_v62, 24  ;;  %v2095_v29 = vshra.s32 %v8282_v59, 12  ;;  %v1415_v62 = vand.u32 15, %v1399_v30  ;;  %v1404_v19 = vshra.s32 %v8394_v18, 24 }
 0x1c7   : > { %2282 = vrot.lane.b32.xlu1 %v2105_v43, %s7355_s8  ;;  %v8491_v35 = vand.u32 15, %v1348_v24  ;;  %v8493_v0 = vand.u32 15, %v1350_v57  ;;  %v2097_v63 = vshra.s32 %v8300_v13, 12  ;;  %v1416_v51 = vand.u32 15, %v1400_v23 }
 0x1c8   : > { %2280 = vrot.lane.b32.xlu0 %v2104_v28, %s7355_s8  ;;  %v1417_v45 = vand.u32 15, %v1401_v38  ;;  %v1405_v28 = vshra.s32 %v8388_v7, 24  ;;  %v2109_v24 = vand.u32 15, %v2093_v20  ;;  %v2108_v59 = vand.u32 15, %v2092_v49 }
 0x1c9   : > { %v1560_v43 = vpop.permute.xlu0 %1559  ;;  %12516 = vst [vmem:[#allocation39_spill] sm:$0xff] %v8493_v0  ;;  %v2096_v30 = vshra.s32 %v8305_v22, 12  ;;  %v1624_v57 = vsel %vm807_vm0, %v8415_v39, %v8307_v2  ;;  %v1419_v38 = vand.u32 15, %v1403_v21  ;;  %v1418_v36 = vand.u32 15, %v1402_v6 }
 0x1ca   : > { %v8496_v42 = vpop.permute.xlu1 %1557  ;;  %v2111_v7 = vand.u32 15, %v2095_v29  ;;  %v1639_v18 = vsel %vm807_vm0, %v1415_v62, %v1560_v43  ;;  %v2110_v13 = vand.u32 15, %v2094_v41  ;;  %v1406_v23 = vshra.s32 %v8404_v17, 24 }
 0x1cb   : > { %2286 = vrot.lane.b32.xlu1 %v2107_v5, %s7355_s8  ;;  %v1407_v5 = vshra.s32 %v8398_v1, 24  ;;  %v1623_v49 = vsel %vm807_vm0, %v8383_v33, %v8285_v14  ;;  %v1421_v22 = vand.u32 15, %v1405_v28  ;;  %v1420_v2 = vand.u32 15, %v1404_v19 }
 0x1cc   : > { %2284 = vrot.lane.b32.xlu0 %v2106_v15, %s7355_s8  ;;  %v2113_v39 = vand.u32 15, %v2097_v63  ;;  %v1661_v15 = vcvt.s32.f32 %v1624_v57  ;;  %v2112_v29 = vand.u32 15, %v2096_v30  ;;  %v2099_v6 = vshra.s32 %v8318_v27, 12 }
 0x1cd   : > { %v1564_v0 = vpop.permute.xlu0 %1563  ;;  %v1626_v1 = vsel %vm807_vm0, %v8419_v32, %v8325_v58  ;;  %v1658_v17 = vcvt.s32.f32 %v1639_v18  ;;  %v2098_v14 = vshra.s32 %v8323_v60, 12  ;;  %v1657_v33 = vcvt.s32.f32 %v1623_v49 }
 0x1ce   : > { %v1562_v20 = vpop.permute.xlu1 %1561  ;;  %v1641_v43 = vsel %vm807_vm0, %v1417_v45, %v1564_v0  ;;  %v8522_v28 = vand.u32 15, %v1407_v5  ;;  %v1422_v19 = vand.u32 15, %v1406_v23  ;;  %v1625_v63 = vsel %vm807_vm0, %v8385_v34, %v8302_v11 }
 0x1cf   : > { %v1640_v21 = vsel %vm807_vm0, %v1416_v51, %v1562_v20  ;;  %2290 = vrot.lane.b32.xlu1 %v2109_v24, %s7355_s8  ;;  %v1409_v32 = vshra.s32 %v8408_v54, 24  ;;  %v1408_v58 = vshra.s32 %v8422_v9, 24  ;;  %v1669_v30 = vcvt.s32.f32 %v1626_v1 }
 0x1d0   : > { %v1662_v62 = vcvt.s32.f32 %v1640_v21  ;;  %2288 = vrot.lane.b32.xlu0 %v2108_v59, %s7355_s8  ;;  %v1721_v59 = vpack.c.bf16 %v1661_v15, %v1657_v33  ;;  %v2115_v45 = vand.u32 15, %v2099_v6  ;;  %v1628_v0 = vsel %vm807_vm0, %v8447_v50, %v8341_v44 }
 0x1d1   : > { %v1568_v41 = vpop.permute.xlu0 %1567  ;;  %v1666_v18 = vcvt.s32.f32 %v1641_v43  ;;  %v2114_v11 = vand.u32 15, %v2098_v14  ;;  %v1665_v34 = vcvt.s32.f32 %v1625_v63  ;;  %v1627_v23 = vsel %vm807_vm0, %v8417_v10, %v8320_v53 }
 0x1d2   : > { %v1566_v51 = vpop.permute.xlu1 %1565  ;;  %v1722_v24 = vpack.c.bf16 %v1662_v62, %v1658_v17  ;;  %v1643_v9 = vsel %vm807_vm0, %v1419_v38, %v1568_v41  ;;  %v1425_v49 = vand.u32 15, %v1409_v32  ;;  %v1424_v20 = vand.u32 15, %v1408_v58 }
 0x1d3   : > { %v1642_v57 = vsel %vm807_vm0, %v1418_v36, %v1566_v51  ;;  %2294 = vrot.lane.b32.xlu1 %v2111_v7, %s7355_s8  ;;  %v2101_v36 = vshra.s32 %v8333_v31, 12  ;;  %v2100_v7 = vshra.s32 %v8338_v56, 12  ;;  %v1677_v15 = vcvt.s32.f32 %v1628_v0  ;;  %v12518_v0 = vld [vmem:[#allocation22_spill] sm:$0xff] }
 0x1d4   : > { %v1670_v5 = vcvt.s32.f32 %v1642_v57  ;;  %2292 = vrot.lane.b32.xlu0 %v2110_v13, %s7355_s8  ;;  %1800 = vmatprep.subr.bf16.mxu1 %v1722_v24  ;;  %v1725_v13 = vpack.c.bf16 %v1669_v30, %v1665_v34  ;;  %v1411_v38 = vshra.s32 %v8432_v40, 24  ;;  %v1630_v6 = vsel %vm807_vm0, %v8455_v47, %v8363_v26  ;;  %v12517_v30 = vld [vmem:[#allocation33_spill] sm:$0xff] }
 0x1d5   : > { %v1572_v54 = vpop.permute.xlu0 %1571  ;;  %1801 = vmatpush1.bf16.msra.mxu1 %v1721_v59  ;;  %v1674_v1 = vcvt.s32.f32 %v1643_v9  ;;  %v1410_v10 = vshra.s32 %v8436_v48, 24  ;;  %v1673_v53 = vcvt.s32.f32 %v1627_v23  ;;  %v1629_v40 = vsel %vm807_vm0, %v8429_v16, %v8335_v52 }
 0x1d6   : > { %v1570_v50 = vpop.permute.xlu1 %1569  ;;  %v1726_v44 = vpack.c.bf16 %v1670_v5, %v1666_v18  ;;  %v1645_v62 = vsel %vm807_vm0, %v1421_v22, %v1572_v54  ;;  %v2116_v33 = vand.u32 15, %v2100_v7  ;;  %v1685_v41 = vcvt.s32.f32 %v1630_v6  ;;  %v12520_v54 = vld [vmem:[#allocation30_spill] sm:$0xff] }
 0x1d7   : > { %v1644_v21 = vsel %vm807_vm0, %v1420_v2, %v1570_v50  ;;  %2298 = vrot.lane.b32.xlu1 %v2113_v39, %s7355_s8  ;;  %v2117_v2 = vand.u32 15, %v2101_v36  ;;  %v2103_v39 = vshra.s32 %v8348_v37, 12  ;;  %v1729_v43 = vpack.c.bf16 %v1677_v15, %v1673_v53 }
 0x1d8   : > { %v1678_v17 = vcvt.s32.f32 %v1644_v21  ;;  %2296 = vrot.lane.b32.xlu0 %v2112_v29, %s7355_s8  ;;  %1802 = vmatprep.subr.bf16.mxu1 %v1726_v44  ;;  %v2102_v29 = vshra.s32 %v8353_v8, 12  ;;  %v1427_v22 = vand.u32 15, %v1411_v38  ;;  %v1632_v63 = vsel %vm807_vm0, %v8461_v12, %v8391_v55  ;;  %v12522_v21 = vld [vmem:[#allocation26_spill] sm:$0xff]  ;;  %v12523_v38 = vld [vmem:[#allocation35_spill] sm:$0xff] }
 0x1d9   : > { %v1576_v14 = vpop.permute.xlu0 %1575  ;;  %1803 = vmatpush1.bf16.msra.mxu1 %v1725_v13  ;;  %v1682_v51 = vcvt.s32.f32 %v1645_v62  ;;  %v1426_v52 = vand.u32 15, %v1410_v10  ;;  %v1681_v16 = vcvt.s32.f32 %v1629_v40  ;;  %v1412_v59 = vshra.s32 %v8466_v3, 24  ;;  %v12524_v10 = vld [vmem:[#allocation19_spill] sm:$0xff] }
 0x1da   : > { %v1574_v26 = vpop.permute.xlu1 %1573  ;;  %v1730_v47 = vpack.c.bf16 %v1678_v17, %v1674_v1  ;;  %v1647_v32 = vsel %vm807_vm0, %v8522_v28, %v1576_v14  ;;  %v1631_v57 = vsel %vm807_vm0, %v12517_v30, %v8350_v46  ;;  %v2153_v18 = vshra.s32 %v12518_v0, 20  ;;  %v12519_v28 = vld [vmem:[#allocation32_spill] sm:$0xff]  ;;  %v12521_v46 = vld [vmem:[#allocation18_spill] sm:$0xff]  ;;  %v12529_v30 = vld [vmem:[#allocation39_spill] sm:$0xff] }
 0x1db   : > { %v1646_v48 = vsel %vm807_vm0, %v1422_v19, %v1574_v26  ;;  %2302 = vrot.lane.b32.xlu1 %v2115_v45, %s7355_s8  ;;  %v2119_v19 = vand.u32 15, %v2103_v39  ;;  %v2118_v45 = vand.u32 15, %v2102_v29  ;;  %v1733_v5 = vpack.c.bf16 %v1685_v41, %v1681_v16 }
 0x1dc   : > { %v1686_v24 = vcvt.s32.f32 %v1646_v48  ;;  %2300 = vrot.lane.b32.xlu0 %v2114_v11, %s7355_s8  ;;  %1804 = vmatprep.subr.bf16.mxu1 %v1730_v47  ;;  %v1693_v11 = vcvt.s32.f32 %v1632_v63  ;;  %v1413_v9 = vshra.s32 %v12519_v28, 24  ;;  %v1634_v3 = vsel %vm807_vm0, %v8476_v25, %v12520_v54  ;;  %v12526_v48 = vld [vmem:[#allocation28_spill] sm:$0xff]  ;;  %v12527_v63 = vld [vmem:[#allocation37_spill] sm:$0xff]  ;;  %v12532_v28 = vld [vmem:[#allocation38_spill] sm:$0xff] }
 0x1dd   : > { %v1580_v58 = vpop.permute.xlu0 %1579  ;;  %1805 = vmatpush1.bf16.msra.mxu1 %v1729_v43  ;;  %v1690_v36 = vcvt.s32.f32 %v1647_v32  ;;  %v2152_v23 = vshra.s32 %v12521_v46, 20  ;;  %v1689_v50 = vcvt.s32.f32 %v1631_v57  ;;  %v1414_v15 = vshra.s32 %v8471_v61, 24 }
 0x1de   : > { %v1578_v12 = vpop.permute.xlu1 %1577  ;;  %v1734_v55 = vpack.c.bf16 %v1686_v24, %v1682_v51  ;;  %v1649_v44 = vsel %vm807_vm0, %v1425_v49, %v1580_v58  ;;  %v1633_v6 = vsel %vm807_vm0, %v12523_v38, %v12522_v21  ;;  %v2169_v17 = vand.u32 15, %v2153_v18  ;;  %v12525_v49 = vld [vmem:[#allocation10_spill] sm:$0xff] }
 0x1df   : > { %v1648_v34 = vsel %vm807_vm0, %v1424_v20, %v1578_v12  ;;  %2306 = vrot.lane.b32.xlu1 %v2117_v2, %s7355_s8  ;;  %v1428_v20 = vand.u32 15, %v1412_v59  ;;  %v2155_v53 = vshra.s32 %v12524_v10, 20  ;;  %v1737_v62 = vpack.c.bf16 %v1693_v11, %v1689_v50  ;;  %v12533_v50 = vld [vmem:[#allocation13_spill] sm:$0xff]  ;;  %v12534_v21 = vld [vmem:[#allocation14_spill] sm:$0xff] }
 0x1e0   : > { %v1694_v7 = vcvt.s32.f32 %v1648_v34  ;;  %2304 = vrot.lane.b32.xlu0 %v2116_v33, %s7355_s8  ;;  %1806 = vmatprep.subr.bf16.mxu1 %v1734_v55  ;;  %v1701_v14 = vcvt.s32.f32 %v1634_v3  ;;  %v2154_v39 = vshra.s32 %v12525_v49, 20  ;;  %v1636_v61 = vsel %vm807_vm0, %v8491_v35, %v8480_v4  ;;  %v12528_v4 = vld [vmem:[#allocation11_spill] sm:$0xff]  ;;  %v12531_v34 = vld [vmem:[#allocation36_spill] sm:$0xff] }
 0x1e1   : > { %v1584_v13 = vpop.permute.xlu0 %1583  ;;  %1807 = vmatpush1.bf16.msra.mxu1 %v1733_v5  ;;  %v1698_v40 = vcvt.s32.f32 %v1649_v44  ;;  %v2168_v47 = vand.u32 15, %v2152_v23  ;;  %v1697_v33 = vcvt.s32.f32 %v1633_v6  ;;  %v1429_v43 = vand.u32 15, %v1413_v9 }
 0x1e2   : > { %v1582_v25 = vpop.permute.xlu1 %1581  ;;  %v1738_v1 = vpack.c.bf16 %v1694_v7, %v1690_v36  ;;  %v1651_v29 = vsel %vm807_vm0, %v1427_v22, %v1584_v13  ;;  %v1430_v41 = vand.u32 15, %v1414_v15  ;;  %v1635_v51 = vsel %vm807_vm0, %v12527_v63, %v12526_v48 }
 0x1e3   : > { %v1650_v2 = vsel %vm807_vm0, %v1426_v52, %v1582_v25  ;;  %2310 = vrot.lane.b32.xlu1 %v2119_v19, %s7355_s8  ;;  %v2171_v35 = vand.u32 15, %v2155_v53  ;;  %v2157_v32 = vshra.s32 %v12528_v4, 20  ;;  %v1741_v58 = vpack.c.bf16 %v1701_v14, %v1697_v33  ;;  %v12535_v53 = vld [vmem:[#allocation23_spill] sm:$0xff] }
 0x1e4   : > { %v1702_v26 = vcvt.s32.f32 %v1650_v2  ;;  %2308 = vrot.lane.b32.xlu0 %v2118_v45, %s7355_s8  ;;  %1808 = vmatprep.subr.bf16.mxu1 %v1738_v1  ;;  %v1709_v19 = vcvt.s32.f32 %v1636_v61  ;;  %v2170_v22 = vand.u32 15, %v2154_v39  ;;  %v1638_v57 = vsel %vm807_vm0, %v12529_v30, %v8496_v42  ;;  %v12530_v45 = vld [vmem:[#allocation12_spill] sm:$0xff] }
 0x1e5   : > { %1809 = vmatpush1.bf16.msra.mxu1 %v1737_v62  ;;  %v1588_v24 = vpop.permute.xlu0 %1587  ;;  %v1706_v12 = vcvt.s32.f32 %v1651_v29  ;;  %v2156_v18 = vshra.s32 %v12530_v45, 20  ;;  %v1705_v5 = vcvt.s32.f32 %v1635_v51  ;;  %v1637_v9 = vsel %vm807_vm0, %v12532_v28, %v12531_v34  ;;  %v12536_v2 = vld [vmem:[#allocation24_spill] sm:$0xff] }
 0x1e6   : > { %v1586_v52 = vpop.permute.xlu1 %1585  ;;  %v1742_v16 = vpack.c.bf16 %v1702_v26, %v1698_v40  ;;  %v1653_v11 = vsel %vm807_vm0, %v1429_v43, %v1588_v24  ;;  %v2173_v36 = vand.u32 15, %v2157_v32  ;;  %v1717_v42 = vcvt.s32.f32 %v1638_v57  ;;  %v12537_v26 = vld [vmem:[#allocation25_spill] sm:$0xff] }
 0x1e7   : > { %v1652_v59 = vsel %vm807_vm0, %v1428_v20, %v1586_v52  ;;  %2314 = vrot.lane.b32.xlu1 %v2169_v17, %s7355_s8  ;;  %v1745_v7 = vpack.c.bf16 %v1709_v19, %v1705_v5  ;;  %v2159_v44 = vshra.s32 %v12533_v50, 20  ;;  %v1714_v13 = vcvt.s32.f32 %v1653_v11 }
 0x1e8   : > { %v1710_v55 = vcvt.s32.f32 %v1652_v59  ;;  %2312 = vrot.lane.b32.xlu0 %v2168_v47, %s7355_s8  ;;  %1810 = vmatprep.subr.bf16.mxu1 %v1742_v16  ;;  %v2172_v15 = vand.u32 15, %v2156_v18  ;;  %v2158_v38 = vshra.s32 %v12534_v21, 20  ;;  %v1713_v6 = vcvt.s32.f32 %v1637_v9 }
 0x1e9   : > { %1811 = vmatpush1.bf16.msra.mxu1 %v1741_v58  ;;  %v2175_v17 = vand.u32 15, %v2159_v44  ;;  %v2161_v62 = vshra.s32 %v12535_v53, 20  ;;  %v2160_v39 = vshra.s32 %v12536_v2, 20  ;;  %v2163_v40 = vshra.s32 %v8318_v27, 20  ;;  %v8658_v9 = vpop.permute.xlu0 %1867 }
 0x1ea   : > { %v1590_v54 = vpop.permute.xlu1 %1589  ;;  %v1746_v3 = vpack.c.bf16 %v1710_v55, %v1706_v12  ;;  %v1749_v1 = vpack.c.bf16 %v1717_v42, %v1713_v6  ;;  %v2174_v14 = vand.u32 15, %v2158_v38  ;;  %v2162_v33 = vshra.s32 %v8323_v60, 20  ;;  %12543 = vst [vmem:[#allocation18_spill] sm:$0xff] %v8658_v9 }
 0x1eb   : > { %v1654_v23 = vsel %vm807_vm0, %v1430_v41, %v1590_v54  ;;  %2318 = vrot.lane.b32.xlu1 %v2171_v35, %s7355_s8  ;;  %v2177_v61 = vand.u32 15, %v2161_v62  ;;  %v2176_v47 = vand.u32 15, %v2160_v39  ;;  %v12538_v29 = vmov 0  }
 0x1ec   : > { %v1718_v20 = vcvt.s32.f32 %v1654_v23  ;;  %2316 = vrot.lane.b32.xlu0 %v2170_v22, %s7355_s8  ;;  %1812 = vmatprep.subr.bf16.mxu1 %v1746_v3  ;;  %v2179_v43 = vand.u32 15, %v2163_v40  ;;  %v2165_v41 = vshra.s32 %v8333_v31, 20  ;;  %v2178_v48 = vand.u32 15, %v2162_v33 }
 0x1ed   : > { %1813 = vmatpush1.bf16.msra.mxu1 %v1745_v7  ;;  %v2164_v63 = vshra.s32 %v8338_v56, 20  ;;  %v2167_v24 = vshra.s32 %v8348_v37, 20  ;;  %v2166_v16 = vshra.s32 %v8353_v8, 20  ;;  %v6966_v30 = vshrl.u32 %v12518_v0, 28  ;;  %v8667_v42 = vpop.permute.xlu0 %1879 }
 0x1ee   : > { %v1750_v25 = vpack.c.bf16 %v1718_v20, %v1714_v13  ;;  %v2181_v51 = vand.u32 15, %v2165_v41  ;;  %v6965_v57 = vshrl.u32 %v12521_v46, 28  ;;  %v6968_v12 = vshrl.u32 %v12524_v10, 28  ;;  %v8665_v7 = vpop.permute.xlu1 %1873  ;;  %12545 = vst [vmem:[#allocation35_spill] sm:$0xff] %v8667_v42 }
 0x1ef   : > { %2322 = vrot.lane.b32.xlu1 %v2173_v36, %s7355_s8  ;;  %v2180_v52 = vand.u32 15, %v2164_v63  ;;  %v2183_v35 = vand.u32 15, %v2167_v24  ;;  %v2182_v58 = vand.u32 15, %v2166_v16  ;;  %v6967_v55 = vshrl.u32 %v12525_v49, 28  ;;  %v6983_v36 = vld [vmem:[%s7447_s28 + $0x2] sm:$0x1] }
 0x1f0   : > { %2320 = vrot.lane.b32.xlu0 %v2172_v15, %s7355_s8  ;;  %1814 = vmatprep.subr.bf16.mxu1 %v1750_v25  ;;  %v6970_v18 = vshrl.u32 %v12528_v4, 28  ;;  %v6969_v0 = vshrl.u32 %v12530_v45, 28  ;;  %v6972_v5 = vshrl.u32 %v12533_v50, 28  ;;  %v6971_v11 = vshrl.u32 %v12534_v21, 28  ;;  %12544 = vst [vmem:[#allocation26_spill] sm:$0xff] %v8665_v7 }
 0x1f1   : > { %1815 = vmatpush1.bf16.msra.mxu1 %v1749_v1  ;;  %v6974_v34 = vshrl.u32 %v12535_v53, 28  ;;  %v6973_v28 = vshrl.u32 %v12536_v2, 28  ;;  %v6976_v54 = vshrl.u32 %v8318_v27, 28  ;;  %v6975_v3 = vshrl.u32 %v8323_v60, 28 }
 0x1f2   : > { %v6978_v23 = vshrl.u32 %v8333_v31, 28  ;;  %v2638_v44 = vshra.s32 %v6983_v36, 12  ;;  %v6977_v13 = vshrl.u32 %v8338_v56, 28  ;;  %v2634_v20 = vshra.s32 %v6983_v36, 4  ;;  %v8673_v15 = vpop.permute.xlu1 %1885 }
 0x1f3   : > { %2326 = vrot.lane.b32.xlu1 %v2175_v17, %s7355_s8  ;;  %12546 = vst [vmem:[#allocation19_spill] sm:$0xff] %v8673_v15  ;;  %v6980_v6 = vshrl.u32 %v8348_v37, 28  ;;  %v6979_v1 = vshrl.u32 %v8353_v8, 28  ;;  %v2642_v62 = vshra.s32 %v6983_v36, 20  ;;  %v2059_v15 = vshra.s32 %v12524_v10, 8 }
 0x1f4   : > { %2324 = vrot.lane.b32.xlu0 %v2174_v14, %s7355_s8  ;;  %1833 = vmatmul.mubr.bf16.vlgmr.msra.gmra.mrb[4].mxu1 %v12537_v26  ;;  %v2639_v25 = vand.u32 15, %v2638_v44  ;;  %v2635_v17 = vand.u32 15, %v2634_v20  ;;  %v6984_v26 = vshrl.u32 %v6983_v36, 28 }
 0x1f5   : > { %2617 = vmatprep.mubr.bf16.mxu1 %v12538_v29  ;;  %v2643_v33 = vand.u32 15, %v2642_v62  ;;  %v2075_v42 = vand.u32 15, %v2059_v15 }
 0x1f7   : > { %2330 = vrot.lane.b32.xlu1 %v2177_v61, %s7355_s8  ;;  %v12549_v61 = vld [vmem:[#allocation9_spill] sm:$0xff] }
 0x1f8   : > { %2328 = vrot.lane.b32.xlu0 %v2176_v47, %s7355_s8  ;;  %v2657_v40 = vrot.slane %v2639_v25, %v12549_v61  ;;  %v2651_v47 = vrot.slane %v2635_v17, %v12549_v61  ;;  %v2663_v63 = vrot.slane %v2643_v33, %v12549_v61  ;;  %v2008_v33 = vand.u32 15, %v12521_v46 }
 0x1fb   : > { %2334 = vrot.lane.b32.xlu1 %v2179_v43, %s7355_s8 }
 0x1fc   : > { %2332 = vrot.lane.b32.xlu0 %v2178_v48, %s7355_s8  ;;  %v2669_v48 = vrot.slane %v6984_v26, %v12549_v61  ;;  %v12554_v26 = vld [vmem:[#allocation15_spill] sm:$0xff] }
 0x1ff   : > { %2338 = vrot.lane.b32.xlu1 %v2181_v51, %s7355_s8 }
 0x200   : > { %2336 = vrot.lane.b32.xlu0 %v2180_v52, %s7355_s8  ;;  %v8630_v32 = vpop.f32.mrb[0].mxu1 }
 0x201   : > { %12539 = vst [vmem:[#allocation33_spill] sm:$0xff] %v8630_v32  ;;  %v8632_v19 = vpop.f32.mrb[1].mxu1 }
 0x202   : > { %12540 = vst [vmem:[#allocation22_spill] sm:$0xff] %v8632_v19  ;;  %v8634_v59 = vpop.f32.mrb[2].mxu1  ;;  %v2062_v19 = vshra.s32 %v12534_v21, 8 }
 0x203   : > { %12541 = vst [vmem:[#allocation32_spill] sm:$0xff] %v8634_v59  ;;  %2342 = vrot.lane.b32.xlu1 %v2183_v35, %s7355_s8  ;;  %v8637_v22 = vpop.f32.mrb[3].mxu1  ;;  %v8770_v59 = vld [vmem:[%s7454_s7 + $0x28] sm:$0xf] }
 0x204   : > { %12542 = vst [vmem:[#allocation30_spill] sm:$0xff] %v8637_v22  ;;  %2340 = vrot.lane.b32.xlu0 %v2182_v58, %s7355_s8 }
 0x207   : > { %2346 = vrot.lane.b32.xlu1 %v6966_v30, %s7355_s8 }
 0x208   : > { %2344 = vrot.lane.b32.xlu0 %v6965_v57, %s7355_s8 }
 0x20b   : > { %2350 = vrot.lane.b32.xlu1 %v6968_v12, %s7355_s8  ;;  %v7175_v12 = vld [vmem:[%s7447_s28] sm:$0x1] }
 0x20c   : > { %2348 = vrot.lane.b32.xlu0 %v6967_v55, %s7355_s8  ;;  %v1066_v55 = vshra.s32 %v7175_v12, 8  ;;  %v1063_v36 = vand.u32 15, %v7175_v12 }
 0x20f   : > { %2354 = vrot.lane.b32.xlu1 %v6970_v18, %s7355_s8  ;;  %v1060_v18 = vld [vmem:[%s7452_s6] sm:$0xf] }
 0x210   : > { %2352 = vrot.lane.b32.xlu0 %v6969_v0, %s7355_s8 }
 0x213   : > { %2358 = vrot.lane.b32.xlu1 %v6972_v5, %s7355_s8 }
 0x214   : > { %2356 = vrot.lane.b32.xlu0 %v6971_v11, %s7355_s8  ;;  %v8717_v11 = vunpack.c.l.bf16 %v1060_v18  ;;  %v2011_v18 = vand.u32 15, %v12524_v10 }
 0x216   : > { %12550 = vst [vmem:[#allocation37_spill] sm:$0xff] %v8717_v11 }
 0x217   : > { %2362 = vrot.lane.b32.xlu1 %v6974_v34, %s7355_s8  ;;  %v1067_v34 = vand.u32 15, %v1066_v55 }
 0x218   : > { %2360 = vrot.lane.b32.xlu0 %v6973_v28, %s7355_s8  ;;  %v12551_v28 = vld [vmem:[#allocation8_spill] sm:$0xff] }
 0x21b   : > { %2366 = vrot.lane.b32.xlu1 %v6976_v54, %s7355_s8  ;;  %v8720_v54 = vsub.s32 2, %v12551_v28 }
 0x21c   : > { %2364 = vrot.lane.b32.xlu0 %v6975_v3, %s7355_s8  ;;  %v2056_v3 = vshra.s32 %v12521_v46, 8  ;;  %v2013_v46 = vand.u32 15, %v12528_v4 }
 0x21d   : > { %12552 = vst [vmem:[#allocation11_spill] sm:$0xff] %v8720_v54  ;;  %v8734_v25 = vrot.slane %v8717_v11, %v8720_v54 }
 0x21e   : > { %v2072_v62 = vand.u32 15, %v2056_v3 }
 0x21f   : > { %v8675_v38 = vpop.xlane.xlu0 %1897  ;;  %2370 = vrot.lane.b32.xlu1 %v6978_v23, %s7355_s8 }
 0x220   : > { %12547 = vst [vmem:[#allocation10_spill] sm:$0xff] %v8675_v38  ;;  %2368 = vrot.lane.b32.xlu0 %v6977_v13, %s7355_s8  ;;  %v8728_v13 = vld [vmem:[%s7442_s17 + $0x108] sm:$0xff] }
 0x221   : > { %v2057_v20 = vshra.s32 %v8728_v13, 8 }
 0x223   : > { %v8681_v14 = vpop.permute.xlu0 %2248  ;;  %2374 = vrot.lane.b32.xlu1 %v6980_v6, %s7355_s8  ;;  %v8684_v39 = vpop.xlane.xlu1 %1899  ;;  %v2009_v6 = vand.u32 15, %v8728_v13  ;;  %v2073_v3 = vand.u32 15, %v2057_v20  ;;  %v2060_v20 = vshra.s32 %v12530_v45, 8 }
 0x224   : > { %12548 = vst [vmem:[#allocation28_spill] sm:$0xff] %v8684_v39  ;;  %2372 = vrot.lane.b32.xlu0 %v6979_v1, %s7355_s8  ;;  %v12553_v1 = vld [vmem:[#allocation20_spill] sm:$0xff] }
 0x225   : > { %v8738_v17 = vsel %vm807_vm0, %v1067_v34, %v12553_v1  ;;  %v8753_v1 = vld [vmem:[%s7454_s7 + $0x8] sm:$0xf]  ;;  %v2376_v34 = vsel %vm807_vm0, %v2008_v33, %v8681_v14  ;;  %v2019_v14 = vand.u32 15, %v8318_v27  ;;  %v2076_v10 = vand.u32 15, %v2060_v20 }
 0x226   : > { %v2022_v20 = vand.u32 15, %v8353_v8 }
 0x227   : > { %v8689_v43 = vpop.permute.xlu0 %2252  ;;  %2658 = vrot.lane.b32.xlu1 %v2657_v40, %s7355_s8  ;;  %v2251_v41 = vpop.permute.xlu1 %2250  ;;  %v2058_v40 = vshra.s32 %v12525_v49, 8 }
 0x228   : > { %2652 = vrot.lane.b32.xlu0 %v2651_v47, %s7355_s8  ;;  %v8743_v47 = vsel %vm807_vm0, %v1063_v36, %v12554_v26  ;;  %v2377_v36 = vsel %vm807_vm0, %v2009_v6, %v2251_v41  ;;  %v2015_v26 = vand.u32 15, %v12533_v50 }
 0x229   : > { %v2074_v38 = vand.u32 15, %v2058_v40  ;;  %v2444_v9 = vcvt.s32.f32 %v2377_v36 }
 0x22b   : > { %v8695_v51 = vpop.permute.xlu0 %2256  ;;  %2670 = vrot.lane.b32.xlu1 %v2669_v48, %s7355_s8  ;;  %v2255_v24 = vpop.permute.xlu1 %2254  ;;  %v2010_v48 = vand.u32 15, %v12525_v49  ;;  %v2680_v49 = vunpack.c.l.bf16 %v8753_v1 }
 0x22c   : > { %2664 = vrot.lane.b32.xlu0 %v2663_v63, %s7355_s8  ;;  %v2012_v63 = vand.u32 15, %v12530_v45  ;;  %v2379_v45 = vsel %vm807_vm0, %v2011_v18, %v2255_v24  ;;  %v2063_v24 = vshra.s32 %v12533_v50, 8  ;;  %v2064_v50 = vshra.s32 %v12536_v2, 8 }
 0x22f   : > { %v8699_v52 = vpop.permute.xlu0 %2260  ;;  %v8701_v16 = vpop.permute.xlu1 %2258 }
 0x233   : > { %v8703_v35 = vpop.permute.xlu0 %2264  ;;  %v8705_v58 = vpop.permute.xlu1 %2262 }
 0x237   : > { %v8707_v30 = vpop.permute.xlu0 %2268  ;;  %v8709_v57 = vpop.permute.xlu1 %2266 }
 0x23b   : > { %v8713_v0 = vpop.permute.xlu0 %2272  ;;  %v8715_v5 = vpop.permute.xlu1 %2270 }
 0x23f   : > { %v8723_v23 = vpop.permute.xlu0 %2276  ;;  %v8725_v44 = vpop.permute.xlu1 %2274 }
 0x243   : > { %v2281_v12 = vpop.permute.xlu0 %2280  ;;  %v8748_v55 = vpop.permute.xlu1 %2278 }
 0x244   : > { %v2392_v39 = vsel %vm807_vm0, %v2072_v62, %v2281_v12  ;;  %v2061_v62 = vshra.s32 %v12528_v4, 8  ;;  %v2440_v12 = vcvt.s32.f32 %v2376_v34  ;;  %v2681_v4 = vunpack.c.l.bf16 %v8770_v59 }
 0x245   : > { %v2441_v40 = vcvt.s32.f32 %v2392_v39  ;;  %v2452_v39 = vcvt.s32.f32 %v2379_v45  ;;  %v2079_v45 = vand.u32 15, %v2063_v24  ;;  %v12555_v24 = vand.u32 15, %v12534_v21 }
 0x246   : > { %v2504_v18 = vpack.c.bf16 %v2444_v9, %v2440_v12  ;;  %v2077_v34 = vand.u32 15, %v2061_v62  ;;  %v2380_v9 = vsel %vm807_vm0, %v2012_v63, %v8695_v51  ;;  %v2066_v51 = vshra.s32 %v8323_v60, 8 }
 0x247   : > { %v2285_v6 = vpop.permute.xlu0 %2284  ;;  %v2283_v7 = vpop.permute.xlu1 %2282  ;;  %v2456_v63 = vcvt.s32.f32 %v2380_v9  ;;  %v12557_v21 = vand.u32 15, %v12535_v53 }
 0x248   : > { %v2393_v22 = vsel %vm807_vm0, %v2073_v3, %v2283_v7  ;;  %v2394_v41 = vsel %vm807_vm0, %v2074_v38, %v2285_v6  ;;  %v2378_v7 = vsel %vm807_vm0, %v2010_v48, %v8689_v43  ;;  %v2381_v38 = vsel %vm807_vm0, %v2013_v46, %v8701_v16 }
 0x249   : > { %v2445_v33 = vcvt.s32.f32 %v2393_v22  ;;  %v2449_v6 = vcvt.s32.f32 %v2394_v41  ;;  %v2448_v48 = vcvt.s32.f32 %v2378_v7  ;;  %v2082_v9 = vand.u32 15, %v2066_v51 }
 0x24b   : > { %2682 = vadd.xlane.f32.xlu0 %v2680_v49  ;;  %v2289_v15 = vpop.permute.xlu0 %2288  ;;  %v2287_v3 = vpop.permute.xlu1 %2286  ;;  %v2505_v36 = vpack.c.bf16 %v2445_v33, %v2441_v40  ;;  %v2078_v40 = vand.u32 15, %v2062_v19  ;;  %v2508_v41 = vpack.c.bf16 %v2452_v39, %v2448_v48  ;;  %v2460_v33 = vcvt.s32.f32 %v2381_v38 }
 0x24c   : > { %v2395_v22 = vsel %vm807_vm0, %v2075_v42, %v2287_v3  ;;  %v2396_v49 = vsel %vm807_vm0, %v2076_v10, %v2289_v15  ;;  %v2021_v42 = vand.u32 15, %v8333_v31  ;;  %v2065_v10 = vshra.s32 %v12535_v53, 8 }
 0x24d   : > { %v2453_v43 = vcvt.s32.f32 %v2395_v22  ;;  %2542 = vmatprep.subr.bf16.mxu0 %v2505_v36  ;;  %v2383_v19 = vsel %vm807_vm0, %v2015_v26, %v8705_v58  ;;  %v2457_v7 = vcvt.s32.f32 %v2396_v49  ;;  %v2080_v36 = vand.u32 15, %v2064_v50  ;;  %v8805_v49 = vld [vmem:[%s7442_s17 + $0x188] sm:$0xff] }
 0x24e   : > { %2543 = vmatpush1.bf16.msra.mxu0 %v2504_v18  ;;  %v2382_v18 = vsel %vm807_vm0, %v12555_v24, %v8699_v52  ;;  %v2023_v58 = vand.u32 15, %v8348_v37  ;;  %v2512_v38 = vpack.c.bf16 %v2460_v33, %v2456_v63  ;;  %v2081_v48 = vand.u32 15, %v2065_v10  ;;  %12556 = vst [vmem:[#allocation39_spill] sm:$0xff] %v8805_v49 }
 0x24f   : > { %v2293_v62 = vpop.permute.xlu0 %2292  ;;  %2684 = vadd.xlane.f32.xlu1 %v2681_v4  ;;  %v2291_v16 = vpop.permute.xlu1 %2290  ;;  %v2509_v46 = vpack.c.bf16 %v2453_v43, %v2449_v6  ;;  %v2068_v4 = vshra.s32 %v8338_v56, 8  ;;  %v2468_v6 = vcvt.s32.f32 %v2383_v19  ;;  %v2385_v52 = vsel %vm807_vm0, %v12557_v21, %v8709_v57 }
 0x250   : > { %v2397_v12 = vsel %vm807_vm0, %v2077_v34, %v2291_v16  ;;  %v2398_v3 = vsel %vm807_vm0, %v2078_v40, %v2293_v62  ;;  %v2067_v34 = vshra.s32 %v8318_v27, 8  ;;  %v2464_v62 = vcvt.s32.f32 %v2382_v18  ;;  %v8832_v18 = vld [vmem:[%s7442_s17 + $0x190] sm:$0xff] }
 0x251   : > { %v2461_v15 = vcvt.s32.f32 %v2397_v12  ;;  %2544 = vmatprep.subr.bf16.mxu0 %v2509_v46  ;;  %v2465_v40 = vcvt.s32.f32 %v2398_v3  ;;  %v2084_v46 = vand.u32 15, %v2068_v4  ;;  %v12559_v33 = vand.u32 15, %v12536_v2 }
 0x252   : > { %2545 = vmatpush1.bf16.msra.mxu0 %v2508_v41  ;;  %v8814_v41 = vld [vmem:[%s7442_s17 + $0x180] sm:$0xff]  ;;  %v2083_v19 = vand.u32 15, %v2067_v34  ;;  %v2476_v51 = vcvt.s32.f32 %v2385_v52  ;;  %v2070_v3 = vshra.s32 %v8353_v8, 8  ;;  %v2387_v2 = vsel %vm807_vm0, %v2019_v14, %v8715_v5 }
 0x253   : > { %v2297_v26 = vpop.permute.xlu0 %2296  ;;  %v2295_v39 = vpop.permute.xlu1 %2294  ;;  %v2513_v22 = vpack.c.bf16 %v2461_v15, %v2457_v7  ;;  %12558 = vst [vmem:[#allocation12_spill] sm:$0xff] %v8814_v41  ;;  %v2384_v53 = vsel %vm807_vm0, %v12559_v33, %v8703_v35  ;;  %v2810_v7 = vshra.s32 %v8805_v49, 4  ;;  %v2516_v15 = vpack.c.bf16 %v2468_v6, %v2464_v62 }
 0x254   : > { %v2399_v43 = vsel %vm807_vm0, %v2079_v45, %v2295_v39  ;;  %v2400_v16 = vsel %vm807_vm0, %v2080_v36, %v2297_v26  ;;  %v2069_v45 = vshra.s32 %v8333_v31, 8  ;;  %v8824_v36 = vld [vmem:[%s7442_s17 + $0x198] sm:$0xff]  ;;  %v2809_v24 = vshra.s32 %v8814_v41, 4 }
 0x255   : > { %v2469_v50 = vcvt.s32.f32 %v2399_v43  ;;  %2546 = vmatprep.subr.bf16.mxu0 %v2513_v22  ;;  %12560 = vst [vmem:[#allocation36_spill] sm:$0xff] %v8824_v36  ;;  %v2473_v35 = vcvt.s32.f32 %v2400_v16  ;;  %v2472_v26 = vcvt.s32.f32 %v2384_v53  ;;  %v2071_v34 = vshra.s32 %v8348_v37, 8  ;;  %v8875_v37 = vld [vmem:[%s7442_s17 + $0x1b0] sm:$0xff] }
 0x256   : > { %2547 = vmatpush1.bf16.msra.mxu0 %v2512_v38  ;;  %v2085_v22 = vand.u32 15, %v2069_v45  ;;  %v12561_v27 = vand.u32 15, %v8323_v60  ;;  %v2826_v43 = vand.u32 15, %v2810_v7  ;;  %v2484_v52 = vcvt.s32.f32 %v2387_v2  ;;  %12564 = vst [vmem:[#allocation13_spill] sm:$0xff] %v8875_v37 }
 0x257   : > { %v2301_v57 = vpop.permute.xlu0 %2300  ;;  %v2299_v12 = vpop.permute.xlu1 %2298  ;;  %v2517_v10 = vpack.c.bf16 %v2469_v50, %v2465_v40  ;;  %v2520_v21 = vpack.c.bf16 %v2476_v51, %v2472_v26  ;;  %v2811_v50 = vshra.s32 %v8832_v18, 4  ;;  %v2389_v60 = vsel %vm807_vm0, %v2021_v42, %v8725_v44 }
 0x258   : > { %v2401_v63 = vsel %vm807_vm0, %v2081_v48, %v2299_v12  ;;  %v2402_v39 = vsel %vm807_vm0, %v2082_v9, %v2301_v57  ;;  %v2386_v5 = vsel %vm807_vm0, %v12561_v27, %v8707_v30  ;;  %v2812_v48 = vshra.s32 %v8824_v36, 4  ;;  %v8844_v9 = vld [vmem:[%s7442_s17 + $0x1a8] sm:$0xff]  ;;  %v8852_v12 = vld [vmem:[%s7442_s17 + $0x1a0] sm:$0xff] }
 0x259   : > { %v2477_v4 = vcvt.s32.f32 %v2401_v63  ;;  %2548 = vmatprep.subr.bf16.mxu0 %v2517_v10  ;;  %v2481_v30 = vcvt.s32.f32 %v2402_v39  ;;  %v2825_v16 = vand.u32 15, %v2809_v24  ;;  %v2480_v45 = vcvt.s32.f32 %v2386_v5 }
 0x25a   : > { %2549 = vmatpush1.bf16.msra.mxu0 %v2516_v15  ;;  %v2086_v53 = vand.u32 15, %v2070_v3  ;;  %v2087_v57 = vand.u32 15, %v2071_v34  ;;  %v12562_v10 = vand.u32 15, %v8338_v56  ;;  %v2828_v7 = vand.u32 15, %v2812_v48 }
 0x25b   : > { %v2305_v14 = vpop.permute.xlu0 %2304  ;;  %v2303_v38 = vpop.permute.xlu1 %2302  ;;  %v2521_v6 = vpack.c.bf16 %v2477_v4, %v2473_v35  ;;  %v2814_v15 = vshra.s32 %v8844_v9, 4  ;;  %v2524_v51 = vpack.c.bf16 %v2484_v52, %v2480_v45  ;;  %v2492_v63 = vcvt.s32.f32 %v2389_v60  ;;  %v8868_v4 = vld [vmem:[%s7442_s17 + $0x1b8] sm:$0xff]  ;;  %v8893_v52 = vld [vmem:[%s7442_s17 + $0x1c0] sm:$0xff] }
 0x25c   : > { %v2403_v40 = vsel %vm807_vm0, %v2083_v19, %v2303_v38  ;;  %v2404_v33 = vsel %vm807_vm0, %v2084_v46, %v2305_v14  ;;  %v2388_v19 = vsel %vm807_vm0, %v12562_v10, %v8713_v0  ;;  %v2827_v3 = vand.u32 15, %v2811_v50  ;;  %12563 = vst [vmem:[#allocation38_spill] sm:$0xff] %v8868_v4  ;;  %12566 = vst [vmem:[#allocation23_spill] sm:$0xff] %v8893_v52 }
 0x25d   : > { %v2485_v62 = vcvt.s32.f32 %v2403_v40  ;;  %2550 = vmatprep.subr.bf16.mxu0 %v2521_v6  ;;  %v2391_v56 = vsel %vm807_vm0, %v2023_v58, %v8748_v55  ;;  %v2489_v0 = vcvt.s32.f32 %v2404_v33  ;;  %v2813_v35 = vshra.s32 %v8852_v12, 4  ;;  %v6962_v33 = vld [vmem:[%s7452_s6 + $0x4] sm:$0xf] }
 0x25e   : > { %2551 = vmatpush1.bf16.msra.mxu0 %v2520_v21  ;;  %v1107_v24 = vcvt.s32.f32 %v8738_v17  ;;  %v1120_v26 = vrot.slane %v8717_v11, %v12549_v61  ;;  %v2488_v39 = vcvt.s32.f32 %v2388_v19  ;;  %v1106_v55 = vcvt.s32.f32 %v8743_v47 }
 0x25f   : > { %v2309_v31 = vpop.permute.xlu0 %2308  ;;  %v2307_v44 = vpop.permute.xlu1 %2306  ;;  %v2525_v42 = vpack.c.bf16 %v2485_v62, %v2481_v30  ;;  %v2390_v58 = vsel %vm807_vm0, %v2022_v20, %v8723_v23  ;;  %v2830_v5 = vand.u32 15, %v2814_v15  ;;  %v2500_v38 = vcvt.s32.f32 %v2391_v56  ;;  %v8890_v20 = vld [vmem:[%s7442_s17 + $0x1c8] sm:$0xff]  ;;  %v12570_v15 = vld [vmem:[#allocation27_spill] sm:$0xff]  ;;  %v12573_v56 = vld [vmem:[#allocation29_spill] sm:$0xff] }
 0x260   : > { %v2405_v46 = vsel %vm807_vm0, %v2085_v22, %v2307_v44  ;;  %3035 = vrot.lane.b32.xlu1 %v2826_v43, %s7355_s8  ;;  %v2406_v22 = vsel %vm807_vm0, %v2086_v53, %v2309_v31  ;;  %v2528_v14 = vpack.c.bf16 %v2492_v63, %v2488_v39  ;;  %v2816_v47 = vshra.s32 %v8868_v4, 4  ;;  %12565 = vst [vmem:[#allocation14_spill] sm:$0xff] %v8890_v20 }
 0x261   : > { %v2493_v2 = vcvt.s32.f32 %v2405_v46  ;;  %3033 = vrot.lane.b32.xlu0 %v2825_v16, %s7355_s8  ;;  %2552 = vmatprep.subr.bf16.mxu0 %v2525_v42  ;;  %v2497_v43 = vcvt.s32.f32 %v2406_v22  ;;  %v2829_v8 = vand.u32 15, %v2813_v35  ;;  %v2815_v23 = vshra.s32 %v8875_v37, 4  ;;  %v8913_v42 = vld [vmem:[%s7442_s17 + $0x1d8] sm:$0xff] }
 0x262   : > { %2553 = vmatpush1.bf16.msra.mxu0 %v2524_v51  ;;  %v2496_v21 = vcvt.s32.f32 %v2390_v58  ;;  %v1170_v40 = vmul.f32 %v8734_v25, %v1107_v24  ;;  %v1169_v50 = vmul.f32 %v1120_v26, %v1106_v55  ;;  %v1140_v60 = vrot.slane %v1120_v26, %v12549_v61  ;;  %12568 = vst [vmem:[#allocation25_spill] sm:$0xff] %v8913_v42  ;;  %v414_v24 = vld [vmem:[#allocation2 + $0x8] sm:$0xff]  ;;  %v12574_v26 = vld [vmem:[#allocation31_spill] sm:$0xff]  ;;  %v12575_v22 = vld [vmem:[#allocation34_spill] sm:$0xff] }
 0x263   : > { %v8882_v34 = vpop.permute.xlu0 %2312  ;;  %v2311_v17 = vpop.permute.xlu1 %2310  ;;  %v2529_v27 = vpack.c.bf16 %v2493_v2, %v2489_v0  ;;  %v1144_v45 = vrot.slane %v8734_v25, %v12549_v61  ;;  %v2818_v10 = vshra.s32 %v8890_v20, 4  ;;  %v8908_v19 = vcombine.low %v8753_v1, %v8770_v59  ;;  %v8916_v25 = vld [vmem:[%s7442_s17 + $0x1d0] sm:$0xff] }
 0x264   : > { %v2407_v6 = vsel %vm807_vm0, %v2087_v57, %v2311_v17  ;;  %3039 = vrot.lane.b32.xlu1 %v2828_v7, %s7355_s8  ;;  %v2532_v53 = vpack.c.bf16 %v2500_v38, %v2496_v21  ;;  %v2832_v57 = vand.u32 15, %v2816_v47  ;;  %v2831_v31 = vand.u32 15, %v2815_v23  ;;  %12569 = vst [vmem:[#allocation20_spill] sm:$0xff] %v8916_v25  ;;  %v8939_v38 = vld [vmem:[%s7442_s17 + $0x1e0] sm:$0xff] }
 0x265   : > { %v2501_v48 = vcvt.s32.f32 %v2407_v6  ;;  %3037 = vrot.lane.b32.xlu0 %v2827_v3, %s7355_s8  ;;  %2554 = vmatprep.subr.bf16.mxu0 %v2529_v27  ;;  %12567 = vst [vmem:[#allocation24_spill] sm:$0xff] %v8908_v19  ;;  %v2817_v44 = vshra.s32 %v8893_v52, 4  ;;  %v1180_v7 = vrot.slane %v1170_v40, %v12549_v61  ;;  %v1153_v51 = vmul.f32 %v1140_v60, %v12570_v15  ;;  %v413_v3 = vld [vmem:[#allocation2] sm:$0xff]  ;;  %v8936_v27 = vld [vmem:[%s7442_s17 + $0x1e8] sm:$0xff]  ;;  %v12580_v40 = vld [vmem:[#allocation21_spill] sm:$0xff] }
 0x266   : > { %2555 = vmatpush1.bf16.msra.mxu0 %v2528_v14  ;;  %v8920_v63 = vunpack.c.l.bf16 %v6962_v33  ;;  %v1176_v46 = vrot.slane %v1169_v50, %v12549_v61  ;;  %v1154_v0 = vmul.f32 %v1144_v45, %v12573_v56  ;;  %v2834_v2 = vand.u32 15, %v2818_v10  ;;  %v418_v14 = vld [vmem:[#allocation2 + $0x28] sm:$0xff]  ;;  %12576 = vst [vmem:[#allocation29_spill] sm:$0xff] %v8939_v38 }
 0x267   : > { %v8897_v30 = vpop.permute.xlu0 %2316  ;;  %v8899_v62 = vpop.permute.xlu1 %2314  ;;  %v2533_v16 = vpack.c.bf16 %v2501_v48, %v2497_v43  ;;  %v2820_v35 = vshra.s32 %v8913_v42, 4  ;;  %v1157_v39 = vmul.f32 %v1140_v60, %v12574_v26  ;;  %v1158_v55 = vmul.f32 %v1144_v45, %v12575_v22  ;;  %v12577_v6 = vld [vmem:[#allocation16_spill] sm:$0xff] }
 0x268   : > { %3043 = vrot.lane.b32.xlu1 %v2830_v5, %s7355_s8  ;;  %12571 = vst [vmem:[#allocation15_spill] sm:$0xff] %v8920_v63  ;;  %v2833_v58 = vand.u32 15, %v2817_v44  ;;  %v2819_v17 = vshra.s32 %v8916_v25, 4  ;;  %v417_v5 = vld [vmem:[#allocation2 + $0x20] sm:$0xff]  ;;  %v8942_v47 = vmul.f32 %v1176_v46, %v12577_v6  ;;  %v8945_v43 = vadd.f32 %v1153_v51, %v413_v3  ;;  %v8975_v44 = vld [vmem:[%s7442_s17 + $0x1f8] sm:$0xff] }
 0x269   : > { %3041 = vrot.lane.b32.xlu0 %v2829_v8, %s7355_s8  ;;  %2556 = vmatprep.subr.bf16.mxu0 %v2533_v16  ;;  %v8949_v48 = vrot.slane %v8920_v63, %v12549_v61  ;;  %v8956_v21 = vmul.f32 %v1180_v7, %v12577_v6  ;;  %v8959_v50 = vmul.f32 %v1176_v46, %v12580_v40  ;;  %v2836_v16 = vand.u32 15, %v2820_v35  ;;  %v8986_v46 = vld [vmem:[%s7442_s17 + $0x110] sm:$0xff]  ;;  %v9032_v6 = vld [vmem:[%s7442_s17 + $0x140] sm:$0xff] }
 0x26a   : > { %2557 = vmatpush1.bf16.msra.mxu0 %v2532_v53  ;;  %v8961_v60 = vadd.f32 %v1154_v0, %v414_v24  ;;  %v2822_v45 = vshra.s32 %v8936_v27, 4  ;;  %v8966_v33 = vmul.f32 %v1180_v7, %v12580_v40  ;;  %v8968_v53 = vadd.f32 %v1157_v39, %v417_v5  ;;  %12581 = vst [vmem:[#allocation40_spill] sm:$0xff] %v8975_v44  ;;  %v8982_v7 = vld [vmem:[%s7442_s17 + $0x100] sm:$0xff]  ;;  %v8991_v0 = vld [vmem:[%s7442_s17 + $0x1f0] sm:$0xff]  ;;  %v8998_v24 = vld [vmem:[%s7442_s17 + $0x118] sm:$0xff] }
 0x26b   : > { %v8922_v59 = vpop.permute.xlu0 %2320  ;;  %v8924_v1 = vpop.permute.xlu1 %2318  ;;  %12578 = vst [vmem:[#allocation31_spill] sm:$0xff] %v8949_v48  ;;  %v2835_v10 = vand.u32 15, %v2819_v17  ;;  %v8979_v15 = vrot.slane %v8920_v63, %v8720_v54  ;;  %v2120_v51 = vshra.s32 %v8982_v7, 16  ;;  %v2122_v3 = vshra.s32 %v8986_v46, 16  ;;  %12583 = vst [vmem:[#allocation42_spill] sm:$0xff] %v8991_v0  ;;  %v9002_v39 = vld [vmem:[%s7442_s17 + $0x130] sm:$0xff] }
 0x26c   : > { %12572 = vst [vmem:[#allocation27_spill] sm:$0xff] %v8922_v59  ;;  %3047 = vrot.lane.b32.xlu1 %v2832_v57, %s7355_s8  ;;  %v8970_v57 = vadd.f32 %v1158_v55, %v418_v14  ;;  %v2121_v56 = vshra.s32 %v8728_v13, 16  ;;  %v2123_v26 = vshra.s32 %v8998_v24, 16  ;;  %v2126_v22 = vshra.s32 %v9002_v39, 16  ;;  %v9012_v5 = vld [vmem:[%s7442_s17 + $0x128] sm:$0xff] }
 0x26d   : > { %3045 = vrot.lane.b32.xlu0 %v2831_v31, %s7355_s8  ;;  %2575 = vmatmul.mubr.bf16.vlgmr.msra.gmra.mrb[8].mxu0 %v8908_v19  ;;  %v2821_v31 = vshra.s32 %v8939_v38, 4  ;;  %12582 = vst [vmem:[#allocation41_spill] sm:$0xff] %v8979_v15  ;;  %v2125_v14 = vshra.s32 %v9012_v5, 16  ;;  %v2838_v54 = vand.u32 15, %v2822_v45  ;;  %v2824_v40 = vshra.s32 %v8975_v44, 4  ;;  %v9042_v19 = vld [vmem:[%s7442_s17 + $0x138] sm:$0xff] }
 0x26e   : > { %3359 = vmatprep.mubr.bf16.mxu0 %v12538_v29  ;;  %v2823_v32 = vshra.s32 %v8991_v0, 4  ;;  %v9027_v45 = vand.u32 15, %v2122_v3  ;;  %v9029_v28 = vand.u32 15, %v2121_v56  ;;  %v9037_v29 = vand.u32 15, %v2123_v26  ;;  %v9058_v0 = vld [vmem:[%s7442_s17 + $0x148] sm:$0xff] }
 0x26f   : > { %v8951_v8 = vpop.permute.xlu0 %2324  ;;  %v8953_v23 = vpop.permute.xlu1 %2322  ;;  %v2837_v63 = vand.u32 15, %v2821_v31  ;;  %v9039_v17 = vand.u32 15, %v2126_v22  ;;  %v9049_v11 = vand.u32 15, %v2125_v14  ;;  %v2840_v26 = vand.u32 15, %v2824_v40  ;;  %v9063_v14 = vld [vmem:[%s7442_s17 + $0x160] sm:$0xff] }
 0x270   : > { %12579 = vst [vmem:[#allocation34_spill] sm:$0xff] %v8951_v8  ;;  %3051 = vrot.lane.b32.xlu1 %v2834_v2, %s7355_s8  ;;  %v8994_v2 = vld [vmem:[%s7442_s17 + $0x120] sm:$0xff]  ;;  %v2874_v22 = vshra.s32 %v8805_v49, 12  ;;  %12590 = vst [vmem:[#allocation49_spill] sm:$0xff] %v9063_v14  ;;  %v2873_v8 = vshra.s32 %v8814_v41, 12  ;;  %v9074_v49 = vld [vmem:[%s7442_s17 + $0x170] sm:$0xff] }
 0x271   : > { %3049 = vrot.lane.b32.xlu0 %v2833_v58, %s7355_s8  ;;  %v2124_v35 = vshra.s32 %v8994_v2, 16  ;;  %12587 = vst [vmem:[#allocation46_spill] sm:$0xff] %v9039_v17  ;;  %v2839_v17 = vand.u32 15, %v2823_v32  ;;  %12593 = vst [vmem:[#allocation52_spill] sm:$0xff] %v9074_v49  ;;  %v9089_v41 = vld [vmem:[%s7442_s17 + $0x178] sm:$0xff]  ;;  %v2875_v38 = vshra.s32 %v8832_v18, 12 }
 0x272   : > { %12598 = vst [vmem:[#allocation57_spill] sm:$0xff] %v9089_v41 }
 0x273   : > { %v9005_v55 = vpop.permute.xlu0 %2328  ;;  %v9007_v58 = vpop.permute.xlu1 %2326  ;;  %v9035_v31 = vand.u32 15, %v2124_v35 }
 0x274   : > { %12584 = vst [vmem:[#allocation43_spill] sm:$0xff] %v9005_v55  ;;  %12585 = vst [vmem:[#allocation44_spill] sm:$0xff] %v9007_v58  ;;  %3055 = vrot.lane.b32.xlu1 %v2836_v16, %s7355_s8  ;;  %v9025_v16 = vand.u32 15, %v2120_v51  ;;  %v2127_v51 = vshra.s32 %v9042_v19, 16  ;;  %v9052_v55 = vld [vmem:[%s7442_s17 + $0x150] sm:$0xff]  ;;  %v2134_v58 = vshra.s32 %v9074_v49, 16 }
 0x275   : > { %3053 = vrot.lane.b32.xlu0 %v2835_v10, %s7355_s8  ;;  %v2128_v10 = vshra.s32 %v9032_v6, 16  ;;  %12586 = vst [vmem:[#allocation45_spill] sm:$0xff] %v9035_v31  ;;  %v2130_v35 = vshra.s32 %v9052_v55, 16  ;;  %v9078_v31 = vld [vmem:[%s7442_s17 + $0x168] sm:$0xff]  ;;  %v2890_v49 = vand.u32 15, %v2874_v22  ;;  %v2878_v22 = vshra.s32 %v8844_v9, 12 }
 0x276   : > { %12594 = vst [vmem:[#allocation53_spill] sm:$0xff] %v9078_v31  ;;  %v9081_v59 = vand.u32 15, %v2127_v51  ;;  %v2186_v51 = vshra.s32 %v8986_v46, 24 }
 0x277   : > { %v9045_v3 = vpop.permute.xlu0 %2332  ;;  %v9047_v56 = vpop.permute.xlu1 %2330  ;;  %v9067_v44 = vand.u32 15, %v2128_v10  ;;  %v2184_v10 = vshra.s32 %v8982_v7, 24 }
 0x278   : > { %12588 = vst [vmem:[#allocation47_spill] sm:$0xff] %v9045_v3  ;;  %12589 = vst [vmem:[#allocation48_spill] sm:$0xff] %v9047_v56  ;;  %3059 = vrot.lane.b32.xlu1 %v2838_v54, %s7355_s8  ;;  %v2129_v3 = vshra.s32 %v9058_v0, 16  ;;  %v2132_v56 = vshra.s32 %v9063_v14, 16  ;;  %v9070_v54 = vld [vmem:[%s7442_s17 + $0x158] sm:$0xff] }
 0x279   : > { %3057 = vrot.lane.b32.xlu0 %v2837_v63, %s7355_s8  ;;  %12591 = vst [vmem:[#allocation50_spill] sm:$0xff] %v9067_v44  ;;  %12592 = vst [vmem:[#allocation51_spill] sm:$0xff] %v9070_v54  ;;  %v2131_v40 = vshra.s32 %v9070_v54, 16  ;;  %v2133_v63 = vshra.s32 %v9078_v31, 16  ;;  %v2135_v44 = vshra.s32 %v9089_v41, 16  ;;  %v2876_v54 = vshra.s32 %v8824_v36, 12 }
 0x27a   : > { %12595 = vst [vmem:[#allocation54_spill] sm:$0xff] %v9081_v59  ;;  %v2185_v31 = vshra.s32 %v8728_v13, 24  ;;  %v9101_v7 = vand.u32 15, %v2132_v56  ;;  %v2889_v41 = vand.u32 15, %v2873_v8  ;;  %v9106_v36 = vand.u32 15, %v2134_v58 }
 0x27b   : > { %v9083_v14 = vpop.permute.xlu0 %2336  ;;  %v9085_v32 = vpop.permute.xlu1 %2334  ;;  %v9104_v59 = vand.u32 15, %v2131_v40  ;;  %v2892_v56 = vand.u32 15, %v2876_v54  ;;  %v2891_v8 = vand.u32 15, %v2875_v38  ;;  %v2188_v40 = vshra.s32 %v8994_v2, 24 }
 0x27c   : > { %12596 = vst [vmem:[#allocation55_spill] sm:$0xff] %v9083_v14  ;;  %12597 = vst [vmem:[#allocation56_spill] sm:$0xff] %v9085_v32  ;;  %3063 = vrot.lane.b32.xlu1 %v2840_v26, %s7355_s8  ;;  %v9097_v14 = vand.u32 15, %v2130_v35  ;;  %v9099_v32 = vand.u32 15, %v2129_v3  ;;  %v9108_v26 = vand.u32 15, %v2133_v63  ;;  %v2200_v35 = vand.u32 15, %v2184_v10 }
 0x27d   : > { %12599 = vst [vmem:[#allocation58_spill] sm:$0xff] %v9101_v7  ;;  %3061 = vrot.lane.b32.xlu0 %v2839_v17, %s7355_s8  ;;  %12600 = vst [vmem:[#allocation59_spill] sm:$0xff] %v9106_v36  ;;  %v9115_v3 = vand.u32 15, %v2135_v44  ;;  %v2877_v7 = vshra.s32 %v8852_v12, 12  ;;  %v2202_v17 = vand.u32 15, %v2186_v51  ;;  %v2201_v58 = vand.u32 15, %v2185_v31 }
 0x27e   : > { %v1925_v63 = vrot.slane %v8949_v48, %v12549_v61  ;;  %v2187_v36 = vshra.s32 %v8998_v24, 24  ;;  %v2880_v44 = vshra.s32 %v8868_v4, 12  ;;  %v2879_v54 = vshra.s32 %v8875_v37, 12 }
 0x27f   : > { %v9111_v46 = vpop.permute.xlu0 %2340  ;;  %v9113_v13 = vpop.permute.xlu1 %2338  ;;  %12602 = vst [vmem:[#allocation61_spill] sm:$0xff] %v9115_v3  ;;  %v2894_v10 = vand.u32 15, %v2878_v22  ;;  %v2882_v38 = vshra.s32 %v8890_v20, 12  ;;  %v2881_v51 = vshra.s32 %v8893_v52, 12  ;;  %v2192_v48 = vshra.s32 %v9032_v6, 24 }
 0x280   : > { %12601 = vst [vmem:[#allocation60_spill] sm:$0xff] %v9111_v46  ;;  %3067 = vrot.lane.b32.xlu1 %v2890_v49, %s7355_s8  ;;  %v2190_v46 = vshra.s32 %v9002_v39, 24  ;;  %v2189_v49 = vshra.s32 %v9012_v5, 24  ;;  %v2191_v24 = vshra.s32 %v9042_v19, 24  ;;  %v1929_v22 = vrot.slane %v8979_v15, %v12549_v61 }
 0x281   : > { %3065 = vrot.lane.b32.xlu0 %v2889_v41, %s7355_s8  ;;  %v2893_v41 = vand.u32 15, %v2877_v7  ;;  %v2204_v39 = vand.u32 15, %v2188_v40  ;;  %v2884_v5 = vshra.s32 %v8913_v42, 12  ;;  %v2883_v20 = vshra.s32 %v8916_v25, 12 }
 0x282   : > { %v2409_v7 = vsel %vm807_vm0, %v9029_v28, %v8899_v62  ;;  %v2203_v52 = vand.u32 15, %v2187_v36  ;;  %v2896_v6 = vand.u32 15, %v2880_v44  ;;  %v2895_v37 = vand.u32 15, %v2879_v54 }
 0x283   : > { %v2345_v31 = vpop.permute.xlu0 %2344  ;;  %v9129_v2 = vpop.permute.xlu1 %2342  ;;  %v2205_v4 = vand.u32 15, %v2189_v49  ;;  %v2898_v15 = vand.u32 15, %v2882_v38  ;;  %v2408_v40 = vsel %vm807_vm0, %v9025_v16, %v8882_v34  ;;  %v2897_v42 = vand.u32 15, %v2881_v51 }
 0x284   : > { %3071 = vrot.lane.b32.xlu1 %v2892_v56, %s7355_s8  ;;  %v2424_v19 = vsel %vm807_vm0, %v2200_v35, %v2345_v31  ;;  %v9144_v56 = vand.u32 15, %v2190_v46  ;;  %v9149_v3 = vand.u32 15, %v2192_v48  ;;  %v9151_v28 = vand.u32 15, %v2191_v24 }
 0x285   : > { %3069 = vrot.lane.b32.xlu0 %v2891_v8, %s7355_s8  ;;  %v2446_v36 = vcvt.s32.f32 %v2409_v7  ;;  %v9155_v46 = vand.u32 15, %v2884_v5  ;;  %v9157_v35 = vand.u32 15, %v2883_v20  ;;  %v2443_v44 = vcvt.s32.f32 %v2424_v19 }
 0x286   : > { %v2194_v48 = vshra.s32 %v9052_v55, 24  ;;  %v2442_v49 = vcvt.s32.f32 %v2408_v40  ;;  %v12603_v31 = vsub.f32 %v8945_v43, %v8942_v47  ;;  %v2410_v7 = vsel %vm807_vm0, %v9027_v45, %v8897_v30  ;;  %v12607_v40 = vld [vmem:[#allocation29_spill] sm:$0xff] }
 0x287   : > { %v2349_v61 = vpop.permute.xlu0 %2348  ;;  %v2347_v25 = vpop.permute.xlu1 %2346  ;;  %v12605_v43 = vsub.f32 %v8968_v53, %v8959_v50  ;;  %v2886_v30 = vshra.s32 %v8936_v27, 12  ;;  %v12606_v45 = vsub.f32 %v8970_v57, %v8966_v33  ;;  %v2450_v53 = vcvt.s32.f32 %v2410_v7  ;;  %v12616_v7 = vld [vmem:[#allocation46_spill] sm:$0xff] }
 0x288   : > { %v2425_v62 = vsel %vm807_vm0, %v2201_v58, %v2347_v25  ;;  %v1791_v8 = vpop.f32.mrb[4].mxu0  ;;  %3075 = vrot.lane.b32.xlu1 %v2894_v10, %s7355_s8  ;;  %v2411_v25 = vsel %vm807_vm0, %v9037_v29, %v8924_v1  ;;  %v2193_v10 = vshra.s32 %v9058_v0, 24  ;;  %v2426_v20 = vsel %vm807_vm0, %v2202_v17, %v2349_v61 }
 0x289   : > { %v2447_v54 = vcvt.s32.f32 %v2425_v62  ;;  %v1938_v34 = vmul.f32 %v1925_v63, %v1791_v8  ;;  %3073 = vrot.lane.b32.xlu0 %v2893_v41, %s7355_s8  ;;  %v1793_v16 = vpop.f32.mrb[5].mxu0  ;;  %v2506_v29 = vpack.c.bf16 %v2446_v36, %v2442_v49  ;;  %v12604_v1 = vsub.f32 %v8961_v60, %v8956_v21  ;;  %v12608_v62 = vld [vmem:[#allocation27_spill] sm:$0xff]  ;;  %v12609_v8 = vld [vmem:[#allocation45_spill] sm:$0xff] }
 0x28a   : > { %v1939_v58 = vmul.f32 %v1929_v22, %v1793_v16  ;;  %v1795_v38 = vpop.f32.mrb[6].mxu0  ;;  %v2454_v47 = vcvt.s32.f32 %v2411_v25  ;;  %v2413_v21 = vsel %vm807_vm0, %v9049_v11, %v8953_v23  ;;  %v2451_v60 = vcvt.s32.f32 %v2426_v20  ;;  %v12612_v25 = vld [vmem:[#allocation44_spill] sm:$0xff] }
 0x28b   : > { %v9169_v51 = vadd.f32 %v1938_v34, %v12603_v31  ;;  %v1942_v41 = vmul.f32 %v1925_v63, %v1795_v38  ;;  %v2353_v24 = vpop.permute.xlu0 %2352  ;;  %v1797_v5 = vpop.f32.mrb[7].mxu0  ;;  %v2507_v55 = vpack.c.bf16 %v2447_v54, %v2443_v44  ;;  %v2885_v36 = vshra.s32 %v12607_v40, 12  ;;  %v12610_v44 = vld [vmem:[#allocation49_spill] sm:$0xff] }
 0x28c   : > { %v9177_v0 = vadd.f32 %v1939_v58, %v12604_v1  ;;  %v1943_v61 = vmul.f32 %v1929_v22, %v1797_v5  ;;  %v2351_v17 = vpop.permute.xlu1 %2350  ;;  %3079 = vrot.lane.b32.xlu1 %v2896_v6, %s7355_s8  ;;  %v2412_v11 = vsel %vm807_vm0, %v12609_v8, %v12608_v62  ;;  %v2209_v57 = vand.u32 15, %v2193_v10  ;;  %v12613_v58 = vld [vmem:[#allocation54_spill] sm:$0xff]  ;;  %v12620_v8 = vld [vmem:[#allocation39_spill] sm:$0xff] }
 0x28d   : > { %v9183_v63 = vadd.f32 %v1942_v41, %v12605_v43  ;;  %v2427_v19 = vsel %vm807_vm0, %v2203_v52, %v2351_v17  ;;  %3077 = vrot.lane.b32.xlu0 %v2895_v37, %s7355_s8  ;;  %2585 = vmatprep.subr.bf16.mxu1 %v2507_v55  ;;  %v2428_v52 = vsel %vm807_vm0, %v2204_v39, %v2353_v24  ;;  %v9197_v37 = vand.u32 15, %v2194_v48  ;;  %v12611_v48 = vld [vmem:[#allocation51_spill] sm:$0xff] }
 0x28e   : > { %v9194_v22 = vadd.f32 %v1943_v61, %v12606_v45  ;;  %v2455_v50 = vcvt.s32.f32 %v2427_v19  ;;  %2586 = vmatpush1.bf16.msra.mxu1 %v2506_v29  ;;  %v2196_v54 = vshra.s32 %v12610_v44, 24  ;;  %v2510_v34 = vpack.c.bf16 %v2454_v47, %v2450_v53  ;;  %v12617_v47 = vld [vmem:[#allocation42_spill] sm:$0xff] }
 0x28f   : > { %v2357_v6 = vpop.permute.xlu0 %2356  ;;  %v2462_v16 = vcvt.s32.f32 %v2413_v21  ;;  %v2195_v49 = vshra.s32 %v12611_v48, 24  ;;  %v2415_v38 = vsel %vm807_vm0, %v12613_v58, %v12612_v25  ;;  %v2459_v20 = vcvt.s32.f32 %v2428_v52  ;;  %v12625_v58 = vld [vmem:[#allocation56_spill] sm:$0xff] }
 0x290   : > { %v2355_v23 = vpop.permute.xlu1 %2354  ;;  %3083 = vrot.lane.b32.xlu1 %v2898_v15, %s7355_s8  ;;  %v2511_v33 = vpack.c.bf16 %v2455_v50, %v2451_v60  ;;  %v2902_v15 = vand.u32 15, %v2886_v30  ;;  %v2458_v41 = vcvt.s32.f32 %v2412_v11  ;;  %v2430_v10 = vsel %vm807_vm0, %v9144_v56, %v2357_v6  ;;  %v12618_v60 = vld [vmem:[#allocation48_spill] sm:$0xff] }
 0x291   : > { %v2429_v39 = vsel %vm807_vm0, %v2205_v4, %v2355_v23  ;;  %3081 = vrot.lane.b32.xlu0 %v2897_v42, %s7355_s8  ;;  %v2901_v5 = vand.u32 15, %v2885_v36  ;;  %v12614_v4 = vld [vmem:[#allocation40_spill] sm:$0xff]  ;;  %v12615_v42 = vld [vmem:[#allocation34_spill] sm:$0xff]  ;;  %v2212_v17 = vand.u32 15, %v2196_v54  ;;  %v2887_v43 = vshra.s32 %v12617_v47, 12 }
 0x292   : > { %v2463_v31 = vcvt.s32.f32 %v2429_v39  ;;  %2587 = vmatprep.subr.bf16.mxu1 %v2511_v33  ;;  %v2888_v55 = vshra.s32 %v12614_v4, 12  ;;  %v2414_v29 = vsel %vm807_vm0, %v12616_v7, %v12615_v42  ;;  %v2514_v19 = vpack.c.bf16 %v2462_v16, %v2458_v41  ;;  %v12622_v23 = vld [vmem:[#allocation50_spill] sm:$0xff] }
 0x293   : > { %v2361_v24 = vpop.permute.xlu0 %2360  ;;  %2588 = vmatpush1.bf16.msra.mxu1 %v2510_v34  ;;  %v2470_v30 = vcvt.s32.f32 %v2415_v38  ;;  %v2211_v21 = vand.u32 15, %v2195_v49  ;;  %v2417_v45 = vsel %vm807_vm0, %v9099_v32, %v12618_v60  ;;  %v2467_v50 = vcvt.s32.f32 %v2430_v10  ;;  %v12623_v34 = vld [vmem:[#allocation12_spill] sm:$0xff] }
 0x294   : > { %v2359_v1 = vpop.permute.xlu1 %2358  ;;  %3087 = vrot.lane.b32.xlu1 %v9155_v46, %s7355_s8  ;;  %v2515_v61 = vpack.c.bf16 %v2463_v31, %v2459_v20  ;;  %v12619_v46 = vld [vmem:[#allocation53_spill] sm:$0xff]  ;;  %v2466_v6 = vcvt.s32.f32 %v2414_v29  ;;  %v2432_v36 = vsel %vm807_vm0, %v9149_v3, %v2361_v24  ;;  %v2938_v11 = vshra.s32 %v12620_v8, 20  ;;  %v12624_v49 = vld [vmem:[#allocation52_spill] sm:$0xff] }
 0x295   : > { %v2431_v56 = vsel %vm807_vm0, %v9151_v28, %v2359_v1  ;;  %3085 = vrot.lane.b32.xlu0 %v9157_v35, %s7355_s8  ;;  %v2197_v52 = vshra.s32 %v12619_v46, 24  ;;  %v2904_v28 = vand.u32 15, %v2888_v55  ;;  %v12621_v35 = vld [vmem:[#allocation43_spill] sm:$0xff]  ;;  %v2903_v54 = vand.u32 15, %v2887_v43 }
 0x296   : > { %v2471_v53 = vcvt.s32.f32 %v2431_v56  ;;  %2589 = vmatprep.subr.bf16.mxu1 %v2515_v61  ;;  %v2416_v33 = vsel %vm807_vm0, %v12622_v23, %v12621_v35  ;;  %v2937_v16 = vshra.s32 %v12623_v34, 20  ;;  %v2518_v39 = vpack.c.bf16 %v2470_v30, %v2466_v6  ;;  %v12628_v61 = vld [vmem:[#allocation36_spill] sm:$0xff] }
 0x297   : > { %v2365_v62 = vpop.permute.xlu0 %2364  ;;  %2590 = vmatpush1.bf16.msra.mxu1 %v2514_v19  ;;  %v2478_v48 = vcvt.s32.f32 %v2417_v45  ;;  %v2198_v25 = vshra.s32 %v12624_v49, 24  ;;  %v2419_v38 = vsel %vm807_vm0, %v9104_v59, %v12625_v58  ;;  %v2475_v20 = vcvt.s32.f32 %v2432_v36  ;;  %v12630_v36 = vld [vmem:[#allocation58_spill] sm:$0xff]  ;;  %v12633_v58 = vld [vmem:[#allocation59_spill] sm:$0xff] }
 0x298   : > { %v2363_v44 = vpop.permute.xlu1 %2362  ;;  %3091 = vrot.lane.b32.xlu1 %v2902_v15, %s7355_s8  ;;  %v2519_v32 = vpack.c.bf16 %v2471_v53, %v2467_v50  ;;  %v2213_v15 = vand.u32 15, %v2197_v52  ;;  %v2474_v41 = vcvt.s32.f32 %v2416_v33  ;;  %v2434_v10 = vsel %vm807_vm0, %v9197_v37, %v2365_v62 }
 0x299   : > { %v2433_v3 = vsel %vm807_vm0, %v2209_v57, %v2363_v44  ;;  %3089 = vrot.lane.b32.xlu0 %v2901_v5, %s7355_s8  ;;  %v2954_v55 = vand.u32 15, %v2938_v11  ;;  %v12626_v57 = vld [vmem:[#allocation57_spill] sm:$0xff]  ;;  %v12627_v5 = vld [vmem:[#allocation47_spill] sm:$0xff]  ;;  %v2953_v1 = vand.u32 15, %v2937_v16  ;;  %v2940_v43 = vshra.s32 %v12628_v61, 20 }
 0x29a   : > { %v2479_v31 = vcvt.s32.f32 %v2433_v3  ;;  %2591 = vmatprep.subr.bf16.mxu1 %v2519_v32  ;;  %v2199_v42 = vshra.s32 %v12626_v57, 24  ;;  %v2418_v7 = vsel %vm807_vm0, %v9097_v14, %v12627_v5  ;;  %v2522_v19 = vpack.c.bf16 %v2478_v48, %v2474_v41  ;;  %v12631_v32 = vld [vmem:[#allocation61_spill] sm:$0xff]  ;;  %v12634_v41 = vld [vmem:[#allocation38_spill] sm:$0xff] }
 0x29b   : > { %v2369_v24 = vpop.permute.xlu0 %2368  ;;  %2592 = vmatpush1.bf16.msra.mxu1 %v2518_v39  ;;  %v2486_v30 = vcvt.s32.f32 %v2419_v38  ;;  %v2939_v56 = vshra.s32 %v8832_v18, 20  ;;  %v2421_v60 = vsel %vm807_vm0, %v9108_v26, %v9113_v13  ;;  %v2483_v14 = vcvt.s32.f32 %v2434_v10  ;;  %v12635_v57 = vld [vmem:[#allocation13_spill] sm:$0xff] }
 0x29c   : > { %v2367_v29 = vpop.permute.xlu1 %2366  ;;  %3095 = vrot.lane.b32.xlu1 %v2904_v28, %s7355_s8  ;;  %v2523_v59 = vpack.c.bf16 %v2479_v31, %v2475_v20  ;;  %v2214_v50 = vand.u32 15, %v2198_v25  ;;  %v2482_v53 = vcvt.s32.f32 %v2418_v7  ;;  %v2436_v46 = vsel %vm807_vm0, %v2212_v17, %v2369_v24  ;;  %v12632_v25 = vld [vmem:[#allocation60_spill] sm:$0xff] }
 0x29d   : > { %v2435_v37 = vsel %vm807_vm0, %v2211_v21, %v2367_v29  ;;  %3093 = vrot.lane.b32.xlu0 %v2903_v54, %s7355_s8  ;;  %v2215_v52 = vand.u32 15, %v2199_v42  ;;  %v2942_v6 = vshra.s32 %v8844_v9, 20  ;;  %v12629_v21 = vld [vmem:[#allocation55_spill] sm:$0xff]  ;;  %v2956_v13 = vand.u32 15, %v2940_v43  ;;  %v12636_v43 = vld [vmem:[#allocation14_spill] sm:$0xff] }
 0x29e   : > { %v2487_v45 = vcvt.s32.f32 %v2435_v37  ;;  %2593 = vmatprep.subr.bf16.mxu1 %v2523_v59  ;;  %v2420_v62 = vsel %vm807_vm0, %v12630_v36, %v12629_v21  ;;  %v2941_v35 = vshra.s32 %v8852_v12, 20  ;;  %v2526_v23 = vpack.c.bf16 %v2486_v30, %v2482_v53 }
 0x29f   : > { %2594 = vmatpush1.bf16.msra.mxu1 %v2522_v19  ;;  %v2373_v28 = vpop.permute.xlu0 %2372  ;;  %v2494_v33 = vcvt.s32.f32 %v2421_v60  ;;  %v2955_v44 = vand.u32 15, %v2939_v56  ;;  %v2423_v54 = vsel %vm807_vm0, %v12631_v32, %v9129_v2  ;;  %v2491_v16 = vcvt.s32.f32 %v2436_v46  ;;  %v12637_v56 = vld [vmem:[#allocation23_spill] sm:$0xff]  ;;  %v12639_v46 = vld [vmem:[#allocation20_spill] sm:$0xff] }
 0x2a0   : > { %v2371_v11 = vpop.permute.xlu1 %2370  ;;  %3099 = vrot.lane.b32.xlu1 %v2954_v55, %s7355_s8  ;;  %v2527_v26 = vpack.c.bf16 %v2487_v45, %v2483_v14  ;;  %v2490_v48 = vcvt.s32.f32 %v2420_v62  ;;  %v2438_v3 = vsel %vm807_vm0, %v2214_v50, %v2373_v28  ;;  %v2958_v49 = vand.u32 15, %v2942_v6  ;;  %v12638_v45 = vld [vmem:[#allocation25_spill] sm:$0xff]  ;;  %v12640_v6 = vld [vmem:[#allocation24_spill] sm:$0xff]  ;;  %v7192_v28 = vld [vmem:[%s7447_s28] sm:$0x1] }
 0x2a1   : > { %v2437_v17 = vsel %vm807_vm0, %v2213_v15, %v2371_v11  ;;  %3097 = vrot.lane.b32.xlu0 %v2953_v1, %s7355_s8  ;;  %v2422_v38 = vsel %vm807_vm0, %v12633_v58, %v12632_v25  ;;  %v2957_v15 = vand.u32 15, %v2941_v35  ;;  %v2944_v10 = vshra.s32 %v12634_v41, 20 }
 0x2a2   : > { %v2495_v39 = vcvt.s32.f32 %v2437_v17  ;;  %2595 = vmatprep.subr.bf16.mxu1 %v2527_v26  ;;  %v2530_v2 = vpack.c.bf16 %v2494_v33, %v2490_v48  ;;  %v2502_v24 = vcvt.s32.f32 %v2423_v54  ;;  %v2943_v42 = vshra.s32 %v12635_v57, 20 }
 0x2a3   : > { %2596 = vmatpush1.bf16.msra.mxu1 %v2526_v23  ;;  %v2499_v5 = vcvt.s32.f32 %v2438_v3  ;;  %v2498_v29 = vcvt.s32.f32 %v2422_v38  ;;  %v2960_v1 = vand.u32 15, %v2944_v10  ;;  %v2946_v19 = vshra.s32 %v12636_v43, 20  ;;  %v12646_v38 = vld [vmem:[#allocation17_spill] sm:$0xff] }
 0x2a4   : > { %v2375_v20 = vpop.permute.xlu1 %2374  ;;  %3103 = vrot.lane.b32.xlu1 %v2956_v13, %s7355_s8  ;;  %v2531_v31 = vpack.c.bf16 %v2495_v39, %v2491_v16  ;;  %v2959_v37 = vand.u32 15, %v2943_v42  ;;  %v2945_v60 = vshra.s32 %v12637_v56, 20  ;;  %v2948_v50 = vshra.s32 %v12638_v45, 20  ;;  %v12642_v16 = vld [vmem:[#allocation8_spill] sm:$0xff] }
 0x2a5   : > { %v2439_v55 = vsel %vm807_vm0, %v2215_v52, %v2375_v20  ;;  %3101 = vrot.lane.b32.xlu0 %v2955_v44, %s7355_s8  ;;  %v2534_v30 = vpack.c.bf16 %v2502_v24, %v2498_v29  ;;  %v2962_v14 = vand.u32 15, %v2946_v19  ;;  %v2947_v52 = vshra.s32 %v12639_v46, 20  ;;  %v12648_v24 = vld [vmem:[#allocation9_spill] sm:$0xff] }
 0x2a6   : > { %v2503_v7 = vcvt.s32.f32 %v2439_v55  ;;  %2597 = vmatprep.subr.bf16.mxu1 %v2531_v31  ;;  %v2961_v53 = vand.u32 15, %v2945_v60  ;;  %v12641_v21 = vmov 0   ;;  %v2964_v36 = vand.u32 15, %v2948_v50  ;;  %v12647_v31 = vld [vmem:[#allocation37_spill] sm:$0xff] }
 0x2a7   : > { %2598 = vmatpush1.bf16.msra.mxu1 %v2530_v2  ;;  %v2950_v62 = vshra.s32 %v8936_v27, 20  ;;  %v1070_v11 = vshra.s32 %v7192_v28, 16  ;;  %v2963_v26 = vand.u32 15, %v2947_v52  ;;  %v2949_v13 = vshra.s32 %v12607_v40, 20  ;;  %v415_v60 = vld [vmem:[#allocation2 + $0x10] sm:$0xff] }
 0x2a8   : > { %3107 = vrot.lane.b32.xlu1 %v2958_v49, %s7355_s8  ;;  %v2535_v59 = vpack.c.bf16 %v2503_v7, %v2499_v5  ;;  %v1074_v35 = vshra.s32 %v7192_v28, 24  ;;  %v2952_v33 = vshra.s32 %v12614_v4, 20  ;;  %v2951_v32 = vshra.s32 %v12617_v47, 20  ;;  %v12645_v49 = vld [vmem:[#allocation7_spill] sm:$0xff]  ;;  %v12655_v28 = vld [vmem:[#allocation30_spill] sm:$0xff] }
 0x2a9   : > { %3105 = vrot.lane.b32.xlu0 %v2957_v15, %s7355_s8  ;;  %v2966_v23 = vand.u32 15, %v2950_v62  ;;  %v1071_v17 = vand.u32 15, %v1070_v11  ;;  %v2965_v44 = vand.u32 15, %v2949_v13  ;;  %v9297_v39 = vsub.s32 4, %v12642_v16 }
 0x2aa   : > { %2599 = vmatprep.subr.bf16.mxu1 %v2535_v59  ;;  %v1075_v54 = vand.u32 15, %v1074_v35  ;;  %v9300_v48 = vsub.s32 6, %v12642_v16  ;;  %v2968_v3 = vand.u32 15, %v2952_v33  ;;  %v2967_v58 = vand.u32 15, %v2951_v32  ;;  %v420_v35 = vld [vmem:[#allocation2 + $0x38] sm:$0xff]  ;;  %v12656_v16 = vld [vmem:[#allocation16_spill] sm:$0xff] }
 0x2ab   : > { %2600 = vmatpush1.bf16.msra.mxu1 %v2534_v30  ;;  %12643 = vst [vmem:[#allocation29_spill] sm:$0xff] %v9297_v39  ;;  %v1104_v25 = vsel %vm807_vm0, %v1071_v17, %v12645_v49  ;;  %v1128_v15 = vrot.slane %v12647_v31, %v9297_v39  ;;  %v6986_v42 = vshrl.u32 %v12620_v8, 28  ;;  %v6985_v29 = vshrl.u32 %v12623_v34, 28  ;;  %v416_v34 = vld [vmem:[#allocation2 + $0x18] sm:$0xff] }
 0x2ac   : > { %3111 = vrot.lane.b32.xlu1 %v2960_v1, %s7355_s8  ;;  %12644 = vst [vmem:[#allocation27_spill] sm:$0xff] %v9300_v48  ;;  %v1105_v20 = vsel %vm807_vm0, %v1075_v54, %v12646_v38  ;;  %v1132_v10 = vrot.slane %v12647_v31, %v9300_v48  ;;  %v1108_v2 = vcvt.s32.f32 %v1104_v25  ;;  %v12649_v1 = vld [vmem:[#allocation33_spill] sm:$0xff]  ;;  %v6988_v30 = vshrl.u32 %v12628_v61, 28 }
 0x2ad   : > { %3109 = vrot.lane.b32.xlu0 %v2959_v37, %s7355_s8  ;;  %v1148_v55 = vrot.slane %v1128_v15, %v12648_v24  ;;  %v1109_v5 = vcvt.s32.f32 %v1105_v20  ;;  %v6987_v8 = vshrl.u32 %v8832_v18, 28  ;;  %v419_v61 = vld [vmem:[#allocation2 + $0x30] sm:$0xff] }
 0x2ae   : > { %2618 = vmatmul.mubr.bf16.vlgmr.msra.gmra.mrb[8].mxu1 %v12640_v6  ;;  %v1152_v7 = vrot.slane %v1132_v10, %v12648_v24  ;;  %v1171_v59 = vmul.f32 %v1128_v15, %v1108_v2  ;;  %v12653_v6 = vld [vmem:[#allocation32_spill] sm:$0xff]  ;;  %v12657_v31 = vld [vmem:[#allocation21_spill] sm:$0xff] }
 0x2af   : > { %3402 = vmatprep.mubr.bf16.mxu1 %v12641_v21  ;;  %v1155_v19 = vmul.f32 %v1148_v55, %v12649_v1  ;;  %v1172_v37 = vmul.f32 %v1132_v10, %v1109_v5  ;;  %v6992_v10 = vshrl.u32 %v12634_v41, 28  ;;  %v6991_v5 = vshrl.u32 %v12635_v57, 28 }
 0x2b0   : > { %3115 = vrot.lane.b32.xlu1 %v2962_v14, %s7355_s8  ;;  %v12650_v14 = vld [vmem:[#allocation22_spill] sm:$0xff]  ;;  %v1160_v11 = vmul.f32 %v1152_v7, %v12655_v28  ;;  %v6993_v57 = vshrl.u32 %v12637_v56, 28 }
 0x2b1   : > { %3113 = vrot.lane.b32.xlu0 %v2961_v53, %s7355_s8  ;;  %v1156_v50 = vmul.f32 %v1152_v7, %v12650_v14  ;;  %v12651_v53 = vld [vmem:[#allocation15_spill] sm:$0xff]  ;;  %v1163_v13 = vadd.f32 %v1155_v19, %v415_v60  ;;  %v1188_v33 = vrot.slane %v1172_v37, %v12648_v24  ;;  %v6994_v60 = vshrl.u32 %v12636_v43, 28 }
 0x2b2   : > { %v9326_v52 = vrot.slane %v12651_v53, %v9297_v39  ;;  %v9331_v62 = vrot.slane %v12651_v53, %v9300_v48  ;;  %v1168_v49 = vadd.f32 %v1160_v11, %v420_v35  ;;  %v6995_v53 = vshrl.u32 %v12639_v46, 28 }
 0x2b3   : > { %v1164_v17 = vadd.f32 %v1156_v50, %v416_v34  ;;  %v9364_v50 = vpop.permute.xlu0 %2652  ;;  %v7003_v34 = vld [vmem:[%s7447_s28 + $0x3] sm:$0x1]  ;;  %v6999_v35 = vshrl.u32 %v12617_v47, 28 }
 0x2b4   : > { %3119 = vrot.lane.b32.xlu1 %v2964_v36, %s7355_s8  ;;  %12652 = vst [vmem:[#allocation45_spill] sm:$0xff] %v9326_v52  ;;  %v1159_v36 = vmul.f32 %v1148_v55, %v12653_v6  ;;  %12654 = vst [vmem:[#allocation49_spill] sm:$0xff] %v9331_v62  ;;  %v1933_v18 = vrot.slane %v9326_v52, %v12648_v24  ;;  %v1937_v32 = vrot.slane %v9331_v62, %v12648_v24  ;;  %v9371_v6 = vpop.permute.xlu1 %2658 }
 0x2b5   : > { %3117 = vrot.lane.b32.xlu0 %v2963_v26, %s7355_s8  ;;  %v1184_v26 = vrot.slane %v1171_v59, %v12648_v24  ;;  %12662 = vst [vmem:[#allocation34_spill] sm:$0xff] %v9364_v50  ;;  %12663 = vst [vmem:[#allocation46_spill] sm:$0xff] %v9371_v6  ;;  %v3423_v56 = vshra.s32 %v7003_v34, 12  ;;  %v3419_v28 = vshra.s32 %v7003_v34, 4 }
 0x2b6   : > { %v1167_v54 = vadd.f32 %v1159_v36, %v419_v61  ;;  %v6998_v36 = vshrl.u32 %v8936_v27, 28  ;;  %v6997_v61 = vshrl.u32 %v12607_v40, 28 }
 0x2b7   : > { %v1195_v15 = vmul.f32 %v1184_v26, %v12657_v31  ;;  %v9373_v43 = vpop.permute.xlu0 %2664  ;;  %v3420_v27 = vand.u32 15, %v3419_v28 }
 0x2b8   : > { %3123 = vrot.lane.b32.xlu1 %v2966_v23, %s7355_s8  ;;  %v6990_v23 = vshrl.u32 %v8844_v9, 28  ;;  %12664 = vst [vmem:[#allocation42_spill] sm:$0xff] %v9373_v43 }
 0x2b9   : > { %3121 = vrot.lane.b32.xlu0 %v2965_v44, %s7355_s8  ;;  %v6989_v44 = vshrl.u32 %v8852_v12, 28 }
 0x2bc   : > { %3127 = vrot.lane.b32.xlu1 %v2968_v3, %s7355_s8  ;;  %v1191_v3 = vmul.f32 %v1184_v26, %v12656_v16  ;;  %v7000_v26 = vshrl.u32 %v12614_v4, 28  ;;  %v3436_v4 = vrot.slane %v3420_v27, %v12648_v24 }
 0x2bd   : > { %3125 = vrot.lane.b32.xlu0 %v2967_v58, %s7355_s8  ;;  %v1192_v58 = vmul.f32 %v1188_v33, %v12656_v16 }
 0x2be   : > { %v1199_v38 = vsub.f32 %v1163_v13, %v1191_v3  ;;  %v3424_v13 = vand.u32 15, %v3423_v56  ;;  %v12668_v56 = vld [vmem:[#allocation18_spill] sm:$0xff] }
 0x2bf   : > { %v1200_v12 = vsub.f32 %v1164_v17, %v1192_v58 }
 0x2c0   : > { %3131 = vrot.lane.b32.xlu1 %v6986_v42, %s7355_s8  ;;  %v1196_v42 = vmul.f32 %v1188_v33, %v12657_v31  ;;  %v3442_v17 = vrot.slane %v3424_v13, %v12648_v24  ;;  %v9448_v13 = vld [vmem:[%s7442_s17 + $0x1a0] sm:$0xff] }
 0x2c1   : > { %3129 = vrot.lane.b32.xlu0 %v6985_v29, %s7355_s8  ;;  %v1203_v29 = vsub.f32 %v1167_v54, %v1195_v15 }
 0x2c4   : > { %3135 = vrot.lane.b32.xlu1 %v6988_v30, %s7355_s8  ;;  %v1204_v30 = vsub.f32 %v1168_v49, %v1196_v42 }
 0x2c5   : > { %3133 = vrot.lane.b32.xlu0 %v6987_v8, %s7355_s8  ;;  %v6996_v8 = vshrl.u32 %v12638_v45, 28  ;;  %v9379_v45 = vpop.permute.xlu1 %2670 }
 0x2c6   : > { %12665 = vst [vmem:[#allocation48_spill] sm:$0xff] %v9379_v45  ;;  %v9475_v45 = vld [vmem:[%s7442_s17 + $0x1b8] sm:$0xff] }
 0x2c7   : > { %v1834_v25 = vpop.f32.mrb[4].mxu1 }
 0x2c8   : > { %v1940_v20 = vmul.f32 %v1933_v18, %v1834_v25  ;;  %3139 = vrot.lane.b32.xlu1 %v6990_v23, %s7355_s8  ;;  %v1836_v9 = vpop.f32.mrb[5].mxu1 }
 0x2c9   : > { %3137 = vrot.lane.b32.xlu0 %v6989_v44, %s7355_s8  ;;  %v1941_v2 = vmul.f32 %v1937_v32, %v1836_v9  ;;  %v1838_v55 = vpop.f32.mrb[6].mxu1  ;;  %v7004_v44 = vshrl.u32 %v7003_v34, 28 }
 0x2ca   : > { %v9352_v7 = vadd.f32 %v1940_v20, %v1199_v38  ;;  %v1944_v59 = vmul.f32 %v1933_v18, %v1838_v55  ;;  %v1840_v1 = vpop.f32.mrb[7].mxu1  ;;  %v3427_v18 = vshra.s32 %v7003_v34, 20  ;;  %v7193_v55 = vld [vmem:[%s7447_s28 + $0x1] sm:$0x1]  ;;  %v9438_v34 = vld [vmem:[%s7442_s17 + $0x190] sm:$0xff] }
 0x2cb   : > { %v9354_v19 = vadd.f32 %v1941_v2, %v1200_v12  ;;  %v1945_v37 = vmul.f32 %v1937_v32, %v1840_v1  ;;  %v3454_v3 = vrot.slane %v7004_v44, %v12648_v24  ;;  %v1851_v42 = vshra.s32 %v7193_v55, 8 }
 0x2cc   : > { %12658 = vst [vmem:[#allocation51_spill] sm:$0xff] %v9352_v7  ;;  %v9356_v41 = vadd.f32 %v1944_v59, %v1203_v29  ;;  %3143 = vrot.lane.b32.xlu1 %v6992_v10, %s7355_s8  ;;  %v3428_v32 = vand.u32 15, %v3427_v18  ;;  %v1848_v59 = vand.u32 15, %v7193_v55 }
 0x2cd   : > { %12659 = vst [vmem:[#allocation44_spill] sm:$0xff] %v9354_v19  ;;  %v9360_v14 = vadd.f32 %v1945_v37, %v1204_v30  ;;  %3141 = vrot.lane.b32.xlu0 %v6991_v5, %s7355_s8  ;;  %v9423_v5 = vld [vmem:[%s7442_s17 + $0x180] sm:$0xff]  ;;  %v9431_v37 = vld [vmem:[%s7442_s17 + $0x188] sm:$0xff] }
 0x2ce   : > { %12660 = vst [vmem:[#allocation54_spill] sm:$0xff] %v9356_v41  ;;  %v3448_v49 = vrot.slane %v3428_v32, %v12648_v24  ;;  %v2841_v29 = vshra.s32 %v9423_v5, 8  ;;  %v2793_v28 = vand.u32 15, %v9423_v5  ;;  %v2800_v32 = vand.u32 15, %v9475_v45 }
 0x2cf   : > { %12661 = vst [vmem:[#allocation40_spill] sm:$0xff] %v9360_v14 }
 0x2d0   : > { %3147 = vrot.lane.b32.xlu1 %v6994_v60, %s7355_s8  ;;  %v2842_v60 = vshra.s32 %v9431_v37, 8 }
 0x2d1   : > { %3145 = vrot.lane.b32.xlu0 %v6993_v57, %s7355_s8  ;;  %v2794_v57 = vand.u32 15, %v9431_v37 }
 0x2d4   : > { %3151 = vrot.lane.b32.xlu1 %v6996_v8, %s7355_s8  ;;  %v9435_v8 = vand.u32 15, %v1851_v42 }
 0x2d5   : > { %3149 = vrot.lane.b32.xlu0 %v6995_v53, %s7355_s8  ;;  %v2857_v53 = vand.u32 15, %v2841_v29  ;;  %v9467_v29 = vld [vmem:[%s7442_s17 + $0x1a8] sm:$0xff] }
 0x2d6   : > { %v2846_v19 = vshra.s32 %v9467_v29, 8 }
 0x2d8   : > { %v9381_v11 = vpop.xlane.xlu0 %2682  ;;  %3155 = vrot.lane.b32.xlu1 %v6998_v36, %s7355_s8  ;;  %v2843_v36 = vshra.s32 %v9438_v34, 8 }
 0x2d9   : > { %12666 = vst [vmem:[#allocation53_spill] sm:$0xff] %v9381_v11  ;;  %3153 = vrot.lane.b32.xlu0 %v6997_v61, %s7355_s8  ;;  %v9443_v61 = vsel %vm807_vm0, %v1848_v59, %v12668_v56  ;;  %v2798_v59 = vand.u32 15, %v9467_v29  ;;  %v9471_v56 = vld [vmem:[%s7442_s17 + $0x1c0] sm:$0xff]  ;;  %v9484_v11 = vld [vmem:[%s7442_s17 + $0x1c8] sm:$0xff] }
 0x2dc   : > { %v9387_v23 = vpop.permute.xlu0 %3033  ;;  %3159 = vrot.lane.b32.xlu1 %v7000_v26, %s7355_s8  ;;  %v9390_v33 = vpop.xlane.xlu1 %2684  ;;  %v2795_v26 = vand.u32 15, %v9438_v34 }
 0x2dd   : > { %12667 = vst [vmem:[#allocation39_spill] sm:$0xff] %v9390_v33  ;;  %3157 = vrot.lane.b32.xlu0 %v6999_v35, %s7355_s8  ;;  %v2859_v33 = vand.u32 15, %v2843_v36  ;;  %v9491_v36 = vld [vmem:[%s7454_s7 + $0x2c] sm:$0xf]  ;;  %v2849_v35 = vshra.s32 %v9471_v56, 8 }
 0x2e0   : > { %v9395_v54 = vpop.permute.xlu0 %3037  ;;  %3443 = vrot.lane.b32.xlu1 %v3442_v17, %s7355_s8  ;;  %v3036_v16 = vpop.permute.xlu1 %3035  ;;  %v9454_v17 = vld [vmem:[%s7442_s17 + $0x198] sm:$0xff] }
 0x2e1   : > { %3437 = vrot.lane.b32.xlu0 %v3436_v4, %s7355_s8  ;;  %v2796_v44 = vand.u32 15, %v9454_v17  ;;  %v9458_v4 = vld [vmem:[%s7442_s17 + $0x1b0] sm:$0xff]  ;;  %v2844_v55 = vshra.s32 %v9454_v17, 8  ;;  %v3162_v42 = vsel %vm807_vm0, %v2794_v57, %v3036_v16  ;;  %v2845_v16 = vshra.s32 %v9448_v13, 8 }
 0x2e2   : > { %v3161_v57 = vsel %vm807_vm0, %v2793_v28, %v9387_v23  ;;  %v9496_v28 = vld [vmem:[%s7442_s17 + $0x1d8] sm:$0xff] }
 0x2e3   : > { %12669 = vst [vmem:[#allocation43_spill] sm:$0xff] %v9496_v28  ;;  %v3225_v48 = vcvt.s32.f32 %v3161_v57  ;;  %v2861_v62 = vand.u32 15, %v2845_v16 }
 0x2e4   : > { %v9401_v25 = vpop.permute.xlu0 %3041  ;;  %3455 = vrot.lane.b32.xlu1 %v3454_v3, %s7355_s8  ;;  %v3040_v58 = vpop.permute.xlu1 %3039  ;;  %v2858_v3 = vand.u32 15, %v2842_v60  ;;  %v3229_v60 = vcvt.s32.f32 %v3162_v42  ;;  %v2847_v42 = vshra.s32 %v9458_v4, 8 }
 0x2e5   : > { %3449 = vrot.lane.b32.xlu0 %v3448_v49, %s7355_s8  ;;  %v9462_v49 = vld [vmem:[%s7454_s7 + $0xc] sm:$0xf]  ;;  %v3164_v23 = vsel %vm807_vm0, %v2796_v44, %v3040_v58  ;;  %v3466_v58 = vunpack.c.l.bf16 %v9491_v36  ;;  %v2848_v44 = vshra.s32 %v9475_v45, 8 }
 0x2e6   : > { %v3465_v41 = vunpack.c.l.bf16 %v9462_v49 }
 0x2e8   : > { %v9405_v38 = vpop.permute.xlu0 %3045  ;;  %v9407_v20 = vpop.permute.xlu1 %3043 }
 0x2ec   : > { %v9409_v9 = vpop.permute.xlu0 %3049  ;;  %v9411_v31 = vpop.permute.xlu1 %3047 }
 0x2f0   : > { %v9413_v15 = vpop.permute.xlu0 %3053  ;;  %v9415_v10 = vpop.permute.xlu1 %3051 }
 0x2f4   : > { %v9417_v12 = vpop.permute.xlu0 %3057  ;;  %v9419_v2 = vpop.permute.xlu1 %3055 }
 0x2f8   : > { %v9426_v1 = vpop.permute.xlu0 %3061  ;;  %v9428_v30 = vpop.permute.xlu1 %3059 }
 0x2fc   : > { %v3066_v27 = vpop.permute.xlu0 %3065  ;;  %v9451_v18 = vpop.permute.xlu1 %3063 }
 0x2fd   : > { %v3177_v43 = vsel %vm807_vm0, %v2857_v53, %v3066_v27  ;;  %v2860_v27 = vand.u32 15, %v2844_v55 }
 0x2fe   : > { %v3226_v7 = vcvt.s32.f32 %v3177_v43  ;;  %v3289_v43 = vpack.c.bf16 %v3229_v60, %v3225_v48  ;;  %v12670_v48 = vand.u32 15, %v9448_v13  ;;  %v9516_v60 = vld [vmem:[%s7442_s17 + $0x1e8] sm:$0xff] }
 0x2ff   : > { %12671 = vst [vmem:[#allocation50_spill] sm:$0xff] %v9516_v60 }
 0x300   : > { %v3070_v50 = vpop.permute.xlu0 %3069  ;;  %v3068_v14 = vpop.permute.xlu1 %3067 }
 0x301   : > { %v3178_v53 = vsel %vm807_vm0, %v2858_v3, %v3068_v14  ;;  %v3179_v39 = vsel %vm807_vm0, %v2859_v33, %v3070_v50  ;;  %v3163_v14 = vsel %vm807_vm0, %v2795_v26, %v9395_v54  ;;  %v2862_v50 = vand.u32 15, %v2846_v19 }
 0x302   : > { %v3230_v6 = vcvt.s32.f32 %v3178_v53  ;;  %v3237_v53 = vcvt.s32.f32 %v3164_v23  ;;  %v3166_v33 = vsel %vm807_vm0, %v2798_v59, %v9407_v20  ;;  %v3234_v54 = vcvt.s32.f32 %v3179_v39 }
 0x303   : > { %v3233_v26 = vcvt.s32.f32 %v3163_v14  ;;  %v3165_v19 = vsel %vm807_vm0, %v12670_v48, %v9401_v25  ;;  %v3245_v23 = vcvt.s32.f32 %v3166_v33  ;;  %v2850_v14 = vshra.s32 %v9484_v11, 8  ;;  %v9529_v33 = vld [vmem:[%s7442_s17 + $0x1e0] sm:$0xff] }
 0x304   : > { %3467 = vadd.xlane.f32.xlu0 %v3465_v41  ;;  %v3074_v3 = vpop.permute.xlu0 %3073  ;;  %v3072_v55 = vpop.permute.xlu1 %3071  ;;  %v3290_v52 = vpack.c.bf16 %v3230_v6, %v3226_v7  ;;  %v2863_v6 = vand.u32 15, %v2847_v42  ;;  %v3168_v25 = vsel %vm807_vm0, %v2800_v32, %v9411_v31  ;;  %v12672_v31 = vand.u32 15, %v9458_v4 }
 0x305   : > { %v3180_v57 = vsel %vm807_vm0, %v2860_v27, %v3072_v55  ;;  %v3181_v7 = vsel %vm807_vm0, %v2861_v62, %v3074_v3  ;;  %v2864_v62 = vand.u32 15, %v2848_v44  ;;  %v3293_v27 = vpack.c.bf16 %v3237_v53, %v3233_v26 }
 0x306   : > { %v3238_v41 = vcvt.s32.f32 %v3180_v57  ;;  %3327 = vmatprep.subr.bf16.mxu0 %v3290_v52  ;;  %v3242_v3 = vcvt.s32.f32 %v3181_v7  ;;  %v3241_v57 = vcvt.s32.f32 %v3165_v19  ;;  %v2865_v53 = vand.u32 15, %v2849_v35 }
 0x307   : > { %3328 = vmatpush1.bf16.msra.mxu0 %v3289_v43  ;;  %v9524_v43 = vld [vmem:[%s7442_s17 + $0x1d0] sm:$0xff]  ;;  %v3167_v32 = vsel %vm807_vm0, %v12672_v31, %v9405_v38  ;;  %v3253_v19 = vcvt.s32.f32 %v3168_v25  ;;  %v12675_v38 = vand.u32 15, %v9484_v11  ;;  %v12677_v25 = vand.u32 15, %v9471_v56 }
 0x308   : > { %v3078_v39 = vpop.permute.xlu0 %3077  ;;  %3469 = vadd.xlane.f32.xlu1 %v3466_v58  ;;  %v3076_v52 = vpop.permute.xlu1 %3075  ;;  %v3294_v59 = vpack.c.bf16 %v3238_v41, %v3234_v54  ;;  %v2851_v58 = vshra.s32 %v9524_v43, 8  ;;  %v9537_v54 = vld [vmem:[%s7442_s17 + $0x1f8] sm:$0xff]  ;;  %v3297_v35 = vpack.c.bf16 %v3245_v23, %v3241_v57 }
 0x309   : > { %v3182_v42 = vsel %vm807_vm0, %v2862_v50, %v3076_v52  ;;  %v3183_v44 = vsel %vm807_vm0, %v2863_v6, %v3078_v39  ;;  %v2853_v50 = vshra.s32 %v9529_v33, 8  ;;  %12673 = vst [vmem:[#allocation12_spill] sm:$0xff] %v9537_v54  ;;  %v2852_v6 = vshra.s32 %v9496_v28, 8 }
 0x30a   : > { %v3246_v55 = vcvt.s32.f32 %v3182_v42  ;;  %3329 = vmatprep.subr.bf16.mxu0 %v3294_v59  ;;  %v2866_v52 = vand.u32 15, %v2850_v14  ;;  %v9543_v59 = vld [vmem:[%s7442_s17 + $0x208] sm:$0xff]  ;;  %v3250_v42 = vcvt.s32.f32 %v3183_v44  ;;  %v2867_v16 = vand.u32 15, %v2851_v58  ;;  %v9552_v14 = vld [vmem:[%s7442_s17 + $0x200] sm:$0xff] }
 0x30b   : > { %3330 = vmatpush1.bf16.msra.mxu0 %v3293_v27  ;;  %12674 = vst [vmem:[#allocation52_spill] sm:$0xff] %v9543_v59  ;;  %v3170_v27 = vsel %vm807_vm0, %v12675_v38, %v9415_v10  ;;  %v2869_v23 = vand.u32 15, %v2853_v50  ;;  %12676 = vst [vmem:[#allocation56_spill] sm:$0xff] %v9552_v14  ;;  %v3169_v10 = vsel %vm807_vm0, %v12677_v25, %v9409_v9  ;;  %v12680_v9 = vand.u32 15, %v9496_v28 }
 0x30c   : > { %v3082_v26 = vpop.permute.xlu0 %3081  ;;  %v3080_v7 = vpop.permute.xlu1 %3079  ;;  %v3298_v48 = vpack.c.bf16 %v3246_v55, %v3242_v3  ;;  %v3249_v3 = vcvt.s32.f32 %v3167_v32  ;;  %v3595_v32 = vshra.s32 %v9543_v59, 4 }
 0x30d   : > { %v3184_v39 = vsel %vm807_vm0, %v2864_v62, %v3080_v7  ;;  %v3185_v55 = vsel %vm807_vm0, %v2865_v53, %v3082_v26  ;;  %v2854_v62 = vshra.s32 %v9516_v60, 8  ;;  %v2868_v7 = vand.u32 15, %v2852_v6 }
 0x30e   : > { %v3254_v31 = vcvt.s32.f32 %v3184_v39  ;;  %3331 = vmatprep.subr.bf16.mxu0 %v3298_v48  ;;  %v3301_v53 = vpack.c.bf16 %v3253_v19, %v3249_v3  ;;  %v3261_v26 = vcvt.s32.f32 %v3170_v27  ;;  %v9561_v48 = vld [vmem:[%s7442_s17 + $0x1f0] sm:$0xff]  ;;  %v9565_v39 = vld [vmem:[%s7442_s17 + $0x218] sm:$0xff]  ;;  %v3172_v38 = vsel %vm807_vm0, %v12680_v9, %v9419_v2 }
 0x30f   : > { %3332 = vmatpush1.bf16.msra.mxu0 %v3297_v35  ;;  %12678 = vst [vmem:[#allocation57_spill] sm:$0xff] %v9561_v48  ;;  %v2855_v35 = vshra.s32 %v9561_v48, 8  ;;  %12679 = vst [vmem:[#allocation47_spill] sm:$0xff] %v9565_v39  ;;  %v3258_v25 = vcvt.s32.f32 %v3185_v55  ;;  %v3594_v6 = vshra.s32 %v9552_v14, 4  ;;  %v9573_v19 = vld [vmem:[%s7442_s17 + $0x210] sm:$0xff]  ;;  %v2856_v3 = vshra.s32 %v9537_v54, 8 }
 0x310   : > { %v3086_v57 = vpop.permute.xlu0 %3085  ;;  %v3084_v44 = vpop.permute.xlu1 %3083  ;;  %v3302_v58 = vpack.c.bf16 %v3254_v31, %v3250_v42  ;;  %12681 = vst [vmem:[#allocation36_spill] sm:$0xff] %v9573_v19  ;;  %v2870_v31 = vand.u32 15, %v2854_v62  ;;  %v3611_v9 = vand.u32 15, %v3595_v32  ;;  %v3597_v41 = vshra.s32 %v9565_v39, 4 }
 0x311   : > { %v3186_v50 = vsel %vm807_vm0, %v2866_v52, %v3084_v44  ;;  %v3257_v52 = vcvt.s32.f32 %v3169_v10  ;;  %v3187_v27 = vsel %vm807_vm0, %v2867_v16, %v3086_v57  ;;  %v12682_v44 = vand.u32 15, %v12639_v46  ;;  %v9585_v57 = vld [vmem:[%s7442_s17 + $0x228] sm:$0xff] }
 0x312   : > { %v3262_v42 = vcvt.s32.f32 %v3186_v50  ;;  %3333 = vmatprep.subr.bf16.mxu0 %v3302_v58  ;;  %v3269_v10 = vcvt.s32.f32 %v3172_v38  ;;  %v3596_v62 = vshra.s32 %v9573_v19, 4  ;;  %v12683_v46 = vand.u32 15, %v9516_v60 }
 0x313   : > { %3334 = vmatpush1.bf16.msra.mxu0 %v3301_v53  ;;  %v3171_v2 = vsel %vm807_vm0, %v12682_v44, %v9413_v15  ;;  %v3305_v20 = vpack.c.bf16 %v3261_v26, %v3257_v52  ;;  %v3266_v53 = vcvt.s32.f32 %v3187_v27  ;;  %v3610_v32 = vand.u32 15, %v3594_v6 }
 0x314   : > { %v3090_v55 = vpop.permute.xlu0 %3089  ;;  %v3088_v50 = vpop.permute.xlu1 %3087  ;;  %v3306_v58 = vpack.c.bf16 %v3262_v42, %v3258_v25  ;;  %v3174_v15 = vsel %vm807_vm0, %v12683_v46, %v9428_v30  ;;  %v3265_v25 = vcvt.s32.f32 %v3171_v2  ;;  %v2871_v26 = vand.u32 15, %v2855_v35  ;;  %v12688_v46 = vld [vmem:[#allocation26_spill] sm:$0xff] }
 0x315   : > { %v3188_v16 = vsel %vm807_vm0, %v2868_v7, %v3088_v50  ;;  %v3189_v42 = vsel %vm807_vm0, %v2869_v23, %v3090_v55  ;;  %v2872_v38 = vand.u32 15, %v2856_v3  ;;  %v9593_v7 = vld [vmem:[%s7442_s17 + $0x220] sm:$0xff]  ;;  %v12684_v52 = vand.u32 15, %v12607_v40 }
 0x316   : > { %v3270_v44 = vcvt.s32.f32 %v3188_v16  ;;  %3335 = vmatprep.subr.bf16.mxu0 %v3306_v58  ;;  %v3613_v16 = vand.u32 15, %v3597_v41  ;;  %v3599_v6 = vshra.s32 %v9585_v57, 4  ;;  %v3309_v2 = vpack.c.bf16 %v3269_v10, %v3265_v25  ;;  %v9609_v58 = vld [vmem:[%s7442_s17 + $0x238] sm:$0xff] }
 0x317   : > { %3336 = vmatpush1.bf16.msra.mxu0 %v3305_v20  ;;  %v3173_v50 = vsel %vm807_vm0, %v12684_v52, %v9417_v12  ;;  %v3277_v23 = vcvt.s32.f32 %v3174_v15  ;;  %v3612_v35 = vand.u32 15, %v3596_v62  ;;  %v12685_v40 = vand.u32 15, %v9537_v54  ;;  %12686 = vst [vmem:[#allocation55_spill] sm:$0xff] %v9609_v58  ;;  %v9614_v62 = vld [vmem:[%s7442_s17 + $0x230] sm:$0xff] }
 0x318   : > { %v3094_v19 = vpop.permute.xlu0 %3093  ;;  %v3092_v30 = vpop.permute.xlu1 %3091  ;;  %v3310_v27 = vpack.c.bf16 %v3270_v44, %v3266_v53  ;;  %v3274_v3 = vcvt.s32.f32 %v3189_v42  ;;  %v3598_v41 = vshra.s32 %v9593_v7, 4  ;;  %v1891_v10 = vcvt.s32.f32 %v9443_v61  ;;  %12687 = vst [vmem:[#allocation58_spill] sm:$0xff] %v9614_v62 }
 0x319   : > { %v3190_v20 = vsel %vm807_vm0, %v2870_v31, %v3092_v30  ;;  %3820 = vrot.lane.b32.xlu1 %v3611_v9, %s7355_s8  ;;  %v3176_v12 = vsel %vm807_vm0, %v12685_v40, %v9451_v18  ;;  %v3273_v31 = vcvt.s32.f32 %v3173_v50  ;;  %v3191_v9 = vsel %vm807_vm0, %v2871_v26, %v3094_v19  ;;  %v9631_v30 = vld [vmem:[%s7442_s17 + $0x248] sm:$0xff] }
 0x31a   : > { %v3278_v55 = vcvt.s32.f32 %v3190_v20  ;;  %3818 = vrot.lane.b32.xlu0 %v3610_v32, %s7355_s8  ;;  %3337 = vmatprep.subr.bf16.mxu0 %v3310_v27  ;;  %v1888_v18 = vsel %vm807_vm0, %v9435_v8, %v12688_v46  ;;  %v12689_v15 = vand.u32 15, %v12617_v47  ;;  %v3615_v25 = vand.u32 15, %v3599_v6  ;;  %12690 = vst [vmem:[#allocation61_spill] sm:$0xff] %v9631_v30  ;;  %v12695_v46 = vld [vmem:[#allocation41_spill] sm:$0xff] }
 0x31b   : > { %3338 = vmatpush1.bf16.msra.mxu0 %v3309_v2  ;;  %v3313_v19 = vpack.c.bf16 %v3277_v23, %v3273_v31  ;;  %v3285_v42 = vcvt.s32.f32 %v3176_v12  ;;  %v3601_v8 = vshra.s32 %v9609_v58, 4  ;;  %v3282_v52 = vcvt.s32.f32 %v3191_v9  ;;  %v9634_v2 = vld [vmem:[%s7442_s17 + $0x240] sm:$0xff]  ;;  %v9650_v9 = vld [vmem:[%s7442_s17 + $0x258] sm:$0xff] }
 0x31c   : > { %v3175_v53 = vsel %vm807_vm0, %v12689_v15, %v9426_v1  ;;  %v9623_v44 = vpop.permute.xlu0 %3097  ;;  %v3096_v32 = vpop.permute.xlu1 %3095  ;;  %v3314_v61 = vpack.c.bf16 %v3278_v55, %v3274_v3  ;;  %v3614_v47 = vand.u32 15, %v3598_v41  ;;  %v3600_v1 = vshra.s32 %v9614_v62, 4  ;;  %12691 = vst [vmem:[#allocation60_spill] sm:$0xff] %v9634_v2  ;;  %v12692_v12 = vld [vmem:[#allocation31_spill] sm:$0xff]  ;;  %12694 = vst [vmem:[#allocation38_spill] sm:$0xff] %v9650_v9 }
 0x31d   : > { %v3192_v26 = vsel %vm807_vm0, %v2872_v38, %v3096_v32  ;;  %3824 = vrot.lane.b32.xlu1 %v3613_v16, %s7355_s8  ;;  %v1892_v27 = vcvt.s32.f32 %v1888_v18  ;;  %v3281_v6 = vcvt.s32.f32 %v3175_v53  ;;  %v3603_v40 = vshra.s32 %v9631_v30, 4  ;;  %v6982_v15 = vld [vmem:[%s7452_s6 + $0x8] sm:$0xf]  ;;  %v9655_v53 = vld [vmem:[%s7442_s17 + $0x250] sm:$0xff] }
 0x31e   : > { %v3286_v50 = vcvt.s32.f32 %v3192_v26  ;;  %3822 = vrot.lane.b32.xlu0 %v3612_v35, %s7355_s8  ;;  %3339 = vmatprep.subr.bf16.mxu0 %v3314_v61  ;;  %v3617_v35 = vand.u32 15, %v3601_v8  ;;  %v1954_v3 = vmul.f32 %v12692_v12, %v1891_v10  ;;  %v9645_v55 = vcombine.low %v9462_v49, %v9491_v36  ;;  %12696 = vst [vmem:[#allocation13_spill] sm:$0xff] %v9655_v53  ;;  %v9670_v26 = vld [vmem:[%s7442_s17 + $0x268] sm:$0xff] }
 0x31f   : > { %3340 = vmatpush1.bf16.msra.mxu0 %v3313_v19  ;;  %v3317_v20 = vpack.c.bf16 %v3285_v42, %v3281_v6  ;;  %v3616_v41 = vand.u32 15, %v3600_v1  ;;  %v3602_v31 = vshra.s32 %v9634_v2, 4  ;;  %v1955_v18 = vmul.f32 %v12695_v46, %v1892_v27  ;;  %12699 = vst [vmem:[#allocation25_spill] sm:$0xff] %v9670_v26  ;;  %v12703_v1 = vld [vmem:[#allocation10_spill] sm:$0xff] }
 0x320   : > { %v9636_v38 = vpop.permute.xlu0 %3101  ;;  %v9638_v16 = vpop.permute.xlu1 %3099  ;;  %v3318_v23 = vpack.c.bf16 %v3286_v50, %v3282_v52  ;;  %12693 = vst [vmem:[#allocation59_spill] sm:$0xff] %v9645_v55  ;;  %v3619_v36 = vand.u32 15, %v3603_v40  ;;  %v3605_v32 = vshra.s32 %v9650_v9, 4  ;;  %v1961_v61 = vrot.slane %v1954_v3, %v12648_v24  ;;  %v9674_v52 = vld [vmem:[%s7442_s17 + $0x260] sm:$0xff] }
 0x321   : > { %3828 = vrot.lane.b32.xlu1 %v3615_v25, %s7355_s8  ;;  %v9664_v25 = vunpack.c.l.bf16 %v6982_v15  ;;  %v3618_v19 = vand.u32 15, %v3602_v31  ;;  %v3604_v42 = vshra.s32 %v9655_v53, 4  ;;  %v1965_v8 = vrot.slane %v1955_v18, %v12648_v24  ;;  %12700 = vst [vmem:[#allocation20_spill] sm:$0xff] %v9674_v52  ;;  %v9699_v31 = vld [vmem:[%s7442_s17 + $0x278] sm:$0xff]  ;;  %v12707_v18 = vld [vmem:[#allocation11_spill] sm:$0xff] }
 0x322   : > { %3826 = vrot.lane.b32.xlu0 %v3614_v47, %s7355_s8  ;;  %3341 = vmatprep.subr.bf16.mxu0 %v3318_v23  ;;  %v9682_v27 = vmul.f32 %v1961_v61, %v12703_v1  ;;  %v3621_v6 = vand.u32 15, %v3605_v32  ;;  %v3607_v23 = vshra.s32 %v9670_v26, 4  ;;  %12706 = vst [vmem:[#allocation37_spill] sm:$0xff] %v9699_v31  ;;  %v2907_v32 = vshra.s32 %v9438_v34, 16 }
 0x323   : > { %3342 = vmatpush1.bf16.msra.mxu0 %v3317_v20  ;;  %12698 = vst [vmem:[#allocation23_spill] sm:$0xff] %v9664_v25  ;;  %v9687_v20 = vmul.f32 %v1965_v8, %v12703_v1  ;;  %v9694_v12 = vrot.slane %v9664_v25, %v12648_v24  ;;  %v3620_v3 = vand.u32 15, %v3604_v42  ;;  %v9706_v15 = vrot.slane %v9664_v25, %v12707_v18  ;;  %v9712_v1 = vld [vmem:[%s7442_s17 + $0x270] sm:$0xff] }
 0x324   : > { %v9657_v10 = vpop.permute.xlu0 %3105  ;;  %v9659_v49 = vpop.permute.xlu1 %3103  ;;  %12709 = vst [vmem:[#allocation22_spill] sm:$0xff] %v9712_v1  ;;  %v2908_v42 = vshra.s32 %v9454_v17, 16  ;;  %v2910_v25 = vshra.s32 %v9467_v29, 16 }
 0x325   : > { %12697 = vst [vmem:[#allocation14_spill] sm:$0xff] %v9657_v10  ;;  %3832 = vrot.lane.b32.xlu1 %v3617_v35, %s7355_s8  ;;  %v12704_v35 = vld [vmem:[#allocation28_spill] sm:$0xff]  ;;  %12705 = vst [vmem:[#allocation17_spill] sm:$0xff] %v9694_v12 }
 0x326   : > { %3830 = vrot.lane.b32.xlu0 %v3616_v41, %s7355_s8  ;;  %3360 = vmatmul.mubr.bf16.vlgmr.msra.gmra.mrb[12].mxu0 %v9645_v55  ;;  %v9690_v40 = vmul.f32 %v1961_v61, %v12704_v35  ;;  %v3606_v41 = vshra.s32 %v9674_v52, 4  ;;  %v9702_v46 = vmul.f32 %v1965_v8, %v12704_v35  ;;  %12708 = vst [vmem:[#allocation33_spill] sm:$0xff] %v9706_v15  ;;  %v2906_v61 = vshra.s32 %v9431_v37, 16 }
 0x327   : > { %4144 = vmatprep.mubr.bf16.mxu0 %v12641_v21  ;;  %v2911_v21 = vshra.s32 %v9458_v4, 16  ;;  %v3623_v55 = vand.u32 15, %v3607_v23 }
 0x328   : > { %v9677_v50 = vpop.permute.xlu0 %3109  ;;  %v9679_v47 = vpop.permute.xlu1 %3107  ;;  %v3622_v52 = vand.u32 15, %v3606_v41  ;;  %v9738_v23 = vand.u32 15, %v2906_v61 }
 0x329   : > { %12701 = vst [vmem:[#allocation24_spill] sm:$0xff] %v9677_v50  ;;  %12702 = vst [vmem:[#allocation7_spill] sm:$0xff] %v9679_v47  ;;  %3836 = vrot.lane.b32.xlu1 %v3619_v36, %s7355_s8  ;;  %v2905_v36 = vshra.s32 %v9423_v5, 16  ;;  %v3609_v50 = vshra.s32 %v9699_v31, 4  ;;  %v2913_v31 = vshra.s32 %v9471_v56, 16  ;;  %v9745_v41 = vand.u32 15, %v2911_v21 }
 0x32a   : > { %3834 = vrot.lane.b32.xlu0 %v3618_v19, %s7355_s8  ;;  %v2909_v19 = vshra.s32 %v9448_v13, 16  ;;  %v2917_v21 = vshra.s32 %v9529_v33, 16 }
 0x32b   : > { %v9734_v47 = vand.u32 15, %v2905_v36  ;;  %12713 = vst [vmem:[#allocation16_spill] sm:$0xff] %v9745_v41  ;;  %v9752_v36 = vand.u32 15, %v2910_v25  ;;  %v3625_v61 = vand.u32 15, %v3609_v50  ;;  %v9761_v41 = vand.u32 15, %v2913_v31 }
 0x32c   : > { %v9717_v8 = vpop.permute.xlu0 %3113  ;;  %v9719_v35 = vpop.permute.xlu1 %3111  ;;  %v9741_v10 = vand.u32 15, %v2909_v19  ;;  %v3659_v19 = vshra.s32 %v9543_v59, 12  ;;  %v2916_v25 = vshra.s32 %v9496_v28, 16 }
 0x32d   : > { %12710 = vst [vmem:[#allocation15_spill] sm:$0xff] %v9717_v8  ;;  %12711 = vst [vmem:[#allocation32_spill] sm:$0xff] %v9719_v35  ;;  %3840 = vrot.lane.b32.xlu1 %v3621_v6, %s7355_s8  ;;  %v3608_v8 = vshra.s32 %v9712_v1, 4  ;;  %v9736_v6 = vand.u32 15, %v2907_v32  ;;  %v2912_v1 = vshra.s32 %v9475_v45, 16  ;;  %v2915_v32 = vshra.s32 %v9524_v43, 16 }
 0x32e   : > { %3838 = vrot.lane.b32.xlu0 %v3620_v3, %s7355_s8  ;;  %12712 = vst [vmem:[#allocation30_spill] sm:$0xff] %v9741_v10  ;;  %v9743_v3 = vand.u32 15, %v2908_v42  ;;  %v2914_v42 = vshra.s32 %v9484_v11, 16  ;;  %12716 = vst [vmem:[#allocation26_spill] sm:$0xff] %v9761_v41  ;;  %v3675_v31 = vand.u32 15, %v3659_v19  ;;  %v12719_v41 = vld [vmem:[#allocation36_spill] sm:$0xff] }
 0x32f   : > { %v3624_v18 = vand.u32 15, %v3608_v8  ;;  %v9766_v50 = vand.u32 15, %v2912_v1  ;;  %v2920_v8 = vshra.s32 %v9537_v54, 16  ;;  %v3660_v28 = vshra.s32 %v12719_v41, 12 }
 0x330   : > { %v9748_v35 = vpop.permute.xlu0 %3117  ;;  %v9750_v26 = vpop.permute.xlu1 %3115  ;;  %v2970_v1 = vshra.s32 %v9431_v37, 24  ;;  %v9786_v54 = vand.u32 15, %v2916_v25  ;;  %v3663_v19 = vshra.s32 %v9585_v57, 12  ;;  %v2973_v25 = vshra.s32 %v9448_v13, 24 }
 0x331   : > { %12714 = vst [vmem:[#allocation21_spill] sm:$0xff] %v9748_v35  ;;  %12715 = vst [vmem:[#allocation18_spill] sm:$0xff] %v9750_v26  ;;  %3844 = vrot.lane.b32.xlu1 %v3623_v55, %s7355_s8  ;;  %v3658_v35 = vshra.s32 %v9552_v14, 12  ;;  %v2919_v26 = vshra.s32 %v9561_v48, 16  ;;  %v2918_v55 = vshra.s32 %v9516_v60, 16  ;;  %v3661_v14 = vshra.s32 %v9565_v39, 12 }
 0x332   : > { %3842 = vrot.lane.b32.xlu0 %v3622_v52, %s7355_s8  ;;  %v2969_v52 = vshra.s32 %v9423_v5, 24  ;;  %v2971_v48 = vshra.s32 %v9438_v34, 24  ;;  %v9779_v60 = vand.u32 15, %v2915_v32 }
 0x333   : > { %v3674_v5 = vand.u32 15, %v3658_v35  ;;  %v9788_v39 = vand.u32 15, %v2919_v26  ;;  %v3676_v35 = vand.u32 15, %v3660_v28  ;;  %v2986_v26 = vand.u32 15, %v2970_v1 }
 0x334   : > { %v9768_v59 = vpop.permute.xlu0 %3121  ;;  %v9770_v10 = vpop.permute.xlu1 %3119  ;;  %v2985_v32 = vand.u32 15, %v2969_v52  ;;  %v3665_v52 = vshra.s32 %v9609_v58, 12  ;;  %v2974_v28 = vshra.s32 %v9467_v29, 24  ;;  %v3669_v29 = vshra.s32 %v9650_v9, 12 }
 0x335   : > { %12717 = vst [vmem:[#allocation31_spill] sm:$0xff] %v9768_v59  ;;  %12718 = vst [vmem:[#allocation41_spill] sm:$0xff] %v9770_v10  ;;  %3848 = vrot.lane.b32.xlu1 %v3625_v61, %s7355_s8  ;;  %v9781_v59 = vand.u32 15, %v2914_v42  ;;  %v9783_v10 = vand.u32 15, %v2917_v21  ;;  %v9790_v61 = vand.u32 15, %v2918_v55  ;;  %v9797_v42 = vand.u32 15, %v2920_v8 }
 0x336   : > { %3846 = vrot.lane.b32.xlu0 %v3624_v18, %s7355_s8  ;;  %12721 = vst [vmem:[#allocation62_spill] sm:$0xff] %v9788_v39  ;;  %v3677_v21 = vand.u32 15, %v3661_v14  ;;  %v2987_v18 = vand.u32 15, %v2971_v48  ;;  %v2710_v55 = vrot.slane %v9694_v12, %v12648_v24  ;;  %v2972_v39 = vshra.s32 %v9454_v17, 24 }
 0x337   : > { %12720 = vst [vmem:[#allocation36_spill] sm:$0xff] %v9783_v10  ;;  %12723 = vst [vmem:[#allocation64_spill] sm:$0xff] %v9797_v42  ;;  %v3662_v10 = vshra.s32 %v9593_v7, 12  ;;  %v3664_v14 = vshra.s32 %v9614_v62, 12  ;;  %v3679_v8 = vand.u32 15, %v3663_v19  ;;  %v3667_v48 = vshra.s32 %v9631_v30, 12 }
 0x338   : > { %v9793_v34 = vpop.permute.xlu0 %3125  ;;  %v9795_v37 = vpop.permute.xlu1 %3123  ;;  %v2977_v12 = vshra.s32 %v9471_v56, 24  ;;  %v2976_v17 = vshra.s32 %v9475_v45, 24  ;;  %v2714_v19 = vrot.slane %v9706_v15, %v12648_v24  ;;  %v3668_v30 = vshra.s32 %v9655_v53, 12 }
 0x339   : > { %12722 = vst [vmem:[#allocation63_spill] sm:$0xff] %v9793_v34  ;;  %3852 = vrot.lane.b32.xlu1 %v3675_v31, %s7355_s8  ;;  %v2975_v34 = vshra.s32 %v9458_v4, 24  ;;  %v3678_v1 = vand.u32 15, %v3662_v10  ;;  %v2989_v4 = vand.u32 15, %v2973_v25  ;;  %v3194_v10 = vsel %vm807_vm0, %v9738_v23, %v9638_v16 }
 0x33a   : > { %3850 = vrot.lane.b32.xlu0 %v3674_v5, %s7355_s8  ;;  %v3666_v5 = vshra.s32 %v9634_v2, 12  ;;  %v2988_v2 = vand.u32 15, %v2972_v39  ;;  %v3681_v56 = vand.u32 15, %v3665_v52  ;;  %v3680_v62 = vand.u32 15, %v3664_v14 }
 0x33b   : > { %v2990_v58 = vand.u32 15, %v2974_v28  ;;  %v3683_v15 = vand.u32 15, %v3667_v48  ;;  %v3193_v25 = vsel %vm807_vm0, %v9734_v47, %v9623_v44  ;;  %v9831_v42 = vand.u32 15, %v2977_v12 }
 0x33c   : > { %v3130_v31 = vpop.permute.xlu0 %3129  ;;  %v9811_v13 = vpop.permute.xlu1 %3127  ;;  %v3682_v9 = vand.u32 15, %v3666_v5  ;;  %v9833_v16 = vand.u32 15, %v2976_v17  ;;  %v3231_v39 = vcvt.s32.f32 %v3194_v10  ;;  %v2979_v12 = vshra.s32 %v9524_v43, 24 }
 0x33d   : > { %3856 = vrot.lane.b32.xlu1 %v3677_v21, %s7355_s8  ;;  %v3209_v45 = vsel %vm807_vm0, %v2985_v32, %v3130_v31  ;;  %v9826_v21 = vand.u32 15, %v2975_v34  ;;  %v9837_v34 = vand.u32 15, %v3669_v29  ;;  %v9839_v32 = vand.u32 15, %v3668_v30 }
 0x33e   : > { %3854 = vrot.lane.b32.xlu0 %v3676_v35, %s7355_s8  ;;  %v3228_v52 = vcvt.s32.f32 %v3209_v45  ;;  %v3227_v28 = vcvt.s32.f32 %v3193_v25  ;;  %v12724_v31 = vsub.f32 %v9169_v51, %v9682_v27  ;;  %v3195_v10 = vsel %vm807_vm0, %v9736_v6, %v9636_v38  ;;  %v12729_v38 = vld [vmem:[#allocation25_spill] sm:$0xff] }
 0x33f   : > { %v12727_v27 = vsub.f32 %v9183_v63, %v9690_v40  ;;  %v3671_v6 = vshra.s32 %v12729_v38, 12  ;;  %v3235_v40 = vcvt.s32.f32 %v3195_v10  ;;  %v12740_v10 = vld [vmem:[#allocation16_spill] sm:$0xff] }
 0x340   : > { %v3134_v24 = vpop.permute.xlu0 %3133  ;;  %v3132_v53 = vpop.permute.xlu1 %3131 }
 0x341   : > { %v3210_v23 = vsel %vm807_vm0, %v2986_v26, %v3132_v53  ;;  %v2576_v35 = vpop.f32.mrb[8].mxu0  ;;  %3860 = vrot.lane.b32.xlu1 %v3679_v8, %s7355_s8  ;;  %v3196_v53 = vsel %vm807_vm0, %v9743_v3, %v9659_v49  ;;  %v2978_v8 = vshra.s32 %v9484_v11, 24  ;;  %v3211_v30 = vsel %vm807_vm0, %v2987_v18, %v3134_v24 }
 0x342   : > { %v3232_v14 = vcvt.s32.f32 %v3210_v23  ;;  %v2723_v44 = vmul.f32 %v2710_v55, %v2576_v35  ;;  %3858 = vrot.lane.b32.xlu0 %v3678_v1, %s7355_s8  ;;  %v2578_v47 = vpop.f32.mrb[9].mxu0  ;;  %v3291_v49 = vpack.c.bf16 %v3231_v39, %v3227_v28  ;;  %v12725_v3 = vsub.f32 %v9177_v0, %v9687_v20  ;;  %v12730_v0 = vld [vmem:[#allocation7_spill] sm:$0xff]  ;;  %v12733_v23 = vld [vmem:[#allocation20_spill] sm:$0xff] }
 0x343   : > { %v2724_v26 = vmul.f32 %v2714_v19, %v2578_v47  ;;  %v2580_v48 = vpop.f32.mrb[10].mxu0  ;;  %v3239_v51 = vcvt.s32.f32 %v3196_v53  ;;  %v3198_v20 = vsel %vm807_vm0, %v9752_v36, %v12730_v0  ;;  %v3670_v35 = vshra.s32 %v12733_v23, 12  ;;  %v12742_v0 = vld [vmem:[#allocation18_spill] sm:$0xff] }
 0x344   : > { %v9851_v5 = vadd.f32 %v2723_v44, %v12724_v31  ;;  %v2727_v1 = vmul.f32 %v2710_v55, %v2580_v48  ;;  %v3138_v17 = vpop.permute.xlu0 %3137  ;;  %v2582_v29 = vpop.f32.mrb[11].mxu0  ;;  %v3292_v43 = vpack.c.bf16 %v3232_v14, %v3228_v52  ;;  %v12734_v52 = vld [vmem:[#allocation14_spill] sm:$0xff]  ;;  %v2981_v47 = vshra.s32 %v9529_v33, 24  ;;  %v12737_v48 = vld [vmem:[#allocation32_spill] sm:$0xff] }
 0x345   : > { %v9859_v11 = vadd.f32 %v2724_v26, %v12725_v3  ;;  %v2728_v24 = vmul.f32 %v2714_v19, %v2582_v29  ;;  %v3136_v18 = vpop.permute.xlu1 %3135  ;;  %3864 = vrot.lane.b32.xlu1 %v3681_v56, %s7355_s8  ;;  %v3236_v19 = vcvt.s32.f32 %v3211_v30  ;;  %v12731_v56 = vsub.f32 %v9194_v22, %v9702_v46  ;;  %v12735_v14 = vld [vmem:[#allocation30_spill] sm:$0xff] }
 0x346   : > { %v9865_v55 = vadd.f32 %v2727_v1, %v12727_v27  ;;  %v3212_v45 = vsel %vm807_vm0, %v2988_v2, %v3136_v18  ;;  %3862 = vrot.lane.b32.xlu0 %v3680_v62, %s7355_s8  ;;  %3370 = vmatprep.subr.bf16.mxu1 %v3292_v43  ;;  %v3213_v2 = vsel %vm807_vm0, %v2989_v4, %v3138_v17  ;;  %v9879_v62 = vand.u32 15, %v2979_v12  ;;  %v12736_v12 = vld [vmem:[#allocation43_spill] sm:$0xff]  ;;  %v12741_v18 = vld [vmem:[#allocation22_spill] sm:$0xff] }
 0x347   : > { %12726 = vst [vmem:[#allocation65_spill] sm:$0xff] %v9859_v11  ;;  %v9876_v25 = vadd.f32 %v2728_v24, %v12731_v56  ;;  %v3240_v63 = vcvt.s32.f32 %v3212_v45  ;;  %3371 = vmatpush1.bf16.msra.mxu1 %v3291_v49  ;;  %v3197_v36 = vsel %vm807_vm0, %v12735_v14, %v12734_v52  ;;  %v2994_v46 = vand.u32 15, %v2978_v8  ;;  %v12746_v14 = vld [vmem:[#allocation26_spill] sm:$0xff]  ;;  %v10161_v11 = vld [vmem:[%s7442_s17 + $0x230] sm:$0xff] }
 0x348   : > { %12728 = vst [vmem:[#allocation66_spill] sm:$0xff] %v9865_v55  ;;  %v3142_v39 = vpop.permute.xlu0 %3141  ;;  %v3295_v28 = vpack.c.bf16 %v3239_v51, %v3235_v40  ;;  %v3247_v53 = vcvt.s32.f32 %v3198_v20  ;;  %v2980_v26 = vshra.s32 %v12736_v12, 24  ;;  %v3200_v30 = vsel %vm807_vm0, %v9766_v50, %v12737_v48  ;;  %v12748_v12 = vld [vmem:[#allocation57_spill] sm:$0xff] }
 0x349   : > { %12732 = vst [vmem:[#allocation25_spill] sm:$0xff] %v9876_v25  ;;  %v3140_v44 = vpop.permute.xlu1 %3139  ;;  %3868 = vrot.lane.b32.xlu1 %v3683_v15, %s7355_s8  ;;  %v3296_v22 = vpack.c.bf16 %v3240_v63, %v3236_v19  ;;  %v3244_v31 = vcvt.s32.f32 %v3213_v2  ;;  %v3687_v15 = vand.u32 15, %v3671_v6  ;;  %v3243_v17 = vcvt.s32.f32 %v3197_v36  ;;  %v12749_v48 = vld [vmem:[#allocation41_spill] sm:$0xff] }
 0x34a   : > { %v3214_v4 = vsel %vm807_vm0, %v2990_v58, %v3140_v44  ;;  %3866 = vrot.lane.b32.xlu0 %v3682_v9, %s7355_s8  ;;  %v3215_v33 = vsel %vm807_vm0, %v9826_v21, %v3142_v39  ;;  %v3686_v29 = vand.u32 15, %v3670_v35  ;;  %v12738_v58 = vld [vmem:[#allocation37_spill] sm:$0xff]  ;;  %v12739_v9 = vld [vmem:[#allocation24_spill] sm:$0xff]  ;;  %v2997_v24 = vand.u32 15, %v2981_v47 }
 0x34b   : > { %v3248_v1 = vcvt.s32.f32 %v3214_v4  ;;  %3372 = vmatprep.subr.bf16.mxu1 %v3296_v22  ;;  %v3673_v43 = vshra.s32 %v12738_v58, 12  ;;  %v3199_v49 = vsel %vm807_vm0, %v12740_v10, %v12739_v9  ;;  %v3672_v51 = vshra.s32 %v12741_v18, 12  ;;  %v12744_v35 = vld [vmem:[#allocation52_spill] sm:$0xff] }
 0x34c   : > { %v3146_v8 = vpop.permute.xlu0 %3145  ;;  %3373 = vmatpush1.bf16.msra.mxu1 %v3295_v28  ;;  %v3299_v27 = vpack.c.bf16 %v3247_v53, %v3243_v17  ;;  %v3255_v45 = vcvt.s32.f32 %v3200_v30  ;;  %v2996_v6 = vand.u32 15, %v2980_v26  ;;  %v3202_v20 = vsel %vm807_vm0, %v9781_v59, %v12742_v0  ;;  %v12747_v47 = vld [vmem:[#allocation56_spill] sm:$0xff] }
 0x34d   : > { %v3144_v3 = vpop.permute.xlu1 %3143  ;;  %3872 = vrot.lane.b32.xlu1 %v9837_v34, %s7355_s8  ;;  %v3300_v50 = vpack.c.bf16 %v3248_v1, %v3244_v31  ;;  %v3252_v19 = vcvt.s32.f32 %v3215_v33  ;;  %v12743_v34 = vld [vmem:[#allocation50_spill] sm:$0xff]  ;;  %v3251_v40 = vcvt.s32.f32 %v3199_v49  ;;  %v3217_v2 = vsel %vm807_vm0, %v9831_v42, %v3146_v8 }
 0x34e   : > { %v3216_v21 = vsel %vm807_vm0, %v9833_v16, %v3144_v3  ;;  %3870 = vrot.lane.b32.xlu0 %v9839_v32, %s7355_s8  ;;  %v2982_v63 = vshra.s32 %v12743_v34, 24  ;;  %v3689_v16 = vand.u32 15, %v3673_v43  ;;  %v3723_v52 = vshra.s32 %v12744_v35, 20  ;;  %v12745_v32 = vld [vmem:[#allocation15_spill] sm:$0xff] }
 0x34f   : > { %v3256_v56 = vcvt.s32.f32 %v3216_v21  ;;  %3374 = vmatprep.subr.bf16.mxu1 %v3300_v50  ;;  %v3201_v36 = vsel %vm807_vm0, %v12746_v14, %v12745_v32  ;;  %v3688_v22 = vand.u32 15, %v3672_v51  ;;  %v3722_v28 = vshra.s32 %v12747_v47, 20  ;;  %v12752_v50 = vld [vmem:[#allocation47_spill] sm:$0xff] }
 0x350   : > { %v3150_v39 = vpop.permute.xlu0 %3149  ;;  %3375 = vmatpush1.bf16.msra.mxu1 %v3299_v27  ;;  %v3303_v53 = vpack.c.bf16 %v3255_v45, %v3251_v40  ;;  %v3263_v4 = vcvt.s32.f32 %v3202_v20  ;;  %v2983_v26 = vshra.s32 %v12748_v12, 24  ;;  %v3204_v30 = vsel %vm807_vm0, %v9786_v54, %v12749_v48  ;;  %v12757_v48 = vld [vmem:[#allocation62_spill] sm:$0xff] }
 0x351   : > { %v3148_v44 = vpop.permute.xlu1 %3147  ;;  %3876 = vrot.lane.b32.xlu1 %v3687_v15, %s7355_s8  ;;  %v3304_v59 = vpack.c.bf16 %v3256_v56, %v3252_v19  ;;  %v3260_v31 = vcvt.s32.f32 %v3217_v2  ;;  %v2998_v15 = vand.u32 15, %v2982_v63  ;;  %v3259_v17 = vcvt.s32.f32 %v3201_v36  ;;  %v12754_v2 = vld [vmem:[#allocation36_spill] sm:$0xff] }
 0x352   : > { %v3218_v42 = vsel %vm807_vm0, %v2994_v46, %v3148_v44  ;;  %3874 = vrot.lane.b32.xlu0 %v3686_v29, %s7355_s8  ;;  %v3219_v33 = vsel %vm807_vm0, %v9879_v62, %v3150_v39  ;;  %v3739_v43 = vand.u32 15, %v3723_v52  ;;  %v12750_v46 = vld [vmem:[#allocation12_spill] sm:$0xff]  ;;  %v12751_v29 = vld [vmem:[#allocation21_spill] sm:$0xff]  ;;  %v3738_v3 = vand.u32 15, %v3722_v28 }
 0x353   : > { %v3264_v1 = vcvt.s32.f32 %v3218_v42  ;;  %3376 = vmatprep.subr.bf16.mxu1 %v3304_v59  ;;  %v2984_v9 = vshra.s32 %v12750_v46, 24  ;;  %v3203_v10 = vsel %vm807_vm0, %v9779_v60, %v12751_v29  ;;  %v3725_v51 = vshra.s32 %v12752_v50, 20  ;;  %v12755_v59 = vld [vmem:[#allocation64_spill] sm:$0xff]  ;;  %v12759_v46 = vld [vmem:[#allocation58_spill] sm:$0xff] }
 0x354   : > { %v3154_v8 = vpop.permute.xlu0 %3153  ;;  %3377 = vmatpush1.bf16.msra.mxu1 %v3303_v53  ;;  %v3307_v27 = vpack.c.bf16 %v3263_v4, %v3259_v17  ;;  %v3271_v45 = vcvt.s32.f32 %v3204_v30  ;;  %v3724_v21 = vshra.s32 %v12719_v41, 20  ;;  %v3206_v0 = vsel %vm807_vm0, %v9790_v61, %v9795_v37  ;;  %v12758_v17 = vld [vmem:[#allocation55_spill] sm:$0xff] }
 0x355   : > { %v3152_v49 = vpop.permute.xlu1 %3151  ;;  %3880 = vrot.lane.b32.xlu1 %v3689_v16, %s7355_s8  ;;  %v3308_v54 = vpack.c.bf16 %v3264_v1, %v3260_v31  ;;  %v3268_v60 = vcvt.s32.f32 %v3219_v33  ;;  %v2999_v19 = vand.u32 15, %v2983_v26  ;;  %v3267_v56 = vcvt.s32.f32 %v3203_v10  ;;  %v12756_v26 = vld [vmem:[#allocation63_spill] sm:$0xff] }
 0x356   : > { %v3220_v62 = vsel %vm807_vm0, %v2996_v6, %v3152_v49  ;;  %3878 = vrot.lane.b32.xlu0 %v3688_v22, %s7355_s8  ;;  %v3221_v34 = vsel %vm807_vm0, %v2997_v24, %v3154_v8  ;;  %v3000_v63 = vand.u32 15, %v2984_v9  ;;  %v3727_v40 = vshra.s32 %v9585_v57, 20  ;;  %v12753_v6 = vld [vmem:[#allocation31_spill] sm:$0xff] }
 0x357   : > { %v3272_v20 = vcvt.s32.f32 %v3220_v62  ;;  %3378 = vmatprep.subr.bf16.mxu1 %v3308_v54  ;;  %v3205_v39 = vsel %vm807_vm0, %v12754_v2, %v12753_v6  ;;  %v3741_v37 = vand.u32 15, %v3725_v51  ;;  %v3726_v32 = vshra.s32 %v9593_v7, 20  ;;  %v12760_v51 = vld [vmem:[#allocation61_spill] sm:$0xff] }
 0x358   : > { %3379 = vmatpush1.bf16.msra.mxu1 %v3307_v27  ;;  %v3158_v16 = vpop.permute.xlu0 %3157  ;;  %v3311_v14 = vpack.c.bf16 %v3271_v45, %v3267_v56  ;;  %v3279_v36 = vcvt.s32.f32 %v3206_v0  ;;  %v3740_v44 = vand.u32 15, %v3724_v21  ;;  %v3208_v22 = vsel %vm807_vm0, %v12755_v59, %v9811_v13  ;;  %v12761_v21 = vld [vmem:[#allocation60_spill] sm:$0xff] }
 0x359   : > { %v3156_v52 = vpop.permute.xlu1 %3155  ;;  %3884 = vrot.lane.b32.xlu1 %v3739_v43, %s7355_s8  ;;  %v3312_v61 = vpack.c.bf16 %v3272_v20, %v3268_v60  ;;  %v3276_v28 = vcvt.s32.f32 %v3221_v34  ;;  %v3275_v4 = vcvt.s32.f32 %v3205_v39  ;;  %v3223_v42 = vsel %vm807_vm0, %v2999_v19, %v3158_v16  ;;  %v12762_v20 = vld [vmem:[#allocation38_spill] sm:$0xff]  ;;  %v12763_v34 = vld [vmem:[#allocation13_spill] sm:$0xff] }
 0x35a   : > { %v3222_v24 = vsel %vm807_vm0, %v2998_v15, %v3156_v52  ;;  %3882 = vrot.lane.b32.xlu0 %v3738_v3, %s7355_s8  ;;  %v3743_v12 = vand.u32 15, %v3727_v40  ;;  %v3207_v30 = vsel %vm807_vm0, %v12757_v48, %v12756_v26  ;;  %v3742_v15 = vand.u32 15, %v3726_v32  ;;  %v12764_v40 = vld [vmem:[#allocation59_spill] sm:$0xff] }
 0x35b   : > { %v3280_v53 = vcvt.s32.f32 %v3222_v24  ;;  %3380 = vmatprep.subr.bf16.mxu1 %v3312_v61  ;;  %v3729_v33 = vshra.s32 %v12758_v17, 20  ;;  %v3315_v13 = vpack.c.bf16 %v3279_v36, %v3275_v4  ;;  %v3287_v8 = vcvt.s32.f32 %v3208_v22  ;;  %v7210_v61 = vld [vmem:[%s7447_s28 + $0x1] sm:$0x1] }
 0x35c   : > { %3381 = vmatpush1.bf16.msra.mxu1 %v3311_v14  ;;  %v3728_v9 = vshra.s32 %v12759_v46, 20  ;;  %v3284_v29 = vcvt.s32.f32 %v3223_v42  ;;  %v3283_v49 = vcvt.s32.f32 %v3207_v30  ;;  %v3731_v27 = vshra.s32 %v12760_v51, 20  ;;  %v12766_v4 = vld [vmem:[#allocation35_spill] sm:$0xff] }
 0x35d   : > { %v3160_v31 = vpop.permute.xlu1 %3159  ;;  %3888 = vrot.lane.b32.xlu1 %v3741_v37, %s7355_s8  ;;  %v3316_v1 = vpack.c.bf16 %v3280_v53, %v3276_v28  ;;  %v3745_v3 = vand.u32 15, %v3729_v33  ;;  %v3730_v0 = vshra.s32 %v12761_v21, 20  ;;  %v3733_v19 = vshra.s32 %v12762_v20, 20  ;;  %v12768_v33 = vld [vmem:[#allocation45_spill] sm:$0xff] }
 0x35e   : > { %v3224_v43 = vsel %vm807_vm0, %v3000_v63, %v3160_v31  ;;  %3886 = vrot.lane.b32.xlu0 %v3740_v44, %s7355_s8  ;;  %v3319_v45 = vpack.c.bf16 %v3287_v8, %v3283_v49  ;;  %v3744_v62 = vand.u32 15, %v3728_v9  ;;  %v3747_v60 = vand.u32 15, %v3731_v27  ;;  %v12773_v49 = vld [vmem:[#allocation27_spill] sm:$0xff] }
 0x35f   : > { %v3288_v10 = vcvt.s32.f32 %v3224_v43  ;;  %3382 = vmatprep.subr.bf16.mxu1 %v3316_v1  ;;  %v3746_v56 = vand.u32 15, %v3730_v0  ;;  %v3732_v63 = vshra.s32 %v12763_v34, 20  ;;  %v12765_v6 = vmov 0   ;;  %v12769_v43 = vld [vmem:[#allocation49_spill] sm:$0xff]  ;;  %v12776_v0 = vld [vmem:[#allocation10_spill] sm:$0xff] }
 0x360   : > { %3383 = vmatpush1.bf16.msra.mxu1 %v3315_v13  ;;  %v3749_v2 = vand.u32 15, %v3733_v19  ;;  %v3735_v39 = vshra.s32 %v12729_v38, 20  ;;  %v3734_v52 = vshra.s32 %v12733_v23, 20  ;;  %v1855_v37 = vshra.s32 %v7210_v61, 16 }
 0x361   : > { %3892 = vrot.lane.b32.xlu1 %v3743_v12, %s7355_s8  ;;  %v3320_v54 = vpack.c.bf16 %v3288_v10, %v3284_v29  ;;  %v3748_v16 = vand.u32 15, %v3732_v63  ;;  %v1859_v32 = vshra.s32 %v7210_v61, 24  ;;  %v3737_v36 = vshra.s32 %v12738_v58, 20  ;;  %v12767_v12 = vld [vmem:[#allocation19_spill] sm:$0xff]  ;;  %v12770_v29 = vld [vmem:[#allocation29_spill] sm:$0xff]  ;;  %v12779_v61 = vld [vmem:[#allocation44_spill] sm:$0xff] }
 0x362   : > { %3890 = vrot.lane.b32.xlu0 %v3742_v15, %s7355_s8  ;;  %v3751_v14 = vand.u32 15, %v3735_v39  ;;  %v3750_v24 = vand.u32 15, %v3734_v52  ;;  %v3736_v44 = vshra.s32 %v12741_v18, 20  ;;  %v1856_v59 = vand.u32 15, %v1855_v37  ;;  %v12777_v63 = vld [vmem:[#allocation51_spill] sm:$0xff]  ;;  %v12778_v39 = vld [vmem:[#allocation28_spill] sm:$0xff] }
 0x363   : > { %3384 = vmatprep.subr.bf16.mxu1 %v3320_v54  ;;  %v1860_v22 = vand.u32 15, %v1859_v32  ;;  %v3753_v28 = vand.u32 15, %v3737_v36  ;;  %v7006_v48 = vshrl.u32 %v12744_v35, 28  ;;  %v7005_v31 = vshrl.u32 %v12747_v47, 28  ;;  %v12771_v35 = vld [vmem:[#allocation23_spill] sm:$0xff]  ;;  %v12775_v54 = vld [vmem:[#allocation9_spill] sm:$0xff] }
 0x364   : > { %3385 = vmatpush1.bf16.msra.mxu1 %v3319_v45  ;;  %v3752_v53 = vand.u32 15, %v3736_v44  ;;  %v1889_v42 = vsel %vm807_vm0, %v1856_v59, %v12766_v4  ;;  %v7008_v15 = vshrl.u32 %v12752_v50, 28  ;;  %v7007_v8 = vshrl.u32 %v12719_v41, 28  ;;  %v12781_v44 = vld [vmem:[#allocation54_spill] sm:$0xff] }
 0x365   : > { %3896 = vrot.lane.b32.xlu1 %v3745_v3, %s7355_s8  ;;  %v1890_v26 = vsel %vm807_vm0, %v1860_v22, %v12767_v12  ;;  %v1893_v30 = vcvt.s32.f32 %v1889_v42  ;;  %v9996_v10 = vrot.slane %v12771_v35, %v12770_v29  ;;  %v10000_v47 = vrot.slane %v12771_v35, %v12773_v49 }
 0x366   : > { %3894 = vrot.lane.b32.xlu0 %v3744_v62, %s7355_s8  ;;  %v1894_v1 = vcvt.s32.f32 %v1890_v26  ;;  %v7010_v50 = vshrl.u32 %v9585_v57, 28  ;;  %v7009_v27 = vshrl.u32 %v9593_v7, 28  ;;  %v7011_v52 = vshrl.u32 %v12759_v46, 28 }
 0x367   : > { %3403 = vmatmul.mubr.bf16.vlgmr.msra.gmra.mrb[12].mxu1 %v12764_v40  ;;  %v1956_v13 = vmul.f32 %v12768_v33, %v1893_v30  ;;  %12772 = vst [vmem:[#allocation7_spill] sm:$0xff] %v9996_v10  ;;  %12774 = vst [vmem:[#allocation20_spill] sm:$0xff] %v10000_v47  ;;  %v2718_v41 = vrot.slane %v9996_v10, %v12775_v54  ;;  %v2722_v62 = vrot.slane %v10000_v47, %v12775_v54  ;;  %v10034_v30 = vpop.permute.xlu0 %3437  ;;  %v7023_v33 = vld [vmem:[%s7447_s28 + $0x4] sm:$0x1] }
 0x368   : > { %4187 = vmatprep.mubr.bf16.mxu1 %v12765_v6  ;;  %v1957_v9 = vmul.f32 %v12769_v43, %v1894_v1  ;;  %v7014_v12 = vshrl.u32 %v12760_v51, 28  ;;  %12785 = vst [vmem:[#allocation32_spill] sm:$0xff] %v10034_v30  ;;  %v7016_v1 = vshrl.u32 %v12762_v20, 28  ;;  %v7018_v43 = vshrl.u32 %v12729_v38, 28  ;;  %v10141_v30 = vld [vmem:[%s7442_s17 + $0x238] sm:$0xff] }
 0x369   : > { %3900 = vrot.lane.b32.xlu1 %v3747_v60, %s7355_s8  ;;  %v1969_v3 = vrot.slane %v1956_v13, %v12775_v54  ;;  %v10043_v13 = vpop.permute.xlu1 %3443  ;;  %v7017_v35 = vshrl.u32 %v12733_v23, 28 }
 0x36a   : > { %3898 = vrot.lane.b32.xlu0 %v3746_v56, %s7355_s8  ;;  %v1973_v45 = vrot.slane %v1957_v9, %v12775_v54  ;;  %v7012_v56 = vshrl.u32 %v12758_v17, 28  ;;  %12787 = vst [vmem:[#allocation24_spill] sm:$0xff] %v10043_v13  ;;  %v4208_v9 = vshra.s32 %v7023_v33, 12 }
 0x36b   : > { %v1976_v60 = vmul.f32 %v1969_v3, %v12776_v0 }
 0x36c   : > { %v1977_v57 = vmul.f32 %v1973_v45, %v12776_v0  ;;  %v1981_v36 = vmul.f32 %v1973_v45, %v12778_v39  ;;  %v4209_v45 = vand.u32 15, %v4208_v9 }
 0x36d   : > { %3904 = vrot.lane.b32.xlu1 %v3749_v2, %s7355_s8  ;;  %v1984_v40 = vsub.f32 %v12777_v63, %v1976_v60  ;;  %v4212_v60 = vshra.s32 %v7023_v33, 20  ;;  %v7024_v63 = vshrl.u32 %v7023_v33, 28 }
 0x36e   : > { %3902 = vrot.lane.b32.xlu0 %v3748_v16, %s7355_s8  ;;  %v1980_v16 = vmul.f32 %v1969_v3, %v12778_v39  ;;  %v1985_v37 = vsub.f32 %v12779_v61, %v1977_v57  ;;  %v10051_v3 = vpop.permute.xlu1 %3455 }
 0x36f   : > { %12789 = vst [vmem:[#allocation22_spill] sm:$0xff] %v10051_v3 }
 0x370   : > { %v1988_v17 = vsub.f32 %v12781_v44, %v1980_v16  ;;  %v4239_v16 = vrot.slane %v7024_v63, %v12775_v54 }
 0x371   : > { %3908 = vrot.lane.b32.xlu1 %v3751_v14, %s7355_s8 }
 0x372   : > { %3906 = vrot.lane.b32.xlu0 %v3750_v24, %s7355_s8 }
 0x375   : > { %3912 = vrot.lane.b32.xlu1 %v3753_v28, %s7355_s8 }
 0x376   : > { %3910 = vrot.lane.b32.xlu0 %v3752_v53, %s7355_s8  ;;  %v12783_v53 = vld [vmem:[#allocation40_spill] sm:$0xff] }
 0x377   : > { %v1989_v4 = vsub.f32 %v12783_v53, %v1981_v36 }
 0x379   : > { %3916 = vrot.lane.b32.xlu1 %v7006_v48, %s7355_s8  ;;  %v7013_v48 = vshrl.u32 %v12761_v21, 28 }
 0x37a   : > { %3914 = vrot.lane.b32.xlu0 %v7005_v31, %s7355_s8 }
 0x37d   : > { %3920 = vrot.lane.b32.xlu1 %v7008_v15, %s7355_s8  ;;  %v7015_v15 = vshrl.u32 %v12763_v34, 28 }
 0x37e   : > { %3918 = vrot.lane.b32.xlu0 %v7007_v8, %s7355_s8  ;;  %v10045_v8 = vpop.permute.xlu0 %3449 }
 0x37f   : > { %12788 = vst [vmem:[#allocation16_spill] sm:$0xff] %v10045_v8 }
 0x381   : > { %v2619_v19 = vpop.f32.mrb[8].mxu1  ;;  %3924 = vrot.lane.b32.xlu1 %v7010_v50, %s7355_s8  ;;  %v4204_v50 = vshra.s32 %v7023_v33, 4 }
 0x382   : > { %v2725_v2 = vmul.f32 %v2718_v41, %v2619_v19  ;;  %3922 = vrot.lane.b32.xlu0 %v7009_v27, %s7355_s8  ;;  %v2621_v7 = vpop.f32.mrb[9].mxu1  ;;  %v7020_v27 = vshrl.u32 %v12738_v58, 28 }
 0x383   : > { %v2726_v32 = vmul.f32 %v2722_v62, %v2621_v7  ;;  %v2623_v14 = vpop.f32.mrb[10].mxu1  ;;  %v4205_v0 = vand.u32 15, %v4204_v50 }
 0x384   : > { %v10022_v24 = vadd.f32 %v2725_v2, %v1984_v40  ;;  %v2729_v59 = vmul.f32 %v2718_v41, %v2623_v14  ;;  %v2625_v22 = vpop.f32.mrb[11].mxu1  ;;  %v4213_v2 = vand.u32 15, %v4212_v60 }
 0x385   : > { %v10025_v28 = vadd.f32 %v2726_v32, %v1985_v37  ;;  %v2730_v42 = vmul.f32 %v2722_v62, %v2625_v22  ;;  %3928 = vrot.lane.b32.xlu1 %v7012_v56, %s7355_s8  ;;  %v7019_v62 = vshrl.u32 %v12741_v18, 28  ;;  %v4227_v56 = vrot.slane %v4209_v45, %v12775_v54  ;;  %v10110_v45 = vld [vmem:[%s7442_s17 + $0x210] sm:$0xff] }
 0x386   : > { %12780 = vst [vmem:[#allocation14_spill] sm:$0xff] %v10022_v24  ;;  %v10030_v26 = vadd.f32 %v2729_v59, %v1988_v17  ;;  %3926 = vrot.lane.b32.xlu0 %v7011_v52, %s7355_s8  ;;  %v4221_v40 = vrot.slane %v4205_v0, %v12775_v54  ;;  %v4233_v52 = vrot.slane %v4213_v2, %v12775_v54  ;;  %v12792_v0 = vld [vmem:[#allocation34_spill] sm:$0xff]  ;;  %v3580_v63 = vand.u32 15, %v10110_v45 }
 0x387   : > { %12782 = vst [vmem:[#allocation30_spill] sm:$0xff] %v10025_v28  ;;  %v10036_v31 = vadd.f32 %v2730_v42, %v1989_v4  ;;  %v7211_v4 = vld [vmem:[%s7447_s28 + $0x2] sm:$0x1] }
 0x388   : > { %12784 = vst [vmem:[#allocation43_spill] sm:$0xff] %v10030_v26  ;;  %v2636_v42 = vshra.s32 %v7211_v4, 8 }
 0x389   : > { %12786 = vst [vmem:[#allocation37_spill] sm:$0xff] %v10036_v31  ;;  %3932 = vrot.lane.b32.xlu1 %v7014_v12, %s7355_s8  ;;  %v10095_v12 = vld [vmem:[%s7442_s17 + $0x200] sm:$0xff]  ;;  %v3585_v31 = vand.u32 15, %v10141_v30 }
 0x38a   : > { %3930 = vrot.lane.b32.xlu0 %v7013_v48, %s7355_s8  ;;  %v3626_v48 = vshra.s32 %v10095_v12, 8  ;;  %v10107_v50 = vand.u32 15, %v2636_v42 }
 0x38d   : > { %3936 = vrot.lane.b32.xlu1 %v7016_v1, %s7355_s8  ;;  %v2633_v1 = vand.u32 15, %v7211_v4  ;;  %v10126_v4 = vld [vmem:[%s7442_s17 + $0x218] sm:$0xff] }
 0x38e   : > { %3934 = vrot.lane.b32.xlu0 %v7015_v15, %s7355_s8  ;;  %v3581_v42 = vand.u32 15, %v10126_v4  ;;  %v3629_v3 = vshra.s32 %v10126_v4, 8 }
 0x38f   : > { %v10115_v60 = vsel %vm807_vm0, %v2633_v1, %v12792_v0  ;;  %v10131_v0 = vld [vmem:[%s7454_s7 + $0x10] sm:$0xf] }
 0x390   : > { %v4250_v29 = vunpack.c.l.bf16 %v10131_v0  ;;  %v3645_v10 = vand.u32 15, %v3629_v3 }
 0x391   : > { %v10053_v41 = vpop.xlane.xlu0 %3467  ;;  %3940 = vrot.lane.b32.xlu1 %v7018_v43, %s7355_s8  ;;  %v10103_v43 = vld [vmem:[%s7442_s17 + $0x208] sm:$0xff] }
 0x392   : > { %12790 = vst [vmem:[#allocation18_spill] sm:$0xff] %v10053_v41  ;;  %3938 = vrot.lane.b32.xlu0 %v7017_v35, %s7355_s8  ;;  %v3627_v9 = vshra.s32 %v10103_v43, 8  ;;  %v3579_v35 = vand.u32 15, %v10103_v43 }
 0x394   : > { %v3643_v1 = vand.u32 15, %v3627_v9 }
 0x395   : > { %v10059_v19 = vpop.permute.xlu0 %3818  ;;  %3944 = vrot.lane.b32.xlu1 %v7020_v27, %s7355_s8  ;;  %v10062_v57 = vpop.xlane.xlu1 %3469  ;;  %v3642_v27 = vand.u32 15, %v3626_v48 }
 0x396   : > { %12791 = vst [vmem:[#allocation50_spill] sm:$0xff] %v10062_v57  ;;  %3942 = vrot.lane.b32.xlu0 %v7019_v62, %s7355_s8  ;;  %v3628_v62 = vshra.s32 %v10110_v45, 8  ;;  %v10136_v57 = vld [vmem:[%s7442_s17 + $0x228] sm:$0xff] }
 0x397   : > { %12793 = vst [vmem:[#allocation52_spill] sm:$0xff] %v10136_v57  ;;  %v3583_v41 = vand.u32 15, %v10136_v57 }
 0x398   : > { %v3644_v26 = vand.u32 15, %v3628_v62  ;;  %v3631_v62 = vshra.s32 %v10136_v57, 8 }
 0x399   : > { %v10067_v7 = vpop.permute.xlu0 %3822  ;;  %4228 = vrot.lane.b32.xlu1 %v4227_v56, %s7355_s8  ;;  %v3821_v39 = vpop.permute.xlu1 %3820  ;;  %v3578_v56 = vand.u32 15, %v10095_v12 }
 0x39a   : > { %4222 = vrot.lane.b32.xlu0 %v4221_v40, %s7355_s8  ;;  %v10120_v40 = vld [vmem:[%s7442_s17 + $0x220] sm:$0xff]  ;;  %v3947_v8 = vsel %vm807_vm0, %v3579_v35, %v3821_v39 }
 0x39b   : > { %v3582_v2 = vand.u32 15, %v10120_v40  ;;  %v3630_v28 = vshra.s32 %v10120_v40, 8  ;;  %v3946_v39 = vsel %vm807_vm0, %v3578_v56, %v10059_v19  ;;  %v4014_v47 = vcvt.s32.f32 %v3947_v8  ;;  %v10174_v19 = vld [vmem:[%s7442_s17 + $0x240] sm:$0xff] }
 0x39c   : > { %v4010_v24 = vcvt.s32.f32 %v3946_v39  ;;  %v3632_v8 = vshra.s32 %v10161_v11, 8  ;;  %v3592_v39 = vand.u32 15, %v12741_v18 }
 0x39d   : > { %v10073_v61 = vpop.permute.xlu0 %3826  ;;  %4240 = vrot.lane.b32.xlu1 %v4239_v16, %s7355_s8  ;;  %v3825_v37 = vpop.permute.xlu1 %3824  ;;  %v3646_v55 = vand.u32 15, %v3630_v28 }
 0x39e   : > { %4234 = vrot.lane.b32.xlu0 %v4233_v52, %s7355_s8 }
 0x3a1   : > { %v10077_v32 = vpop.permute.xlu0 %3830  ;;  %v10079_v14 = vpop.permute.xlu1 %3828 }
 0x3a5   : > { %v10081_v36 = vpop.permute.xlu0 %3834  ;;  %v10083_v44 = vpop.permute.xlu1 %3832 }
 0x3a9   : > { %v10085_v17 = vpop.permute.xlu0 %3838  ;;  %v10087_v59 = vpop.permute.xlu1 %3836 }
 0x3ad   : > { %v10089_v22 = vpop.permute.xlu0 %3842  ;;  %v10091_v53 = vpop.permute.xlu1 %3840 }
 0x3b1   : > { %v10098_v15 = vpop.permute.xlu0 %3846  ;;  %v10100_v33 = vpop.permute.xlu1 %3844 }
 0x3b5   : > { %v3851_v16 = vpop.permute.xlu0 %3850  ;;  %v10123_v52 = vpop.permute.xlu1 %3848 }
 0x3b6   : > { %v3962_v9 = vsel %vm807_vm0, %v3642_v27, %v3851_v16  ;;  %v10154_v27 = vld [vmem:[%s7454_s7 + $0x30] sm:$0xf]  ;;  %v3949_v16 = vsel %vm807_vm0, %v3581_v42, %v3825_v37  ;;  %v3633_v42 = vshra.s32 %v10141_v30, 8 }
 0x3b7   : > { %v4011_v56 = vcvt.s32.f32 %v3962_v9  ;;  %v4251_v37 = vunpack.c.l.bf16 %v10154_v27  ;;  %v4022_v9 = vcvt.s32.f32 %v3949_v16 }
 0x3b9   : > { %v3855_v13 = vpop.permute.xlu0 %3854  ;;  %v3853_v49 = vpop.permute.xlu1 %3852 }
 0x3ba   : > { %v3963_v48 = vsel %vm807_vm0, %v3643_v1, %v3853_v49  ;;  %v3964_v25 = vsel %vm807_vm0, %v3644_v26, %v3855_v13  ;;  %v3948_v49 = vsel %vm807_vm0, %v3580_v63, %v10067_v7  ;;  %v3647_v26 = vand.u32 15, %v3631_v62 }
 0x3bb   : > { %v4015_v35 = vcvt.s32.f32 %v3963_v48  ;;  %v4074_v48 = vpack.c.bf16 %v4014_v47, %v4010_v24  ;;  %v3951_v13 = vsel %vm807_vm0, %v3583_v41, %v10079_v14  ;;  %v4019_v7 = vcvt.s32.f32 %v3964_v25 }
 0x3bc   : > { %v4018_v63 = vcvt.s32.f32 %v3948_v49  ;;  %v3634_v47 = vshra.s32 %v10174_v19, 8  ;;  %v3591_v24 = vand.u32 15, %v12729_v38  ;;  %v3649_v14 = vand.u32 15, %v3633_v42 }
 0x3bd   : > { %4252 = vadd.xlane.f32.xlu0 %v4250_v29  ;;  %v3859_v3 = vpop.permute.xlu0 %3858  ;;  %v3857_v1 = vpop.permute.xlu1 %3856  ;;  %v4075_v57 = vpack.c.bf16 %v4015_v35, %v4011_v56  ;;  %v3648_v56 = vand.u32 15, %v3632_v8  ;;  %v10182_v8 = vld [vmem:[%s7442_s17 + $0x248] sm:$0xff] }
 0x3be   : > { %v3965_v28 = vsel %vm807_vm0, %v3645_v10, %v3857_v1  ;;  %v3966_v35 = vsel %vm807_vm0, %v3646_v55, %v3859_v3  ;;  %v3950_v10 = vsel %vm807_vm0, %v3582_v2, %v10073_v61  ;;  %v4078_v62 = vpack.c.bf16 %v4022_v9, %v4018_v63  ;;  %v10188_v1 = vld [vmem:[%s7442_s17 + $0x250] sm:$0xff] }
 0x3bf   : > { %v4023_v29 = vcvt.s32.f32 %v3965_v28  ;;  %4112 = vmatprep.subr.bf16.mxu0 %v4075_v57  ;;  %v4030_v55 = vcvt.s32.f32 %v3951_v13  ;;  %v3635_v49 = vshra.s32 %v10182_v8, 8  ;;  %v3953_v61 = vsel %vm807_vm0, %v3585_v31, %v10083_v44  ;;  %v10193_v28 = vld [vmem:[%s7442_s17 + $0x260] sm:$0xff] }
 0x3c0   : > { %4113 = vmatpush1.bf16.msra.mxu0 %v4074_v48  ;;  %v4027_v2 = vcvt.s32.f32 %v3966_v35  ;;  %v4026_v42 = vcvt.s32.f32 %v3950_v10  ;;  %v3650_v9 = vand.u32 15, %v3634_v47  ;;  %v12794_v31 = vand.u32 15, %v12759_v46  ;;  %v10202_v35 = vld [vmem:[%s7442_s17 + $0x258] sm:$0xff] }
 0x3c1   : > { %v3863_v41 = vpop.permute.xlu0 %3862  ;;  %4254 = vadd.xlane.f32.xlu1 %v4251_v37  ;;  %v3861_v25 = vpop.permute.xlu1 %3860  ;;  %v4079_v57 = vpack.c.bf16 %v4023_v29, %v4019_v7  ;;  %v3636_v37 = vshra.s32 %v10188_v1, 8  ;;  %v3593_v13 = vand.u32 15, %v12738_v58  ;;  %v4038_v10 = vcvt.s32.f32 %v3953_v61  ;;  %v12808_v58 = vld [vmem:[#allocation46_spill] sm:$0xff] }
 0x3c2   : > { %v3967_v16 = vsel %vm807_vm0, %v3647_v26, %v3861_v25  ;;  %v3968_v48 = vsel %vm807_vm0, %v3648_v56, %v3863_v41  ;;  %v3638_v26 = vshra.s32 %v10193_v28, 8  ;;  %v3952_v44 = vsel %vm807_vm0, %v12794_v31, %v10077_v32 }
 0x3c3   : > { %v4031_v3 = vcvt.s32.f32 %v3967_v16  ;;  %4114 = vmatprep.subr.bf16.mxu0 %v4079_v57  ;;  %v3637_v56 = vshra.s32 %v10202_v35, 8  ;;  %v4082_v47 = vpack.c.bf16 %v4030_v55, %v4026_v42  ;;  %v3651_v25 = vand.u32 15, %v3635_v49  ;;  %v10207_v57 = vld [vmem:[%s7442_s17 + $0x288] sm:$0xff]  ;;  %v10219_v42 = vld [vmem:[%s7442_s17 + $0x280] sm:$0xff] }
 0x3c4   : > { %4115 = vmatpush1.bf16.msra.mxu0 %v4078_v62  ;;  %12795 = vst [vmem:[#allocation15_spill] sm:$0xff] %v10207_v57  ;;  %v12796_v46 = vand.u32 15, %v12760_v51  ;;  %v4035_v62 = vcvt.s32.f32 %v3968_v48  ;;  %v3654_v61 = vand.u32 15, %v3638_v26  ;;  %12798 = vst [vmem:[#allocation56_spill] sm:$0xff] %v10219_v42  ;;  %v12799_v51 = vand.u32 15, %v12761_v21 }
 0x3c5   : > { %v3867_v7 = vpop.permute.xlu0 %3866  ;;  %v3865_v29 = vpop.permute.xlu1 %3864  ;;  %v4083_v63 = vpack.c.bf16 %v4031_v3, %v4027_v2  ;;  %v3652_v2 = vand.u32 15, %v3636_v37  ;;  %v4034_v3 = vcvt.s32.f32 %v3952_v44  ;;  %v3653_v44 = vand.u32 15, %v3637_v56 }
 0x3c6   : > { %v3969_v41 = vsel %vm807_vm0, %v3649_v14, %v3865_v29  ;;  %v3955_v32 = vsel %vm807_vm0, %v12796_v46, %v10087_v59  ;;  %v3970_v55 = vsel %vm807_vm0, %v3650_v9, %v3867_v7  ;;  %v10215_v14 = vld [vmem:[%s7442_s17 + $0x268] sm:$0xff]  ;;  %v3954_v59 = vsel %vm807_vm0, %v12799_v51, %v10081_v36 }
 0x3c7   : > { %v4039_v16 = vcvt.s32.f32 %v3969_v41  ;;  %4116 = vmatprep.subr.bf16.mxu0 %v4083_v63  ;;  %12797 = vst [vmem:[#allocation26_spill] sm:$0xff] %v10215_v14  ;;  %v3639_v49 = vshra.s32 %v10215_v14, 8  ;;  %v4380_v9 = vshra.s32 %v10207_v57, 4  ;;  %v4086_v7 = vpack.c.bf16 %v4038_v10, %v4034_v3  ;;  %v10228_v63 = vld [vmem:[%s7442_s17 + $0x270] sm:$0xff]  ;;  %v10232_v41 = vld [vmem:[%s7442_s17 + $0x298] sm:$0xff] }
 0x3c8   : > { %4117 = vmatpush1.bf16.msra.mxu0 %v4082_v47  ;;  %v4046_v26 = vcvt.s32.f32 %v3955_v32  ;;  %12800 = vst [vmem:[#allocation57_spill] sm:$0xff] %v10228_v63  ;;  %v3640_v47 = vshra.s32 %v10228_v63, 8  ;;  %12801 = vst [vmem:[#allocation41_spill] sm:$0xff] %v10232_v41  ;;  %v12802_v21 = vand.u32 15, %v12762_v20  ;;  %v4043_v46 = vcvt.s32.f32 %v3970_v55  ;;  %v10244_v3 = vld [vmem:[%s7442_s17 + $0x278] sm:$0xff] }
 0x3c9   : > { %v3871_v48 = vpop.permute.xlu0 %3870  ;;  %v3869_v37 = vpop.permute.xlu1 %3868  ;;  %v4087_v31 = vpack.c.bf16 %v4039_v16, %v4035_v62  ;;  %v4379_v10 = vshra.s32 %v10219_v42, 4  ;;  %v10240_v62 = vld [vmem:[%s7442_s17 + $0x290] sm:$0xff]  ;;  %v4042_v32 = vcvt.s32.f32 %v3954_v59  ;;  %v3655_v16 = vand.u32 15, %v3639_v49  ;;  %12803 = vst [vmem:[#allocation12_spill] sm:$0xff] %v10244_v3 }
 0x3ca   : > { %v3971_v29 = vsel %vm807_vm0, %v3651_v25, %v3869_v37  ;;  %v3957_v36 = vsel %vm807_vm0, %v12802_v21, %v10091_v53  ;;  %v3972_v25 = vsel %vm807_vm0, %v3652_v2, %v3871_v48  ;;  %v3641_v51 = vshra.s32 %v10244_v3, 8 }
 0x3cb   : > { %v4047_v56 = vcvt.s32.f32 %v3971_v29  ;;  %4118 = vmatprep.subr.bf16.mxu0 %v4087_v31  ;;  %v12804_v20 = vand.u32 15, %v12763_v34  ;;  %v4396_v29 = vand.u32 15, %v4380_v9  ;;  %v4382_v59 = vshra.s32 %v10232_v41, 4 }
 0x3cc   : > { %4119 = vmatpush1.bf16.msra.mxu0 %v4086_v7  ;;  %v4090_v21 = vpack.c.bf16 %v4046_v26, %v4042_v32  ;;  %v4054_v2 = vcvt.s32.f32 %v3957_v36  ;;  %v4381_v48 = vshra.s32 %v10240_v62, 4  ;;  %v10255_v7 = vld [vmem:[%s7442_s17 + $0x2a8] sm:$0xff]  ;;  %v3959_v34 = vsel %vm807_vm0, %v3591_v24, %v10100_v33 }
 0x3cd   : > { %v3956_v53 = vsel %vm807_vm0, %v12804_v20, %v10085_v17  ;;  %v3875_v55 = vpop.permute.xlu0 %3874  ;;  %v3873_v37 = vpop.permute.xlu1 %3872  ;;  %v4091_v31 = vpack.c.bf16 %v4047_v56, %v4043_v46  ;;  %v4051_v17 = vcvt.s32.f32 %v3972_v25  ;;  %v4395_v9 = vand.u32 15, %v4379_v10 }
 0x3ce   : > { %v3973_v49 = vsel %vm807_vm0, %v3653_v44, %v3873_v37  ;;  %v4050_v46 = vcvt.s32.f32 %v3956_v53  ;;  %v3974_v56 = vsel %vm807_vm0, %v3654_v61, %v3875_v55  ;;  %v3656_v26 = vand.u32 15, %v3640_v47  ;;  %v10263_v44 = vld [vmem:[%s7442_s17 + $0x2a0] sm:$0xff] }
 0x3cf   : > { %v4055_v20 = vcvt.s32.f32 %v3973_v49  ;;  %4120 = vmatprep.subr.bf16.mxu0 %v4091_v31  ;;  %v3657_v36 = vand.u32 15, %v3641_v51  ;;  %v12805_v32 = vand.u32 15, %v12733_v23  ;;  %v4398_v25 = vand.u32 15, %v4382_v59  ;;  %v10279_v59 = vld [vmem:[%s7442_s17 + $0x2b8] sm:$0xff] }
 0x3d0   : > { %4121 = vmatpush1.bf16.msra.mxu0 %v4090_v21  ;;  %v4384_v10 = vshra.s32 %v10255_v7, 4  ;;  %v4094_v53 = vpack.c.bf16 %v4054_v2, %v4050_v46  ;;  %v4062_v61 = vcvt.s32.f32 %v3959_v34  ;;  %v4397_v51 = vand.u32 15, %v4381_v48  ;;  %12806 = vst [vmem:[#allocation21_spill] sm:$0xff] %v10279_v59  ;;  %v10284_v2 = vld [vmem:[%s7442_s17 + $0x2b0] sm:$0xff] }
 0x3d1   : > { %v3958_v37 = vsel %vm807_vm0, %v12805_v32, %v10089_v22  ;;  %v3879_v38 = vpop.permute.xlu0 %3878  ;;  %v3877_v33 = vpop.permute.xlu1 %3876  ;;  %v4095_v24 = vpack.c.bf16 %v4055_v20, %v4051_v17  ;;  %v3961_v23 = vsel %vm807_vm0, %v3593_v13, %v10123_v52  ;;  %v4059_v22 = vcvt.s32.f32 %v3974_v56  ;;  %12807 = vst [vmem:[#allocation47_spill] sm:$0xff] %v10284_v2 }
 0x3d2   : > { %v3975_v47 = vsel %vm807_vm0, %v3655_v16, %v3877_v33  ;;  %4605 = vrot.lane.b32.xlu1 %v4396_v29, %s7355_s8  ;;  %v4383_v31 = vshra.s32 %v10263_v44, 4  ;;  %v2676_v21 = vcvt.s32.f32 %v10115_v60  ;;  %v4058_v16 = vcvt.s32.f32 %v3958_v37 }
 0x3d3   : > { %v4063_v55 = vcvt.s32.f32 %v3975_v47  ;;  %4603 = vrot.lane.b32.xlu0 %v4395_v9, %s7355_s8  ;;  %4122 = vmatprep.subr.bf16.mxu0 %v4095_v24  ;;  %v3976_v29 = vsel %vm807_vm0, %v3656_v26, %v3879_v38  ;;  %v2673_v52 = vsel %vm807_vm0, %v10107_v50, %v12808_v58  ;;  %v3960_v13 = vsel %vm807_vm0, %v3592_v39, %v10098_v15  ;;  %v10301_v39 = vld [vmem:[%s7442_s17 + $0x2c8] sm:$0xff] }
 0x3d4   : > { %4123 = vmatpush1.bf16.msra.mxu0 %v4094_v53  ;;  %v4400_v34 = vand.u32 15, %v4384_v10  ;;  %v4098_v17 = vpack.c.bf16 %v4062_v61, %v4058_v16  ;;  %v4070_v20 = vcvt.s32.f32 %v3961_v23  ;;  %v4386_v50 = vshra.s32 %v10279_v59, 4  ;;  %12809 = vst [vmem:[#allocation31_spill] sm:$0xff] %v10301_v39  ;;  %v12811_v53 = vld [vmem:[#allocation17_spill] sm:$0xff]  ;;  %v7002_v47 = vld [vmem:[%s7452_s6 + $0xc] sm:$0xf] }
 0x3d5   : > { %v10293_v49 = vpop.permute.xlu0 %3882  ;;  %v3881_v48 = vpop.permute.xlu1 %3880  ;;  %v4099_v60 = vpack.c.bf16 %v4063_v55, %v4059_v22  ;;  %v4067_v46 = vcvt.s32.f32 %v3976_v29  ;;  %v4399_v18 = vand.u32 15, %v4383_v31  ;;  %v4385_v15 = vshra.s32 %v10284_v2, 4  ;;  %v10321_v55 = vld [vmem:[%s7442_s17 + $0x2d8] sm:$0xff]  ;;  %v12814_v31 = vld [vmem:[#allocation33_spill] sm:$0xff] }
 0x3d6   : > { %v3977_v9 = vsel %vm807_vm0, %v3657_v36, %v3881_v48  ;;  %4609 = vrot.lane.b32.xlu1 %v4398_v25, %s7355_s8  ;;  %v2677_v26 = vcvt.s32.f32 %v2673_v52  ;;  %v4066_v32 = vcvt.s32.f32 %v3960_v13  ;;  %v10304_v36 = vld [vmem:[%s7442_s17 + $0x2c0] sm:$0xff]  ;;  %v4402_v25 = vand.u32 15, %v4386_v50  ;;  %12813 = vst [vmem:[#allocation63_spill] sm:$0xff] %v10321_v55  ;;  %v10325_v29 = vld [vmem:[%s7442_s17 + $0x2d0] sm:$0xff] }
 0x3d7   : > { %v4071_v56 = vcvt.s32.f32 %v3977_v9  ;;  %4607 = vrot.lane.b32.xlu0 %v4397_v51, %s7355_s8  ;;  %4124 = vmatprep.subr.bf16.mxu0 %v4099_v60  ;;  %12810 = vst [vmem:[#allocation36_spill] sm:$0xff] %v10304_v36  ;;  %v4388_v10 = vshra.s32 %v10301_v39, 4  ;;  %v2739_v61 = vmul.f32 %v12811_v53, %v2676_v21  ;;  %v10316_v51 = vcombine.low %v10131_v0, %v10154_v27 }
 0x3d8   : > { %4125 = vmatpush1.bf16.msra.mxu0 %v4098_v17  ;;  %v4102_v24 = vpack.c.bf16 %v4070_v20, %v4066_v32  ;;  %v4401_v23 = vand.u32 15, %v4385_v15  ;;  %v4387_v22 = vshra.s32 %v10304_v36, 4  ;;  %v2740_v16 = vmul.f32 %v12814_v31, %v2677_v26  ;;  %12815 = vst [vmem:[#allocation62_spill] sm:$0xff] %v10325_v29  ;;  %v10344_v20 = vld [vmem:[%s7442_s17 + $0x2e0] sm:$0xff] }
 0x3d9   : > { %v10306_v37 = vpop.permute.xlu0 %3886  ;;  %v10308_v38 = vpop.permute.xlu1 %3884  ;;  %v4103_v33 = vpack.c.bf16 %v4071_v56, %v4067_v46  ;;  %12812 = vst [vmem:[#allocation64_spill] sm:$0xff] %v10316_v51  ;;  %v10331_v0 = vunpack.c.l.bf16 %v7002_v47  ;;  %v4404_v27 = vand.u32 15, %v4388_v10  ;;  %v4390_v52 = vshra.s32 %v10321_v55, 4  ;;  %12819 = vst [vmem:[#allocation60_spill] sm:$0xff] %v10344_v20  ;;  %v12822_v46 = vld [vmem:[#allocation53_spill] sm:$0xff]  ;;  %v12825_v10 = vld [vmem:[#allocation39_spill] sm:$0xff] }
 0x3da   : > { %4613 = vrot.lane.b32.xlu1 %v4400_v34, %s7355_s8  ;;  %v2746_v13 = vrot.slane %v2739_v61, %v12775_v54  ;;  %v4403_v48 = vand.u32 15, %v4387_v22  ;;  %v4389_v60 = vshra.s32 %v10325_v29, 4  ;;  %v10340_v34 = vld [vmem:[%s7442_s17 + $0x2e8] sm:$0xff]  ;;  %v2750_v17 = vrot.slane %v2740_v16, %v12775_v54  ;;  %v12827_v47 = vld [vmem:[#allocation11_spill] sm:$0xff] }
 0x3db   : > { %4611 = vrot.lane.b32.xlu0 %v4399_v18, %s7355_s8  ;;  %4126 = vmatprep.subr.bf16.mxu0 %v4103_v33  ;;  %12817 = vst [vmem:[#allocation58_spill] sm:$0xff] %v10331_v0  ;;  %12818 = vst [vmem:[#allocation61_spill] sm:$0xff] %v10340_v34  ;;  %v10356_v18 = vrot.slane %v10331_v0, %v12775_v54  ;;  %v4406_v15 = vand.u32 15, %v4390_v52  ;;  %v4392_v26 = vshra.s32 %v10340_v34, 4  ;;  %v3690_v22 = vshra.s32 %v10095_v12, 16 }
 0x3dc   : > { %4127 = vmatpush1.bf16.msra.mxu0 %v4102_v24  ;;  %v10352_v56 = vmul.f32 %v2746_v13, %v12822_v46  ;;  %v10361_v32 = vmul.f32 %v2750_v17, %v12822_v46  ;;  %v4405_v33 = vand.u32 15, %v4389_v60  ;;  %v4391_v24 = vshra.s32 %v10344_v20, 4 }
 0x3dd   : > { %v10327_v21 = vpop.permute.xlu0 %3890  ;;  %v10329_v58 = vpop.permute.xlu1 %3888  ;;  %12823 = vst [vmem:[#allocation59_spill] sm:$0xff] %v10356_v18  ;;  %v10369_v53 = vmul.f32 %v2746_v13, %v12825_v10  ;;  %v10372_v61 = vmul.f32 %v2750_v17, %v12825_v10  ;;  %v3692_v31 = vshra.s32 %v10110_v45, 16  ;;  %v3691_v16 = vshra.s32 %v10103_v43, 16  ;;  %v12832_v10 = vld [vmem:[#allocation52_spill] sm:$0xff] }
 0x3de   : > { %12816 = vst [vmem:[#allocation55_spill] sm:$0xff] %v10327_v21  ;;  %4617 = vrot.lane.b32.xlu1 %v4402_v25, %s7355_s8  ;;  %v10366_v25 = vld [vmem:[%s7442_s17 + $0x2f8] sm:$0xff]  ;;  %v3694_v52 = vshra.s32 %v10120_v40, 16  ;;  %v3693_v13 = vshra.s32 %v10126_v4, 16  ;;  %v3695_v46 = vshra.s32 %v12832_v10, 16  ;;  %v4407_v21 = vand.u32 15, %v4391_v24 }
 0x3df   : > { %4615 = vrot.lane.b32.xlu0 %v4401_v23, %s7355_s8  ;;  %4145 = vmatmul.mubr.bf16.vlgmr.msra.gmra.mrb[16].mxu0 %v10316_v51  ;;  %12824 = vst [vmem:[#allocation35_spill] sm:$0xff] %v10366_v25  ;;  %12826 = vst [vmem:[#allocation19_spill] sm:$0xff] %v10369_v53  ;;  %v10376_v23 = vrot.slane %v10331_v0, %v12827_v47  ;;  %v4408_v0 = vand.u32 15, %v4392_v26  ;;  %v12833_v51 = vld [vmem:[#allocation65_spill] sm:$0xff]  ;;  %v10404_v34 = vand.u32 15, %v3690_v22  ;;  %v10408_v26 = vand.u32 15, %v3691_v16 }
 0x3e0   : > { %4929 = vmatprep.mubr.bf16.mxu0 %v12765_v6  ;;  %v4394_v6 = vshra.s32 %v10366_v25, 4  ;;  %v12835_v47 = vld [vmem:[#allocation25_spill] sm:$0xff]  ;;  %v3698_v25 = vshra.s32 %v10174_v19, 16  ;;  %v10422_v22 = vand.u32 15, %v3695_v46  ;;  %v3701_v46 = vshra.s32 %v10202_v35, 16 }
 0x3e1   : > { %v10347_v9 = vpop.permute.xlu0 %3894  ;;  %v10349_v50 = vpop.permute.xlu1 %3892  ;;  %12828 = vst [vmem:[#allocation45_spill] sm:$0xff] %v10376_v23 }
 0x3e2   : > { %12820 = vst [vmem:[#allocation38_spill] sm:$0xff] %v10347_v9  ;;  %12821 = vst [vmem:[#allocation13_spill] sm:$0xff] %v10349_v50  ;;  %4621 = vrot.lane.b32.xlu1 %v4404_v27, %s7355_s8  ;;  %v10382_v27 = vld [vmem:[%s7442_s17 + $0x2f0] sm:$0xff]  ;;  %v10411_v9 = vand.u32 15, %v3694_v52  ;;  %v4410_v16 = vand.u32 15, %v4394_v6  ;;  %v4444_v52 = vshra.s32 %v10207_v57, 12 }
 0x3e3   : > { %4619 = vrot.lane.b32.xlu0 %v4403_v48, %s7355_s8  ;;  %12829 = vst [vmem:[#allocation49_spill] sm:$0xff] %v10382_v27  ;;  %v3696_v48 = vshra.s32 %v10161_v11, 16 }
 0x3e4   : > { %12836 = vst [vmem:[#allocation51_spill] sm:$0xff] %v10411_v9 }
 0x3e5   : > { %v10387_v60 = vpop.permute.xlu0 %3898  ;;  %v10389_v17 = vpop.permute.xlu1 %3896  ;;  %v10415_v24 = vand.u32 15, %v3696_v48  ;;  %v3702_v48 = vshra.s32 %v10193_v28, 16 }
 0x3e6   : > { %12830 = vst [vmem:[#allocation23_spill] sm:$0xff] %v10387_v60  ;;  %12831 = vst [vmem:[#allocation10_spill] sm:$0xff] %v10389_v17  ;;  %4625 = vrot.lane.b32.xlu1 %v4406_v15, %s7355_s8  ;;  %v4393_v60 = vshra.s32 %v10382_v27, 4  ;;  %v12834_v17 = vld [vmem:[#allocation66_spill] sm:$0xff]  ;;  %v10406_v15 = vand.u32 15, %v3692_v31  ;;  %v3697_v27 = vshra.s32 %v10141_v30, 16 }
 0x3e7   : > { %4623 = vrot.lane.b32.xlu0 %v4405_v33, %s7355_s8  ;;  %v10413_v33 = vand.u32 15, %v3693_v13  ;;  %12837 = vst [vmem:[#allocation28_spill] sm:$0xff] %v10415_v24  ;;  %v3700_v31 = vshra.s32 %v10188_v1, 16  ;;  %v3699_v13 = vshra.s32 %v10182_v8, 16  ;;  %v10431_v24 = vand.u32 15, %v3698_v25 }
 0x3e8   : > { %v4409_v50 = vand.u32 15, %v4393_v60  ;;  %v10436_v6 = vand.u32 15, %v3697_v27  ;;  %v3705_v60 = vshra.s32 %v10244_v3, 16  ;;  %v4460_v25 = vand.u32 15, %v4444_v52 }
 0x3e9   : > { %v10418_v20 = vpop.permute.xlu0 %3902  ;;  %v10420_v53 = vpop.permute.xlu1 %3900  ;;  %12840 = vst [vmem:[#allocation40_spill] sm:$0xff] %v10431_v24  ;;  %v4445_v24 = vshra.s32 %v10240_v62, 12  ;;  %v3755_v27 = vshra.s32 %v10103_v43, 24  ;;  %v10456_v3 = vand.u32 15, %v3701_v46  ;;  %v4448_v52 = vshra.s32 %v10255_v7, 12 }
 0x3ea   : > { %12838 = vst [vmem:[#allocation44_spill] sm:$0xff] %v10418_v20  ;;  %12839 = vst [vmem:[#allocation54_spill] sm:$0xff] %v10420_v53  ;;  %4629 = vrot.lane.b32.xlu1 %v4408_v0, %s7355_s8  ;;  %v4443_v20 = vshra.s32 %v10219_v42, 12  ;;  %v3704_v53 = vshra.s32 %v10228_v63, 16  ;;  %v3703_v0 = vshra.s32 %v10215_v14, 16  ;;  %v4446_v42 = vshra.s32 %v10232_v41, 12 }
 0x3eb   : > { %4627 = vrot.lane.b32.xlu0 %v4407_v21, %s7355_s8  ;;  %v3754_v21 = vshra.s32 %v10095_v12, 24  ;;  %v3756_v63 = vshra.s32 %v10110_v45, 24  ;;  %v10449_v14 = vand.u32 15, %v3700_v31  ;;  %v3758_v46 = vshra.s32 %v10120_v40, 24 }
 0x3ec   : > { %v4459_v12 = vand.u32 15, %v4443_v20  ;;  %v10458_v41 = vand.u32 15, %v3704_v53  ;;  %v4461_v20 = vand.u32 15, %v4445_v24  ;;  %v3771_v53 = vand.u32 15, %v3755_v27 }
 0x3ed   : > { %v10438_v57 = vpop.permute.xlu0 %3906  ;;  %v10440_v9 = vpop.permute.xlu1 %3904  ;;  %v3770_v31 = vand.u32 15, %v3754_v21  ;;  %v4450_v21 = vshra.s32 %v10279_v59, 12  ;;  %v3759_v24 = vshra.s32 %v12832_v10, 24  ;;  %v4454_v10 = vshra.s32 %v10321_v55, 12 }
 0x3ee   : > { %12841 = vst [vmem:[#allocation34_spill] sm:$0xff] %v10438_v57  ;;  %12842 = vst [vmem:[#allocation46_spill] sm:$0xff] %v10440_v9  ;;  %4633 = vrot.lane.b32.xlu1 %v4410_v16, %s7355_s8  ;;  %v10451_v57 = vand.u32 15, %v3699_v13  ;;  %v10453_v9 = vand.u32 15, %v3702_v48  ;;  %v10460_v16 = vand.u32 15, %v3703_v0  ;;  %v10467_v13 = vand.u32 15, %v3705_v60 }
 0x3ef   : > { %4631 = vrot.lane.b32.xlu0 %v4409_v50, %s7355_s8  ;;  %12844 = vst [vmem:[#allocation33_spill] sm:$0xff] %v10458_v41  ;;  %v4462_v48 = vand.u32 15, %v4446_v42  ;;  %v3772_v50 = vand.u32 15, %v3756_v63  ;;  %v3495_v0 = vrot.slane %v10356_v18, %v12775_v54  ;;  %v3757_v41 = vshra.s32 %v10126_v4, 24 }
 0x3f0   : > { %12843 = vst [vmem:[#allocation17_spill] sm:$0xff] %v10453_v9  ;;  %12846 = vst [vmem:[#allocation65_spill] sm:$0xff] %v10467_v13  ;;  %v4447_v9 = vshra.s32 %v10263_v44, 12  ;;  %v4449_v42 = vshra.s32 %v10284_v2, 12  ;;  %v4464_v60 = vand.u32 15, %v4448_v52  ;;  %v4452_v63 = vshra.s32 %v10301_v39, 12 }
 0x3f1   : > { %v10463_v45 = vpop.permute.xlu0 %3910  ;;  %v10465_v43 = vpop.permute.xlu1 %3908  ;;  %v3762_v18 = vshra.s32 %v10174_v19, 24  ;;  %v3761_v4 = vshra.s32 %v10141_v30, 24  ;;  %v3499_v52 = vrot.slane %v10376_v23, %v12775_v54  ;;  %v4453_v39 = vshra.s32 %v10325_v29, 12 }
 0x3f2   : > { %12845 = vst [vmem:[#allocation52_spill] sm:$0xff] %v10463_v45  ;;  %4637 = vrot.lane.b32.xlu1 %v4460_v25, %s7355_s8  ;;  %v3760_v45 = vshra.s32 %v10161_v11, 24  ;;  %v4463_v27 = vand.u32 15, %v4447_v9  ;;  %v3774_v11 = vand.u32 15, %v3758_v46  ;;  %v3979_v9 = vsel %vm807_vm0, %v10408_v26, %v10308_v38 }
 0x3f3   : > { %4635 = vrot.lane.b32.xlu0 %v4459_v12, %s7355_s8  ;;  %v4451_v12 = vshra.s32 %v10304_v36, 12  ;;  %v3773_v36 = vand.u32 15, %v3757_v41  ;;  %v4466_v19 = vand.u32 15, %v4450_v21  ;;  %v4465_v2 = vand.u32 15, %v4449_v42 }
 0x3f4   : > { %v3775_v59 = vand.u32 15, %v3759_v24  ;;  %v4468_v23 = vand.u32 15, %v4452_v63  ;;  %v3978_v46 = vsel %vm807_vm0, %v10404_v34, %v10293_v49  ;;  %v10501_v13 = vand.u32 15, %v3762_v18 }
 0x3f5   : > { %v3915_v25 = vpop.permute.xlu0 %3914  ;;  %v10481_v40 = vpop.permute.xlu1 %3912  ;;  %v4467_v55 = vand.u32 15, %v4451_v12  ;;  %v10503_v38 = vand.u32 15, %v3761_v4  ;;  %v4016_v41 = vcvt.s32.f32 %v3979_v9  ;;  %v3764_v18 = vshra.s32 %v10188_v1, 24 }
 0x3f6   : > { %4641 = vrot.lane.b32.xlu1 %v4462_v48, %s7355_s8  ;;  %v3994_v30 = vsel %vm807_vm0, %v3770_v31, %v3915_v25  ;;  %v10496_v48 = vand.u32 15, %v3760_v45  ;;  %v10507_v45 = vand.u32 15, %v4454_v10  ;;  %v10509_v31 = vand.u32 15, %v4453_v39 }
 0x3f7   : > { %4639 = vrot.lane.b32.xlu0 %v4461_v20, %s7355_s8  ;;  %v4013_v21 = vcvt.s32.f32 %v3994_v30  ;;  %v4012_v24 = vcvt.s32.f32 %v3978_v46  ;;  %v12847_v25 = vsub.f32 %v9851_v5, %v10352_v56  ;;  %v3980_v9 = vsel %vm807_vm0, %v10406_v15, %v10306_v37  ;;  %v12850_v56 = vld [vmem:[#allocation19_spill] sm:$0xff]  ;;  %v12853_v37 = vld [vmem:[#allocation61_spill] sm:$0xff] }
 0x3f8   : > { %v4456_v15 = vshra.s32 %v12853_v37, 12 }
 0x3f9   : > { %v3919_v54 = vpop.permute.xlu0 %3918  ;;  %v3917_v29 = vpop.permute.xlu1 %3916 }
 0x3fa   : > { %v3995_v26 = vsel %vm807_vm0, %v3771_v53, %v3917_v29  ;;  %v3361_v20 = vpop.f32.mrb[12].mxu0  ;;  %4645 = vrot.lane.b32.xlu1 %v4464_v60, %s7355_s8  ;;  %v3981_v29 = vsel %vm807_vm0, %v10413_v33, %v10329_v58  ;;  %v3763_v60 = vshra.s32 %v10182_v8, 24  ;;  %v3996_v39 = vsel %vm807_vm0, %v3772_v50, %v3919_v54 }
 0x3fb   : > { %v4017_v42 = vcvt.s32.f32 %v3995_v26  ;;  %v3508_v49 = vmul.f32 %v3495_v0, %v3361_v20  ;;  %4643 = vrot.lane.b32.xlu0 %v4463_v27, %s7355_s8  ;;  %v3363_v34 = vpop.f32.mrb[13].mxu0  ;;  %v4076_v58 = vpack.c.bf16 %v4016_v41, %v4012_v24  ;;  %v12848_v33 = vsub.f32 %v12833_v51, %v10361_v32  ;;  %v12854_v51 = vld [vmem:[#allocation13_spill] sm:$0xff] }
 0x3fc   : > { %v3509_v53 = vmul.f32 %v3499_v52, %v3363_v34  ;;  %v3365_v63 = vpop.f32.mrb[14].mxu0  ;;  %v4024_v5 = vcvt.s32.f32 %v3981_v29  ;;  %v3983_v32 = vsel %vm807_vm0, %v10422_v22, %v12854_v51  ;;  %v4020_v26 = vcvt.s32.f32 %v3980_v9  ;;  %v12859_v34 = vld [vmem:[#allocation51_spill] sm:$0xff] }
 0x3fd   : > { %v10521_v12 = vadd.f32 %v3508_v49, %v12847_v25  ;;  %v3512_v27 = vmul.f32 %v3495_v0, %v3365_v63  ;;  %v3923_v4 = vpop.permute.xlu0 %3922  ;;  %v3367_v10 = vpop.f32.mrb[15].mxu0  ;;  %v4077_v1 = vpack.c.bf16 %v4017_v42, %v4013_v21  ;;  %v12851_v0 = vsub.f32 %v12834_v17, %v12850_v56  ;;  %v12857_v21 = vld [vmem:[#allocation60_spill] sm:$0xff]  ;;  %v12858_v49 = vld [vmem:[#allocation55_spill] sm:$0xff] }
 0x3fe   : > { %v10529_v8 = vadd.f32 %v3509_v53, %v12848_v33  ;;  %v3513_v54 = vmul.f32 %v3499_v52, %v3367_v10  ;;  %v3921_v50 = vpop.permute.xlu1 %3920  ;;  %4649 = vrot.lane.b32.xlu1 %v4466_v19, %s7355_s8  ;;  %v4021_v52 = vcvt.s32.f32 %v3996_v39  ;;  %v12855_v19 = vsub.f32 %v12835_v47, %v10372_v61  ;;  %v12860_v39 = vld [vmem:[#allocation10_spill] sm:$0xff] }
 0x3ff   : > { %v10535_v30 = vadd.f32 %v3512_v27, %v12851_v0  ;;  %v3997_v46 = vsel %vm807_vm0, %v3773_v36, %v3921_v50  ;;  %4647 = vrot.lane.b32.xlu0 %v4465_v2, %s7355_s8  ;;  %4155 = vmatprep.subr.bf16.mxu1 %v4077_v1  ;;  %v3998_v36 = vsel %vm807_vm0, %v3774_v11, %v3923_v4  ;;  %v10549_v2 = vand.u32 15, %v3764_v18  ;;  %v12864_v50 = vld [vmem:[#allocation49_spill] sm:$0xff] }
 0x400   : > { %12849 = vst [vmem:[#allocation66_spill] sm:$0xff] %v10529_v8  ;;  %v10546_v41 = vadd.f32 %v3513_v54, %v12855_v19  ;;  %v4025_v17 = vcvt.s32.f32 %v3997_v46  ;;  %4156 = vmatpush1.bf16.msra.mxu1 %v4076_v58  ;;  %v4455_v42 = vshra.s32 %v12857_v21, 12  ;;  %v3982_v22 = vsel %vm807_vm0, %v12859_v34, %v12858_v49  ;;  %v12863_v58 = vld [vmem:[#allocation28_spill] sm:$0xff] }
 0x401   : > { %12852 = vst [vmem:[#allocation25_spill] sm:$0xff] %v10535_v30  ;;  %v3927_v20 = vpop.permute.xlu0 %3926  ;;  %v3779_v47 = vand.u32 15, %v3763_v60  ;;  %v3766_v29 = vshra.s32 %v10193_v28, 24  ;;  %v4080_v53 = vpack.c.bf16 %v4024_v5, %v4020_v26  ;;  %v4032_v63 = vcvt.s32.f32 %v3983_v32  ;;  %v12869_v49 = vld [vmem:[#allocation40_spill] sm:$0xff] }
 0x402   : > { %12856 = vst [vmem:[#allocation19_spill] sm:$0xff] %v10546_v41  ;;  %v3925_v24 = vpop.permute.xlu1 %3924  ;;  %4653 = vrot.lane.b32.xlu1 %v4468_v23, %s7355_s8  ;;  %v4081_v61 = vpack.c.bf16 %v4025_v17, %v4021_v52  ;;  %v3765_v18 = vshra.s32 %v10202_v35, 24  ;;  %v3985_v25 = vsel %vm807_vm0, %v10436_v6, %v12860_v39  ;;  %v4029_v27 = vcvt.s32.f32 %v3998_v36  ;;  %v12872_v39 = vld [vmem:[#allocation46_spill] sm:$0xff] }
 0x403   : > { %v3999_v11 = vsel %vm807_vm0, %v3775_v59, %v3925_v24  ;;  %4651 = vrot.lane.b32.xlu0 %v4467_v55, %s7355_s8  ;;  %v4472_v23 = vand.u32 15, %v4456_v15  ;;  %v4028_v10 = vcvt.s32.f32 %v3982_v22  ;;  %v4000_v28 = vsel %vm807_vm0, %v10496_v48, %v3927_v20  ;;  %v12861_v59 = vld [vmem:[#allocation35_spill] sm:$0xff]  ;;  %v12862_v55 = vld [vmem:[#allocation38_spill] sm:$0xff] }
 0x404   : > { %v4033_v4 = vcvt.s32.f32 %v3999_v11  ;;  %4157 = vmatprep.subr.bf16.mxu1 %v4081_v61  ;;  %v4471_v1 = vand.u32 15, %v4455_v42  ;;  %v4458_v9 = vshra.s32 %v12861_v59, 12  ;;  %v3984_v35 = vsel %vm807_vm0, %v12863_v58, %v12862_v55  ;;  %v12865_v15 = vld [vmem:[#allocation54_spill] sm:$0xff]  ;;  %v12867_v20 = vld [vmem:[#allocation15_spill] sm:$0xff]  ;;  %v12870_v61 = vld [vmem:[#allocation56_spill] sm:$0xff] }
 0x405   : > { %v3931_v60 = vpop.permute.xlu0 %3930  ;;  %4158 = vmatpush1.bf16.msra.mxu1 %v4080_v53  ;;  %v3782_v54 = vand.u32 15, %v3766_v29  ;;  %v4457_v5 = vshra.s32 %v12864_v50, 12  ;;  %v4084_v56 = vpack.c.bf16 %v4032_v63, %v4028_v10  ;;  %v4040_v0 = vcvt.s32.f32 %v3985_v25  ;;  %v12871_v11 = vld [vmem:[#allocation57_spill] sm:$0xff] }
 0x406   : > { %v3929_v33 = vpop.permute.xlu1 %3928  ;;  %4657 = vrot.lane.b32.xlu1 %v10507_v45, %s7355_s8  ;;  %v4085_v6 = vpack.c.bf16 %v4033_v4, %v4029_v27  ;;  %v3781_v46 = vand.u32 15, %v3765_v18  ;;  %v3987_v51 = vsel %vm807_vm0, %v10451_v57, %v12865_v15  ;;  %v4037_v32 = vcvt.s32.f32 %v4000_v28  ;;  %v12866_v45 = vld [vmem:[#allocation26_spill] sm:$0xff] }
 0x407   : > { %v4001_v48 = vsel %vm807_vm0, %v10503_v38, %v3929_v33  ;;  %4655 = vrot.lane.b32.xlu0 %v10509_v31, %s7355_s8  ;;  %v3767_v19 = vshra.s32 %v12866_v45, 24  ;;  %v4036_v17 = vcvt.s32.f32 %v3984_v35  ;;  %v4002_v26 = vsel %vm807_vm0, %v10501_v13, %v3931_v60  ;;  %v12868_v31 = vld [vmem:[#allocation23_spill] sm:$0xff] }
 0x408   : > { %v4041_v52 = vcvt.s32.f32 %v4001_v48  ;;  %4159 = vmatprep.subr.bf16.mxu1 %v4085_v6  ;;  %v4474_v38 = vand.u32 15, %v4458_v9  ;;  %v4508_v42 = vshra.s32 %v12867_v20, 20  ;;  %v3986_v34 = vsel %vm807_vm0, %v12869_v49, %v12868_v31  ;;  %v12875_v6 = vld [vmem:[#allocation41_spill] sm:$0xff] }
 0x409   : > { %v3935_v36 = vpop.permute.xlu0 %3934  ;;  %4160 = vmatpush1.bf16.msra.mxu1 %v4084_v56  ;;  %v4473_v24 = vand.u32 15, %v4457_v5  ;;  %v4507_v29 = vshra.s32 %v12870_v61, 20  ;;  %v4088_v53 = vpack.c.bf16 %v4040_v0, %v4036_v17  ;;  %v4048_v63 = vcvt.s32.f32 %v3987_v51 }
 0x40a   : > { %v3933_v22 = vpop.permute.xlu1 %3932  ;;  %4661 = vrot.lane.b32.xlu1 %v4472_v23, %s7355_s8  ;;  %v4089_v57 = vpack.c.bf16 %v4041_v52, %v4037_v32  ;;  %v3768_v18 = vshra.s32 %v12871_v11, 24  ;;  %v3989_v25 = vsel %vm807_vm0, %v10456_v3, %v12872_v39  ;;  %v4045_v27 = vcvt.s32.f32 %v4002_v26  ;;  %v12877_v26 = vld [vmem:[#allocation17_spill] sm:$0xff] }
 0x40b   : > { %v4003_v13 = vsel %vm807_vm0, %v3779_v47, %v3933_v22  ;;  %4659 = vrot.lane.b32.xlu0 %v4471_v1, %s7355_s8  ;;  %v3783_v23 = vand.u32 15, %v3767_v19  ;;  %v4044_v10 = vcvt.s32.f32 %v3986_v34  ;;  %v4004_v28 = vsel %vm807_vm0, %v10549_v2, %v3935_v36  ;;  %v12873_v47 = vld [vmem:[#allocation12_spill] sm:$0xff]  ;;  %v12880_v39 = vld [vmem:[#allocation33_spill] sm:$0xff] }
 0x40c   : > { %v4049_v4 = vcvt.s32.f32 %v4003_v13  ;;  %4161 = vmatprep.subr.bf16.mxu1 %v4089_v57  ;;  %v4524_v9 = vand.u32 15, %v4508_v42  ;;  %v3769_v55 = vshra.s32 %v12873_v47, 24  ;;  %v12874_v1 = vld [vmem:[#allocation44_spill] sm:$0xff]  ;;  %v4523_v33 = vand.u32 15, %v4507_v29  ;;  %v12878_v57 = vld [vmem:[#allocation65_spill] sm:$0xff]  ;;  %v12882_v47 = vld [vmem:[#allocation47_spill] sm:$0xff] }
 0x40d   : > { %v3939_v60 = vpop.permute.xlu0 %3938  ;;  %4162 = vmatpush1.bf16.msra.mxu1 %v4088_v53  ;;  %v3988_v58 = vsel %vm807_vm0, %v10449_v14, %v12874_v1  ;;  %v4510_v5 = vshra.s32 %v12875_v6, 20  ;;  %v4092_v56 = vpack.c.bf16 %v4048_v63, %v4044_v10  ;;  %v4056_v0 = vcvt.s32.f32 %v3989_v25  ;;  %v12881_v10 = vld [vmem:[#allocation21_spill] sm:$0xff] }
 0x40e   : > { %v3937_v35 = vpop.permute.xlu1 %3936  ;;  %4665 = vrot.lane.b32.xlu1 %v4474_v38, %s7355_s8  ;;  %v4093_v3 = vpack.c.bf16 %v4049_v4, %v4045_v27  ;;  %v4509_v48 = vshra.s32 %v10240_v62, 20  ;;  %v3991_v15 = vsel %vm807_vm0, %v10460_v16, %v10465_v43  ;;  %v4053_v14 = vcvt.s32.f32 %v4004_v28 }
 0x40f   : > { %v4005_v2 = vsel %vm807_vm0, %v3781_v46, %v3937_v35  ;;  %4663 = vrot.lane.b32.xlu0 %v4473_v24, %s7355_s8  ;;  %v3784_v32 = vand.u32 15, %v3768_v18  ;;  %v4052_v52 = vcvt.s32.f32 %v3988_v58  ;;  %v4006_v45 = vsel %vm807_vm0, %v3782_v54, %v3939_v60  ;;  %v12876_v46 = vld [vmem:[#allocation34_spill] sm:$0xff]  ;;  %v12879_v18 = vld [vmem:[#allocation52_spill] sm:$0xff] }
 0x410   : > { %v4057_v51 = vcvt.s32.f32 %v4005_v2  ;;  %4163 = vmatprep.subr.bf16.mxu1 %v4093_v3  ;;  %v3785_v19 = vand.u32 15, %v3769_v55  ;;  %v4512_v17 = vshra.s32 %v10255_v7, 20  ;;  %v3990_v36 = vsel %vm807_vm0, %v12877_v26, %v12876_v46 }
 0x411   : > { %4164 = vmatpush1.bf16.msra.mxu1 %v4092_v56  ;;  %v3943_v38 = vpop.permute.xlu0 %3942  ;;  %v4526_v43 = vand.u32 15, %v4510_v5  ;;  %v4511_v31 = vshra.s32 %v10263_v44, 20  ;;  %v4096_v49 = vpack.c.bf16 %v4056_v0, %v4052_v52  ;;  %v4064_v34 = vcvt.s32.f32 %v3991_v15  ;;  %v12883_v5 = vld [vmem:[#allocation31_spill] sm:$0xff] }
 0x412   : > { %v3941_v42 = vpop.permute.xlu1 %3940  ;;  %4669 = vrot.lane.b32.xlu1 %v4524_v9, %s7355_s8  ;;  %v4097_v16 = vpack.c.bf16 %v4057_v51, %v4053_v14  ;;  %v4525_v22 = vand.u32 15, %v4509_v48  ;;  %v3993_v24 = vsel %vm807_vm0, %v12878_v57, %v10481_v40  ;;  %v4061_v29 = vcvt.s32.f32 %v4006_v45  ;;  %v12884_v48 = vld [vmem:[#allocation36_spill] sm:$0xff]  ;;  %v12885_v51 = vld [vmem:[#allocation63_spill] sm:$0xff]  ;;  %v12886_v45 = vld [vmem:[#allocation62_spill] sm:$0xff] }
 0x413   : > { %v4007_v54 = vsel %vm807_vm0, %v3783_v23, %v3941_v42  ;;  %4667 = vrot.lane.b32.xlu0 %v4523_v33, %s7355_s8  ;;  %v4060_v63 = vcvt.s32.f32 %v3990_v36  ;;  %v4008_v13 = vsel %vm807_vm0, %v3784_v32, %v3943_v38  ;;  %v4528_v11 = vand.u32 15, %v4512_v17  ;;  %v12887_v17 = vld [vmem:[#allocation64_spill] sm:$0xff] }
 0x414   : > { %v4065_v53 = vcvt.s32.f32 %v4007_v54  ;;  %4165 = vmatprep.subr.bf16.mxu1 %v4097_v16  ;;  %v3992_v25 = vsel %vm807_vm0, %v12880_v39, %v12879_v18  ;;  %v4527_v23 = vand.u32 15, %v4511_v31  ;;  %v4514_v28 = vshra.s32 %v12881_v10, 20  ;;  %v7228_v16 = vld [vmem:[%s7447_s28 + $0x2] sm:$0x1] }
 0x415   : > { %4166 = vmatpush1.bf16.msra.mxu1 %v4096_v49  ;;  %v4100_v40 = vpack.c.bf16 %v4064_v34, %v4060_v63  ;;  %v4072_v60 = vcvt.s32.f32 %v3993_v24  ;;  %v4513_v55 = vshra.s32 %v12882_v47, 20  ;;  %v4069_v1 = vcvt.s32.f32 %v4008_v13  ;;  %v12889_v63 = vld [vmem:[#allocation42_spill] sm:$0xff] }
 0x416   : > { %v3945_v27 = vpop.permute.xlu1 %3944  ;;  %4673 = vrot.lane.b32.xlu1 %v4526_v43, %s7355_s8  ;;  %v4101_v4 = vpack.c.bf16 %v4065_v53, %v4061_v29  ;;  %v4068_v35 = vcvt.s32.f32 %v3992_v25  ;;  %v4530_v33 = vand.u32 15, %v4514_v28  ;;  %v4516_v56 = vshra.s32 %v12883_v5, 20  ;;  %v12891_v28 = vld [vmem:[#allocation7_spill] sm:$0xff] }
 0x417   : > { %v4009_v9 = vsel %vm807_vm0, %v3785_v19, %v3945_v27  ;;  %4671 = vrot.lane.b32.xlu0 %v4525_v22, %s7355_s8  ;;  %v4529_v2 = vand.u32 15, %v4513_v55  ;;  %v4515_v15 = vshra.s32 %v12884_v48, 20  ;;  %v4518_v32 = vshra.s32 %v12885_v51, 20 }
 0x418   : > { %v4073_v58 = vcvt.s32.f32 %v4009_v9  ;;  %4167 = vmatprep.subr.bf16.mxu1 %v4101_v4  ;;  %v4104_v0 = vpack.c.bf16 %v4072_v60, %v4068_v35  ;;  %v4532_v14 = vand.u32 15, %v4516_v56  ;;  %v4517_v19 = vshra.s32 %v12886_v45, 20  ;;  %v12892_v9 = vld [vmem:[#allocation20_spill] sm:$0xff]  ;;  %v12896_v35 = vld [vmem:[#allocation27_spill] sm:$0xff] }
 0x419   : > { %4168 = vmatpush1.bf16.msra.mxu1 %v4100_v40  ;;  %v4531_v52 = vand.u32 15, %v4515_v15  ;;  %v12888_v46 = vmov 0   ;;  %v4534_v26 = vand.u32 15, %v4518_v32  ;;  %v4520_v36 = vshra.s32 %v12853_v37, 20  ;;  %v12899_v15 = vld [vmem:[#allocation53_spill] sm:$0xff] }
 0x41a   : > { %4677 = vrot.lane.b32.xlu1 %v4528_v11, %s7355_s8  ;;  %v4105_v3 = vpack.c.bf16 %v4073_v58, %v4069_v1  ;;  %v4533_v38 = vand.u32 15, %v4517_v19  ;;  %v4519_v42 = vshra.s32 %v12857_v21, 20  ;;  %v2640_v43 = vshra.s32 %v7228_v16, 16  ;;  %v12890_v11 = vld [vmem:[#allocation48_spill] sm:$0xff]  ;;  %v12893_v1 = vld [vmem:[#allocation29_spill] sm:$0xff]  ;;  %v12900_v19 = vld [vmem:[#allocation14_spill] sm:$0xff] }
 0x41b   : > { %4675 = vrot.lane.b32.xlu0 %v4527_v23, %s7355_s8  ;;  %v2644_v31 = vshra.s32 %v7228_v16, 24  ;;  %v4536_v49 = vand.u32 15, %v4520_v36  ;;  %v4522_v34 = vshra.s32 %v12861_v59, 20  ;;  %v4521_v22 = vshra.s32 %v12864_v50, 20  ;;  %v12901_v36 = vld [vmem:[#allocation39_spill] sm:$0xff]  ;;  %v12902_v16 = vld [vmem:[#allocation30_spill] sm:$0xff] }
 0x41c   : > { %4169 = vmatprep.subr.bf16.mxu1 %v4105_v3  ;;  %v4535_v54 = vand.u32 15, %v4519_v42  ;;  %v2641_v57 = vand.u32 15, %v2640_v43  ;;  %v7026_v39 = vshrl.u32 %v12867_v20, 28  ;;  %v7025_v27 = vshrl.u32 %v12870_v61, 28  ;;  %v12894_v20 = vld [vmem:[#allocation58_spill] sm:$0xff]  ;;  %v12898_v3 = vld [vmem:[#allocation9_spill] sm:$0xff] }
 0x41d   : > { %4170 = vmatpush1.bf16.msra.mxu1 %v4104_v0  ;;  %v2645_v24 = vand.u32 15, %v2644_v31  ;;  %v4538_v29 = vand.u32 15, %v4522_v34  ;;  %v4537_v53 = vand.u32 15, %v4521_v22  ;;  %v7028_v23 = vshrl.u32 %v12875_v6, 28  ;;  %v12904_v22 = vld [vmem:[#allocation43_spill] sm:$0xff] }
 0x41e   : > { %4681 = vrot.lane.b32.xlu1 %v4530_v33, %s7355_s8  ;;  %v2674_v13 = vsel %vm807_vm0, %v2641_v57, %v12889_v63  ;;  %v7027_v60 = vshrl.u32 %v10240_v62, 28  ;;  %v10666_v58 = vrot.slane %v12894_v20, %v12893_v1  ;;  %v10670_v61 = vrot.slane %v12894_v20, %v12896_v35 }
 0x41f   : > { %4679 = vrot.lane.b32.xlu0 %v4529_v2, %s7355_s8  ;;  %v2675_v18 = vsel %vm807_vm0, %v2645_v24, %v12890_v11  ;;  %v2678_v25 = vcvt.s32.f32 %v2674_v13  ;;  %v7030_v6 = vshrl.u32 %v10255_v7, 28  ;;  %v7029_v56 = vshrl.u32 %v10263_v44, 28 }
 0x420   : > { %4188 = vmatmul.mubr.bf16.vlgmr.msra.gmra.mrb[16].mxu1 %v12887_v17  ;;  %v2679_v4 = vcvt.s32.f32 %v2675_v18  ;;  %12895 = vst [vmem:[#allocation61_spill] sm:$0xff] %v10666_v58  ;;  %12897 = vst [vmem:[#allocation13_spill] sm:$0xff] %v10670_v61  ;;  %v3503_v62 = vrot.slane %v10666_v58, %v12898_v3  ;;  %v3507_v2 = vrot.slane %v10670_v61, %v12898_v3  ;;  %v7031_v42 = vshrl.u32 %v12882_v47, 28 }
 0x421   : > { %4972 = vmatprep.mubr.bf16.mxu1 %v12888_v46  ;;  %v2741_v40 = vmul.f32 %v12891_v28, %v2678_v25  ;;  %v7034_v47 = vshrl.u32 %v12883_v5, 28  ;;  %v7033_v18 = vshrl.u32 %v12884_v48, 28  ;;  %v10713_v5 = vpop.permute.xlu1 %4228  ;;  %v7038_v48 = vshrl.u32 %v12853_v37, 28 }
 0x422   : > { %4685 = vrot.lane.b32.xlu1 %v4532_v14, %s7355_s8  ;;  %v2742_v55 = vmul.f32 %v12892_v9, %v2679_v4  ;;  %v7035_v4 = vshrl.u32 %v12886_v45, 28  ;;  %12910 = vst [vmem:[#allocation38_spill] sm:$0xff] %v10713_v5 }
 0x423   : > { %4683 = vrot.lane.b32.xlu0 %v4531_v52, %s7355_s8  ;;  %v2754_v33 = vrot.slane %v2741_v40, %v12898_v3  ;;  %v7032_v52 = vshrl.u32 %v12881_v10, 28 }
 0x424   : > { %v2758_v0 = vrot.slane %v2742_v55, %v12898_v3 }
 0x425   : > { %v2761_v14 = vmul.f32 %v2754_v33, %v12899_v15  ;;  %v10721_v55 = vpop.permute.xlu1 %4240 }
 0x426   : > { %4689 = vrot.lane.b32.xlu1 %v4534_v26, %s7355_s8  ;;  %v2762_v7 = vmul.f32 %v2758_v0, %v12899_v15  ;;  %v2766_v34 = vmul.f32 %v2758_v0, %v12901_v36  ;;  %12912 = vst [vmem:[#allocation49_spill] sm:$0xff] %v10721_v55  ;;  %v5133_v0 = vld [vmem:[%s7442_s17 + $0x308] sm:$0xff] }
 0x427   : > { %4687 = vrot.lane.b32.xlu0 %v4533_v38, %s7355_s8  ;;  %v2769_v17 = vsub.f32 %v12900_v19, %v2761_v14  ;;  %v2765_v38 = vmul.f32 %v2754_v33, %v12901_v36  ;;  %v7046_v36 = vshrl.u32 %v5133_v0, 28 }
 0x428   : > { %v2770_v43 = vsub.f32 %v12902_v16, %v2762_v7  ;;  %v5229_v7 = vshra.s32 %v5133_v0, 12 }
 0x429   : > { %v2773_v10 = vsub.f32 %v12904_v22, %v2765_v38  ;;  %v5293_v22 = vshra.s32 %v5133_v0, 20 }
 0x42a   : > { %4693 = vrot.lane.b32.xlu1 %v4536_v49, %s7355_s8  ;;  %v5245_v19 = vand.u32 15, %v5229_v7 }
 0x42b   : > { %4691 = vrot.lane.b32.xlu0 %v4535_v54, %s7355_s8 }
 0x42e   : > { %4697 = vrot.lane.b32.xlu1 %v4538_v29, %s7355_s8 }
 0x42f   : > { %4695 = vrot.lane.b32.xlu0 %v4537_v53, %s7355_s8  ;;  %v12906_v53 = vld [vmem:[#allocation37_spill] sm:$0xff] }
 0x430   : > { %v2774_v63 = vsub.f32 %v12906_v53, %v2766_v34  ;;  %v10761_v53 = vld [vmem:[%s7442_s17 + $0x310] sm:$0xff] }
 0x432   : > { %4701 = vrot.lane.b32.xlu1 %v7026_v39, %s7355_s8  ;;  %v10704_v39 = vpop.permute.xlu0 %4222 }
 0x433   : > { %4699 = vrot.lane.b32.xlu0 %v7025_v27, %s7355_s8  ;;  %12908 = vst [vmem:[#allocation10_spill] sm:$0xff] %v10704_v39  ;;  %v7036_v27 = vshrl.u32 %v12885_v51, 28 }
 0x436   : > { %4705 = vrot.lane.b32.xlu1 %v7028_v23, %s7355_s8  ;;  %v7043_v23 = vld [vmem:[%s7447_s28 + $0x5] sm:$0x1]  ;;  %v10715_v28 = vpop.permute.xlu0 %4234 }
 0x437   : > { %4703 = vrot.lane.b32.xlu0 %v7027_v60, %s7355_s8  ;;  %12911 = vst [vmem:[#allocation28_spill] sm:$0xff] %v10715_v28  ;;  %v4993_v40 = vshra.s32 %v7043_v23, 12  ;;  %v7037_v60 = vshrl.u32 %v12857_v21, 28  ;;  %v4989_v9 = vshra.s32 %v7043_v23, 4  ;;  %v10772_v23 = vld [vmem:[%s7447_s28 + $0x3] sm:$0x1] }
 0x438   : > { %12915 = vst [vmem:[#allocation15_spill] sm:$0xff] %v10772_v23  ;;  %v10836_v28 = vld [vmem:[%s7442_s17 + $0x320] sm:$0xff] }
 0x439   : > { %v4994_v33 = vand.u32 15, %v4993_v40 }
 0x43a   : > { %v3404_v32 = vpop.f32.mrb[12].mxu1  ;;  %4709 = vrot.lane.b32.xlu1 %v7030_v6, %s7355_s8  ;;  %v7040_v6 = vshrl.u32 %v12861_v59, 28 }
 0x43b   : > { %v3510_v26 = vmul.f32 %v3503_v62, %v3404_v32  ;;  %4707 = vrot.lane.b32.xlu0 %v7029_v56, %s7355_s8  ;;  %v3406_v44 = vpop.f32.mrb[13].mxu1  ;;  %v4990_v56 = vand.u32 15, %v4989_v9  ;;  %v5012_v14 = vrot.slane %v4994_v33, %v12898_v3  ;;  %v10831_v33 = vld [vmem:[%s7442_s17 + $0x2c8] sm:$0xff] }
 0x43c   : > { %v3511_v31 = vmul.f32 %v3507_v2, %v3406_v44  ;;  %v3408_v49 = vpop.f32.mrb[14].mxu1 }
 0x43d   : > { %v10692_v54 = vadd.f32 %v3510_v26, %v2769_v17  ;;  %v3514_v57 = vmul.f32 %v3503_v62, %v3408_v49  ;;  %v3410_v24 = vpop.f32.mrb[15].mxu1  ;;  %v7039_v62 = vshrl.u32 %v12864_v50, 28  ;;  %v5006_v59 = vrot.slane %v4990_v56, %v12898_v3 }
 0x43e   : > { %v10695_v29 = vadd.f32 %v3511_v31, %v2770_v43  ;;  %v3515_v13 = vmul.f32 %v3507_v2, %v3410_v24  ;;  %4713 = vrot.lane.b32.xlu1 %v7032_v52, %s7355_s8  ;;  %v5132_v2 = vld [vmem:[%s7442_s17 + $0x300] sm:$0xff]  ;;  %v10758_v24 = vld [vmem:[%s7442_s17 + $0x318] sm:$0xff] }
 0x43f   : > { %12903 = vst [vmem:[#allocation60_spill] sm:$0xff] %v10692_v54  ;;  %v10700_v11 = vadd.f32 %v3514_v57, %v2773_v10  ;;  %4711 = vrot.lane.b32.xlu0 %v7031_v42, %s7355_s8  ;;  %v5228_v52 = vshra.s32 %v5132_v2, 12  ;;  %v5165_v42 = vshra.s32 %v5133_v0, 4  ;;  %v7045_v16 = vshrl.u32 %v5132_v2, 28  ;;  %v10786_v0 = vld [vmem:[%s7442_s17 + $0x288] sm:$0xff] }
 0x440   : > { %12905 = vst [vmem:[#allocation55_spill] sm:$0xff] %v10695_v29  ;;  %v10706_v25 = vadd.f32 %v3515_v13, %v2774_v63  ;;  %v5164_v43 = vshra.s32 %v5132_v2, 4  ;;  %v5292_v57 = vshra.s32 %v5132_v2, 20  ;;  %v5309_v13 = vand.u32 15, %v5293_v22  ;;  %v10811_v22 = vld [vmem:[%s7442_s17 + $0x290] sm:$0xff] }
 0x441   : > { %12907 = vst [vmem:[#allocation51_spill] sm:$0xff] %v10700_v11  ;;  %v5244_v26 = vand.u32 15, %v5228_v52  ;;  %v5181_v49 = vand.u32 15, %v5165_v42  ;;  %v4364_v2 = vand.u32 15, %v10786_v0  ;;  %v7048_v52 = vshrl.u32 %v10758_v24, 28 }
 0x442   : > { %12909 = vst [vmem:[#allocation35_spill] sm:$0xff] %v10706_v25  ;;  %4717 = vrot.lane.b32.xlu1 %v7034_v47, %s7355_s8  ;;  %v5180_v10 = vand.u32 15, %v5164_v43  ;;  %v7047_v42 = vshrl.u32 %v10761_v53, 28  ;;  %v4413_v5 = vshra.s32 %v10811_v22, 8  ;;  %v5232_v29 = vshra.s32 %v10836_v28, 12 }
 0x443   : > { %4715 = vrot.lane.b32.xlu0 %v7033_v18, %s7355_s8  ;;  %v5231_v18 = vshra.s32 %v10758_v24, 12 }
 0x444   : > { %v4429_v11 = vand.u32 15, %v4413_v5  ;;  %v5248_v41 = vand.u32 15, %v5232_v29 }
 0x446   : > { %4721 = vrot.lane.b32.xlu1 %v7036_v27, %s7355_s8  ;;  %v5308_v27 = vand.u32 15, %v5292_v57  ;;  %v10815_v57 = vld [vmem:[%s7442_s17 + $0x2a8] sm:$0xff] }
 0x447   : > { %4719 = vrot.lane.b32.xlu0 %v7035_v4, %s7355_s8  ;;  %v5230_v4 = vshra.s32 %v10761_v53, 12  ;;  %v4416_v1 = vshra.s32 %v10815_v57, 8 }
 0x44a   : > { %v10723_v20 = vpop.xlane.xlu0 %4252  ;;  %4725 = vrot.lane.b32.xlu1 %v7038_v48, %s7355_s8  ;;  %v3421_v48 = vshra.s32 %v10772_v23, 8 }
 0x44b   : > { %12913 = vst [vmem:[#allocation54_spill] sm:$0xff] %v10723_v20  ;;  %4723 = vrot.lane.b32.xlu0 %v7037_v60, %s7355_s8  ;;  %v5247_v60 = vand.u32 15, %v5231_v18  ;;  %v10819_v18 = vld [vmem:[%s7442_s17 + $0x2a0] sm:$0xff]  ;;  %v5294_v20 = vshra.s32 %v10761_v53, 20 }
 0x44c   : > { %v10783_v56 = vand.u32 15, %v3421_v48  ;;  %v4412_v48 = vshra.s32 %v10786_v0, 8 }
 0x44e   : > { %4729 = vrot.lane.b32.xlu1 %v7040_v6, %s7355_s8  ;;  %v10732_v15 = vpop.xlane.xlu1 %4254  ;;  %v10735_v32 = vpop.permute.xlu0 %4603  ;;  %v5246_v6 = vand.u32 15, %v5230_v4  ;;  %v10823_v4 = vld [vmem:[%s7442_s17 + $0x2b8] sm:$0xff] }
 0x44f   : > { %12914 = vst [vmem:[#allocation26_spill] sm:$0xff] %v10732_v15  ;;  %4727 = vrot.lane.b32.xlu0 %v7039_v62, %s7355_s8  ;;  %v5167_v62 = vshra.s32 %v10758_v24, 4  ;;  %v4418_v30 = vshra.s32 %v10823_v4, 8 }
 0x451   : > { %v5183_v55 = vand.u32 15, %v5167_v62 }
 0x452   : > { %5013 = vrot.lane.b32.xlu1 %v5012_v14, %s7355_s8  ;;  %v10740_v50 = vpop.permute.xlu1 %4605  ;;  %v10742_v17 = vpop.permute.xlu0 %4607  ;;  %v10790_v14 = vld [vmem:[%s7442_s17 + $0x280] sm:$0xff] }
 0x453   : > { %5007 = vrot.lane.b32.xlu0 %v5006_v59, %s7355_s8  ;;  %v4363_v7 = vand.u32 15, %v10790_v14  ;;  %v4411_v43 = vshra.s32 %v10790_v14, 8  ;;  %v4732_v61 = vsel %vm807_vm0, %v4364_v2, %v10740_v50 }
 0x454   : > { %v4799_v2 = vcvt.s32.f32 %v4732_v61 }
 0x455   : > { %v4427_v39 = vand.u32 15, %v4411_v43  ;;  %v5310_v43 = vand.u32 15, %v5294_v20  ;;  %v4731_v54 = vsel %vm807_vm0, %v4363_v7, %v10735_v32  ;;  %v7049_v20 = vshrl.u32 %v10836_v28, 28 }
 0x456   : > { %5422 = vrot.lane.b32.xlu1 %v5245_v19, %s7355_s8  ;;  %v10746_v44 = vpop.permute.xlu1 %4609  ;;  %v10748_v38 = vpop.permute.xlu0 %4611  ;;  %v4795_v32 = vcvt.s32.f32 %v4731_v54 }
 0x457   : > { %5420 = vrot.lane.b32.xlu0 %v5244_v26, %s7355_s8  ;;  %v10800_v26 = vld [vmem:[%s7442_s17 + $0x298] sm:$0xff] }
 0x458   : > { %v12916_v61 = vand.u32 15, %v10800_v26 }
 0x45a   : > { %5486 = vrot.lane.b32.xlu1 %v7046_v36, %s7355_s8  ;;  %v10752_v31 = vpop.permute.xlu1 %4613  ;;  %v10754_v34 = vpop.permute.xlu0 %4615  ;;  %v10848_v36 = vld [vmem:[%s7442_s17 + $0x2c0] sm:$0xff]  ;;  %v4734_v54 = vsel %vm807_vm0, %v12916_v61, %v10746_v44 }
 0x45b   : > { %5484 = vrot.lane.b32.xlu0 %v7045_v16, %s7355_s8  ;;  %v5166_v16 = vshra.s32 %v10761_v53, 4  ;;  %v4414_v53 = vshra.s32 %v10800_v26, 8 }
 0x45e   : > { %5390 = vrot.lane.b32.xlu1 %v5181_v49, %s7355_s8  ;;  %v10764_v63 = vpop.permute.xlu1 %4617  ;;  %v10766_v47 = vpop.permute.xlu0 %4619  ;;  %v10808_v49 = vld [vmem:[%s7442_s17 + $0x328] sm:$0xff] }
 0x45f   : > { %5388 = vrot.lane.b32.xlu0 %v5180_v10, %s7355_s8  ;;  %v4365_v10 = vand.u32 15, %v10811_v22  ;;  %v5169_v58 = vshra.s32 %v10808_v49, 4 }
 0x461   : > { %v4733_v7 = vsel %vm807_vm0, %v4365_v10, %v10742_v17  ;;  %v5296_v10 = vshra.s32 %v10836_v28, 20 }
 0x462   : > { %5454 = vrot.lane.b32.xlu1 %v5309_v13, %s7355_s8  ;;  %v10776_v40 = vpop.permute.xlu1 %4621  ;;  %v10778_v9 = vpop.permute.xlu0 %4623  ;;  %v5295_v13 = vshra.s32 %v10758_v24, 20  ;;  %v4415_v24 = vshra.s32 %v10819_v18, 8 }
 0x463   : > { %5452 = vrot.lane.b32.xlu0 %v5308_v27, %s7355_s8 }
 0x464   : > { %v5311_v35 = vand.u32 15, %v5295_v13  ;;  %v4431_v5 = vand.u32 15, %v4415_v24  ;;  %v5185_v24 = vand.u32 15, %v5169_v58  ;;  %v12917_v58 = vand.u32 15, %v10819_v18 }
 0x466   : > { %5426 = vrot.lane.b32.xlu1 %v5247_v60, %s7355_s8  ;;  %v10794_v59 = vpop.permute.xlu1 %4625  ;;  %v10797_v19 = vpop.permute.xlu0 %4627  ;;  %v10827_v60 = vld [vmem:[%s7442_s17 + $0x2b0] sm:$0xff] }
 0x467   : > { %5424 = vrot.lane.b32.xlu0 %v5246_v6, %s7355_s8  ;;  %v5233_v6 = vshra.s32 %v10808_v49, 12  ;;  %v4417_v50 = vshra.s32 %v10827_v60, 8 }
 0x469   : > { %v5249_v25 = vand.u32 15, %v5233_v6  ;;  %v4432_v6 = vand.u32 15, %v4416_v1  ;;  %v4433_v8 = vand.u32 15, %v4417_v50  ;;  %v12918_v50 = vand.u32 15, %v10815_v57 }
 0x46a   : > { %5490 = vrot.lane.b32.xlu1 %v7048_v52, %s7355_s8  ;;  %v10839_v27 = vpop.permute.xlu1 %4629  ;;  %v10841_v15 = vpop.permute.xlu0 %4631  ;;  %v5182_v52 = vand.u32 15, %v5166_v16  ;;  %v4428_v16 = vand.u32 15, %v4412_v48  ;;  %v7050_v48 = vshrl.u32 %v10808_v49, 28 }
 0x46b   : > { %5488 = vrot.lane.b32.xlu0 %v7047_v42, %s7355_s8 }
 0x46e   : > { %5394 = vrot.lane.b32.xlu1 %v5183_v55, %s7355_s8  ;;  %v10861_v42 = vpop.permute.xlu1 %4633  ;;  %v4636_v62 = vpop.permute.xlu0 %4635  ;;  %v4430_v55 = vand.u32 15, %v4414_v53  ;;  %v5168_v53 = vshra.s32 %v10836_v28, 4  ;;  %v4807_v28 = vcvt.s32.f32 %v4734_v54 }
 0x46f   : > { %5392 = vrot.lane.b32.xlu0 %v5182_v52, %s7355_s8  ;;  %v4747_v13 = vsel %vm807_vm0, %v4427_v39, %v4636_v62 }
 0x470   : > { %v4796_v62 = vcvt.s32.f32 %v4747_v13  ;;  %v4803_v13 = vcvt.s32.f32 %v4733_v7  ;;  %v4434_v7 = vand.u32 15, %v4418_v30  ;;  %v12919_v30 = vand.u32 15, %v10827_v60 }
 0x472   : > { %5458 = vrot.lane.b32.xlu1 %v5311_v35, %s7355_s8  ;;  %v4638_v39 = vpop.permute.xlu1 %4637  ;;  %v4640_v29 = vpop.permute.xlu0 %4639  ;;  %v5297_v35 = vshra.s32 %v10808_v49, 20 }
 0x473   : > { %v4748_v52 = vsel %vm807_vm0, %v4428_v16, %v4638_v39  ;;  %5456 = vrot.lane.b32.xlu0 %v5310_v43, %s7355_s8  ;;  %v4749_v1 = vsel %vm807_vm0, %v4429_v11, %v4640_v29  ;;  %v4420_v16 = vshra.s32 %v10831_v33, 8  ;;  %v4419_v43 = vshra.s32 %v10848_v36, 8 }
 0x474   : > { %v4800_v17 = vcvt.s32.f32 %v4748_v52  ;;  %v4859_v11 = vpack.c.bf16 %v4799_v2, %v4795_v32  ;;  %v4735_v39 = vsel %vm807_vm0, %v12917_v58, %v10748_v38  ;;  %v4804_v29 = vcvt.s32.f32 %v4749_v1  ;;  %v10906_v58 = vld [vmem:[%s7442_s17 + $0x338] sm:$0xff] }
 0x475   : > { %v4736_v2 = vsel %vm807_vm0, %v12918_v50, %v10752_v31  ;;  %v5313_v1 = vand.u32 15, %v5297_v35  ;;  %v4811_v61 = vcvt.s32.f32 %v4735_v39  ;;  %v10901_v54 = vand.u32 15, %v4420_v16  ;;  %v10909_v31 = vld [vmem:[%s7442_s17 + $0x330] sm:$0xff] }
 0x476   : > { %5430 = vrot.lane.b32.xlu1 %v5249_v25, %s7355_s8  ;;  %v4642_v44 = vpop.permute.xlu1 %4641  ;;  %v4860_v52 = vpack.c.bf16 %v4800_v17, %v4796_v62  ;;  %v4644_v49 = vpop.permute.xlu0 %4643  ;;  %v5184_v62 = vand.u32 15, %v5168_v53  ;;  %v10903_v17 = vand.u32 15, %v5296_v10  ;;  %v4737_v53 = vsel %vm807_vm0, %v12919_v30, %v10754_v34 }
 0x477   : > { %v4750_v32 = vsel %vm807_vm0, %v4430_v55, %v4642_v44  ;;  %5428 = vrot.lane.b32.xlu0 %v5248_v41, %s7355_s8  ;;  %v4751_v38 = vsel %vm807_vm0, %v4431_v5, %v4644_v49  ;;  %v10912_v55 = vld [vmem:[%s7442_s17 + $0x2d0] sm:$0xff]  ;;  %v4815_v5 = vcvt.s32.f32 %v4736_v2  ;;  %v4863_v39 = vpack.c.bf16 %v4807_v28, %v4803_v13  ;;  %v10930_v13 = vld [vmem:[%s7442_s17 + $0x2d8] sm:$0xff] }
 0x478   : > { %v4808_v25 = vcvt.s32.f32 %v4750_v32  ;;  %4897 = vmatprep.subr.bf16.mxu0 %v4860_v52  ;;  %v4421_v41 = vshra.s32 %v10912_v55, 8  ;;  %v4812_v10 = vcvt.s32.f32 %v4751_v38  ;;  %v4435_v49 = vand.u32 15, %v4419_v43 }
 0x479   : > { %4898 = vmatpush1.bf16.msra.mxu0 %v4859_v11  ;;  %v12920_v50 = vand.u32 15, %v10823_v4  ;;  %v5235_v2 = vshra.s32 %v10906_v58, 12  ;;  %v4819_v32 = vcvt.s32.f32 %v4737_v53  ;;  %v4867_v28 = vpack.c.bf16 %v4815_v5, %v4811_v61 }
 0x47a   : > { %5494 = vrot.lane.b32.xlu1 %v7050_v48, %s7355_s8  ;;  %v4646_v35 = vpop.permute.xlu1 %4645  ;;  %v4864_v16 = vpack.c.bf16 %v4808_v25, %v4804_v29  ;;  %v4648_v11 = vpop.permute.xlu0 %4647  ;;  %v5234_v29 = vshra.s32 %v10909_v31, 12 }
 0x47b   : > { %v4752_v44 = vsel %vm807_vm0, %v4432_v6, %v4646_v35  ;;  %5492 = vrot.lane.b32.xlu0 %v7049_v20, %s7355_s8  ;;  %v4753_v52 = vsel %vm807_vm0, %v4433_v8, %v4648_v11  ;;  %v4738_v34 = vsel %vm807_vm0, %v12920_v50, %v10764_v63  ;;  %v4422_v20 = vshra.s32 %v10930_v13, 8  ;;  %v10934_v8 = vld [vmem:[%s7442_s17 + $0x2e0] sm:$0xff] }
 0x47c   : > { %v4816_v48 = vcvt.s32.f32 %v4752_v44  ;;  %4899 = vmatprep.subr.bf16.mxu0 %v4864_v16  ;;  %v4437_v6 = vand.u32 15, %v4421_v41  ;;  %v4423_v43 = vshra.s32 %v10934_v8, 8  ;;  %v12921_v63 = vand.u32 15, %v10848_v36  ;;  %v10950_v44 = vld [vmem:[%s7442_s17 + $0x2e8] sm:$0xff] }
 0x47d   : > { %4900 = vmatpush1.bf16.msra.mxu0 %v4863_v39  ;;  %v4820_v30 = vcvt.s32.f32 %v4753_v52  ;;  %v4823_v16 = vcvt.s32.f32 %v4738_v34  ;;  %v12922_v41 = vand.u32 15, %v10831_v33  ;;  %v5250_v39 = vand.u32 15, %v5234_v29  ;;  %12923 = vst [vmem:[#allocation23_spill] sm:$0xff] %v10950_v44 }
 0x47e   : > { %v4739_v38 = vsel %vm807_vm0, %v12921_v63, %v10766_v47  ;;  %5398 = vrot.lane.b32.xlu1 %v5185_v24, %s7355_s8  ;;  %v4650_v25 = vpop.permute.xlu1 %4649  ;;  %v4868_v53 = vpack.c.bf16 %v4816_v48, %v4812_v10  ;;  %v4652_v35 = vpop.permute.xlu0 %4651  ;;  %v5251_v24 = vand.u32 15, %v5235_v2  ;;  %v4424_v10 = vshra.s32 %v10950_v44, 8 }
 0x47f   : > { %v4740_v11 = vsel %vm807_vm0, %v12922_v41, %v10776_v40  ;;  %v4754_v61 = vsel %vm807_vm0, %v4434_v7, %v4650_v25  ;;  %5396 = vrot.lane.b32.xlu0 %v5184_v62, %s7355_s8  ;;  %v4755_v5 = vsel %vm807_vm0, %v4435_v49, %v4652_v35  ;;  %v4438_v52 = vand.u32 15, %v4422_v20  ;;  %v10955_v40 = vld [vmem:[%s7442_s17 + $0x2f0] sm:$0xff]  ;;  %v10975_v35 = vld [vmem:[%s7442_s17 + $0x2f8] sm:$0xff] }
 0x480   : > { %v4824_v47 = vcvt.s32.f32 %v4754_v61  ;;  %4901 = vmatprep.subr.bf16.mxu0 %v4868_v53  ;;  %v7052_v50 = vshrl.u32 %v10906_v58, 28  ;;  %v4439_v34 = vand.u32 15, %v4423_v43  ;;  %12924 = vst [vmem:[#allocation40_spill] sm:$0xff] %v10955_v40  ;;  %v4425_v7 = vshra.s32 %v10955_v40, 8  ;;  %12927 = vst [vmem:[#allocation56_spill] sm:$0xff] %v10975_v35 }
 0x481   : > { %4902 = vmatpush1.bf16.msra.mxu0 %v4867_v28  ;;  %v4831_v62 = vcvt.s32.f32 %v4740_v11  ;;  %v4827_v48 = vcvt.s32.f32 %v4739_v38  ;;  %v4828_v2 = vcvt.s32.f32 %v4755_v5  ;;  %v4871_v25 = vpack.c.bf16 %v4823_v16, %v4819_v32 }
 0x482   : > { %5462 = vrot.lane.b32.xlu1 %v5313_v1, %s7355_s8  ;;  %v4654_v49 = vpop.permute.xlu1 %4653  ;;  %v4872_v29 = vpack.c.bf16 %v4824_v47, %v4820_v30  ;;  %v4656_v63 = vpop.permute.xlu0 %4655  ;;  %v12925_v20 = vand.u32 15, %v12886_v45  ;;  %v12926_v1 = vand.u32 15, %v12885_v51  ;;  %v4440_v32 = vand.u32 15, %v4424_v10 }
 0x483   : > { %v4756_v43 = vsel %vm807_vm0, %v10901_v54, %v4654_v49  ;;  %5460 = vrot.lane.b32.xlu0 %v10903_v17, %s7355_s8  ;;  %v4757_v38 = vsel %vm807_vm0, %v4437_v6, %v4656_v63  ;;  %v7051_v45 = vshrl.u32 %v10909_v31, 28  ;;  %v4426_v54 = vshra.s32 %v10975_v35, 8 }
 0x484   : > { %v4741_v28 = vsel %vm807_vm0, %v12925_v20, %v10778_v9  ;;  %v4742_v30 = vsel %vm807_vm0, %v12926_v1, %v10794_v59  ;;  %v4832_v53 = vcvt.s32.f32 %v4756_v43  ;;  %4903 = vmatprep.subr.bf16.mxu0 %v4872_v29  ;;  %v5171_v9 = vshra.s32 %v10906_v58, 4 }
 0x485   : > { %4904 = vmatpush1.bf16.msra.mxu0 %v4871_v25  ;;  %v5170_v17 = vshra.s32 %v10909_v31, 4  ;;  %v4441_v6 = vand.u32 15, %v4425_v7  ;;  %v4875_v16 = vpack.c.bf16 %v4831_v62, %v4827_v48  ;;  %v4835_v41 = vcvt.s32.f32 %v4741_v28 }
 0x486   : > { %5434 = vrot.lane.b32.xlu1 %v5251_v24, %s7355_s8  ;;  %v4658_v51 = vpop.permute.xlu1 %4657  ;;  %v4836_v59 = vcvt.s32.f32 %v4757_v38  ;;  %v4876_v11 = vpack.c.bf16 %v4832_v53, %v4828_v2  ;;  %v4660_v61 = vpop.permute.xlu0 %4659  ;;  %v4839_v5 = vcvt.s32.f32 %v4742_v30  ;;  %v12928_v47 = vand.u32 15, %v12857_v21  ;;  %v11000_v30 = vld [vmem:[%s7442_s17 + $0x348] sm:$0xff] }
 0x487   : > { %v4758_v49 = vsel %vm807_vm0, %v4438_v52, %v4658_v51  ;;  %5432 = vrot.lane.b32.xlu0 %v5250_v39, %s7355_s8  ;;  %v4759_v7 = vsel %vm807_vm0, %v4439_v34, %v4660_v61  ;;  %v12929_v62 = vand.u32 15, %v12853_v37  ;;  %v4378_v48 = vand.u32 15, %v10975_v35 }
 0x488   : > { %v4743_v10 = vsel %vm807_vm0, %v12928_v47, %v10797_v19  ;;  %v4377_v2 = vand.u32 15, %v10955_v40  ;;  %v4840_v29 = vcvt.s32.f32 %v4758_v49  ;;  %4905 = vmatprep.subr.bf16.mxu0 %v4876_v11  ;;  %v5187_v21 = vand.u32 15, %v5171_v9  ;;  %v12930_v9 = vld [vmem:[#allocation32_spill] sm:$0xff] }
 0x489   : > { %v4744_v24 = vsel %vm807_vm0, %v12929_v62, %v10839_v27  ;;  %4906 = vmatpush1.bf16.msra.mxu0 %v4875_v16  ;;  %v5186_v19 = vand.u32 15, %v5170_v17  ;;  %v5299_v39 = vshra.s32 %v10906_v58, 20  ;;  %v5298_v52 = vshra.s32 %v10909_v31, 20  ;;  %v11003_v58 = vld [vmem:[%s7442_s17 + $0x340] sm:$0xff]  ;;  %v4345_v62 = vld [vmem:[%s7454_s7 + $0x14] sm:$0xf] }
 0x48a   : > { %v4843_v34 = vcvt.s32.f32 %v4743_v10  ;;  %5498 = vrot.lane.b32.xlu1 %v7052_v50, %s7355_s8  ;;  %v4662_v37 = vpop.permute.xlu1 %4661  ;;  %v4844_v27 = vcvt.s32.f32 %v4759_v7  ;;  %v4880_v63 = vpack.c.bf16 %v4840_v29, %v4836_v59  ;;  %v4442_v25 = vand.u32 15, %v4426_v54  ;;  %v4664_v20 = vpop.permute.xlu0 %4663 }
 0x48b   : > { %v4879_v28 = vpack.c.bf16 %v4839_v5, %v4835_v41  ;;  %v4847_v43 = vcvt.s32.f32 %v4744_v24  ;;  %v4760_v38 = vsel %vm807_vm0, %v4440_v32, %v4662_v37  ;;  %5496 = vrot.lane.b32.xlu0 %v7051_v45, %s7355_s8  ;;  %v4761_v1 = vsel %vm807_vm0, %v4441_v6, %v4664_v20  ;;  %v12932_v45 = vld [vmem:[#allocation24_spill] sm:$0xff]  ;;  %v4346_v24 = vld [vmem:[%s7454_s7 + $0x34] sm:$0xf] }
 0x48c   : > { %v4746_v31 = vsel %vm807_vm0, %v4378_v48, %v10861_v42  ;;  %v4745_v50 = vsel %vm807_vm0, %v4377_v2, %v10841_v15  ;;  %v4848_v53 = vcvt.s32.f32 %v4760_v38  ;;  %4907 = vmatprep.subr.bf16.mxu0 %v4880_v63  ;;  %v12931_v54 = vand.u32 15, %v10772_v23 }
 0x48d   : > { %v3458_v17 = vsel %vm807_vm0, %v10783_v56, %v12932_v45  ;;  %4908 = vmatpush1.bf16.msra.mxu0 %v4879_v28  ;;  %v5315_v6 = vand.u32 15, %v5299_v39  ;;  %v5314_v16 = vand.u32 15, %v5298_v52  ;;  %v4852_v41 = vcvt.s32.f32 %v4761_v1 }
 0x48e   : > { %v3457_v32 = vsel %vm807_vm0, %v12931_v54, %v12930_v9  ;;  %5402 = vrot.lane.b32.xlu1 %v5187_v21, %s7355_s8  ;;  %v4666_v42 = vpop.permute.xlu1 %4665  ;;  %v4884_v15 = vpack.c.bf16 %v4848_v53, %v4844_v27  ;;  %v11017_v51 = vpop.permute.xlu0 %4667  ;;  %v5237_v59 = vshra.s32 %v11000_v30, 12  ;;  %v5236_v11 = vshra.s32 %v11003_v58, 12  ;;  %v12935_v27 = vld [vmem:[#allocation45_spill] sm:$0xff] }
 0x48f   : > { %v4883_v61 = vpack.c.bf16 %v4847_v43, %v4843_v34  ;;  %v4855_v5 = vcvt.s32.f32 %v4746_v31  ;;  %v4851_v47 = vcvt.s32.f32 %v4745_v50  ;;  %v4762_v56 = vsel %vm807_vm0, %v4442_v25, %v4666_v42  ;;  %5400 = vrot.lane.b32.xlu0 %v5186_v19, %s7355_s8  ;;  %v12934_v34 = vld [vmem:[#allocation59_spill] sm:$0xff]  ;;  %v7022_v25 = vld [vmem:[%s7452_s6 + $0x10] sm:$0xf] }
 0x490   : > { %v4856_v10 = vcvt.s32.f32 %v4762_v56  ;;  %4909 = vmatprep.subr.bf16.mxu0 %v4884_v15  ;;  %v3461_v49 = vcvt.s32.f32 %v3457_v32  ;;  %v3462_v7 = vcvt.s32.f32 %v3458_v17  ;;  %v5253_v29 = vand.u32 15, %v5237_v59  ;;  %v12937_v15 = vld [vmem:[#allocation18_spill] sm:$0xff] }
 0x491   : > { %4910 = vmatpush1.bf16.msra.mxu0 %v4883_v61  ;;  %v4887_v39 = vpack.c.bf16 %v4855_v5, %v4851_v47  ;;  %v5252_v19 = vand.u32 15, %v5236_v11  ;;  %v11031_v52 = vcombine.low %v4345_v62, %v4346_v24  ;;  %v7054_v28 = vshrl.u32 %v11000_v30, 28  ;;  %v12939_v47 = vld [vmem:[#allocation50_spill] sm:$0xff] }
 0x492   : > { %5466 = vrot.lane.b32.xlu1 %v5315_v6, %s7355_s8  ;;  %v11026_v48 = vpop.permute.xlu1 %4669  ;;  %v4888_v2 = vpack.c.bf16 %v4856_v10, %v4852_v41  ;;  %v11028_v21 = vpop.permute.xlu0 %4671  ;;  %v3524_v37 = vmul.f32 %v12934_v34, %v3461_v49  ;;  %v3525_v63 = vmul.f32 %v12935_v27, %v3462_v7  ;;  %v5173_v38 = vshra.s32 %v11000_v30, 4  ;;  %v11062_v41 = vld [vmem:[%s7442_s17 + $0x358] sm:$0xff] }
 0x493   : > { %5464 = vrot.lane.b32.xlu0 %v5314_v16, %s7355_s8  ;;  %12933 = vst [vmem:[#allocation57_spill] sm:$0xff] %v11031_v52  ;;  %v7053_v1 = vshrl.u32 %v11003_v58, 28  ;;  %v5172_v31 = vshra.s32 %v11003_v58, 4  ;;  %v11046_v50 = vunpack.c.l.bf16 %v7022_v25  ;;  %v5301_v6 = vshra.s32 %v11000_v30, 20  ;;  %v11076_v30 = vld [vmem:[%s7442_s17 + $0x350] sm:$0xff] }
 0x494   : > { %4911 = vmatprep.subr.bf16.mxu0 %v4888_v2  ;;  %v3531_v53 = vrot.slane %v3524_v37, %v12898_v3  ;;  %v3535_v9 = vrot.slane %v3525_v63, %v12898_v3  ;;  %v5189_v45 = vand.u32 15, %v5173_v38  ;;  %v5300_v42 = vshra.s32 %v11003_v58, 20  ;;  %v12941_v37 = vld [vmem:[#allocation11_spill] sm:$0xff] }
 0x495   : > { %4912 = vmatpush1.bf16.msra.mxu0 %v4887_v39  ;;  %12936 = vst [vmem:[#allocation46_spill] sm:$0xff] %v11046_v50  ;;  %v5188_v16 = vand.u32 15, %v5172_v31  ;;  %v11072_v61 = vrot.slane %v11046_v50, %v12898_v3  ;;  %v4476_v5 = vshra.s32 %v10786_v0, 16  ;;  %v4475_v10 = vshra.s32 %v10790_v14, 16 }
 0x496   : > { %5438 = vrot.lane.b32.xlu1 %v5253_v29, %s7355_s8  ;;  %v11037_v20 = vpop.permute.xlu1 %4673  ;;  %v11040_v43 = vpop.permute.xlu0 %4675  ;;  %v11065_v59 = vmul.f32 %v3531_v53, %v12937_v15  ;;  %v11068_v11 = vmul.f32 %v3535_v9, %v12937_v15  ;;  %v11079_v56 = vmul.f32 %v3531_v53, %v12939_v47  ;;  %v11082_v58 = vmul.f32 %v3535_v9, %v12939_v47  ;;  %v12944_v53 = vld [vmem:[#allocation25_spill] sm:$0xff] }
 0x497   : > { %5436 = vrot.lane.b32.xlu0 %v5252_v19, %s7355_s8  ;;  %12938 = vst [vmem:[#allocation12_spill] sm:$0xff] %v11072_v61  ;;  %v4478_v49 = vshra.s32 %v10800_v26, 16  ;;  %v4477_v7 = vshra.s32 %v10811_v22, 16  ;;  %v4480_v62 = vshra.s32 %v10815_v57, 16  ;;  %v4479_v24 = vshra.s32 %v10819_v18, 16 }
 0x498   : > { %4930 = vmatmul.mubr.bf16.vlgmr.msra.gmra.mrb[20].mxu0 %v11031_v52  ;;  %v4482_v2 = vshra.s32 %v10823_v4, 16  ;;  %v5317_v39 = vand.u32 15, %v5301_v6  ;;  %v5239_v34 = vshra.s32 %v11062_v41, 12  ;;  %v11098_v27 = vrot.slane %v11046_v50, %v12941_v37 }
 0x499   : > { %5714 = vmatprep.mubr.bf16.mxu0 %v12888_v46  ;;  %v4481_v63 = vshra.s32 %v10827_v60, 16  ;;  %v5316_v25 = vand.u32 15, %v5300_v42  ;;  %v11111_v54 = vand.u32 15, %v4476_v5  ;;  %v11115_v37 = vand.u32 15, %v4478_v49 }
 0x49a   : > { %5502 = vrot.lane.b32.xlu1 %v7054_v28, %s7355_s8  ;;  %v11054_v32 = vpop.permute.xlu1 %4677  ;;  %v11056_v17 = vpop.permute.xlu0 %4679  ;;  %12942 = vst [vmem:[#allocation41_spill] sm:$0xff] %v11098_v27  ;;  %v5238_v28 = vshra.s32 %v11076_v30, 12  ;;  %v11117_v42 = vand.u32 15, %v4477_v7  ;;  %v11119_v50 = vand.u32 15, %v4480_v62  ;;  %v11121_v38 = vand.u32 15, %v4479_v24 }
 0x49b   : > { %5500 = vrot.lane.b32.xlu0 %v7053_v1, %s7355_s8  ;;  %v12943_v1 = vld [vmem:[#allocation66_spill] sm:$0xff]  ;;  %v11123_v47 = vand.u32 15, %v4482_v2  ;;  %v5255_v31 = vand.u32 15, %v5239_v34  ;;  %v11130_v5 = vand.u32 15, %v4481_v63  ;;  %v4483_v49 = vshra.s32 %v10848_v36, 16 }
 0x49c   : > { %v5254_v7 = vand.u32 15, %v5238_v28  ;;  %v4486_v62 = vshra.s32 %v10930_v13, 16  ;;  %v4485_v24 = vshra.s32 %v10912_v55, 16  ;;  %v4488_v2 = vshra.s32 %v10950_v44, 16 }
 0x49d   : > { %v7056_v34 = vshrl.u32 %v11062_v41, 28  ;;  %v5175_v63 = vshra.s32 %v11062_v41, 4  ;;  %v4490_v15 = vshra.s32 %v10975_v35, 16  ;;  %v5174_v46 = vshra.s32 %v11076_v30, 4 }
 0x49e   : > { %5406 = vrot.lane.b32.xlu1 %v5189_v45, %s7355_s8  ;;  %v11091_v29 = vpop.permute.xlu1 %4681  ;;  %v11093_v19 = vpop.permute.xlu0 %4683  ;;  %v12945_v45 = vld [vmem:[#allocation19_spill] sm:$0xff]  ;;  %v4489_v52 = vshra.s32 %v10955_v40, 16  ;;  %v5303_v23 = vshra.s32 %v11062_v41, 20  ;;  %v5302_v44 = vshra.s32 %v11076_v30, 20  ;;  %v11154_v35 = vand.u32 15, %v4483_v49 }
 0x49f   : > { %12940 = vst [vmem:[#allocation44_spill] sm:$0xff] %v11093_v19  ;;  %5404 = vrot.lane.b32.xlu0 %v5188_v16, %s7355_s8  ;;  %v11113_v16 = vand.u32 15, %v4475_v10  ;;  %v4484_v10 = vshra.s32 %v10831_v33, 16  ;;  %v11163_v40 = vand.u32 15, %v4488_v2  ;;  %v5191_v49 = vand.u32 15, %v5175_v63 }
 0x4a0   : > { %12950 = vst [vmem:[#allocation33_spill] sm:$0xff] %v11154_v35  ;;  %v11173_v35 = vand.u32 15, %v4490_v15  ;;  %v5319_v2 = vand.u32 15, %v5303_v23  ;;  %v4543_v63 = vshra.s32 %v10819_v18, 24 }
 0x4a1   : > { %v11152_v19 = vand.u32 15, %v4484_v10  ;;  %12951 = vst [vmem:[#allocation21_spill] sm:$0xff] %v11163_v40  ;;  %v11171_v10 = vld [vmem:[%s7442_s17 + $0x360] sm:$0xff] }
 0x4a2   : > { %5470 = vrot.lane.b32.xlu1 %v5317_v39, %s7355_s8  ;;  %v11126_v9 = vpop.permute.xlu1 %4685  ;;  %v11128_v6 = vpop.permute.xlu0 %4687  ;;  %v4487_v39 = vshra.s32 %v10934_v8, 16  ;;  %12953 = vst [vmem:[#allocation31_spill] sm:$0xff] %v11173_v35 }
 0x4a3   : > { %12946 = vst [vmem:[#allocation34_spill] sm:$0xff] %v11126_v9  ;;  %12947 = vst [vmem:[#allocation17_spill] sm:$0xff] %v11128_v6  ;;  %5468 = vrot.lane.b32.xlu0 %v5316_v25, %s7355_s8  ;;  %v4540_v6 = vshra.s32 %v10786_v0, 24  ;;  %v11159_v9 = vand.u32 15, %v4486_v62  ;;  %v11168_v0 = vld [vmem:[%s7442_s17 + $0x368] sm:$0xff]  ;;  %v11179_v62 = vand.u32 15, %v4489_v52 }
 0x4a4   : > { %v11165_v41 = vand.u32 15, %v4487_v39  ;;  %v5241_v15 = vshra.s32 %v11168_v0, 12  ;;  %v4544_v52 = vshra.s32 %v10815_v57, 24  ;;  %v5177_v23 = vshra.s32 %v11168_v0, 4 }
 0x4a5   : > { %12954 = vst [vmem:[#allocation36_spill] sm:$0xff] %v11179_v62  ;;  %v4556_v39 = vand.u32 15, %v4540_v6  ;;  %v4763_v57 = vsel %vm807_vm0, %v11113_v16, %v11017_v51  ;;  %v4559_v16 = vand.u32 15, %v4543_v63 }
 0x4a6   : > { %5442 = vrot.lane.b32.xlu1 %v5255_v31, %s7355_s8  ;;  %v11144_v25 = vpop.permute.xlu1 %4689  ;;  %v11146_v28 = vpop.permute.xlu0 %4691  ;;  %v7055_v31 = vshrl.u32 %v11076_v30, 28  ;;  %12952 = vst [vmem:[#allocation47_spill] sm:$0xff] %v11165_v41  ;;  %v4542_v30 = vshra.s32 %v10800_v26, 24  ;;  %v5318_v41 = vand.u32 15, %v5302_v44  ;;  %v4541_v26 = vshra.s32 %v10811_v22, 24 }
 0x4a7   : > { %12948 = vst [vmem:[#allocation65_spill] sm:$0xff] %v11144_v25  ;;  %12949 = vst [vmem:[#allocation52_spill] sm:$0xff] %v11146_v28  ;;  %5440 = vrot.lane.b32.xlu0 %v5254_v7, %s7355_s8  ;;  %v4539_v25 = vshra.s32 %v10790_v14, 24  ;;  %v11161_v28 = vand.u32 15, %v4485_v24  ;;  %v5190_v7 = vand.u32 15, %v5174_v46  ;;  %v5240_v46 = vshra.s32 %v11171_v10, 12 }
 0x4a8   : > { %v4284_v44 = vrot.slane %v11098_v27, %v12898_v3  ;;  %v4558_v6 = vand.u32 15, %v4542_v30  ;;  %v4764_v22 = vsel %vm807_vm0, %v11111_v54, %v11026_v48  ;;  %v5176_v27 = vshra.s32 %v11171_v10, 4 }
 0x4a9   : > { %v4555_v40 = vand.u32 15, %v4539_v25  ;;  %v4545_v30 = vshra.s32 %v10827_v60, 24  ;;  %v5257_v25 = vand.u32 15, %v5241_v15  ;;  %v4557_v48 = vand.u32 15, %v4541_v26 }
 0x4aa   : > { %5506 = vrot.lane.b32.xlu1 %v7056_v34, %s7355_s8  ;;  %v11177_v14 = vpop.permute.xlu1 %4693  ;;  %v11181_v24 = vpop.permute.xlu0 %4695  ;;  %v4280_v34 = vrot.slane %v11072_v61, %v12898_v3  ;;  %v5256_v3 = vand.u32 15, %v5240_v46  ;;  %v11209_v54 = vand.u32 15, %v4544_v52  ;;  %v4801_v62 = vcvt.s32.f32 %v4764_v22 }
 0x4ab   : > { %12955 = vst [vmem:[#allocation63_spill] sm:$0xff] %v11181_v24  ;;  %5504 = vrot.lane.b32.xlu0 %v7055_v31, %s7355_s8  ;;  %v4546_v31 = vshra.s32 %v10823_v4, 24  ;;  %v4797_v24 = vcvt.s32.f32 %v4763_v57  ;;  %v5305_v60 = vshra.s32 %v11168_v0, 20  ;;  %v11221_v46 = vand.u32 15, %v5176_v27 }
 0x4ac   : > { %v4561_v26 = vand.u32 15, %v4545_v30  ;;  %v4548_v22 = vshra.s32 %v10831_v33, 24  ;;  %v4547_v57 = vshra.s32 %v10848_v36, 24  ;;  %v12957_v36 = vsub.f32 %v12943_v1, %v11068_v11 }
 0x4ad   : > { %v11214_v35 = vand.u32 15, %v4546_v31 }
 0x4ae   : > { %5410 = vrot.lane.b32.xlu1 %v5191_v49, %s7355_s8  ;;  %v11203_v18 = vpop.permute.xlu1 %4697  ;;  %v4700_v61 = vpop.permute.xlu0 %4699  ;;  %v11212_v49 = vand.u32 15, %v5177_v23 }
 0x4af   : > { %5408 = vrot.lane.b32.xlu0 %v5190_v7, %s7355_s8  ;;  %v4779_v4 = vsel %vm807_vm0, %v4555_v40, %v4700_v61  ;;  %v4765_v40 = vsel %vm807_vm0, %v11117_v42, %v11028_v21  ;;  %v4766_v21 = vsel %vm807_vm0, %v11115_v37, %v11037_v20 }
 0x4b0   : > { %v4798_v7 = vcvt.s32.f32 %v4779_v4  ;;  %v4805_v4 = vcvt.s32.f32 %v4765_v40 }
 0x4b2   : > { %5474 = vrot.lane.b32.xlu1 %v5319_v2, %s7355_s8  ;;  %v4702_v61 = vpop.permute.xlu1 %4701  ;;  %v4146_v15 = vpop.f32.mrb[16].mxu0 }
 0x4b3   : > { %v4780_v52 = vsel %vm807_vm0, %v4556_v39, %v4702_v61  ;;  %5472 = vrot.lane.b32.xlu0 %v5318_v41, %s7355_s8  ;;  %v4293_v63 = vmul.f32 %v4280_v34, %v4146_v15  ;;  %v4148_v23 = vpop.f32.mrb[17].mxu0  ;;  %v4704_v31 = vpop.permute.xlu0 %4703  ;;  %v4861_v39 = vpack.c.bf16 %v4801_v62, %v4797_v24  ;;  %v12956_v41 = vsub.f32 %v10521_v12, %v11065_v59  ;;  %v11243_v62 = vld [vmem:[%s7442_s17 + $0x378] sm:$0xff] }
 0x4b4   : > { %v4802_v42 = vcvt.s32.f32 %v4780_v52  ;;  %v4294_v27 = vmul.f32 %v4284_v44, %v4148_v23  ;;  %v4150_v2 = vpop.f32.mrb[18].mxu0  ;;  %v4781_v30 = vsel %vm807_vm0, %v4557_v48, %v4704_v31  ;;  %v4809_v24 = vcvt.s32.f32 %v4766_v21 }
 0x4b5   : > { %v11234_v61 = vadd.f32 %v4293_v63, %v12956_v41  ;;  %v4297_v33 = vmul.f32 %v4280_v34, %v4150_v2  ;;  %v4152_v15 = vpop.f32.mrb[19].mxu0  ;;  %v4806_v52 = vcvt.s32.f32 %v4781_v30  ;;  %v4767_v12 = vsel %vm807_vm0, %v11121_v38, %v11040_v43  ;;  %v11270_v63 = vld [vmem:[%s7442_s17 + $0x370] sm:$0xff] }
 0x4b6   : > { %v11239_v51 = vadd.f32 %v4294_v27, %v12957_v36  ;;  %v4298_v20 = vmul.f32 %v4284_v44, %v4152_v15  ;;  %5446 = vrot.lane.b32.xlu1 %v5257_v25, %s7355_s8  ;;  %v4706_v37 = vpop.permute.xlu1 %4705  ;;  %v4862_v48 = vpack.c.bf16 %v4802_v42, %v4798_v7  ;;  %v12958_v59 = vsub.f32 %v12944_v53, %v11079_v56  ;;  %v12962_v15 = vld [vmem:[#allocation34_spill] sm:$0xff]  ;;  %v12963_v36 = vld [vmem:[#allocation44_spill] sm:$0xff] }
 0x4b7   : > { %v4782_v11 = vsel %vm807_vm0, %v4558_v6, %v4706_v37  ;;  %5444 = vrot.lane.b32.xlu0 %v5256_v3, %s7355_s8  ;;  %v4708_v1 = vpop.permute.xlu0 %4707  ;;  %v4768_v44 = vsel %vm807_vm0, %v11119_v50, %v11054_v32  ;;  %v12959_v25 = vsub.f32 %v12945_v45, %v11082_v58  ;;  %v5321_v38 = vand.u32 15, %v5305_v60 }
 0x4b8   : > { %v11251_v34 = vadd.f32 %v4297_v33, %v12958_v59  ;;  %v4810_v43 = vcvt.s32.f32 %v4782_v11  ;;  %4940 = vmatprep.subr.bf16.mxu1 %v4862_v48  ;;  %v4783_v56 = vsel %vm807_vm0, %v4559_v16, %v4708_v1  ;;  %v4564_v53 = vand.u32 15, %v4548_v22 }
 0x4b9   : > { %v11261_v40 = vadd.f32 %v4298_v20, %v12959_v25  ;;  %4941 = vmatpush1.bf16.msra.mxu1 %v4861_v39  ;;  %v5304_v3 = vshra.s32 %v11171_v10, 20  ;;  %v5243_v6 = vshra.s32 %v11243_v62, 12  ;;  %v12960_v7 = vshrl.u32 %v11168_v0, 28  ;;  %v12964_v20 = vld [vmem:[#allocation33_spill] sm:$0xff] }
 0x4ba   : > { %v4710_v50 = vpop.permute.xlu1 %4709  ;;  %v4814_v32 = vcvt.s32.f32 %v4783_v56  ;;  %v4866_v58 = vpack.c.bf16 %v4810_v43, %v4806_v52  ;;  %v4563_v45 = vand.u32 15, %v4547_v57  ;;  %v4549_v23 = vshra.s32 %v10912_v55, 24 }
 0x4bb   : > { %5510 = vrot.lane.b32.xlu1 %v12960_v7, %s7355_s8  ;;  %v4865_v16 = vpack.c.bf16 %v4809_v24, %v4805_v4  ;;  %v4817_v31 = vcvt.s32.f32 %v4768_v44  ;;  %v4813_v60 = vcvt.s32.f32 %v4767_v12  ;;  %v4784_v22 = vsel %vm807_vm0, %v11209_v54, %v4710_v50  ;;  %v4712_v0 = vpop.permute.xlu0 %4711  ;;  %v12965_v12 = vld [vmem:[#allocation23_spill] sm:$0xff]  ;;  %v12966_v44 = vld [vmem:[#allocation40_spill] sm:$0xff]  ;;  %v12967_v50 = vld [vmem:[#allocation65_spill] sm:$0xff] }
 0x4bc   : > { %v12961_v21 = vshrl.u32 %v11171_v10, 28  ;;  %v4770_v42 = vsel %vm807_vm0, %v11123_v47, %v11091_v29  ;;  %v4769_v57 = vsel %vm807_vm0, %v11130_v5, %v11056_v17  ;;  %v4818_v55 = vcvt.s32.f32 %v4784_v22  ;;  %4942 = vmatprep.subr.bf16.mxu1 %v4866_v58  ;;  %v12968_v58 = vld [vmem:[#allocation17_spill] sm:$0xff] }
 0x4bd   : > { %v4785_v27 = vsel %vm807_vm0, %v4561_v26, %v4712_v0  ;;  %4943 = vmatpush1.bf16.msra.mxu1 %v4865_v16  ;;  %v5320_v2 = vand.u32 15, %v5304_v3  ;;  %v5259_v54 = vand.u32 15, %v5243_v6  ;;  %v4550_v30 = vshra.s32 %v10930_v13, 24 }
 0x4be   : > { %5508 = vrot.lane.b32.xlu0 %v12961_v21, %s7355_s8  ;;  %v5242_v10 = vshra.s32 %v11270_v63, 12  ;;  %v4714_v39 = vpop.permute.xlu1 %4713  ;;  %v4822_v47 = vcvt.s32.f32 %v4785_v27  ;;  %v4870_v29 = vpack.c.bf16 %v4818_v55, %v4814_v32  ;;  %v4565_v4 = vand.u32 15, %v4549_v23 }
 0x4bf   : > { %5414 = vrot.lane.b32.xlu1 %v11212_v49, %s7355_s8  ;;  %v4551_v17 = vshra.s32 %v10934_v8, 24  ;;  %v4869_v5 = vpack.c.bf16 %v4817_v31, %v4813_v60  ;;  %v4825_v41 = vcvt.s32.f32 %v4770_v42  ;;  %v4821_v33 = vcvt.s32.f32 %v4769_v57  ;;  %v4716_v13 = vpop.permute.xlu0 %4715  ;;  %v12969_v60 = vld [vmem:[#allocation56_spill] sm:$0xff] }
 0x4c0   : > { %v4786_v26 = vsel %vm807_vm0, %v11214_v35, %v4714_v39  ;;  %v4772_v49 = vsel %vm807_vm0, %v11152_v19, %v12962_v15  ;;  %v4771_v37 = vsel %vm807_vm0, %v12964_v20, %v12963_v36  ;;  %4944 = vmatprep.subr.bf16.mxu1 %v4870_v29  ;;  %v4787_v8 = vsel %vm807_vm0, %v4563_v45, %v4716_v13  ;;  %v11332_v36 = vld [vmem:[%s7442_s17 + $0x388] sm:$0xff]  ;;  %v11335_v20 = vld [vmem:[%s7442_s17 + $0x300] sm:$0xff] }
 0x4c1   : > { %v4826_v52 = vcvt.s32.f32 %v4786_v26  ;;  %4945 = vmatpush1.bf16.msra.mxu1 %v4869_v5  ;;  %v4566_v48 = vand.u32 15, %v4550_v30  ;;  %v5258_v24 = vand.u32 15, %v5242_v10  ;;  %v7060_v35 = vshrl.u32 %v11243_v62, 28  ;;  %v12970_v10 = vld [vmem:[#allocation21_spill] sm:$0xff] }
 0x4c2   : > { %5412 = vrot.lane.b32.xlu0 %v11221_v46, %s7355_s8  ;;  %v4552_v46 = vshra.s32 %v12965_v12, 24  ;;  %v4718_v59 = vpop.permute.xlu1 %4717  ;;  %v4830_v11 = vcvt.s32.f32 %v4787_v8  ;;  %v4567_v1 = vand.u32 15, %v4551_v17  ;;  %v4553_v25 = vshra.s32 %v12966_v44, 24  ;;  %v7247_v44 = vld [vmem:[%s7447_s28 + $0x3] sm:$0x1] }
 0x4c3   : > { %5478 = vrot.lane.b32.xlu1 %v5321_v38, %s7355_s8  ;;  %v4874_v19 = vpack.c.bf16 %v4826_v52, %v4822_v47  ;;  %v4873_v43 = vpack.c.bf16 %v4825_v41, %v4821_v33  ;;  %v4833_v56 = vcvt.s32.f32 %v4772_v49  ;;  %v4829_v3 = vcvt.s32.f32 %v4771_v37  ;;  %v4720_v7 = vpop.permute.xlu0 %4719  ;;  %v12972_v47 = vld [vmem:[#allocation47_spill] sm:$0xff] }
 0x4c4   : > { %v4788_v6 = vsel %vm807_vm0, %v4564_v53, %v4718_v59  ;;  %v4774_v32 = vsel %vm807_vm0, %v11159_v9, %v12967_v50  ;;  %v4773_v38 = vsel %vm807_vm0, %v11161_v28, %v12968_v58  ;;  %v4789_v23 = vsel %vm807_vm0, %v4565_v4, %v4720_v7  ;;  %v12975_v59 = vld [vmem:[#allocation36_spill] sm:$0xff] }
 0x4c5   : > { %v4834_v45 = vcvt.s32.f32 %v4788_v6  ;;  %4946 = vmatprep.subr.bf16.mxu1 %v4874_v19  ;;  %v4568_v16 = vand.u32 15, %v4552_v46  ;;  %v7059_v31 = vshrl.u32 %v11270_v63, 28  ;;  %v5179_v53 = vshra.s32 %v11243_v62, 4  ;;  %v12974_v46 = vld [vmem:[#allocation63_spill] sm:$0xff]  ;;  %v11354_v50 = vld [vmem:[%s7442_s17 + $0x308] sm:$0xff] }
 0x4c6   : > { %5476 = vrot.lane.b32.xlu0 %v5320_v2, %s7355_s8  ;;  %4947 = vmatpush1.bf16.msra.mxu1 %v4873_v43  ;;  %v4554_v22 = vshra.s32 %v12969_v60, 24  ;;  %v4722_v21 = vpop.permute.xlu1 %4721  ;;  %v4838_v9 = vcvt.s32.f32 %v4789_v23  ;;  %v5178_v42 = vshra.s32 %v11270_v63, 4  ;;  %v4569_v28 = vand.u32 15, %v4553_v25 }
 0x4c7   : > { %5450 = vrot.lane.b32.xlu1 %v5259_v54, %s7355_s8  ;;  %v4878_v0 = vpack.c.bf16 %v4834_v45, %v4830_v11  ;;  %v4877_v57 = vpack.c.bf16 %v4833_v56, %v4829_v3  ;;  %v4841_v55 = vcvt.s32.f32 %v4774_v32  ;;  %v4837_v27 = vcvt.s32.f32 %v4773_v38  ;;  %v4724_v30 = vpop.permute.xlu0 %4723  ;;  %v12971_v54 = vld [vmem:[#allocation52_spill] sm:$0xff] }
 0x4c8   : > { %v4790_v2 = vsel %vm807_vm0, %v4566_v48, %v4722_v21  ;;  %v4776_v39 = vsel %vm807_vm0, %v12970_v10, %v11177_v14  ;;  %v4775_v29 = vsel %vm807_vm0, %v12972_v47, %v12971_v54  ;;  %v4791_v17 = vsel %vm807_vm0, %v4567_v1, %v4724_v30  ;;  %v12976_v21 = vld [vmem:[#allocation15_spill] sm:$0xff] }
 0x4c9   : > { %v4842_v4 = vcvt.s32.f32 %v4790_v2  ;;  %4948 = vmatprep.subr.bf16.mxu1 %v4878_v0  ;;  %v5195_v5 = vand.u32 15, %v5179_v53  ;;  %v4570_v41 = vand.u32 15, %v4554_v22  ;;  %v5307_v33 = vshra.s32 %v11243_v62, 20 }
 0x4ca   : > { %5448 = vrot.lane.b32.xlu0 %v5258_v24, %s7355_s8  ;;  %4949 = vmatpush1.bf16.msra.mxu1 %v4877_v57  ;;  %v5306_v26 = vshra.s32 %v11270_v63, 20  ;;  %v4726_v14 = vpop.permute.xlu1 %4725  ;;  %v4846_v13 = vcvt.s32.f32 %v4791_v17  ;;  %v5194_v49 = vand.u32 15, %v5178_v42  ;;  %v5196_v37 = vshra.s32 %v11335_v20, 8  ;;  %v11341_v24 = vld [vmem:[%s7442_s17 + $0x380] sm:$0xff]  ;;  %v12979_v17 = vld [vmem:[#allocation22_spill] sm:$0xff] }
 0x4cb   : > { %5514 = vrot.lane.b32.xlu1 %v7060_v35, %s7355_s8  ;;  %v4882_v15 = vpack.c.bf16 %v4842_v4, %v4838_v9  ;;  %v4881_v52 = vpack.c.bf16 %v4841_v55, %v4837_v27  ;;  %v4849_v8 = vcvt.s32.f32 %v4776_v39  ;;  %v4845_v48 = vcvt.s32.f32 %v4775_v29  ;;  %v4728_v63 = vpop.permute.xlu0 %4727  ;;  %v12973_v35 = vld [vmem:[#allocation31_spill] sm:$0xff]  ;;  %v12978_v29 = vld [vmem:[#allocation16_spill] sm:$0xff] }
 0x4cc   : > { %v4792_v62 = vsel %vm807_vm0, %v4568_v16, %v4726_v14  ;;  %v4778_v12 = vsel %vm807_vm0, %v12973_v35, %v11203_v18  ;;  %v4777_v11 = vsel %vm807_vm0, %v12975_v59, %v12974_v46  ;;  %v4793_v1 = vsel %vm807_vm0, %v4569_v28, %v4728_v63 }
 0x4cd   : > { %v4850_v19 = vcvt.s32.f32 %v4792_v62  ;;  %4950 = vmatprep.subr.bf16.mxu1 %v4882_v15  ;;  %v3429_v25 = vshra.s32 %v7247_v44, 24  ;;  %v5323_v43 = vand.u32 15, %v5307_v33  ;;  %v5322_v56 = vand.u32 15, %v5306_v26 }
 0x4ce   : > { %5512 = vrot.lane.b32.xlu0 %v7059_v31, %s7355_s8  ;;  %4951 = vmatpush1.bf16.msra.mxu1 %v4881_v52  ;;  %v6014_v3 = vshra.s32 %v11332_v36, 12  ;;  %v4730_v6 = vpop.permute.xlu1 %4729  ;;  %v4854_v7 = vcvt.s32.f32 %v4793_v1  ;;  %v5197_v32 = vshra.s32 %v11354_v50, 8  ;;  %v6013_v58 = vshra.s32 %v11341_v24, 12 }
 0x4cf   : > { %5418 = vrot.lane.b32.xlu1 %v5195_v5, %s7355_s8  ;;  %v4886_v18 = vpack.c.bf16 %v4850_v19, %v4846_v13  ;;  %v4885_v38 = vpack.c.bf16 %v4849_v8, %v4845_v48  ;;  %v4857_v45 = vcvt.s32.f32 %v4778_v12  ;;  %v4853_v23 = vcvt.s32.f32 %v4777_v11  ;;  %v11360_v31 = vpop.permute.xlu0 %5007  ;;  %v12980_v48 = vld [vmem:[#allocation57_spill] sm:$0xff] }
 0x4d0   : > { %v4794_v16 = vsel %vm807_vm0, %v4570_v41, %v4730_v6  ;;  %v5212_v60 = vand.u32 15, %v5196_v37  ;;  %v5324_v22 = vshra.s32 %v11335_v20, 24  ;;  %v12977_v9 = vshra.s32 %v12976_v21, 16 }
 0x4d1   : > { %v4858_v53 = vcvt.s32.f32 %v4794_v16  ;;  %4952 = vmatprep.subr.bf16.mxu1 %v4886_v18  ;;  %v3430_v42 = vand.u32 15, %v3429_v25  ;;  %v6030_v55 = vand.u32 15, %v6014_v3  ;;  %v4889_v27 = vpack.c.bf16 %v4857_v45, %v4853_v23  ;;  %v11402_v45 = vld [vmem:[%s7442_s17 + $0x310] sm:$0xff] }
 0x4d2   : > { %5416 = vrot.lane.b32.xlu0 %v5194_v49, %s7355_s8  ;;  %v3426_v0 = vand.u32 15, %v12977_v9  ;;  %4953 = vmatpush1.bf16.msra.mxu1 %v4885_v38  ;;  %v11366_v28 = vpop.permute.xlu1 %5013  ;;  %v5213_v2 = vand.u32 15, %v5197_v32  ;;  %v6029_v30 = vand.u32 15, %v6013_v58  ;;  %v5325_v39 = vshra.s32 %v11354_v50, 24  ;;  %v11399_v38 = vld [vmem:[%s7442_s17 + $0x390] sm:$0xff] }
 0x4d3   : > { %5482 = vrot.lane.b32.xlu1 %v5323_v43, %s7355_s8  ;;  %v4890_v57 = vpack.c.bf16 %v4858_v53, %v4854_v7  ;;  %v5421_v10 = vpop.permute.xlu0 %5420  ;;  %v5340_v47 = vand.u32 15, %v5324_v22  ;;  %v3460_v5 = vsel %vm807_vm0, %v3430_v42, %v12979_v17  ;;  %v7066_v26 = vshrl.u32 %v11332_v36, 28  ;;  %v11395_v7 = vld [vmem:[%s7442_s17 + $0x398] sm:$0xff]  ;;  %v12982_v16 = vld [vmem:[#allocation61_spill] sm:$0xff] }
 0x4d4   : > { %v5532_v54 = vsel %vm807_vm0, %v5212_v60, %v5421_v10  ;;  %v3459_v4 = vsel %vm807_vm0, %v3426_v0, %v12978_v29  ;;  %v5950_v14 = vshra.s32 %v11332_v36, 4  ;;  %v5341_v15 = vand.u32 15, %v5325_v39  ;;  %v12983_v53 = vld [vmem:[#allocation13_spill] sm:$0xff] }
 0x4d5   : > { %4954 = vmatprep.subr.bf16.mxu1 %v4890_v57  ;;  %v5581_v33 = vcvt.s32.f32 %v5532_v54  ;;  %v7065_v49 = vshrl.u32 %v11341_v24, 28  ;;  %v5949_v52 = vshra.s32 %v11341_v24, 4  ;;  %v5148_v63 = vand.u32 15, %v11335_v20 }
 0x4d6   : > { %5480 = vrot.lane.b32.xlu0 %v5322_v56, %s7355_s8  ;;  %4955 = vmatpush1.bf16.msra.mxu1 %v4889_v27  ;;  %v5423_v41 = vpop.permute.xlu1 %5422  ;;  %v5260_v35 = vshra.s32 %v11335_v20, 16  ;;  %v3463_v12 = vcvt.s32.f32 %v3459_v4  ;;  %v3464_v46 = vcvt.s32.f32 %v3460_v5  ;;  %v6078_v59 = vshra.s32 %v11332_v36, 20  ;;  %v12984_v4 = vld [vmem:[#allocation9_spill] sm:$0xff] }
 0x4d7   : > { %6207 = vrot.lane.b32.xlu1 %v6030_v55, %s7355_s8  ;;  %v5533_v13 = vsel %vm807_vm0, %v5213_v2, %v5423_v41  ;;  %v5485_v37 = vpop.permute.xlu0 %5484  ;;  %v12981_v11 = vmov 0   ;;  %v5966_v25 = vand.u32 15, %v5950_v14  ;;  %v5261_v43 = vshra.s32 %v11354_v50, 16  ;;  %v11412_v2 = vld [vmem:[%s7442_s17 + $0x318] sm:$0xff] }
 0x4d8   : > { %v5585_v8 = vcvt.s32.f32 %v5533_v13  ;;  %v5564_v62 = vsel %vm807_vm0, %v5340_v47, %v5485_v37  ;;  %v5149_v20 = vand.u32 15, %v11354_v50  ;;  %v5965_v3 = vand.u32 15, %v5949_v52 }
 0x4d9   : > { %4973 = vmatmul.mubr.bf16.vlgmr.msra.gmra.mrb[20].mxu1 %v12980_v48  ;;  %v5583_v1 = vcvt.s32.f32 %v5564_v62  ;;  %v6077_v6 = vshra.s32 %v11341_v24, 20  ;;  %v5276_v58 = vand.u32 15, %v5260_v35  ;;  %v5198_v23 = vshra.s32 %v11402_v45, 8 }
 0x4da   : > { %6205 = vrot.lane.b32.xlu0 %v6029_v30, %s7355_s8  ;;  %5757 = vmatprep.mubr.bf16.mxu1 %v12981_v11  ;;  %v5487_v19 = vpop.permute.xlu1 %5486  ;;  %v5645_v44 = vpack.c.bf16 %v5585_v8, %v5581_v33  ;;  %v3526_v50 = vmul.f32 %v12982_v16, %v3463_v12  ;;  %v3527_v60 = vmul.f32 %v12983_v53, %v3464_v46  ;;  %v6094_v22 = vand.u32 15, %v6078_v59  ;;  %v12986_v46 = vld [vmem:[#allocation50_spill] sm:$0xff]  ;;  %v12987_v16 = vld [vmem:[#allocation29_spill] sm:$0xff] }
 0x4db   : > { %6271 = vrot.lane.b32.xlu1 %v7066_v26, %s7355_s8  ;;  %v5565_v56 = vsel %vm807_vm0, %v5341_v15, %v5487_v19  ;;  %v5389_v36 = vpop.permute.xlu0 %5388  ;;  %v5277_v0 = vand.u32 15, %v5261_v43  ;;  %v6016_v42 = vshra.s32 %v11395_v7, 12  ;;  %v6093_v55 = vand.u32 15, %v6077_v6 }
 0x4dc   : > { %v5587_v18 = vcvt.s32.f32 %v5565_v56  ;;  %5682 = vmatprep.subr.bf16.mxu0 %v5645_v44  ;;  %v5516_v32 = vsel %vm807_vm0, %v5148_v63, %v5389_v36  ;;  %v5199_v30 = vshra.s32 %v11412_v2, 8  ;;  %v6015_v10 = vshra.s32 %v11399_v38, 12  ;;  %v12985_v63 = vld [vmem:[#allocation18_spill] sm:$0xff] }
 0x4dd   : > { %v5580_v21 = vcvt.s32.f32 %v5516_v32  ;;  %v5214_v47 = vand.u32 15, %v5198_v23  ;;  %v5326_v29 = vshra.s32 %v11402_v45, 24  ;;  %v3539_v17 = vrot.slane %v3526_v50, %v12984_v4  ;;  %v12988_v50 = vld [vmem:[#allocation46_spill] sm:$0xff] }
 0x4de   : > { %6269 = vrot.lane.b32.xlu0 %v7065_v49, %s7355_s8  ;;  %v5391_v24 = vpop.permute.xlu1 %5390  ;;  %v5647_v9 = vpack.c.bf16 %v5587_v18, %v5583_v1  ;;  %v3543_v5 = vrot.slane %v3527_v60, %v12984_v4  ;;  %v6032_v14 = vand.u32 15, %v6016_v42  ;;  %v5215_v15 = vand.u32 15, %v5199_v30 }
 0x4df   : > { %6175 = vrot.lane.b32.xlu1 %v5966_v25, %s7355_s8  ;;  %v5517_v57 = vsel %vm807_vm0, %v5149_v20, %v5391_v24  ;;  %v5453_v27 = vpop.permute.xlu0 %5452  ;;  %v6031_v49 = vand.u32 15, %v6015_v10  ;;  %v5327_v52 = vshra.s32 %v11412_v2, 24  ;;  %v5342_v62 = vand.u32 15, %v5326_v29 }
 0x4e0   : > { %v5584_v39 = vcvt.s32.f32 %v5517_v57  ;;  %5725 = vmatprep.subr.bf16.mxu1 %v5647_v9  ;;  %v5548_v54 = vsel %vm807_vm0, %v5276_v58, %v5453_v27  ;;  %v11426_v35 = vmul.f32 %v3539_v17, %v12985_v63  ;;  %v11429_v12 = vmul.f32 %v3543_v5, %v12985_v63  ;;  %v12989_v57 = vld [vmem:[#allocation27_spill] sm:$0xff] }
 0x4e1   : > { %v5582_v26 = vcvt.s32.f32 %v5548_v54  ;;  %v11432_v59 = vmul.f32 %v3539_v17, %v12986_v46  ;;  %v7068_v25 = vshrl.u32 %v11395_v7, 28  ;;  %v5952_v43 = vshra.s32 %v11395_v7, 4  ;;  %v11470_v17 = vld [vmem:[%s7442_s17 + $0x320] sm:$0xff] }
 0x4e2   : > { %6173 = vrot.lane.b32.xlu0 %v5965_v3, %s7355_s8  ;;  %v5644_v41 = vpack.c.bf16 %v5584_v39, %v5580_v21  ;;  %v5455_v33 = vpop.permute.xlu1 %5454  ;;  %v5343_v20 = vand.u32 15, %v5327_v52  ;;  %v7067_v3 = vshrl.u32 %v11399_v38, 28  ;;  %v5951_v6 = vshra.s32 %v11399_v38, 4  ;;  %v11463_v39 = vld [vmem:[%s7442_s17 + $0x3a8] sm:$0xff] }
 0x4e3   : > { %6239 = vrot.lane.b32.xlu1 %v6094_v22, %s7355_s8  ;;  %v5549_v13 = vsel %vm807_vm0, %v5277_v0, %v5455_v33  ;;  %v5425_v37 = vpop.permute.xlu0 %5424  ;;  %v5150_v58 = vand.u32 15, %v11402_v45  ;;  %v5262_v23 = vshra.s32 %v11402_v45, 16  ;;  %v11446_v53 = vrot.slane %v12988_v50, %v12987_v16 }
 0x4e4   : > { %v5586_v8 = vcvt.s32.f32 %v5549_v13  ;;  %5683 = vmatpush1.bf16.msra.mxu0 %v5644_v41  ;;  %v5534_v48 = vsel %vm807_vm0, %v5214_v47, %v5425_v37  ;;  %v6080_v60 = vshra.s32 %v11395_v7, 20  ;;  %v5263_v22 = vshra.s32 %v11412_v2, 16 }
 0x4e5   : > { %v5589_v44 = vcvt.s32.f32 %v5534_v48  ;;  %v11451_v24 = vmul.f32 %v3543_v5, %v12986_v46  ;;  %v5968_v45 = vand.u32 15, %v5952_v43  ;;  %v6079_v42 = vshra.s32 %v11399_v38, 20  ;;  %v11467_v38 = vld [vmem:[%s7442_s17 + $0x3a0] sm:$0xff] }
 0x4e6   : > { %6237 = vrot.lane.b32.xlu0 %v6093_v55, %s7355_s8  ;;  %v5646_v19 = vpack.c.bf16 %v5586_v8, %v5582_v26  ;;  %v5427_v1 = vpop.permute.xlu1 %5426  ;;  %v11457_v55 = vrot.slane %v12988_v50, %v12989_v57  ;;  %v5151_v27 = vand.u32 15, %v11412_v2  ;;  %v5967_v30 = vand.u32 15, %v5951_v6  ;;  %v12990_v2 = vld [vmem:[#allocation60_spill] sm:$0xff]  ;;  %v12991_v43 = vld [vmem:[#allocation55_spill] sm:$0xff] }
 0x4e7   : > { %6211 = vrot.lane.b32.xlu1 %v6032_v14, %s7355_s8  ;;  %v5535_v56 = vsel %vm807_vm0, %v5215_v15, %v5427_v1  ;;  %v5489_v36 = vpop.permute.xlu0 %5488  ;;  %v5278_v29 = vand.u32 15, %v5262_v23  ;;  %v5200_v5 = vshra.s32 %v11470_v17, 8  ;;  %v6096_v41 = vand.u32 15, %v6080_v60  ;;  %v12993_v6 = vld [vmem:[#allocation35_spill] sm:$0xff] }
 0x4e8   : > { %v5593_v18 = vcvt.s32.f32 %v5535_v56  ;;  %5726 = vmatpush1.bf16.msra.mxu1 %v5646_v19  ;;  %v5566_v32 = vsel %vm807_vm0, %v5342_v62, %v5489_v36  ;;  %v5279_v33 = vand.u32 15, %v5263_v22  ;;  %v3554_v26 = vsub.f32 %v12990_v2, %v11426_v35  ;;  %v11482_v62 = vld [vmem:[%s7442_s17 + $0x328] sm:$0xff] }
 0x4e9   : > { %v5591_v9 = vcvt.s32.f32 %v5566_v32  ;;  %v4288_v14 = vrot.slane %v11446_v53, %v12984_v4  ;;  %v6095_v37 = vand.u32 15, %v6079_v42  ;;  %v6018_v52 = vshra.s32 %v11463_v39, 12 }
 0x4ea   : > { %6209 = vrot.lane.b32.xlu0 %v6031_v49, %s7355_s8  ;;  %v5491_v21 = vpop.permute.xlu1 %5490  ;;  %v5649_v0 = vpack.c.bf16 %v5593_v18, %v5589_v44  ;;  %v5201_v63 = vshra.s32 %v11482_v62, 8  ;;  %v6017_v35 = vshra.s32 %v11467_v38, 12  ;;  %v5329_v46 = vshra.s32 %v11482_v62, 24 }
 0x4eb   : > { %6275 = vrot.lane.b32.xlu1 %v7068_v25, %s7355_s8  ;;  %v5567_v7 = vsel %vm807_vm0, %v5343_v20, %v5491_v21  ;;  %v5393_v10 = vpop.permute.xlu0 %5392  ;;  %v5216_v44 = vand.u32 15, %v5200_v5  ;;  %v5328_v25 = vshra.s32 %v11470_v17, 24  ;;  %v3555_v56 = vsub.f32 %v12991_v43, %v11429_v12 }
 0x4ec   : > { %v5595_v54 = vcvt.s32.f32 %v5567_v7  ;;  %5684 = vmatprep.subr.bf16.mxu0 %v5649_v0  ;;  %v5518_v47 = vsel %vm807_vm0, %v5150_v58, %v5393_v10  ;;  %v4292_v20 = vrot.slane %v11457_v55, %v12984_v4  ;;  %v3559_v18 = vsub.f32 %v12993_v6, %v11451_v24  ;;  %v11527_v6 = vld [vmem:[%s7442_s17 + $0x3b8] sm:$0xff] }
 0x4ed   : > { %v5588_v15 = vcvt.s32.f32 %v5518_v47  ;;  %v6034_v50 = vand.u32 15, %v6018_v52  ;;  %v7070_v60 = vshrl.u32 %v11463_v39, 28  ;;  %v5217_v21 = vand.u32 15, %v5201_v63 }
 0x4ee   : > { %6273 = vrot.lane.b32.xlu0 %v7067_v3, %s7355_s8  ;;  %v5395_v13 = vpop.permute.xlu1 %5394  ;;  %v5651_v49 = vpack.c.bf16 %v5595_v54, %v5591_v9  ;;  %v12992_v3 = vld [vmem:[#allocation51_spill] sm:$0xff]  ;;  %v6033_v9 = vand.u32 15, %v6017_v35  ;;  %v7069_v54 = vshrl.u32 %v11467_v38, 28  ;;  %v5954_v47 = vshra.s32 %v11463_v39, 4 }
 0x4ef   : > { %6179 = vrot.lane.b32.xlu1 %v5968_v45, %s7355_s8  ;;  %v5519_v8 = vsel %vm807_vm0, %v5151_v27, %v5395_v13  ;;  %v5457_v48 = vpop.permute.xlu0 %5456  ;;  %v3558_v36 = vsub.f32 %v12992_v3, %v11432_v59  ;;  %v5345_v59 = vand.u32 15, %v5329_v46  ;;  %v5344_v27 = vand.u32 15, %v5328_v25 }
 0x4f0   : > { %v5592_v19 = vcvt.s32.f32 %v5519_v8  ;;  %5727 = vmatprep.subr.bf16.mxu1 %v5651_v49  ;;  %v5550_v1 = vsel %vm807_vm0, %v5278_v29, %v5457_v48  ;;  %v5953_v29 = vshra.s32 %v11467_v38, 4  ;;  %v5152_v48 = vand.u32 15, %v11470_v17 }
 0x4f1   : > { %v5590_v23 = vcvt.s32.f32 %v5550_v1  ;;  %v5264_v35 = vshra.s32 %v11470_v17, 16  ;;  %v5970_v43 = vand.u32 15, %v5954_v47  ;;  %v5153_v17 = vand.u32 15, %v11482_v62 }
 0x4f2   : > { %6177 = vrot.lane.b32.xlu0 %v5967_v30, %s7355_s8  ;;  %v5648_v32 = vpack.c.bf16 %v5592_v19, %v5588_v15  ;;  %v5459_v58 = vpop.permute.xlu1 %5458  ;;  %v6082_v19 = vshra.s32 %v11463_v39, 20  ;;  %v5969_v3 = vand.u32 15, %v5953_v29  ;;  %v6081_v39 = vshra.s32 %v11467_v38, 20 }
 0x4f3   : > { %6243 = vrot.lane.b32.xlu1 %v6096_v41, %s7355_s8  ;;  %v5551_v22 = vsel %vm807_vm0, %v5279_v33, %v5459_v58  ;;  %v4189_v12 = vpop.f32.mrb[16].mxu1  ;;  %v5429_v0 = vpop.permute.xlu0 %5428  ;;  %v5280_v58 = vand.u32 15, %v5264_v35 }
 0x4f4   : > { %v5594_v45 = vcvt.s32.f32 %v5551_v22  ;;  %v4295_v42 = vmul.f32 %v4288_v14, %v4189_v12  ;;  %v4191_v24 = vpop.f32.mrb[17].mxu1  ;;  %5685 = vmatpush1.bf16.msra.mxu0 %v5648_v32  ;;  %v5536_v7 = vsel %vm807_vm0, %v5216_v44, %v5429_v0  ;;  %v6098_v22 = vand.u32 15, %v6082_v19 }
 0x4f5   : > { %v4296_v30 = vmul.f32 %v4292_v20, %v4191_v24  ;;  %v4193_v10 = vpop.f32.mrb[18].mxu1  ;;  %v5597_v15 = vcvt.s32.f32 %v5536_v7 }
 0x4f6   : > { %6241 = vrot.lane.b32.xlu0 %v6095_v37, %s7355_s8  ;;  %v5650_v5 = vpack.c.bf16 %v5594_v45, %v5590_v23  ;;  %v11505_v41 = vadd.f32 %v4295_v42, %v3554_v26  ;;  %v4299_v33 = vmul.f32 %v4288_v14, %v4193_v10  ;;  %v4195_v2 = vpop.f32.mrb[19].mxu1  ;;  %v5431_v13 = vpop.permute.xlu1 %5430  ;;  %v11531_v23 = vld [vmem:[%s7442_s17 + $0x3b0] sm:$0xff]  ;;  %v11542_v42 = vld [vmem:[%s7442_s17 + $0x338] sm:$0xff] }
 0x4f7   : > { %6215 = vrot.lane.b32.xlu1 %v6034_v50, %s7355_s8  ;;  %v11508_v49 = vadd.f32 %v4296_v30, %v3555_v56  ;;  %v4300_v37 = vmul.f32 %v4292_v20, %v4195_v2  ;;  %v5537_v52 = vsel %vm807_vm0, %v5217_v21, %v5431_v13  ;;  %v5493_v8 = vpop.permute.xlu0 %5492  ;;  %v5265_v56 = vshra.s32 %v11482_v62, 16  ;;  %v11534_v50 = vld [vmem:[%s7442_s17 + $0x330] sm:$0xff] }
 0x4f8   : > { %v11513_v63 = vadd.f32 %v4299_v33, %v3558_v36  ;;  %v5601_v26 = vcvt.s32.f32 %v5537_v52  ;;  %5728 = vmatpush1.bf16.msra.mxu1 %v5650_v5  ;;  %v5568_v14 = vsel %vm807_vm0, %v5344_v27, %v5493_v8  ;;  %v5203_v24 = vshra.s32 %v11542_v42, 8 }
 0x4f9   : > { %v11517_v46 = vadd.f32 %v4300_v37, %v3559_v18  ;;  %v5599_v44 = vcvt.s32.f32 %v5568_v14  ;;  %v5281_v21 = vand.u32 15, %v5265_v56  ;;  %v6019_v7 = vshra.s32 %v11531_v23, 12 }
 0x4fa   : > { %6213 = vrot.lane.b32.xlu0 %v6033_v9, %s7355_s8  ;;  %v5495_v1 = vpop.permute.xlu1 %5494  ;;  %v5653_v25 = vpack.c.bf16 %v5601_v26, %v5597_v15  ;;  %v6020_v9 = vshra.s32 %v11527_v6, 12  ;;  %v5219_v13 = vand.u32 15, %v5203_v24  ;;  %v5331_v52 = vshra.s32 %v11542_v42, 24 }
 0x4fb   : > { %6279 = vrot.lane.b32.xlu1 %v7070_v60, %s7355_s8  ;;  %v5569_v20 = vsel %vm807_vm0, %v5345_v59, %v5495_v1  ;;  %v5397_v36 = vpop.permute.xlu0 %5396  ;;  %v5202_v60 = vshra.s32 %v11534_v50, 8  ;;  %v6097_v59 = vand.u32 15, %v6081_v39  ;;  %v6035_v15 = vand.u32 15, %v6019_v7  ;;  %v11575_v7 = vld [vmem:[%s7442_s17 + $0x3c0] sm:$0xff] }
 0x4fc   : > { %v5603_v18 = vcvt.s32.f32 %v5569_v20  ;;  %5686 = vmatprep.subr.bf16.mxu0 %v5653_v25  ;;  %v5520_v32 = vsel %vm807_vm0, %v5152_v48, %v5397_v36  ;;  %v6036_v33 = vand.u32 15, %v6020_v9  ;;  %v7072_v1 = vshrl.u32 %v11527_v6, 28 }
 0x4fd   : > { %v5596_v12 = vcvt.s32.f32 %v5520_v32  ;;  %v5218_v10 = vand.u32 15, %v5202_v60  ;;  %v7071_v56 = vshrl.u32 %v11531_v23, 28  ;;  %v5154_v39 = vand.u32 15, %v11534_v50 }
 0x4fe   : > { %6277 = vrot.lane.b32.xlu0 %v7069_v54, %s7355_s8  ;;  %v5399_v62 = vpop.permute.xlu1 %5398  ;;  %v5655_v38 = vpack.c.bf16 %v5603_v18, %v5599_v44  ;;  %v5330_v54 = vshra.s32 %v11534_v50, 24  ;;  %v5956_v44 = vshra.s32 %v11527_v6, 4  ;;  %v5266_v18 = vshra.s32 %v11534_v50, 16 }
 0x4ff   : > { %6183 = vrot.lane.b32.xlu1 %v5970_v43, %s7355_s8  ;;  %v5521_v0 = vsel %vm807_vm0, %v5153_v17, %v5399_v62  ;;  %v5461_v45 = vpop.permute.xlu0 %5460  ;;  %v5347_v43 = vand.u32 15, %v5331_v52  ;;  %v5955_v17 = vshra.s32 %v11531_v23, 4  ;;  %v6084_v32 = vshra.s32 %v11527_v6, 20 }
 0x500   : > { %v5600_v27 = vcvt.s32.f32 %v5521_v0  ;;  %5729 = vmatprep.subr.bf16.mxu1 %v5655_v38  ;;  %v5552_v30 = vsel %vm807_vm0, %v5280_v58, %v5461_v45  ;;  %v5346_v26 = vand.u32 15, %v5330_v54  ;;  %v5972_v62 = vand.u32 15, %v5956_v44  ;;  %v11571_v0 = vld [vmem:[%s7442_s17 + $0x3c8] sm:$0xff] }
 0x501   : > { %v5598_v5 = vcvt.s32.f32 %v5552_v30  ;;  %v5971_v9 = vand.u32 15, %v5955_v17  ;;  %v6083_v6 = vshra.s32 %v11531_v23, 20  ;;  %v5282_v24 = vand.u32 15, %v5266_v18 }
 0x502   : > { %6181 = vrot.lane.b32.xlu0 %v5969_v3, %s7355_s8  ;;  %v5652_v47 = vpack.c.bf16 %v5600_v27, %v5596_v12  ;;  %v5463_v29 = vpop.permute.xlu1 %5462  ;;  %v5267_v12 = vshra.s32 %v11542_v42, 16  ;;  %v11578_v27 = vld [vmem:[%s7442_s17 + $0x340] sm:$0xff] }
 0x503   : > { %6247 = vrot.lane.b32.xlu1 %v6098_v22, %s7355_s8  ;;  %v5553_v2 = vsel %vm807_vm0, %v5281_v21, %v5463_v29  ;;  %v5433_v37 = vpop.permute.xlu0 %5432  ;;  %v5155_v21 = vand.u32 15, %v11542_v42  ;;  %v5204_v30 = vshra.s32 %v11578_v27, 8  ;;  %v6022_v29 = vshra.s32 %v11571_v0, 12 }
 0x504   : > { %v5602_v8 = vcvt.s32.f32 %v5553_v2  ;;  %5687 = vmatpush1.bf16.msra.mxu0 %v5652_v47  ;;  %v5538_v48 = vsel %vm807_vm0, %v5218_v10, %v5433_v37  ;;  %v6100_v10 = vand.u32 15, %v6084_v32  ;;  %v5283_v47 = vand.u32 15, %v5267_v12  ;;  %v11604_v12 = vld [vmem:[%s7454_s7 + $0x3c] sm:$0xf] }
 0x505   : > { %v5605_v19 = vcvt.s32.f32 %v5538_v48  ;;  %v6021_v37 = vshra.s32 %v11575_v7, 12  ;;  %v5220_v48 = vand.u32 15, %v5204_v30  ;;  %v5268_v30 = vshra.s32 %v11578_v27, 16 }
 0x506   : > { %6245 = vrot.lane.b32.xlu0 %v6097_v59, %s7355_s8  ;;  %v5654_v14 = vpack.c.bf16 %v5602_v8, %v5598_v5  ;;  %v5435_v35 = vpop.permute.xlu1 %5434 }
 0x507   : > { %6219 = vrot.lane.b32.xlu1 %v6036_v33, %s7355_s8  ;;  %v5539_v25 = vsel %vm807_vm0, %v5219_v13, %v5435_v35  ;;  %v5497_v20 = vpop.permute.xlu0 %5496  ;;  %v6099_v33 = vand.u32 15, %v6083_v6  ;;  %v11586_v13 = vld [vmem:[%s7442_s17 + $0x348] sm:$0xff] }
 0x508   : > { %v5609_v3 = vcvt.s32.f32 %v5539_v25  ;;  %5730 = vmatpush1.bf16.msra.mxu1 %v5654_v14  ;;  %v5570_v36 = vsel %vm807_vm0, %v5346_v26, %v5497_v20  ;;  %v5332_v26 = vshra.s32 %v11578_v27, 24  ;;  %v5333_v44 = vshra.s32 %v11586_v13, 24 }
 0x509   : > { %v5607_v60 = vcvt.s32.f32 %v5570_v36 }
 0x50a   : > { %6217 = vrot.lane.b32.xlu0 %v6035_v15, %s7355_s8  ;;  %v5499_v58 = vpop.permute.xlu1 %5498  ;;  %v5657_v22 = vpack.c.bf16 %v5609_v3, %v5605_v19  ;;  %v5205_v15 = vshra.s32 %v11586_v13, 8  ;;  %v5348_v36 = vand.u32 15, %v5332_v26  ;;  %v11632_v26 = vld [vmem:[%s7442_s17 + $0x350] sm:$0xff] }
 0x50b   : > { %6283 = vrot.lane.b32.xlu1 %v7072_v1, %s7355_s8  ;;  %v5571_v38 = vsel %vm807_vm0, %v5347_v43, %v5499_v58  ;;  %v5401_v50 = vpop.permute.xlu0 %5400  ;;  %v6038_v1 = vand.u32 15, %v6022_v29  ;;  %v5269_v29 = vshra.s32 %v11586_v13, 16 }
 0x50c   : > { %v5611_v59 = vcvt.s32.f32 %v5571_v38  ;;  %5688 = vmatprep.subr.bf16.mxu0 %v5657_v22  ;;  %v5522_v45 = vsel %vm807_vm0, %v5154_v39, %v5401_v50  ;;  %v5221_v43 = vand.u32 15, %v5205_v15  ;;  %v7074_v39 = vshrl.u32 %v11571_v0, 28  ;;  %v11625_v15 = vld [vmem:[%s7442_s17 + $0x3d8] sm:$0xff] }
 0x50d   : > { %v5604_v54 = vcvt.s32.f32 %v5522_v45  ;;  %v5958_v22 = vshra.s32 %v11571_v0, 4  ;;  %v5957_v50 = vshra.s32 %v11575_v7, 4 }
 0x50e   : > { %6281 = vrot.lane.b32.xlu0 %v7071_v56, %s7355_s8  ;;  %v5403_v42 = vpop.permute.xlu1 %5402  ;;  %v5659_v23 = vpack.c.bf16 %v5611_v59, %v5607_v60  ;;  %v6037_v56 = vand.u32 15, %v6021_v37  ;;  %v5349_v60 = vand.u32 15, %v5333_v44  ;;  %v6024_v44 = vshra.s32 %v11625_v15, 12 }
 0x50f   : > { %6187 = vrot.lane.b32.xlu1 %v5972_v62, %s7355_s8  ;;  %v5523_v5 = vsel %vm807_vm0, %v5155_v21, %v5403_v42  ;;  %v5465_v2 = vpop.permute.xlu0 %5464  ;;  %v11601_v62 = vld [vmem:[%s7454_s7 + $0x1c] sm:$0xf]  ;;  %v7073_v21 = vshrl.u32 %v11575_v7, 28 }
 0x510   : > { %v5608_v52 = vcvt.s32.f32 %v5523_v5  ;;  %5731 = vmatprep.subr.bf16.mxu1 %v5659_v23  ;;  %v5554_v8 = vsel %vm807_vm0, %v5282_v24, %v5465_v2  ;;  %v11612_v6 = vcombine.low %v11601_v62, %v11604_v12  ;;  %v5156_v24 = vand.u32 15, %v11578_v27 }
 0x511   : > { %v5606_v19 = vcvt.s32.f32 %v5554_v8  ;;  %v5973_v2 = vand.u32 15, %v5957_v50  ;;  %v5284_v8 = vand.u32 15, %v5268_v30 }
 0x512   : > { %6185 = vrot.lane.b32.xlu0 %v5971_v9, %s7355_s8  ;;  %v5656_v14 = vpack.c.bf16 %v5608_v52, %v5604_v54  ;;  %v5467_v35 = vpop.permute.xlu1 %5466 }
 0x513   : > { %6251 = vrot.lane.b32.xlu1 %v6100_v10, %s7355_s8  ;;  %v5555_v25 = vsel %vm807_vm0, %v5283_v47, %v5467_v35  ;;  %v5437_v20 = vpop.permute.xlu0 %5436  ;;  %v6086_v10 = vshra.s32 %v11571_v0, 20  ;;  %v5974_v47 = vand.u32 15, %v5958_v22  ;;  %v6085_v0 = vshra.s32 %v11575_v7, 20 }
 0x514   : > { %v5610_v17 = vcvt.s32.f32 %v5555_v25  ;;  %5689 = vmatpush1.bf16.msra.mxu0 %v5656_v14  ;;  %v5540_v3 = vsel %vm807_vm0, %v5220_v48, %v5437_v20  ;;  %v11629_v48 = vld [vmem:[%s7442_s17 + $0x3d0] sm:$0xff]  ;;  %v5206_v14 = vshra.s32 %v11632_v26, 8  ;;  %v11640_v20 = vld [vmem:[%s7442_s17 + $0x358] sm:$0xff] }
 0x515   : > { %v5613_v58 = vcvt.s32.f32 %v5540_v3  ;;  %v6102_v35 = vand.u32 15, %v6086_v10  ;;  %v6023_v3 = vshra.s32 %v11629_v48, 12 }
 0x516   : > { %6249 = vrot.lane.b32.xlu0 %v6099_v33, %s7355_s8  ;;  %v5658_v18 = vpack.c.bf16 %v5610_v17, %v5606_v19  ;;  %v5439_v32 = vpop.permute.xlu1 %5438  ;;  %v5157_v33 = vand.u32 15, %v11586_v13  ;;  %v5207_v17 = vshra.s32 %v11640_v20, 8 }
 0x517   : > { %6223 = vrot.lane.b32.xlu1 %v6038_v1, %s7355_s8  ;;  %v5541_v38 = vsel %vm807_vm0, %v5221_v43, %v5439_v32  ;;  %v5501_v9 = vpop.permute.xlu0 %5500  ;;  %v5285_v1 = vand.u32 15, %v5269_v29  ;;  %v6101_v43 = vand.u32 15, %v6085_v0  ;;  %v5334_v32 = vshra.s32 %v11632_v26, 24 }
 0x518   : > { %v5617_v59 = vcvt.s32.f32 %v5541_v38  ;;  %5732 = vmatpush1.bf16.msra.mxu1 %v5658_v18  ;;  %v5572_v45 = vsel %vm807_vm0, %v5348_v36, %v5501_v9  ;;  %v5222_v18 = vand.u32 15, %v5206_v14  ;;  %v6040_v38 = vand.u32 15, %v6024_v44 }
 0x519   : > { %v5615_v54 = vcvt.s32.f32 %v5572_v45  ;;  %v5223_v9 = vand.u32 15, %v5207_v17  ;;  %v6039_v50 = vand.u32 15, %v6023_v3  ;;  %v5335_v45 = vshra.s32 %v11640_v20, 24  ;;  %v11669_v17 = vld [vmem:[%s7442_s17 + $0x3e8] sm:$0xff] }
 0x51a   : > { %6221 = vrot.lane.b32.xlu0 %v6037_v56, %s7355_s8  ;;  %v5503_v42 = vpop.permute.xlu1 %5502  ;;  %v5661_v23 = vpack.c.bf16 %v5617_v59, %v5613_v58  ;;  %v5350_v10 = vand.u32 15, %v5334_v32  ;;  %v5960_v29 = vshra.s32 %v11625_v15, 4  ;;  %v5959_v0 = vshra.s32 %v11629_v48, 4  ;;  %v11676_v32 = vld [vmem:[%s7442_s17 + $0x360] sm:$0xff] }
 0x51b   : > { %6287 = vrot.lane.b32.xlu1 %v7074_v39, %s7355_s8  ;;  %v5573_v5 = vsel %vm807_vm0, %v5349_v60, %v5503_v42  ;;  %v5405_v27 = vpop.permute.xlu0 %5404  ;;  %v5270_v14 = vshra.s32 %v11632_v26, 16  ;;  %v5271_v44 = vshra.s32 %v11640_v20, 16 }
 0x51c   : > { %v5619_v37 = vcvt.s32.f32 %v5573_v5  ;;  %5690 = vmatprep.subr.bf16.mxu0 %v5661_v23  ;;  %v5524_v52 = vsel %vm807_vm0, %v5156_v24, %v5405_v27 }
 0x51d   : > { %v5612_v19 = vcvt.s32.f32 %v5524_v52 }
 0x51e   : > { %6285 = vrot.lane.b32.xlu0 %v7073_v21, %s7355_s8  ;;  %v5407_v13 = vpop.permute.xlu1 %5406  ;;  %v5663_v7 = vpack.c.bf16 %v5619_v37, %v5615_v54 }
 0x51f   : > { %6191 = vrot.lane.b32.xlu1 %v5974_v47, %s7355_s8  ;;  %v5525_v25 = vsel %vm807_vm0, %v5157_v33, %v5407_v13  ;;  %v5469_v56 = vpop.permute.xlu0 %5468  ;;  %v7076_v47 = vshrl.u32 %v11625_v15, 28  ;;  %v5351_v33 = vand.u32 15, %v5335_v45  ;;  %v11684_v45 = vld [vmem:[%s7442_s17 + $0x368] sm:$0xff] }
 0x520   : > { %v5616_v36 = vcvt.s32.f32 %v5525_v25  ;;  %5733 = vmatprep.subr.bf16.mxu1 %v5663_v7  ;;  %v5556_v39 = vsel %vm807_vm0, %v5284_v8, %v5469_v56  ;;  %v5158_v8 = vand.u32 15, %v11632_v26  ;;  %v5975_v56 = vand.u32 15, %v5959_v0 }
 0x521   : > { %v5614_v22 = vcvt.s32.f32 %v5556_v39  ;;  %v5286_v39 = vand.u32 15, %v5270_v14 }
 0x522   : > { %6189 = vrot.lane.b32.xlu0 %v5973_v2, %s7355_s8  ;;  %v5660_v58 = vpack.c.bf16 %v5616_v36, %v5612_v19  ;;  %v5471_v60 = vpop.permute.xlu1 %5470  ;;  %v7075_v2 = vshrl.u32 %v11629_v48, 28 }
 0x523   : > { %6255 = vrot.lane.b32.xlu1 %v6102_v35, %s7355_s8  ;;  %v5557_v21 = vsel %vm807_vm0, %v5285_v1, %v5471_v60  ;;  %v5441_v59 = vpop.permute.xlu0 %5440  ;;  %v6088_v35 = vshra.s32 %v11625_v15, 20  ;;  %v5976_v1 = vand.u32 15, %v5960_v29  ;;  %v6087_v15 = vshra.s32 %v11629_v48, 20 }
 0x524   : > { %v5618_v24 = vcvt.s32.f32 %v5557_v21  ;;  %5691 = vmatpush1.bf16.msra.mxu0 %v5660_v58  ;;  %v5542_v30 = vsel %vm807_vm0, %v5222_v18, %v5441_v59  ;;  %v11673_v18 = vld [vmem:[%s7442_s17 + $0x3e0] sm:$0xff]  ;;  %v5208_v58 = vshra.s32 %v11676_v32, 8  ;;  %v6026_v21 = vshra.s32 %v11669_v17, 12 }
 0x525   : > { %v5621_v23 = vcvt.s32.f32 %v5542_v30  ;;  %v6104_v60 = vand.u32 15, %v6088_v35  ;;  %v6025_v30 = vshra.s32 %v11673_v18, 12 }
 0x526   : > { %6253 = vrot.lane.b32.xlu0 %v6101_v43, %s7355_s8  ;;  %v5662_v42 = vpack.c.bf16 %v5618_v24, %v5614_v22  ;;  %v5443_v54 = vpop.permute.xlu1 %5442  ;;  %v5159_v43 = vand.u32 15, %v11640_v20  ;;  %v5209_v24 = vshra.s32 %v11684_v45, 8 }
 0x527   : > { %6227 = vrot.lane.b32.xlu1 %v6040_v38, %s7355_s8  ;;  %v5543_v5 = vsel %vm807_vm0, %v5223_v9, %v5443_v54  ;;  %v5505_v27 = vpop.permute.xlu0 %5504  ;;  %v5287_v38 = vand.u32 15, %v5271_v44  ;;  %v5224_v54 = vand.u32 15, %v5208_v58  ;;  %v6041_v0 = vand.u32 15, %v6025_v30 }
 0x528   : > { %v5625_v37 = vcvt.s32.f32 %v5543_v5  ;;  %5734 = vmatpush1.bf16.msra.mxu1 %v5662_v42  ;;  %v5574_v52 = vsel %vm807_vm0, %v5350_v10, %v5505_v27  ;;  %v5225_v27 = vand.u32 15, %v5209_v24  ;;  %v5962_v44 = vshra.s32 %v11669_v17, 4  ;;  %v11713_v24 = vld [vmem:[%s7442_s17 + $0x3f8] sm:$0xff] }
 0x529   : > { %v5623_v19 = vcvt.s32.f32 %v5574_v52  ;;  %v5337_v52 = vshra.s32 %v11684_v45, 24  ;;  %v5272_v58 = vshra.s32 %v11676_v32, 16 }
 0x52a   : > { %6225 = vrot.lane.b32.xlu0 %v6039_v50, %s7355_s8  ;;  %v5507_v13 = vpop.permute.xlu1 %5506  ;;  %v5665_v7 = vpack.c.bf16 %v5625_v37, %v5621_v23  ;;  %v6103_v50 = vand.u32 15, %v6087_v15  ;;  %v5336_v23 = vshra.s32 %v11676_v32, 24  ;;  %v5961_v15 = vshra.s32 %v11673_v18, 4 }
 0x52b   : > { %6291 = vrot.lane.b32.xlu1 %v7076_v47, %s7355_s8  ;;  %v5575_v25 = vsel %vm807_vm0, %v5351_v33, %v5507_v13  ;;  %v5409_v26 = vpop.permute.xlu0 %5408  ;;  %v6042_v33 = vand.u32 15, %v6026_v21  ;;  %v5273_v21 = vshra.s32 %v11684_v45, 16 }
 0x52c   : > { %v5627_v3 = vcvt.s32.f32 %v5575_v25  ;;  %5692 = vmatprep.subr.bf16.mxu0 %v5665_v7  ;;  %v5526_v36 = vsel %vm807_vm0, %v5158_v8, %v5409_v26  ;;  %v5352_v35 = vand.u32 15, %v5336_v23  ;;  %v11720_v23 = vld [vmem:[%s7442_s17 + $0x370] sm:$0xff] }
 0x52d   : > { %v5620_v22 = vcvt.s32.f32 %v5526_v36 }
 0x52e   : > { %6289 = vrot.lane.b32.xlu0 %v7075_v2, %s7355_s8  ;;  %v5411_v20 = vpop.permute.xlu1 %5410  ;;  %v5667_v48 = vpack.c.bf16 %v5627_v3, %v5623_v19 }
 0x52f   : > { %6195 = vrot.lane.b32.xlu1 %v5976_v1, %s7355_s8  ;;  %v5527_v9 = vsel %vm807_vm0, %v5159_v43, %v5411_v20  ;;  %v5473_v59 = vpop.permute.xlu0 %5472  ;;  %v7078_v1 = vshrl.u32 %v11669_v17, 28  ;;  %v5353_v43 = vand.u32 15, %v5337_v52  ;;  %v11728_v52 = vld [vmem:[%s7442_s17 + $0x378] sm:$0xff] }
 0x530   : > { %v5624_v10 = vcvt.s32.f32 %v5527_v9  ;;  %5735 = vmatprep.subr.bf16.mxu1 %v5667_v48  ;;  %v5558_v42 = vsel %vm807_vm0, %v5286_v39, %v5473_v59  ;;  %v5160_v39 = vand.u32 15, %v11676_v32  ;;  %v5977_v59 = vand.u32 15, %v5961_v15 }
 0x531   : > { %v5622_v5 = vcvt.s32.f32 %v5558_v42  ;;  %v5288_v42 = vand.u32 15, %v5272_v58 }
 0x532   : > { %6193 = vrot.lane.b32.xlu0 %v5975_v56, %s7355_s8  ;;  %v5664_v47 = vpack.c.bf16 %v5624_v10, %v5620_v22  ;;  %v5475_v29 = vpop.permute.xlu1 %5474  ;;  %v7077_v56 = vshrl.u32 %v11673_v18, 28 }
 0x533   : > { %6259 = vrot.lane.b32.xlu1 %v6104_v60, %s7355_s8  ;;  %v5559_v2 = vsel %vm807_vm0, %v5287_v38, %v5475_v29  ;;  %v5445_v37 = vpop.permute.xlu0 %5444  ;;  %v6090_v60 = vshra.s32 %v11669_v17, 20  ;;  %v5978_v38 = vand.u32 15, %v5962_v44  ;;  %v6089_v17 = vshra.s32 %v11673_v18, 20 }
 0x534   : > { %v5626_v8 = vcvt.s32.f32 %v5559_v2  ;;  %5693 = vmatpush1.bf16.msra.mxu0 %v5664_v47  ;;  %v5544_v14 = vsel %vm807_vm0, %v5224_v54, %v5445_v37  ;;  %v11717_v54 = vld [vmem:[%s7442_s17 + $0x3f0] sm:$0xff]  ;;  %v5210_v47 = vshra.s32 %v11720_v23, 8  ;;  %v6028_v2 = vshra.s32 %v11713_v24, 12 }
 0x535   : > { %v5629_v7 = vcvt.s32.f32 %v5544_v14  ;;  %v6106_v29 = vand.u32 15, %v6090_v60  ;;  %v6027_v14 = vshra.s32 %v11717_v54, 12 }
 0x536   : > { %6257 = vrot.lane.b32.xlu0 %v6103_v50, %s7355_s8  ;;  %v5666_v13 = vpack.c.bf16 %v5626_v8, %v5622_v5  ;;  %v5447_v19 = vpop.permute.xlu1 %5446  ;;  %v5161_v50 = vand.u32 15, %v11684_v45  ;;  %v5211_v8 = vshra.s32 %v11728_v52, 8 }
 0x537   : > { %6231 = vrot.lane.b32.xlu1 %v6042_v33, %s7355_s8  ;;  %v5545_v25 = vsel %vm807_vm0, %v5225_v27, %v5447_v19  ;;  %v5509_v26 = vpop.permute.xlu0 %5508  ;;  %v5289_v33 = vand.u32 15, %v5273_v21  ;;  %v5226_v19 = vand.u32 15, %v5210_v47  ;;  %v6043_v15 = vand.u32 15, %v6027_v14  ;;  %v7263_v14 = vld [vmem:[%s7447_s28 + $0x5] sm:$0x1] }
 0x538   : > { %v5633_v3 = vcvt.s32.f32 %v5545_v25  ;;  %5736 = vmatpush1.bf16.msra.mxu1 %v5666_v13  ;;  %v5576_v36 = vsel %vm807_vm0, %v5352_v35, %v5509_v26  ;;  %v5227_v26 = vand.u32 15, %v5211_v8  ;;  %v5964_v21 = vshra.s32 %v11713_v24, 4 }
 0x539   : > { %v5631_v22 = vcvt.s32.f32 %v5576_v36  ;;  %v5339_v36 = vshra.s32 %v11728_v52, 24  ;;  %v5274_v47 = vshra.s32 %v11720_v23, 16  ;;  %v6091_v8 = vshra.s32 %v11717_v54, 20 }
 0x53a   : > { %6229 = vrot.lane.b32.xlu0 %v6041_v0, %s7355_s8  ;;  %v5511_v20 = vpop.permute.xlu1 %5510  ;;  %v5669_v48 = vpack.c.bf16 %v5633_v3, %v5629_v7  ;;  %v6105_v0 = vand.u32 15, %v6089_v17  ;;  %v5338_v7 = vshra.s32 %v11720_v23, 24 }
 0x53b   : > { %6295 = vrot.lane.b32.xlu1 %v7078_v1, %s7355_s8  ;;  %v5577_v9 = vsel %vm807_vm0, %v5353_v43, %v5511_v20  ;;  %v5413_v32 = vpop.permute.xlu0 %5412  ;;  %v6044_v43 = vand.u32 15, %v6028_v2  ;;  %v7080_v20 = vshrl.u32 %v11713_v24, 28  ;;  %v5980_v2 = vand.u32 15, %v5964_v21  ;;  %v11775_v21 = vld [vmem:[%s7454_s7 + $0x18] sm:$0xf] }
 0x53c   : > { %v5635_v30 = vcvt.s32.f32 %v5577_v9  ;;  %5694 = vmatprep.subr.bf16.mxu0 %v5669_v48  ;;  %v5528_v10 = vsel %vm807_vm0, %v5160_v39, %v5413_v32  ;;  %v5354_v60 = vand.u32 15, %v5338_v7  ;;  %v5963_v9 = vshra.s32 %v11717_v54, 4  ;;  %v11759_v7 = vld [vmem:[%s7442_s17 + $0x380] sm:$0xff] }
 0x53d   : > { %v5628_v5 = vcvt.s32.f32 %v5528_v10  ;;  %v7079_v32 = vshrl.u32 %v11717_v54, 28 }
 0x53e   : > { %6293 = vrot.lane.b32.xlu0 %v7077_v56, %s7355_s8  ;;  %v5415_v45 = vpop.permute.xlu1 %5414  ;;  %v5671_v18 = vpack.c.bf16 %v5635_v30, %v5631_v22 }
 0x53f   : > { %6199 = vrot.lane.b32.xlu1 %v5978_v38, %s7355_s8  ;;  %v5529_v27 = vsel %vm807_vm0, %v5161_v50, %v5415_v45  ;;  %v5477_v37 = vpop.permute.xlu0 %5476  ;;  %v6092_v45 = vshra.s32 %v11713_v24, 20  ;;  %v4997_v24 = vshra.s32 %v7263_v14, 20 }
 0x540   : > { %v5632_v35 = vcvt.s32.f32 %v5529_v27  ;;  %5737 = vmatprep.subr.bf16.mxu1 %v5671_v18  ;;  %v5560_v13 = vsel %vm807_vm0, %v5288_v42, %v5477_v37  ;;  %v5162_v42 = vand.u32 15, %v11720_v23  ;;  %v5979_v27 = vand.u32 15, %v5963_v9  ;;  %v11778_v9 = vld [vmem:[%s7454_s7 + $0x38] sm:$0xf] }
 0x541   : > { %v5630_v25 = vcvt.s32.f32 %v5560_v13  ;;  %v5275_v23 = vshra.s32 %v11728_v52, 16 }
 0x542   : > { %6197 = vrot.lane.b32.xlu0 %v5977_v59, %s7355_s8  ;;  %v5668_v1 = vpack.c.bf16 %v5632_v35, %v5628_v5  ;;  %v5479_v44 = vpop.permute.xlu1 %5478  ;;  %v5355_v59 = vand.u32 15, %v5339_v36 }
 0x543   : > { %6263 = vrot.lane.b32.xlu1 %v6106_v29, %s7355_s8  ;;  %v5561_v56 = vsel %vm807_vm0, %v5289_v33, %v5479_v44  ;;  %v5449_v3 = vpop.permute.xlu0 %5448  ;;  %v5163_v29 = vand.u32 15, %v11728_v52  ;;  %v11763_v44 = vld [vmem:[%s7447_s28 + $0x4] sm:$0x1] }
 0x544   : > { %v5634_v39 = vcvt.s32.f32 %v5561_v56  ;;  %5695 = vmatpush1.bf16.msra.mxu0 %v5668_v1  ;;  %v5546_v58 = vsel %vm807_vm0, %v5226_v19, %v5449_v3  ;;  %v5290_v19 = vand.u32 15, %v5274_v47  ;;  %v5981_v1 = vshra.s32 %v11759_v7, 8 }
 0x545   : > { %v5637_v38 = vcvt.s32.f32 %v5546_v58  ;;  %v6107_v58 = vand.u32 15, %v6091_v8 }
 0x546   : > { %6261 = vrot.lane.b32.xlu0 %v6105_v0, %s7355_s8  ;;  %v5670_v22 = vpack.c.bf16 %v5634_v39, %v5630_v25  ;;  %v5451_v48 = vpop.permute.xlu1 %5450  ;;  %v4206_v25 = vshra.s32 %v11763_v44, 8  ;;  %v5291_v39 = vand.u32 15, %v5275_v23 }
 0x547   : > { %6235 = vrot.lane.b32.xlu1 %v6044_v43, %s7355_s8  ;;  %v5547_v50 = vsel %vm807_vm0, %v5227_v26, %v5451_v48  ;;  %v5513_v17 = vpop.permute.xlu0 %5512  ;;  %v6108_v43 = vand.u32 15, %v6092_v45  ;;  %v7044_v26 = vshrl.u32 %v7263_v14, 28  ;;  %v12994_v14 = vld [vmem:[#allocation10_spill] sm:$0xff] }
 0x548   : > { %v5641_v30 = vcvt.s32.f32 %v5547_v50  ;;  %5738 = vmatpush1.bf16.msra.mxu1 %v5670_v22  ;;  %v5578_v10 = vsel %vm807_vm0, %v5354_v60, %v5513_v17  ;;  %v6109_v50 = vshra.s32 %v11759_v7, 24 }
 0x549   : > { %v5639_v18 = vcvt.s32.f32 %v5578_v10 }
 0x54a   : > { %6233 = vrot.lane.b32.xlu0 %v6043_v15, %s7355_s8  ;;  %v5515_v5 = vpop.permute.xlu1 %5514  ;;  %v5673_v33 = vpack.c.bf16 %v5641_v30, %v5637_v38  ;;  %v11768_v15 = vld [vmem:[%s7442_s17 + $0x388] sm:$0xff]  ;;  %v5997_v38 = vand.u32 15, %v5981_v1 }
 0x54b   : > { %6299 = vrot.lane.b32.xlu1 %v7080_v20, %s7355_s8  ;;  %v5579_v0 = vsel %vm807_vm0, %v5355_v59, %v5515_v5  ;;  %v5417_v37 = vpop.permute.xlu0 %5416  ;;  %v5982_v3 = vshra.s32 %v11768_v15, 8  ;;  %v4998_v20 = vand.u32 15, %v4997_v24  ;;  %v4203_v59 = vand.u32 15, %v11763_v44 }
 0x54c   : > { %v5643_v35 = vcvt.s32.f32 %v5579_v0  ;;  %5696 = vmatprep.subr.bf16.mxu0 %v5673_v33  ;;  %v5530_v13 = vsel %vm807_vm0, %v5162_v42, %v5417_v37  ;;  %v5024_v42 = vrot.slane %v7044_v26, %v12984_v4  ;;  %v6110_v33 = vshra.s32 %v11768_v15, 24 }
 0x54d   : > { %v5636_v52 = vcvt.s32.f32 %v5530_v13  ;;  %v5998_v47 = vand.u32 15, %v5982_v3  ;;  %v5018_v45 = vrot.slane %v4998_v20, %v12984_v4  ;;  %v6125_v0 = vand.u32 15, %v6109_v50 }
 0x54e   : > { %6297 = vrot.lane.b32.xlu0 %v7079_v32, %s7355_s8  ;;  %v5419_v54 = vpop.permute.xlu1 %5418  ;;  %v5675_v56 = vpack.c.bf16 %v5643_v35, %v5639_v18  ;;  %v4207_v32 = vand.u32 15, %v4206_v25  ;;  %v7061_v18 = vcombine.low %v11775_v21, %v11778_v9  ;;  %v4242_v24 = vsel %vm807_vm0, %v4203_v59, %v12994_v14  ;;  %v12995_v35 = vld [vmem:[#allocation38_spill] sm:$0xff]  ;;  %v11807_v59 = vld [vmem:[%s7442_s17 + $0x390] sm:$0xff] }
 0x54f   : > { %6203 = vrot.lane.b32.xlu1 %v5980_v2, %s7355_s8  ;;  %v5531_v36 = vsel %vm807_vm0, %v5163_v29, %v5419_v54  ;;  %v5481_v60 = vpop.permute.xlu0 %5480  ;;  %v6126_v1 = vand.u32 15, %v6110_v33  ;;  %v4246_v26 = vcvt.s32.f32 %v4242_v24  ;;  %v5934_v20 = vand.u32 15, %v11768_v15 }
 0x550   : > { %v5640_v22 = vcvt.s32.f32 %v5531_v36  ;;  %5739 = vmatprep.subr.bf16.mxu1 %v5675_v56  ;;  %v5562_v48 = vsel %vm807_vm0, %v5290_v19, %v5481_v60  ;;  %v4243_v13 = vsel %vm807_vm0, %v4207_v32, %v12995_v35  ;;  %v6045_v56 = vshra.s32 %v11759_v7, 16 }
 0x551   : > { %v5638_v10 = vcvt.s32.f32 %v5562_v48  ;;  %v6046_v48 = vshra.s32 %v11768_v15, 16  ;;  %v5983_v32 = vshra.s32 %v11807_v59, 8 }
 0x552   : > { %6201 = vrot.lane.b32.xlu0 %v5979_v27, %s7355_s8  ;;  %v5672_v17 = vpack.c.bf16 %v5640_v22, %v5636_v52  ;;  %v5483_v30 = vpop.permute.xlu1 %5482  ;;  %v5933_v52 = vand.u32 15, %v11759_v7  ;;  %v6061_v50 = vand.u32 15, %v6045_v56 }
 0x553   : > { %6267 = vrot.lane.b32.xlu1 %v6108_v43, %s7355_s8  ;;  %v5563_v29 = vsel %vm807_vm0, %v5291_v39, %v5483_v30  ;;  %v6206_v5 = vpop.permute.xlu0 %6205 }
 0x554   : > { %v5642_v2 = vcvt.s32.f32 %v5563_v29  ;;  %5697 = vmatpush1.bf16.msra.mxu0 %v5672_v17  ;;  %v6317_v27 = vsel %vm807_vm0, %v5997_v38, %v6206_v5  ;;  %v12996_v17 = vld [vmem:[#allocation12_spill] sm:$0xff] }
 0x555   : > { %v6366_v8 = vcvt.s32.f32 %v6317_v27  ;;  %v4309_v30 = vmul.f32 %v12996_v17, %v4246_v26 }
 0x556   : > { %6265 = vrot.lane.b32.xlu0 %v6107_v58, %s7355_s8  ;;  %v5674_v37 = vpack.c.bf16 %v5642_v2, %v5638_v10  ;;  %v6208_v23 = vpop.permute.xlu1 %6207  ;;  %v4247_v58 = vcvt.s32.f32 %v4243_v13  ;;  %v7042_v10 = vld [vmem:[%s7452_s6 + $0x14] sm:$0xf]  ;;  %v11816_v2 = vld [vmem:[%s7442_s17 + $0x398] sm:$0xff] }
 0x557   : > { %5025 = vrot.lane.b32.xlu1 %v5024_v42, %s7355_s8  ;;  %v6318_v19 = vsel %vm807_vm0, %v5998_v47, %v6208_v23  ;;  %5715 = vmatmul.mubr.bf16.vlgmr.msra.gmra.mrb[24].mxu0 %v7061_v18  ;;  %v6270_v25 = vpop.permute.xlu0 %6269  ;;  %v5984_v27 = vshra.s32 %v11816_v2, 8  ;;  %v6111_v23 = vshra.s32 %v11807_v59, 24  ;;  %v4316_v13 = vrot.slane %v4309_v30, %v12984_v4 }
 0x558   : > { %v6370_v43 = vcvt.s32.f32 %v6318_v19  ;;  %5740 = vmatpush1.bf16.msra.mxu1 %v5674_v37  ;;  %v6349_v54 = vsel %vm807_vm0, %v6125_v0, %v6270_v25  ;;  %6499 = vmatprep.mubr.bf16.mxu0 %v12981_v11  ;;  %v5999_v37 = vand.u32 15, %v5983_v32 }
 0x559   : > { %v6368_v36 = vcvt.s32.f32 %v6349_v54  ;;  %v6127_v26 = vand.u32 15, %v6111_v23 }
 0x55a   : > { %5019 = vrot.lane.b32.xlu0 %v5018_v45, %s7355_s8  ;;  %v6272_v3 = vpop.permute.xlu1 %6271  ;;  %v6430_v39 = vpack.c.bf16 %v6370_v43, %v6366_v8  ;;  %v12997_v45 = vld [vmem:[#allocation41_spill] sm:$0xff]  ;;  %v11821_v8 = vunpack.c.l.bf16 %v7042_v10  ;;  %v6112_v43 = vshra.s32 %v11816_v2, 24 }
 0x55b   : > { %v6350_v60 = vsel %vm807_vm0, %v6126_v1, %v6272_v3  ;;  %5758 = vmatmul.mubr.bf16.vlgmr.msra.gmra.mrb[24].mxu1 %v7061_v18  ;;  %v6174_v22 = vpop.permute.xlu0 %6173  ;;  %v4310_v15 = vmul.f32 %v12997_v45, %v4247_v58  ;;  %v6062_v18 = vand.u32 15, %v6046_v48  ;;  %v6000_v1 = vand.u32 15, %v5984_v27  ;;  %v12999_v48 = vld [vmem:[#allocation11_spill] sm:$0xff]  ;;  %v13000_v45 = vld [vmem:[#allocation26_spill] sm:$0xff] }
 0x55c   : > { %v6372_v38 = vcvt.s32.f32 %v6350_v60  ;;  %6467 = vmatprep.subr.bf16.mxu0 %v6430_v39  ;;  %v6301_v7 = vsel %vm807_vm0, %v5933_v52, %v6174_v22  ;;  %6542 = vmatprep.mubr.bf16.mxu1 %v12981_v11  ;;  %v11830_v3 = vrot.slane %v11821_v8, %v12984_v4  ;;  %v12998_v60 = vld [vmem:[#allocation54_spill] sm:$0xff] }
 0x55d   : > { %v6365_v47 = vcvt.s32.f32 %v6301_v7  ;;  %v4320_v54 = vrot.slane %v4310_v15, %v12984_v4  ;;  %v4333_v15 = vmul.f32 %v4316_v13, %v13000_v45 }
 0x55e   : > { %v6176_v42 = vpop.permute.xlu1 %6175  ;;  %v6432_v29 = vpack.c.bf16 %v6372_v38, %v6368_v36  ;;  %v11836_v38 = vrot.slane %v11821_v8, %v12999_v48  ;;  %v5065_v17 = vrot.slane %v11830_v3, %v12984_v4 }
 0x55f   : > { %v6302_v5 = vsel %vm807_vm0, %v5934_v20, %v6176_v42  ;;  %v6238_v33 = vpop.permute.xlu0 %6237  ;;  %v4329_v20 = vmul.f32 %v4316_v13, %v12998_v60  ;;  %v4330_v22 = vmul.f32 %v4320_v54, %v12998_v60  ;;  %v5935_v42 = vand.u32 15, %v11807_v59  ;;  %v11855_v13 = vld [vmem:[%s7442_s17 + $0x3a0] sm:$0xff] }
 0x560   : > { %v6369_v0 = vcvt.s32.f32 %v6302_v5  ;;  %6510 = vmatprep.subr.bf16.mxu1 %v6432_v29  ;;  %v6333_v11 = vsel %vm807_vm0, %v6061_v50, %v6238_v33  ;;  %v6128_v50 = vand.u32 15, %v6112_v43  ;;  %v5069_v29 = vrot.slane %v11836_v38, %v12984_v4 }
 0x561   : > { %v6367_v35 = vcvt.s32.f32 %v6333_v11  ;;  %v4334_v5 = vmul.f32 %v4320_v54, %v13000_v45  ;;  %v4338_v11 = vsub.f32 %v11239_v51, %v4330_v22 }
 0x562   : > { %v6429_v14 = vpack.c.bf16 %v6369_v0, %v6365_v47  ;;  %v6240_v24 = vpop.permute.xlu1 %6239  ;;  %v6047_v47 = vshra.s32 %v11807_v59, 16  ;;  %v4337_v0 = vsub.f32 %v11234_v61, %v4329_v20  ;;  %v4341_v59 = vsub.f32 %v11251_v34, %v4333_v15  ;;  %v11861_v34 = vld [vmem:[%s7442_s17 + $0x3a8] sm:$0xff] }
 0x563   : > { %v6334_v19 = vsel %vm807_vm0, %v6062_v18, %v6240_v24  ;;  %v6210_v25 = vpop.permute.xlu0 %6209  ;;  %v6048_v18 = vshra.s32 %v11816_v2, 16  ;;  %v5936_v24 = vand.u32 15, %v11816_v2  ;;  %v5986_v2 = vshra.s32 %v11861_v34, 8 }
 0x564   : > { %v6371_v52 = vcvt.s32.f32 %v6334_v19  ;;  %6468 = vmatpush1.bf16.msra.mxu0 %v6429_v14  ;;  %v6319_v56 = vsel %vm807_vm0, %v5999_v37, %v6210_v25  ;;  %v5985_v19 = vshra.s32 %v11855_v13, 8  ;;  %v6063_v61 = vand.u32 15, %v6047_v47 }
 0x565   : > { %v6374_v58 = vcvt.s32.f32 %v6319_v56  ;;  %v4342_v56 = vsub.f32 %v11261_v40, %v4334_v5 }
 0x566   : > { %v6431_v36 = vpack.c.bf16 %v6371_v52, %v6367_v35  ;;  %v6212_v39 = vpop.permute.xlu1 %6211  ;;  %v6001_v40 = vand.u32 15, %v5985_v19 }
 0x567   : > { %v6320_v7 = vsel %vm807_vm0, %v6000_v1, %v6212_v39  ;;  %v6274_v32 = vpop.permute.xlu0 %6273 }
 0x568   : > { %v6378_v30 = vcvt.s32.f32 %v6320_v7  ;;  %6511 = vmatpush1.bf16.msra.mxu1 %v6431_v36  ;;  %v6351_v10 = vsel %vm807_vm0, %v6127_v26, %v6274_v32  ;;  %v6064_v26 = vand.u32 15, %v6048_v18 }
 0x569   : > { %v6376_v27 = vcvt.s32.f32 %v6351_v10 }
 0x56a   : > { %v6276_v33 = vpop.permute.xlu1 %6275  ;;  %v6434_v37 = vpack.c.bf16 %v6378_v30, %v6374_v58 }
 0x56b   : > { %v6352_v23 = vsel %vm807_vm0, %v6128_v50, %v6276_v33  ;;  %v4931_v14 = vpop.f32.mrb[20].mxu0  ;;  %v6178_v35 = vpop.permute.xlu0 %6177 }
 0x56c   : > { %v6380_v1 = vcvt.s32.f32 %v6352_v23  ;;  %v5078_v25 = vmul.f32 %v5065_v17, %v4931_v14  ;;  %v4933_v43 = vpop.f32.mrb[21].mxu0  ;;  %6469 = vmatprep.subr.bf16.mxu0 %v6434_v37  ;;  %v6303_v51 = vsel %vm807_vm0, %v5935_v42, %v6178_v35  ;;  %v6002_v37 = vand.u32 15, %v5986_v2 }
 0x56d   : > { %v5079_v54 = vmul.f32 %v5069_v29, %v4933_v43  ;;  %v4935_v52 = vpop.f32.mrb[22].mxu0  ;;  %v6373_v20 = vcvt.s32.f32 %v6303_v51  ;;  %v6114_v14 = vshra.s32 %v11861_v34, 24  ;;  %v7272_v43 = vld [vmem:[%s7454_s7 + $0x34] sm:$0xf] }
 0x56e   : > { %v11864_v36 = vadd.f32 %v5078_v25, %v4337_v0  ;;  %v5082_v39 = vmul.f32 %v5065_v17, %v4935_v52  ;;  %v6180_v58 = vpop.permute.xlu1 %6179  ;;  %v4937_v22 = vpop.f32.mrb[23].mxu0  ;;  %v6436_v7 = vpack.c.bf16 %v6380_v1, %v6376_v27  ;;  %v6113_v17 = vshra.s32 %v11855_v13, 24  ;;  %v7271_v0 = vld [vmem:[%s7454_s7 + $0x14] sm:$0xf] }
 0x56f   : > { %v11866_v50 = vadd.f32 %v5079_v54, %v4338_v11  ;;  %v6304_v32 = vsel %vm807_vm0, %v5936_v24, %v6180_v58  ;;  %v5083_v30 = vmul.f32 %v5069_v29, %v4937_v22  ;;  %v6242_v10 = vpop.permute.xlu0 %6241  ;;  %v5035_v11 = vunpack.c.l.bf16 %v7271_v0 }
 0x570   : > { %v11869_v42 = vadd.f32 %v5082_v39, %v4341_v59  ;;  %v6377_v47 = vcvt.s32.f32 %v6304_v32  ;;  %6512 = vmatprep.subr.bf16.mxu1 %v6436_v7  ;;  %v6335_v15 = vsel %vm807_vm0, %v6063_v61, %v6242_v10  ;;  %v6129_v35 = vand.u32 15, %v6113_v17 }
 0x571   : > { %v11873_v5 = vadd.f32 %v5083_v30, %v4342_v56  ;;  %v6375_v27 = vcvt.s32.f32 %v6335_v15  ;;  %v5036_v51 = vunpack.c.l.bf16 %v7272_v43  ;;  %v5820_v61 = vunpack.c.l.bf16 %v11775_v21 }
 0x572   : > { %v6433_v18 = vpack.c.bf16 %v6377_v47, %v6373_v20  ;;  %v6244_v33 = vpop.permute.xlu1 %6243  ;;  %v6130_v52 = vand.u32 15, %v6114_v14  ;;  %v5937_v39 = vand.u32 15, %v11855_v13  ;;  %v6049_v58 = vshra.s32 %v11855_v13, 16 }
 0x573   : > { %v6336_v29 = vsel %vm807_vm0, %v6064_v26, %v6244_v33  ;;  %v6214_v23 = vpop.permute.xlu0 %6213  ;;  %v6605_v21 = vunpack.c.l.bf16 %v11601_v62  ;;  %v5821_v32 = vunpack.c.l.bf16 %v11778_v9  ;;  %v5938_v10 = vand.u32 15, %v11861_v34 }
 0x574   : > { %v6379_v59 = vcvt.s32.f32 %v6336_v29  ;;  %6470 = vmatpush1.bf16.msra.mxu0 %v6433_v18  ;;  %v6321_v24 = vsel %vm807_vm0, %v6001_v40, %v6214_v23  ;;  %v6050_v47 = vshra.s32 %v11861_v34, 16  ;;  %v6065_v17 = vand.u32 15, %v6049_v58  ;;  %v7273_v18 = vld [vmem:[%s7442_s17 + $0x3b0] sm:$0xff] }
 0x575   : > { %v6382_v25 = vcvt.s32.f32 %v6321_v24  ;;  %v5987_v33 = vshra.s32 %v7273_v18, 8  ;;  %v6606_v9 = vunpack.c.l.bf16 %v11604_v12 }
 0x576   : > { %v6435_v19 = vpack.c.bf16 %v6379_v59, %v6375_v27  ;;  %v6216_v1 = vpop.permute.xlu1 %6215  ;;  %v6066_v29 = vand.u32 15, %v6050_v47  ;;  %v5939_v47 = vand.u32 15, %v7273_v18 }
 0x577   : > { %v6322_v54 = vsel %vm807_vm0, %v6002_v37, %v6216_v1  ;;  %v6278_v56 = vpop.permute.xlu0 %6277  ;;  %v7274_v37 = vld [vmem:[%s7442_s17 + $0x3b8] sm:$0xff]  ;;  %v6003_v24 = vand.u32 15, %v5987_v33 }
 0x578   : > { %v6386_v26 = vcvt.s32.f32 %v6322_v54  ;;  %6513 = vmatpush1.bf16.msra.mxu1 %v6435_v19  ;;  %v6353_v2 = vsel %vm807_vm0, %v6129_v35, %v6278_v56  ;;  %v5988_v23 = vshra.s32 %v7274_v37, 8  ;;  %v6115_v35 = vshra.s32 %v7273_v18, 24  ;;  %v11897_v19 = vld [vmem:[%s7447_s28 + $0x6] sm:$0x1] }
 0x579   : > { %5037 = vadd.xlane.f32.xlu0 %v5035_v11  ;;  %v6384_v22 = vcvt.s32.f32 %v6353_v2  ;;  %v6116_v54 = vshra.s32 %v7274_v37, 24 }
 0x57a   : > { %v6280_v20 = vpop.permute.xlu1 %6279  ;;  %v6438_v7 = vpack.c.bf16 %v6386_v26, %v6382_v25  ;;  %v6131_v2 = vand.u32 15, %v6115_v35  ;;  %v11914_v35 = vld [vmem:[%s7447_s28 + $0x7] sm:$0x1] }
 0x57b   : > { %5039 = vadd.xlane.f32.xlu1 %v5036_v51  ;;  %v6354_v30 = vsel %vm807_vm0, %v6130_v52, %v6280_v20  ;;  %v6182_v40 = vpop.permute.xlu0 %6181  ;;  %v6004_v51 = vand.u32 15, %v5988_v23  ;;  %v5774_v52 = vshra.s32 %v11897_v19, 4 }
 0x57c   : > { %v6388_v15 = vcvt.s32.f32 %v6354_v30  ;;  %6471 = vmatprep.subr.bf16.mxu0 %v6438_v7  ;;  %v6305_v13 = vsel %vm807_vm0, %v5937_v39, %v6182_v40  ;;  %v6132_v7 = vand.u32 15, %v6116_v54  ;;  %v5782_v30 = vshra.s32 %v11897_v19, 20 }
 0x57d   : > { %5822 = vadd.xlane.f32.xlu0 %v5820_v61  ;;  %v6381_v62 = vcvt.s32.f32 %v6305_v13  ;;  %v6052_v13 = vshra.s32 %v7274_v37, 16 }
 0x57e   : > { %v6184_v27 = vpop.permute.xlu1 %6183  ;;  %v6440_v0 = vpack.c.bf16 %v6388_v15, %v6384_v22  ;;  %v6051_v15 = vshra.s32 %v7273_v18, 16 }
 0x57f   : > { %6607 = vadd.xlane.f32.xlu1 %v6605_v21  ;;  %v6306_v11 = vsel %vm807_vm0, %v5938_v10, %v6184_v27  ;;  %v6246_v34 = vpop.permute.xlu0 %6245 }
 0x580   : > { %v6385_v14 = vcvt.s32.f32 %v6306_v11  ;;  %6514 = vmatprep.subr.bf16.mxu1 %v6440_v0  ;;  %v6337_v59 = vsel %vm807_vm0, %v6065_v17, %v6246_v34  ;;  %v5783_v34 = vand.u32 15, %v5782_v30  ;;  %v6067_v18 = vand.u32 15, %v6051_v15 }
 0x581   : > { %5824 = vadd.xlane.f32.xlu0 %v5821_v32  ;;  %v6383_v43 = vcvt.s32.f32 %v6337_v59  ;;  %v5775_v32 = vand.u32 15, %v5774_v52  ;;  %v11910_v59 = vld [vmem:[%s7442_s17 + $0x3c0] sm:$0xff]  ;;  %v4214_v30 = vshra.s32 %v11763_v44, 24 }
 0x582   : > { %v6437_v1 = vpack.c.bf16 %v6385_v14, %v6381_v62  ;;  %v6248_v25 = vpop.permute.xlu1 %6247  ;;  %v5778_v62 = vshra.s32 %v11897_v19, 12  ;;  %v6117_v54 = vshra.s32 %v11910_v59, 24 }
 0x583   : > { %v6338_v12 = vsel %vm807_vm0, %v6066_v29, %v6248_v25  ;;  %v6218_v61 = vpop.permute.xlu0 %6217  ;;  %v5791_v29 = vrot.slane %v5775_v32, %v12984_v4  ;;  %v6068_v25 = vand.u32 15, %v6052_v13 }
 0x584   : > { %v6387_v56 = vcvt.s32.f32 %v6338_v12  ;;  %6472 = vmatpush1.bf16.msra.mxu0 %v6437_v1  ;;  %v6323_v26 = vsel %vm807_vm0, %v6003_v24, %v6218_v61  ;;  %v5989_v24 = vshra.s32 %v11910_v59, 8  ;;  %v4210_v1 = vshra.s32 %v11763_v44, 16 }
 0x585   : > { %6609 = vadd.xlane.f32.xlu0 %v6606_v9  ;;  %v6390_v20 = vcvt.s32.f32 %v6323_v26  ;;  %v5940_v9 = vand.u32 15, %v7274_v37  ;;  %v5779_v52 = vand.u32 15, %v5778_v62 }
 0x586   : > { %v6439_v39 = vpack.c.bf16 %v6387_v56, %v6383_v43  ;;  %v6220_v58 = vpop.permute.xlu1 %6219  ;;  %v11918_v43 = vld [vmem:[%s7442_s17 + $0x3c8] sm:$0xff]  ;;  %v4211_v32 = vand.u32 15, %v4210_v1 }
 0x587   : > { %v6324_v22 = vsel %vm807_vm0, %v6004_v51, %v6220_v58  ;;  %v6282_v21 = vpop.permute.xlu0 %6281  ;;  %v5990_v37 = vshra.s32 %v11918_v43, 8  ;;  %v6563_v58 = vshra.s32 %v11914_v35, 12  ;;  %v6118_v13 = vshra.s32 %v11918_v43, 24 }
 0x588   : > { %v6394_v10 = vcvt.s32.f32 %v6324_v22  ;;  %6515 = vmatpush1.bf16.msra.mxu1 %v6439_v39  ;;  %v6355_v40 = vsel %vm807_vm0, %v6131_v2, %v6282_v21  ;;  %v5803_v2 = vrot.slane %v5783_v34, %v12984_v4  ;;  %v7064_v39 = vshrl.u32 %v11897_v19, 28 }
 0x589   : > { %v6392_v33 = vcvt.s32.f32 %v6355_v40  ;;  %v6559_v21 = vshra.s32 %v11914_v35, 4  ;;  %v5797_v62 = vrot.slane %v5779_v52, %v12984_v4  ;;  %v6567_v34 = vshra.s32 %v11914_v35, 20 }
 0x58a   : > { %v6284_v17 = vpop.permute.xlu1 %6283  ;;  %v6442_v27 = vpack.c.bf16 %v6394_v10, %v6390_v20  ;;  %v6006_v10 = vand.u32 15, %v5990_v37  ;;  %v6134_v37 = vand.u32 15, %v6118_v13 }
 0x58b   : > { %v6356_v0 = vsel %vm807_vm0, %v6132_v7, %v6284_v17  ;;  %v6186_v11 = vpop.permute.xlu0 %6185  ;;  %v6005_v7 = vand.u32 15, %v5989_v24  ;;  %v6133_v17 = vand.u32 15, %v6117_v54  ;;  %v6053_v54 = vshra.s32 %v11910_v59, 16 }
 0x58c   : > { %v6396_v23 = vcvt.s32.f32 %v6356_v0  ;;  %6473 = vmatprep.subr.bf16.mxu0 %v6442_v27  ;;  %v6307_v14 = vsel %vm807_vm0, %v5939_v47, %v6186_v11  ;;  %v5809_v0 = vrot.slane %v7064_v39, %v12984_v4 }
 0x58d   : > { %v6389_v51 = vcvt.s32.f32 %v6307_v14 }
 0x58e   : > { %v6188_v12 = vpop.permute.xlu1 %6187  ;;  %v6444_v61 = vpack.c.bf16 %v6396_v23, %v6392_v33  ;;  %v13001_v23 = vld [vmem:[#allocation28_spill] sm:$0xff] }
 0x58f   : > { %v6308_v56 = vsel %vm807_vm0, %v5940_v9, %v6188_v12  ;;  %v6250_v26 = vpop.permute.xlu0 %6249  ;;  %v6564_v9 = vand.u32 15, %v6563_v58  ;;  %v4244_v14 = vsel %vm807_vm0, %v4211_v32, %v13001_v23  ;;  %v5941_v12 = vand.u32 15, %v11910_v59 }
 0x590   : > { %5792 = vrot.lane.b32.xlu1 %v5791_v29, %s7355_s8  ;;  %v6393_v20 = vcvt.s32.f32 %v6308_v56  ;;  %6516 = vmatprep.subr.bf16.mxu1 %v6444_v61  ;;  %v6339_v22 = vsel %vm807_vm0, %v6067_v18, %v6250_v26  ;;  %v6560_v29 = vand.u32 15, %v6559_v21  ;;  %v4215_v18 = vand.u32 15, %v4214_v30 }
 0x591   : > { %v6391_v15 = vcvt.s32.f32 %v6339_v22  ;;  %v6582_v52 = vrot.slane %v6564_v9, %v12984_v4  ;;  %v7084_v56 = vshrl.u32 %v11914_v35, 28  ;;  %v6568_v58 = vand.u32 15, %v6567_v34  ;;  %v13002_v22 = vld [vmem:[#allocation49_spill] sm:$0xff] }
 0x592   : > { %v6441_v40 = vpack.c.bf16 %v6393_v20, %v6389_v51  ;;  %v6252_v47 = vpop.permute.xlu1 %6251  ;;  %v6576_v39 = vrot.slane %v6560_v29, %v12984_v4  ;;  %v4248_v20 = vcvt.s32.f32 %v4244_v14  ;;  %v4245_v59 = vsel %vm807_vm0, %v4215_v18, %v13002_v22  ;;  %v11965_v18 = vld [vmem:[%s7442_s17 + $0x3d8] sm:$0xff] }
 0x593   : > { %v6340_v33 = vsel %vm807_vm0, %v6068_v25, %v6252_v47  ;;  %v6222_v27 = vpop.permute.xlu0 %6221  ;;  %v5942_v30 = vand.u32 15, %v11918_v43  ;;  %v6054_v47 = vshra.s32 %v11918_v43, 16  ;;  %v6594_v13 = vrot.slane %v7084_v56, %v12984_v4 }
 0x594   : > { %5804 = vrot.lane.b32.xlu1 %v5803_v2, %s7355_s8  ;;  %v6395_v11 = vcvt.s32.f32 %v6340_v33  ;;  %6474 = vmatpush1.bf16.msra.mxu0 %v6441_v40  ;;  %v6325_v44 = vsel %vm807_vm0, %v6005_v7, %v6222_v27  ;;  %v11957_v27 = vld [vmem:[%s7442_s17 + $0x3d0] sm:$0xff]  ;;  %v4249_v9 = vcvt.s32.f32 %v4245_v59  ;;  %v4311_v29 = vmul.f32 %v11446_v53, %v4248_v20 }
 0x595   : > { %v6398_v25 = vcvt.s32.f32 %v6325_v44  ;;  %v6070_v23 = vand.u32 15, %v6054_v47 }
 0x596   : > { %v6443_v24 = vpack.c.bf16 %v6395_v11, %v6391_v15  ;;  %v6224_v1 = vpop.permute.xlu1 %6223  ;;  %v6069_v15 = vand.u32 15, %v6053_v54  ;;  %v4312_v53 = vmul.f32 %v11457_v55, %v4249_v9 }
 0x597   : > { %v6326_v51 = vsel %vm807_vm0, %v6006_v10, %v6224_v1  ;;  %v6286_v61 = vpop.permute.xlu0 %6285 }
 0x598   : > { %5810 = vrot.lane.b32.xlu1 %v5809_v0, %s7355_s8  ;;  %v6402_v26 = vcvt.s32.f32 %v6326_v51  ;;  %6517 = vmatpush1.bf16.msra.mxu1 %v6443_v24  ;;  %v6357_v2 = vsel %vm807_vm0, %v6133_v17, %v6286_v61  ;;  %v6588_v0 = vrot.slane %v6568_v58, %v12984_v4  ;;  %v5992_v24 = vshra.s32 %v11965_v18, 8 }
 0x599   : > { %v6400_v21 = vcvt.s32.f32 %v6357_v2  ;;  %v6120_v2 = vshra.s32 %v11965_v18, 24  ;;  %v4324_v58 = vrot.slane %v4311_v29, %v12984_v4  ;;  %v4328_v59 = vrot.slane %v4312_v53, %v12984_v4 }
 0x59a   : > { %v6288_v7 = vpop.permute.xlu1 %6287  ;;  %v6446_v32 = vpack.c.bf16 %v6402_v26, %v6398_v25  ;;  %v6008_v56 = vand.u32 15, %v5992_v24 }
 0x59b   : > { %5798 = vrot.lane.b32.xlu0 %v5797_v62, %s7355_s8  ;;  %v6358_v10 = vsel %vm807_vm0, %v6134_v37, %v6288_v7  ;;  %v6190_v40 = vpop.permute.xlu0 %6189  ;;  %v5991_v62 = vshra.s32 %v11957_v27, 8  ;;  %v11984_v7 = vrot.slane %v11821_v8, %v12989_v57  ;;  %v6136_v47 = vand.u32 15, %v6120_v2 }
 0x59c   : > { %6583 = vrot.lane.b32.xlu1 %v6582_v52, %s7355_s8  ;;  %v6404_v17 = vcvt.s32.f32 %v6358_v10  ;;  %6475 = vmatprep.subr.bf16.mxu0 %v6446_v32  ;;  %v6309_v33 = vsel %vm807_vm0, %v5941_v12, %v6190_v40  ;;  %v6119_v12 = vshra.s32 %v11957_v27, 24  ;;  %v4331_v10 = vmul.f32 %v4324_v58, %v12998_v60 }
 0x59d   : > { %v6397_v11 = vcvt.s32.f32 %v6309_v33  ;;  %v6007_v37 = vand.u32 15, %v5991_v62  ;;  %v5077_v9 = vrot.slane %v11984_v7, %v12984_v4 }
 0x59e   : > { %v6192_v43 = vpop.permute.xlu1 %6191  ;;  %v6448_v44 = vpack.c.bf16 %v6404_v17, %v6400_v21  ;;  %v6135_v55 = vand.u32 15, %v6119_v12  ;;  %v4332_v17 = vmul.f32 %v4328_v59, %v12998_v60  ;;  %v12005_v12 = vld [vmem:[%s7442_s17 + $0x3e0] sm:$0xff] }
 0x59f   : > { %6577 = vrot.lane.b32.xlu0 %v6576_v39, %s7355_s8  ;;  %v6310_v34 = vsel %vm807_vm0, %v5942_v30, %v6192_v43  ;;  %v6254_v14 = vpop.permute.xlu0 %6253  ;;  %v11977_v39 = vrot.slane %v11821_v8, %v12987_v16  ;;  %v5943_v8 = vand.u32 15, %v11957_v27  ;;  %v4335_v43 = vmul.f32 %v4324_v58, %v13000_v45 }
 0x5a0   : > { %6595 = vrot.lane.b32.xlu1 %v6594_v13, %s7355_s8  ;;  %v6401_v1 = vcvt.s32.f32 %v6310_v34  ;;  %6518 = vmatprep.subr.bf16.mxu1 %v6448_v44  ;;  %v6341_v25 = vsel %vm807_vm0, %v6069_v15, %v6254_v14  ;;  %v6056_v44 = vshra.s32 %v11965_v18, 16  ;;  %v4339_v34 = vsub.f32 %v11505_v41, %v4331_v10 }
 0x5a1   : > { %v6399_v54 = vcvt.s32.f32 %v6341_v25  ;;  %v5073_v13 = vrot.slane %v11977_v39, %v12984_v4  ;;  %v5944_v25 = vand.u32 15, %v11965_v18 }
 0x5a2   : > { %v6445_v51 = vpack.c.bf16 %v6401_v1, %v6397_v11  ;;  %v6256_v61 = vpop.permute.xlu1 %6255  ;;  %v4336_v11 = vmul.f32 %v4328_v59, %v13000_v45  ;;  %v5993_v45 = vshra.s32 %v12005_v12, 8 }
 0x5a3   : > { %6589 = vrot.lane.b32.xlu0 %v6588_v0, %s7355_s8  ;;  %v6342_v52 = vsel %vm807_vm0, %v6070_v23, %v6256_v61  ;;  %v6226_v26 = vpop.permute.xlu0 %6225  ;;  %v6055_v0 = vshra.s32 %v11957_v27, 16  ;;  %v4340_v23 = vsub.f32 %v11508_v49, %v4332_v17  ;;  %v4343_v27 = vsub.f32 %v11513_v63, %v4335_v43  ;;  %v7280_v63 = vld [vmem:[%s7442_s17 + $0x3e8] sm:$0xff] }
 0x5a4   : > { %v6403_v20 = vcvt.s32.f32 %v6342_v52  ;;  %6476 = vmatpush1.bf16.msra.mxu0 %v6445_v51  ;;  %v6327_v22 = vsel %vm807_vm0, %v6007_v37, %v6226_v26  ;;  %v6072_v26 = vand.u32 15, %v6056_v44  ;;  %v5994_v2 = vshra.s32 %v7280_v63, 8 }
 0x5a5   : > { %v6406_v30 = vcvt.s32.f32 %v6327_v22  ;;  %v6071_v49 = vand.u32 15, %v6055_v0  ;;  %v6121_v17 = vshra.s32 %v12005_v12, 24 }
 0x5a6   : > { %v6447_v21 = vpack.c.bf16 %v6403_v20, %v6399_v54  ;;  %v6228_v32 = vpop.permute.xlu1 %6227  ;;  %v6010_v43 = vand.u32 15, %v5994_v2 }
 0x5a7   : > { %v6328_v40 = vsel %vm807_vm0, %v6008_v56, %v6228_v32  ;;  %v6290_v15 = vpop.permute.xlu0 %6289  ;;  %v4344_v56 = vsub.f32 %v11517_v46, %v4336_v11 }
 0x5a8   : > { %v6410_v33 = vcvt.s32.f32 %v6328_v40  ;;  %6519 = vmatpush1.bf16.msra.mxu1 %v6447_v21  ;;  %v6359_v62 = vsel %vm807_vm0, %v6135_v55, %v6290_v15  ;;  %v6009_v40 = vand.u32 15, %v5993_v45  ;;  %v5945_v45 = vand.u32 15, %v12005_v12 }
 0x5a9   : > { %v6408_v60 = vcvt.s32.f32 %v6359_v62 }
 0x5aa   : > { %v6292_v29 = vpop.permute.xlu1 %6291  ;;  %v6450_v14 = vpack.c.bf16 %v6410_v33, %v6406_v30 }
 0x5ab   : > { %v6360_v24 = vsel %vm807_vm0, %v6136_v47, %v6292_v29  ;;  %v6194_v37 = vpop.permute.xlu0 %6193 }
 0x5ac   : > { %v4974_v1 = vpop.f32.mrb[20].mxu1  ;;  %v6412_v53 = vcvt.s32.f32 %v6360_v24  ;;  %6477 = vmatprep.subr.bf16.mxu0 %v6450_v14  ;;  %v6311_v41 = vsel %vm807_vm0, %v5943_v8, %v6194_v37 }
 0x5ad   : > { %v5080_v51 = vmul.f32 %v5073_v13, %v4974_v1  ;;  %v4976_v61 = vpop.f32.mrb[21].mxu1  ;;  %v6405_v22 = vcvt.s32.f32 %v6311_v41 }
 0x5ae   : > { %v5081_v54 = vmul.f32 %v5077_v9, %v4976_v61  ;;  %v4978_v52 = vpop.f32.mrb[22].mxu1  ;;  %v6196_v20 = vpop.permute.xlu1 %6195  ;;  %v6452_v59 = vpack.c.bf16 %v6412_v53, %v6408_v60  ;;  %v6137_v60 = vand.u32 15, %v6121_v17  ;;  %v6057_v53 = vshra.s32 %v12005_v12, 16 }
 0x5af   : > { %v12011_v18 = vadd.f32 %v5080_v51, %v4339_v34  ;;  %v5084_v58 = vmul.f32 %v5073_v13, %v4978_v52  ;;  %v4980_v55 = vpop.f32.mrb[23].mxu1  ;;  %v6312_v32 = vsel %vm807_vm0, %v5944_v25, %v6196_v20  ;;  %v6258_v10 = vpop.permute.xlu0 %6257  ;;  %v7281_v20 = vld [vmem:[%s7442_s17 + $0x3f0] sm:$0xff] }
 0x5b0   : > { %v12013_v21 = vadd.f32 %v5081_v54, %v4340_v23  ;;  %v5085_v30 = vmul.f32 %v5077_v9, %v4980_v55  ;;  %v6409_v46 = vcvt.s32.f32 %v6312_v32  ;;  %6520 = vmatprep.subr.bf16.mxu1 %v6452_v59  ;;  %v6343_v15 = vsel %vm807_vm0, %v6071_v49, %v6258_v10 }
 0x5b1   : > { %v12016_v47 = vadd.f32 %v5084_v58, %v4343_v27  ;;  %v6407_v8 = vcvt.s32.f32 %v6343_v15  ;;  %v6122_v9 = vshra.s32 %v7280_v63, 24  ;;  %v5946_v54 = vand.u32 15, %v7280_v63 }
 0x5b2   : > { %v12020_v13 = vadd.f32 %v5085_v30, %v4344_v56  ;;  %v6449_v33 = vpack.c.bf16 %v6409_v46, %v6405_v22  ;;  %v6260_v62 = vpop.permute.xlu1 %6259  ;;  %v6058_v56 = vshra.s32 %v7280_v63, 16  ;;  %v6073_v58 = vand.u32 15, %v6057_v53 }
 0x5b3   : > { %v6344_v0 = vsel %vm807_vm0, %v6072_v26, %v6260_v62  ;;  %v6230_v11 = vpop.permute.xlu0 %6229  ;;  %v6138_v1 = vand.u32 15, %v6122_v9  ;;  %v5995_v22 = vshra.s32 %v7281_v20, 8  ;;  %v5947_v53 = vand.u32 15, %v7281_v20 }
 0x5b4   : > { %v6411_v44 = vcvt.s32.f32 %v6344_v0  ;;  %6478 = vmatpush1.bf16.msra.mxu0 %v6449_v33  ;;  %v6329_v29 = vsel %vm807_vm0, %v6009_v40, %v6230_v11  ;;  %v6074_v30 = vand.u32 15, %v6058_v56  ;;  %v7282_v40 = vld [vmem:[%s7442_s17 + $0x3f8] sm:$0xff]  ;;  %v6123_v33 = vshra.s32 %v7281_v20, 24 }
 0x5b5   : > { %v6414_v14 = vcvt.s32.f32 %v6329_v29  ;;  %v5996_v46 = vshra.s32 %v7282_v40, 8  ;;  %v6011_v17 = vand.u32 15, %v5995_v22 }
 0x5b6   : > { %v6451_v34 = vpack.c.bf16 %v6411_v44, %v6407_v8  ;;  %v6232_v23 = vpop.permute.xlu1 %6231  ;;  %v6124_v44 = vshra.s32 %v7282_v40, 24 }
 0x5b7   : > { %v6330_v24 = vsel %vm807_vm0, %v6010_v43, %v6232_v23  ;;  %v6294_v27 = vpop.permute.xlu0 %6293  ;;  %v6012_v11 = vand.u32 15, %v5996_v46 }
 0x5b8   : > { %v6418_v25 = vcvt.s32.f32 %v6330_v24  ;;  %6521 = vmatpush1.bf16.msra.mxu1 %v6451_v34  ;;  %v6361_v37 = vsel %vm807_vm0, %v6137_v60, %v6294_v27  ;;  %v6139_v34 = vand.u32 15, %v6123_v33  ;;  %v6140_v27 = vand.u32 15, %v6124_v44 }
 0x5b9   : > { %v6416_v61 = vcvt.s32.f32 %v6361_v37 }
 0x5ba   : > { %v6296_v51 = vpop.permute.xlu1 %6295  ;;  %v6454_v41 = vpack.c.bf16 %v6418_v25, %v6414_v14 }
 0x5bb   : > { %v6362_v49 = vsel %vm807_vm0, %v6138_v1, %v6296_v51  ;;  %v6198_v52 = vpop.permute.xlu0 %6197  ;;  %v6059_v51 = vshra.s32 %v7281_v20, 16 }
 0x5bc   : > { %v6420_v26 = vcvt.s32.f32 %v6362_v49  ;;  %6479 = vmatprep.subr.bf16.mxu0 %v6454_v41  ;;  %v6313_v2 = vsel %vm807_vm0, %v5945_v45, %v6198_v52  ;;  %v5948_v52 = vand.u32 15, %v7282_v40 }
 0x5bd   : > { %v6413_v59 = vcvt.s32.f32 %v6313_v2  ;;  %v6075_v22 = vand.u32 15, %v6059_v51 }
 0x5be   : > { %v6200_v55 = vpop.permute.xlu1 %6199  ;;  %v6456_v32 = vpack.c.bf16 %v6420_v26, %v6416_v61  ;;  %v6060_v26 = vshra.s32 %v7282_v40, 16 }
 0x5bf   : > { %v6314_v12 = vsel %vm807_vm0, %v5946_v54, %v6200_v55  ;;  %v6262_v10 = vpop.permute.xlu0 %6261 }
 0x5c0   : > { %v6417_v15 = vcvt.s32.f32 %v6314_v12  ;;  %6522 = vmatprep.subr.bf16.mxu1 %v6456_v32  ;;  %v6345_v63 = vsel %vm807_vm0, %v6073_v58, %v6262_v10  ;;  %v6076_v20 = vand.u32 15, %v6060_v26 }
 0x5c1   : > { %v6415_v0 = vcvt.s32.f32 %v6345_v63 }
 0x5c2   : > { %v6453_v62 = vpack.c.bf16 %v6417_v15, %v6413_v59  ;;  %v6264_v8 = vpop.permute.xlu1 %6263 }
 0x5c3   : > { %v6346_v43 = vsel %vm807_vm0, %v6074_v30, %v6264_v8  ;;  %v6234_v9 = vpop.permute.xlu0 %6233  ;;  %v7283_v8 = vld [vmem:[%s7447_s28 + $0x5] sm:$0x1] }
 0x5c4   : > { %v6419_v29 = vcvt.s32.f32 %v6346_v43  ;;  %6480 = vmatpush1.bf16.msra.mxu0 %v6453_v62  ;;  %v6331_v60 = vsel %vm807_vm0, %v6011_v17, %v6234_v9  ;;  %v4995_v43 = vshra.s32 %v7283_v8, 16  ;;  %v4988_v9 = vand.u32 15, %v7283_v8 }
 0x5c5   : > { %v6422_v24 = vcvt.s32.f32 %v6331_v60 }
 0x5c6   : > { %v6455_v23 = vpack.c.bf16 %v6419_v29, %v6415_v0  ;;  %v6236_v14 = vpop.permute.xlu1 %6235  ;;  %v4991_v0 = vshra.s32 %v7283_v8, 8  ;;  %v4996_v29 = vand.u32 15, %v4995_v43 }
 0x5c7   : > { %v6332_v1 = vsel %vm807_vm0, %v6012_v11, %v6236_v14  ;;  %v6298_v25 = vpop.permute.xlu0 %6297  ;;  %v4999_v11 = vshra.s32 %v7283_v8, 24 }
 0x5c8   : > { %v6426_v37 = vcvt.s32.f32 %v6332_v1  ;;  %6523 = vmatpush1.bf16.msra.mxu1 %v6455_v23  ;;  %v6363_v45 = vsel %vm807_vm0, %v6139_v34, %v6298_v25  ;;  %v4992_v44 = vand.u32 15, %v4991_v0  ;;  %v5027_v23 = vsel %vm807_vm0, %v4988_v9, %v11360_v31 }
 0x5c9   : > { %v6424_v41 = vcvt.s32.f32 %v6363_v45  ;;  %v5000_v60 = vand.u32 15, %v4999_v11 }
 0x5ca   : > { %v6300_v61 = vpop.permute.xlu1 %6299  ;;  %v6458_v49 = vpack.c.bf16 %v6426_v37, %v6422_v24  ;;  %v5028_v24 = vsel %vm807_vm0, %v4992_v44, %v11366_v28 }
 0x5cb   : > { %v6364_v54 = vsel %vm807_vm0, %v6140_v27, %v6300_v61  ;;  %v6202_v56 = vpop.permute.xlu0 %6201  ;;  %v12052_v27 = vld [vmem:[%s7452_s6 + $0x18] sm:$0xff]   ;;  %v5032_v37 = vcvt.s32.f32 %v5028_v24 }
 0x5cc   : > { %v6428_v2 = vcvt.s32.f32 %v6364_v54  ;;  %6481 = vmatprep.subr.bf16.mxu0 %v6458_v49  ;;  %v6315_v58 = vsel %vm807_vm0, %v5947_v53, %v6202_v56  ;;  %v5770_v53 = vunpack.c.l.bf16 %v12052_v27 }
 0x5cd   : > { %v6421_v59 = vcvt.s32.f32 %v6315_v58  ;;  %v5095_v31 = vmul.f32 %v11836_v38, %v5032_v37 }
 0x5ce   : > { %v6204_v55 = vpop.permute.xlu1 %6203  ;;  %v6460_v32 = vpack.c.bf16 %v6428_v2, %v6424_v41  ;;  %v12060_v28 = vrot.slane %v5770_v53, %v12984_v4  ;;  %v12070_v38 = vrot.slane %v5770_v53, %v12987_v16 }
 0x5cf   : > { %v6316_v12 = vsel %vm807_vm0, %v5948_v52, %v6204_v55  ;;  %v6266_v30 = vpop.permute.xlu0 %6265  ;;  %v12064_v52 = vrot.slane %v5770_v53, %v12999_v48  ;;  %v5105_v26 = vrot.slane %v5095_v31, %v12984_v4  ;;  %v12076_v55 = vrot.slane %v5770_v53, %v12989_v57 }
 0x5d0   : > { %v6425_v10 = vcvt.s32.f32 %v6316_v12  ;;  %6524 = vmatprep.subr.bf16.mxu1 %v6460_v32  ;;  %v6347_v46 = vsel %vm807_vm0, %v6075_v22, %v6266_v30 }
 0x5d1   : > { %v6423_v40 = vcvt.s32.f32 %v6347_v46  ;;  %v5862_v8 = vrot.slane %v12076_v55, %v12984_v4 }
 0x5d2   : > { %v6457_v15 = vpack.c.bf16 %v6425_v10, %v6421_v59  ;;  %v6268_v63 = vpop.permute.xlu1 %6267  ;;  %v5854_v59 = vrot.slane %v12064_v52, %v12984_v4 }
 0x5d3   : > { %v6348_v17 = vsel %vm807_vm0, %v6076_v20, %v6268_v63  ;;  %v5020_v34 = vpop.permute.xlu0 %5019  ;;  %v5858_v63 = vrot.slane %v12070_v38, %v12984_v4 }
 0x5d4   : > { %v6427_v33 = vcvt.s32.f32 %v6348_v17  ;;  %6482 = vmatpush1.bf16.msra.mxu0 %v6457_v15  ;;  %v5029_v1 = vsel %vm807_vm0, %v4996_v29, %v5020_v34 }
 0x5d5   : > { %v5033_v45 = vcvt.s32.f32 %v5029_v1 }
 0x5d6   : > { %v6459_v62 = vpack.c.bf16 %v6427_v33, %v6423_v40  ;;  %v5026_v14 = vpop.permute.xlu1 %5025 }
 0x5d7   : > { %6500 = vmatmul.mubr.bf16.vlgmr.msra.gmra.mrb[28].mxu0 %v11612_v6  ;;  %v5030_v25 = vsel %vm807_vm0, %v5000_v60, %v5026_v14  ;;  %v5096_v41 = vmul.f32 %v11977_v39, %v5033_v45  ;;  %v5850_v39 = vrot.slane %v12060_v28, %v12984_v4 }
 0x5d8   : > { %6525 = vmatpush1.bf16.msra.mxu1 %v6459_v62  ;;  %v5034_v51 = vcvt.s32.f32 %v5030_v25 }
 0x5da   : > { %v5097_v49 = vmul.f32 %v11984_v7, %v5034_v51 }
 0x5db   : > { %6543 = vmatmul.mubr.bf16.vlgmr.msra.gmra.mrb[28].mxu1 %v11612_v6  ;;  %v5031_v6 = vcvt.s32.f32 %v5027_v23 }
 0x5dc   : > { %v5113_v7 = vrot.slane %v5097_v49, %v12984_v4 }
 0x5dd   : > { %v5094_v61 = vmul.f32 %v11830_v3, %v5031_v6  ;;  %v5109_v3 = vrot.slane %v5096_v41, %v12984_v4 }
 0x5df   : > { %v5101_v56 = vrot.slane %v5094_v61, %v12984_v4 }
 0x606   : > { %v5038_v54 = vpop.xlane.xlu0 %5037 }
 0x607   : > { %v5114_v58 = vmul.f32 %v5101_v56, %v5038_v54  ;;  %v5115_v22 = vmul.f32 %v5105_v26, %v5038_v54  ;;  %v5116_v30 = vmul.f32 %v5109_v3, %v5038_v54  ;;  %v5117_v40 = vmul.f32 %v5113_v7, %v5038_v54 }
 0x608   : > { %v5040_v2 = vpop.xlane.xlu1 %5039 }
 0x609   : > { %v5118_v32 = vmul.f32 %v5101_v56, %v5040_v2  ;;  %v5119_v12 = vmul.f32 %v5105_v26, %v5040_v2  ;;  %v5122_v10 = vsub.f32 %v11864_v36, %v5114_v58  ;;  %v5123_v17 = vsub.f32 %v11866_v50, %v5115_v22 }
 0x60a   : > { %v5120_v0 = vmul.f32 %v5109_v3, %v5040_v2  ;;  %v5121_v44 = vmul.f32 %v5113_v7, %v5040_v2  ;;  %v5124_v14 = vsub.f32 %v12011_v18, %v5116_v30  ;;  %v5125_v25 = vsub.f32 %v12013_v21, %v5117_v40  ;;  %v12108_v54 = vpop.xlane.xlu0 %5822 }
 0x60b   : > { %v5126_v11 = vsub.f32 %v11869_v42, %v5118_v32  ;;  %v5127_v60 = vsub.f32 %v11873_v5, %v5119_v12  ;;  %v5784_v7 = vshra.s32 %v11897_v19, 24  ;;  %v6561_v22 = vshra.s32 %v11914_v35, 8 }
 0x60c   : > { %v5128_v53 = vsub.f32 %v12016_v47, %v5120_v0  ;;  %v5129_v31 = vsub.f32 %v12020_v13, %v5121_v44  ;;  %v12110_v21 = vpop.xlane.xlu1 %6607  ;;  %v5780_v13 = vshra.s32 %v11897_v19, 16  ;;  %v5773_v32 = vand.u32 15, %v11897_v19 }
 0x60d   : > { %v6558_v40 = vand.u32 15, %v11914_v35 }
 0x60e   : > { %v12112_v56 = vpop.xlane.xlu0 %5824 }
 0x610   : > { %v5793_v26 = vpop.permute.xlu1 %5792 }
 0x612   : > { %v12114_v2 = vpop.xlane.xlu0 %6609 }
 0x614   : > { %v5805_v47 = vpop.permute.xlu1 %5804 }
 0x616   : > { %v5799_v3 = vpop.permute.xlu0 %5798 }
 0x618   : > { %v5811_v58 = vpop.permute.xlu1 %5810 }
 0x61c   : > { %v6584_v12 = vpop.permute.xlu1 %6583 }
 0x62a   : > { %v5716_v20 = vpop.f32.mrb[24].mxu0 }
 0x62b   : > { %v5863_v46 = vmul.f32 %v5850_v39, %v5716_v20  ;;  %v5718_v15 = vpop.f32.mrb[25].mxu0  ;;  %v6565_v20 = vshra.s32 %v11914_v35, 16 }
 0x62c   : > { %v5864_v33 = vmul.f32 %v5854_v59, %v5718_v15  ;;  %v5720_v62 = vpop.f32.mrb[26].mxu0  ;;  %v5785_v15 = vand.u32 15, %v5784_v7 }
 0x62d   : > { %v12086_v43 = vadd.f32 %v5863_v46, %v5122_v10  ;;  %v5867_v9 = vmul.f32 %v5850_v39, %v5720_v62  ;;  %v5722_v36 = vpop.f32.mrb[27].mxu0  ;;  %v5776_v39 = vshra.s32 %v11897_v19, 8  ;;  %v6569_v10 = vshra.s32 %v11914_v35, 24 }
 0x62e   : > { %v12089_v29 = vadd.f32 %v5864_v33, %v5123_v17  ;;  %v5868_v34 = vmul.f32 %v5854_v59, %v5722_v36  ;;  %v5759_v23 = vpop.f32.mrb[24].mxu1  ;;  %v6578_v59 = vpop.permute.xlu0 %6577  ;;  %v5781_v46 = vand.u32 15, %v5780_v13  ;;  %v5812_v17 = vsel %vm807_vm0, %v5773_v32, %v5793_v26 }
 0x62f   : > { %v12092_v50 = vadd.f32 %v5867_v9, %v5126_v11  ;;  %v5865_v24 = vmul.f32 %v5858_v63, %v5759_v23  ;;  %v5761_v1 = vpop.f32.mrb[25].mxu1  ;;  %v5777_v30 = vand.u32 15, %v5776_v39  ;;  %v6566_v33 = vand.u32 15, %v6565_v20  ;;  %v6596_v9 = vpop.permute.xlu1 %6595 }
 0x630   : > { %v12095_v6 = vadd.f32 %v5868_v34, %v5127_v60  ;;  %v5866_v42 = vmul.f32 %v5862_v8, %v5761_v1  ;;  %v5763_v37 = vpop.f32.mrb[26].mxu1  ;;  %v6570_v0 = vand.u32 15, %v6569_v10  ;;  %v5814_v11 = vsel %vm807_vm0, %v5781_v46, %v5805_v47 }
 0x631   : > { %v12098_v45 = vadd.f32 %v5865_v24, %v5124_v14  ;;  %v5869_v51 = vmul.f32 %v5858_v63, %v5763_v37  ;;  %v5765_v5 = vpop.f32.mrb[27].mxu1  ;;  %v6562_v63 = vand.u32 15, %v6561_v22  ;;  %v5813_v62 = vsel %vm807_vm0, %v5777_v30, %v5799_v3 }
 0x632   : > { %v12101_v61 = vadd.f32 %v5866_v42, %v5125_v25  ;;  %v5870_v41 = vmul.f32 %v5862_v8, %v5765_v5  ;;  %v6555_v8 = vunpack.c.h.bf16 %v12052_v27  ;;  %v6590_v19 = vpop.permute.xlu0 %6589  ;;  %v5816_v36 = vcvt.s32.f32 %v5812_v17 }
 0x633   : > { %v12104_v18 = vadd.f32 %v5869_v51, %v5128_v53  ;;  %v5815_v44 = vsel %vm807_vm0, %v5785_v15, %v5811_v58  ;;  %v6598_v60 = vsel %vm807_vm0, %v6562_v63, %v6584_v12  ;;  %v6597_v34 = vsel %vm807_vm0, %v6558_v40, %v6578_v59 }
 0x634   : > { %v12106_v49 = vadd.f32 %v5870_v41, %v5129_v31  ;;  %v5817_v35 = vcvt.s32.f32 %v5813_v62  ;;  %v6599_v23 = vsel %vm807_vm0, %v6566_v33, %v6590_v19  ;;  %v5818_v14 = vcvt.s32.f32 %v5814_v11 }
 0x635   : > { %v6619_v24 = vrot.slane %v6555_v8, %v12999_v48  ;;  %v6600_v27 = vsel %vm807_vm0, %v6570_v0, %v6596_v9  ;;  %v5819_v1 = vcvt.s32.f32 %v5815_v44  ;;  %v6602_v25 = vcvt.s32.f32 %v6598_v60 }
 0x636   : > { %v6615_v42 = vrot.slane %v6555_v8, %v12984_v4  ;;  %v6601_v37 = vcvt.s32.f32 %v6597_v34  ;;  %v5879_v53 = vmul.f32 %v12060_v28, %v5816_v36  ;;  %v6623_v51 = vrot.slane %v6555_v8, %v12987_v16 }
 0x637   : > { %v6603_v5 = vcvt.s32.f32 %v6599_v23  ;;  %v5880_v31 = vmul.f32 %v12064_v52, %v5817_v35  ;;  %v6627_v41 = vrot.slane %v6555_v8, %v12989_v57  ;;  %v6604_v26 = vcvt.s32.f32 %v6600_v27 }
 0x638   : > { %v5881_v47 = vmul.f32 %v12070_v38, %v5818_v14  ;;  %v5882_v48 = vmul.f32 %v12076_v55, %v5819_v1  ;;  %v6665_v3 = vmul.f32 %v6619_v24, %v6602_v25  ;;  %v6664_v58 = vmul.f32 %v6615_v42, %v6601_v37 }
 0x639   : > { %v5886_v39 = vrot.slane %v5879_v53, %v12984_v4  ;;  %v6666_v13 = vmul.f32 %v6623_v51, %v6603_v5  ;;  %v5890_v7 = vrot.slane %v5880_v31, %v12984_v4  ;;  %v6667_v28 = vmul.f32 %v6627_v41, %v6604_v26 }
 0x63a   : > { %v5894_v16 = vrot.slane %v5881_v47, %v12984_v4  ;;  %v5898_v22 = vrot.slane %v5882_v48, %v12984_v4  ;;  %v6675_v52 = vrot.slane %v6665_v3, %v12984_v4  ;;  %v6671_v57 = vrot.slane %v6664_v58, %v12984_v4 }
 0x63b   : > { %v6679_v38 = vrot.slane %v6666_v13, %v12984_v4  ;;  %v5899_v55 = vmul.f32 %v5886_v39, %v12108_v54  ;;  %v6635_v59 = vrot.slane %v6615_v42, %v12984_v4  ;;  %v6683_v32 = vrot.slane %v6667_v28, %v12984_v4 }
 0x63c   : > { %v5900_v12 = vmul.f32 %v5890_v7, %v12108_v54  ;;  %v6639_v20 = vrot.slane %v6619_v24, %v12984_v4  ;;  %v5903_v30 = vmul.f32 %v5886_v39, %v12112_v56  ;;  %v5904_v10 = vmul.f32 %v5890_v7, %v12112_v56 }
 0x63d   : > { %v5901_v46 = vmul.f32 %v5894_v16, %v12108_v54  ;;  %v5905_v15 = vmul.f32 %v5894_v16, %v12112_v56  ;;  %v6684_v40 = vmul.f32 %v6671_v57, %v12110_v21  ;;  %v6685_v17 = vmul.f32 %v6675_v52, %v12110_v21 }
 0x63e   : > { %v5902_v33 = vmul.f32 %v5898_v22, %v12108_v54  ;;  %v5906_v62 = vmul.f32 %v5898_v22, %v12112_v56  ;;  %v5907_v8 = vsub.f32 %v12086_v43, %v5899_v55  ;;  %v6643_v11 = vrot.slane %v6623_v51, %v12984_v4 }
 0x63f   : > { %v6686_v9 = vmul.f32 %v6679_v38, %v12110_v21  ;;  %v5908_v36 = vsub.f32 %v12089_v29, %v5900_v12  ;;  %v6647_v34 = vrot.slane %v6627_v41, %v12984_v4  ;;  %v6687_v35 = vmul.f32 %v6683_v32, %v12110_v21 }
 0x640   : > { %v5911_v54 = vsub.f32 %v12092_v50, %v5903_v30  ;;  %v6688_v43 = vmul.f32 %v6671_v57, %v12114_v2  ;;  %v5912_v27 = vsub.f32 %v12095_v6, %v5904_v10  ;;  %v6689_v25 = vmul.f32 %v6675_v52, %v12114_v2 }
 0x641   : > { %v5909_v4 = vsub.f32 %v12098_v45, %v5901_v46  ;;  %v5910_v50 = vsub.f32 %v12101_v61, %v5902_v33  ;;  %v5913_v6 = vsub.f32 %v12104_v18, %v5905_v15  ;;  %v5914_v45 = vsub.f32 %v12106_v49, %v5906_v62  ;;  %v13005_v46 = vld [vmem:[#allocation11_spill] sm:$0xff] (!%p7085_p12) }
 0x642   : > { %v6690_v61 = vmul.f32 %v6679_v38, %v12114_v2  ;;  %v6691_v52 = vmul.f32 %v6683_v32, %v12114_v2  ;;  %v6720_v38 = vld [vmem:[%s12232_s4] sm:$0xf] (!%p7085_p12)  ;;  %v13004_v2 = vld [vmem:[#allocation9_spill] sm:$0xff] (!%p7085_p12) }
 0x643   : > { %v6725_v32 = vrot.slane (!%p7085_p12), %v6720_v38, %v13004_v2  ;;  %v6733_v15 = vrot.slane (!%p7085_p12), %v6720_v38, %v13005_v46 }
 0x6aa   : > { %v6501_v63 = vpop.f32.mrb[28].mxu0 }
 0x6ab   : > { %v6648_v0 = vmul.f32 %v6635_v59, %v6501_v63  ;;  %v6503_v19 = vpop.f32.mrb[29].mxu0 }
 0x6ac   : > { %v6649_v44 = vmul.f32 %v6639_v20, %v6503_v19  ;;  %v6505_v60 = vpop.f32.mrb[30].mxu0 }
 0x6ad   : > { %v6656_v23 = vadd.f32 %v6648_v0, %v5907_v8  ;;  %v6652_v56 = vmul.f32 %v6635_v59, %v6505_v60  ;;  %v6507_v14 = vpop.f32.mrb[31].mxu0  ;;  %v13003_v59 = vld [vmem:[#allocation8_spill] sm:$0xff] (!%p7085_p12) }
 0x6ae   : > { %v6657_v24 = vadd.f32 %v6649_v44, %v5908_v36  ;;  %v6653_v1 = vmul.f32 %v6639_v20, %v6507_v14  ;;  %v6544_v29 = vpop.f32.mrb[28].mxu1  ;;  %v6728_v12 = vsub.s32 (!%p7085_p12), 1, %v13003_v59  ;;  %v6736_v20 = vsub.s32 (!%p7085_p12), 3, %v13003_v59 }
 0x6af   : > { %v6692_v42 = vsub.f32 %v6656_v23, %v6684_v40  ;;  %v6660_v37 = vadd.f32 %v6652_v56, %v5911_v54  ;;  %v6650_v53 = vmul.f32 %v6643_v11, %v6544_v29  ;;  %v6546_v21 = vpop.f32.mrb[29].mxu1 }
 0x6b0   : > { %v6693_v51 = vsub.f32 %v6657_v24, %v6685_v17  ;;  %v6661_v5 = vadd.f32 %v6653_v1, %v5912_v27  ;;  %v6651_v31 = vmul.f32 %v6647_v34, %v6546_v21  ;;  %v6548_v41 = vpop.f32.mrb[30].mxu1  ;;  %v6729_v40 = vrot.slane (!%p7085_p12), %v6720_v38, %v6728_v12 }
 0x6b1   : > { %6700 = vst [vmem:[#allocation2] sm:$0xff] %v6692_v42  ;;  %v6696_v26 = vsub.f32 %v6660_v37, %v6688_v43  ;;  %v6658_v47 = vadd.f32 %v6650_v53, %v5909_v4  ;;  %v6654_v48 = vmul.f32 %v6643_v11, %v6548_v41  ;;  %v6550_v3 = vpop.f32.mrb[31].mxu1  ;;  %v6737_v17 = vrot.slane (!%p7085_p12), %v6720_v38, %v6736_v20 }
 0x6b2   : > { %6701 = vst [vmem:[#allocation2 + $0x8] sm:$0xff] %v6693_v51  ;;  %v6697_v58 = vsub.f32 %v6661_v5, %v6689_v25  ;;  %v6659_v39 = vadd.f32 %v6651_v31, %v5910_v50  ;;  %v6655_v13 = vmul.f32 %v6647_v34, %v6550_v3  ;;  %6711 = sbr.rel (%p7085_p12) target bundleno = 1733 (0x6c5), region = 71 }
 0x6b3   : > { %6704 = vst [vmem:[#allocation2 + $0x20] sm:$0xff] %v6696_v26  ;;  %v6694_v7 = vsub.f32 %v6658_v47, %v6686_v9  ;;  %v6662_v28 = vadd.f32 %v6654_v48, %v5913_v6 }
 0x6b4   : > { %6705 = vst [vmem:[#allocation2 + $0x28] sm:$0xff] %v6697_v58  ;;  %v6695_v16 = vsub.f32 %v6659_v39, %v6687_v35  ;;  %v6663_v22 = vadd.f32 %v6655_v13, %v5914_v45 }
 0x6b5   : > { %6702 = vst [vmem:[#allocation2 + $0x10] sm:$0xff] %v6694_v7  ;;  %v6698_v18 = vsub.f32 %v6662_v28, %v6690_v61 }
 0x6b6   : > { %6703 = vst [vmem:[#allocation2 + $0x18] sm:$0xff] %v6695_v16  ;;  %v6699_v57 = vsub.f32 %v6663_v22, %v6691_v52 }
 0x6b7   : > { %6706 = vst [vmem:[#allocation2 + $0x30] sm:$0xff] %v6698_v18 }
 0x6b8   : > { %6707 = vst [vmem:[#allocation2 + $0x38] sm:$0xff] %v6699_v57  ;;  %v6712_v49 = vld [vmem:[#allocation2] sm:$0xff] (!%p7085_p12) }
 0x6b9   : > { %v6713_v55 = vld [vmem:[#allocation2 + $0x8] sm:$0xff]  ;;  %v6742_v0 = vadd.f32 %v6725_v32, %v6712_v49 }
 0x6ba   : > { %v6716_v63 = vld [vmem:[#allocation2 + $0x20] sm:$0xff]  ;;  %v6743_v36 = vadd.f32 %v6729_v40, %v6713_v55 }
 0x6bb   : > { %v6717_v33 = vld [vmem:[#allocation2 + $0x28] sm:$0xff]  ;;  %v6746_v11 = vadd.f32 %v6725_v32, %v6716_v63 }
 0x6bc   : > { %v6714_v30 = vld [vmem:[#allocation2 + $0x10] sm:$0xff]  ;;  %v6747_v60 = vadd.f32 %v6729_v40, %v6717_v33  ;;  %v7095_v35 = vpack.c.bf16 %v6743_v36, %v6742_v0 }
 0x6bd   : > { %v6715_v10 = vld [vmem:[#allocation2 + $0x18] sm:$0xff]  ;;  %v6744_v19 = vadd.f32 %v6733_v15, %v6714_v30 }
 0x6be   : > { %v6718_v62 = vld [vmem:[#allocation2 + $0x30] sm:$0xff]  ;;  %v6745_v44 = vadd.f32 %v6737_v17, %v6715_v10  ;;  %v7097_v54 = vpack.c.bf16 %v6747_v60, %v6746_v11  ;;  %6774 = vst [vmem:[#allocation4] sm:$0xff] %v7095_v35 }
 0x6bf   : > { %v6719_v8 = vld [vmem:[#allocation2 + $0x38] sm:$0xff]  ;;  %v6748_v9 = vadd.f32 %v6733_v15, %v6718_v62 }
 0x6c0   : > { %v6749_v34 = vadd.f32 %v6737_v17, %v6719_v8  ;;  %v7096_v23 = vpack.c.bf16 %v6745_v44, %v6744_v19  ;;  %6776 = vst [vmem:[#allocation4 + $0x10] sm:$0xff] %v7097_v54 }
 0x6c2   : > { %v7098_v56 = vpack.c.bf16 %v6749_v34, %v6748_v9  ;;  %6775 = vst [vmem:[#allocation4 + $0x8] sm:$0xff] %v7096_v23 }
 0x6c4   : > { %6777 = vst [vmem:[#allocation4 + $0x18] sm:$0xff] %v7098_v56 }
 0x6c5 PF: > { %p12187_p13 = scmp.eq.s32.totalorder %s6912_s23, 1  ;;  %s7357_s11 = smov [#allocation4]  }
 0x6c6   : > { %s6790_s12 = sshll.u32 %s7357_s11, 4  ;;  %s6791_s12 = int_to_ptr.vmem [resolvable:$true] %s6790_s12 }
 0x6c7   : > { %s7284_s13 = scalar_lea.vmem %s6791_s12, 512  ;;  %p7291_p3 = scmp.lt.s32.totalorder %s6791_s12, %s6791_s12 }
 0x6c8   : > { %p7285_p0 = scmp.ne.s32.totalorder %s6791_s12, %s7284_s13  ;;  %p7292_p4 = scmp.lt.s32.totalorder %s7284_s13, %s7284_s13 }
 0x6ca   : > { %p7286_p1 = pnand %p7285_p0, %p12187_p13  ;;  %p7293_p5 = por %p7292_p4, %p7291_p3 }
 0x6cc   : > { %p7287_p2 = pneg %p7286_p1 }
 0x6ce   : > { %p7294_p6 = pnand %p7293_p5, %p7287_p2 }
 0x6d0   : > { %7297 = shalt.err (!%p7294_p6)
}
 0x6d1   : > { %s7298_s23 = scalar_lea.hbm %s12233_s5, 512 }
 0x6d2   : > { %p7299_p7 = scmp.ne.s32.totalorder %s12233_s5, %s7298_s23  ;;  %p7304_p10 = scmp.lt.u32.totalorder %s7298_s23, %s12233_s5 }
 0x6d4   : > { %p7300_p8 = pnand %p7299_p7, %p12187_p13 }
 0x6d6   : > { %p7301_p9 = pneg %p7300_p8 }
 0x6d8   : > { %p7306_p11 = pnand %p7304_p10, %p7301_p9 }
 0x6da   : > { %7309 = shalt.err (!%p7306_p11)
}
 0x6db   : > { %s7358_s28 = smov 256   ;;  %s7359_s29 = smov 16  }
 0x6dc   : > { %7100 = dma.vmem_to_hbm [thread:$0]  (%p12187_p13), %s6791_s12, 512, %s12233_s5, [#allocation5], %s7358_s28, %s7358_s28, %s7359_s29  }
 0x6dd   : > { %7331 = dma.done.wait (%p12187_p13), [#allocation5], 512  }
 0x6de   : > { %7333 = vsyncadd (%p12187_p13), [#allocation5], 4294966784 }
 0x6df PF: > { %s16_s22 = sadd.s32 1, %s7352_s22   ;;  %s13007_s18 = smov %s7340_s19 }
 0x6e0   : > { %p13_p12 = scmp.ge.s32.totalorder %s16_s22, 4   ;;  %s13008_s19 = smov %s7426_s27 }
 0x6e1   : > { %s13009_s20 = smov %s7348_s21  ;;  %s13010_s21 = smov %s13012_s24 }
 0x6e2   :  { %15 = sbr.rel (!%p13_p12) target bundleno = 3 (0x3), region = 130 }
 0x6e9   :  { %6806 = vsyncpa [#allocation5], 1 }
 0x6ea   :  { %6808 = vsyncpa [#allocation5 + $0x1], 1 }

</bundles_post_ra>
